<compile_context>
chip_gen: v6e
topology: v6e:2x2x1
jax: 0.10.0
libtpu: 0.0.40
codegen_flags: <defaults>
</compile_context>

<pallas_src>
import functools

import numpy as np
import jax
import jax.numpy as jnp
from jax.experimental import pallas as pl
from jax.experimental.pallas import tpu as pltpu

BN_EPS = 1e-5
LANE = 128

# MXU-operand dtype: bf16 is the native fast path on v6e/v7x (f32 accumulation
# via preferred_element_type).  Set to jnp.float32 to recover exact torch
# numerics (tighten the test tolerance accordingly).
MATMUL_DTYPE = jnp.bfloat16
# Inter-kernel activation storage dtype in HBM.
ACT_DTYPE = jnp.bfloat16


def _vmem_limit_bytes():
    # v5e/v6e: 128 MiB physical VMEM -> 96 MiB scoped budget; v7x: 64 MiB -> 48.
    cap = 128 * 1024 * 1024
    try:
        cap = int(getattr(pltpu.get_tpu_info(), "vmem_capacity_bytes", cap))
    except Exception:
        pass
    return min(96 * 1024 * 1024, (cap * 3) // 4)


VMEM_LIMIT = _vmem_limit_bytes()


def _cpad(c):
    """Round a channel count up to a lane-dense multiple of 128."""
    return ((c + LANE - 1) // LANE) * LANE


# ---------------------------------------------------------------------------
# Probe: single-buffered constant blocks (pl.Buffered(1)).  Falls back cleanly
# if this build does not accept / lower BlockSpec.pipeline_mode.
# ---------------------------------------------------------------------------
def _probe_copy_kernel(x_ref, o_ref):
    o_ref[...] = x_ref[...]


def _buffered_pipeline_supported():
    try:
        fn = pl.pallas_call(
            _probe_copy_kernel,
            out_shape=jax.ShapeDtypeStruct((8, 128), jnp.float32),
            grid=(2,),
            in_specs=[pl.BlockSpec((8, 128), lambda i: (0, 0),
                                   pipeline_mode=pl.Buffered(1))],
            out_specs=pl.BlockSpec((8, 128), lambda i: (0, 0)))
        jax.block_until_ready(fn(jnp.zeros((8, 128), jnp.float32)))
        return True
    except Exception:
        return False


_USE_BUFFERED = _buffered_pipeline_supported()


def _const_spec(shape, index_map):
    """BlockSpec for a weight/bias block whose index never changes across the
    grid: single-buffer it (double-buffering a revisited block only doubles its
    VMEM footprint — matters for v7x at real ConvNeXt stage-4 shapes)."""
    if _USE_BUFFERED:
        return pl.BlockSpec(shape, index_map, pipeline_mode=pl.Buffered(1))
    return pl.BlockSpec(shape, index_map)


# ---------------------------------------------------------------------------
# In-kernel math helpers
# ---------------------------------------------------------------------------
def _gelu(x):
    # tanh-approximate GELU: the transcendental lands on the EUP slot.
    # TODO(synk): torch nn.GELU() uses exact erf; tanh form deviates <= ~5e-4.
    c = 0.7978845608028654  # sqrt(2/pi)
    return 0.5 * x * (1.0 + jnp.tanh(c * (x + 0.044715 * x * x * x)))


def _default_bn_affine(c):
    # eval-mode BatchNorm2d with default params (weight=1, bias=0,
    # running_mean=0, running_var=1)  ->  y = x / sqrt(1 + eps)
    scale = jnp.full((c,), 1.0 / np.sqrt(1.0 + BN_EPS), jnp.float32)
    shift = jnp.zeros((c,), jnp.float32)
    return scale, shift


# ---------------------------------------------------------------------------
# Kernel 1: M-tiled matmul + bias (stem / downsample patch convs, via im2col)
# ---------------------------------------------------------------------------
def _matmul_bias_kernel(x_ref, w_ref, b_ref, o_ref):
    acc = jnp.dot(x_ref[...], w_ref[...], preferred_element_type=jnp.float32)
    o_ref[...] = (acc + b_ref[...]).astype(o_ref.dtype)


def matmul_bias(x, w, b, out_dtype=ACT_DTYPE):
    m, k = x.shape
    n = w.shape[1]
    # Fixed 512-row tile with a pl.cdiv grid (masked partial last tile) instead
    # of falling back to one giant M-sized tile when M is not 128-divisible.
    tm = 512 if m >= 512 else m
    return pl.pallas_call(
        _matmul_bias_kernel,
        out_shape=jax.ShapeDtypeStruct((m, n), out_dtype),
        grid=(pl.cdiv(m, tm),),
        in_specs=[pl.BlockSpec((tm, k), lambda i: (i, 0)),
                  _const_spec((k, n), lambda i: (0, 0)),
                  _const_spec((1, n), lambda i: (0, 0))],
        out_specs=pl.BlockSpec((tm, n), lambda i: (i, 0)),
        compiler_params=pltpu.CompilerParams(
            dimension_semantics=("parallel",),
            vmem_limit_bytes=VMEM_LIMIT),
    )(x, w, b)


# ---------------------------------------------------------------------------
# Kernel 2: fused ConvNeXt block (one batch element per grid step)
#   7x7 depthwise conv -> (BN folded) 1x1 conv -> GELU -> 1x1 conv (gamma
#   folded) -> residual add.  All affines pre-folded into w1/b1 and w2/b2.
# ---------------------------------------------------------------------------
def _convnext_block_kernel(H, W, x_ref, wdw_ref, w1_ref, b1_ref,
                           w2_ref, b2_ref, o_ref, xpad_ref):
    Cp = x_ref.shape[3]
    PH, PW, _ = xpad_ref.shape
    x = x_ref[0].astype(jnp.float32)               # (H, W, Cp) residual, f32 math

    # Refresh only the thin zero-halo border each step (the interior is fully
    # rewritten below).  Border-per-step (instead of full-scratch-per-step or
    # zero-once-at-step-0) is both cheap and megacore-safe: each TensorCore has
    # its own scratch and may never execute grid step 0.
    xpad_ref[0:3, :, :] = jnp.zeros((3, PW, Cp), jnp.float32)
    xpad_ref[3 + H:PH, :, :] = jnp.zeros((3, PW, Cp), jnp.float32)
    xpad_ref[3:3 + H, 0:8, :] = jnp.zeros((H, 8, Cp), jnp.float32)
    xpad_ref[3:3 + H, 8 + W:PW, :] = jnp.zeros((H, 3, Cp), jnp.float32)
    xpad_ref[3:3 + H, 8:8 + W, :] = x              # interior at sublane offset 8

    # 7x7 depthwise conv, padding=3, groups=C (dwconv bias folded into b1).
    # The W-axis (sublane) shift is hoisted out of the inner loop: one shifted
    # strip per j (7 sublane relayouts instead of 49); the per-i slices are on
    # the leading dim and therefore layout-free.  acc starts from the first tap.
    wdw = wdw_ref[...]
    acc = None
    for j in range(7):
        strip = xpad_ref[:, 5 + j:5 + j + W, :]    # (H+6, W, Cp) shifted strip
        for i in range(7):
            tap = strip[i:i + H] * wdw[i, j:j + 1, :]
            acc = tap if acc is None else acc + tap

    # 1x1 convs on the MXU (bf16 operands, f32 accumulate); eval-BN folded into
    # w1/b1, layer-scale gamma folded into w2/b2.
    y2 = acc.reshape(H * W, Cp).astype(w1_ref.dtype)
    h = jnp.dot(y2, w1_ref[...], preferred_element_type=jnp.float32) + b1_ref[...]
    h = _gelu(h).astype(w2_ref.dtype)
    z = jnp.dot(h, w2_ref[...], preferred_element_type=jnp.float32) + b2_ref[...]
    o_ref[0] = (x + z.reshape(H, W, Cp)).astype(o_ref.dtype)   # DropPath = identity


def convnext_block(x, blk, bn_scale, bn_shift):
    B, H, W, Cp = x.shape
    C = blk['dw_b'].shape[0]
    hid = blk['b1'].shape[0]            # 4*C
    Hp = _cpad(hid)

    # PyTorch weight layouts -> kernel layouts, with all affines folded in.
    wdw = jnp.transpose(blk['dw_w'][:, 0, :, :], (1, 2, 0))     # (C,1,7,7)->(7,7,C)
    w1 = blk['w1'][:, :, 0, 0].T                                 # (4C,C,1,1)->(C,4C)
    w2 = blk['w2'][:, :, 0, 0].T                                 # (C,4C,1,1)->(4C,C)
    w1f = bn_scale[:, None] * w1
    b1f = (blk['dw_b'] * bn_scale + bn_shift) @ w1 + blk['b1']
    w2f = w2 * blk['gamma'][None, :]
    b2f = blk['b2'] * blk['gamma']

    # Zero-pad to lane-dense channel dims; cast matmul weights to bf16 on the
    # host so the kernels carry no weight .astype pass.  Biases stay f32.
    wdw = jnp.pad(wdw, ((0, 0), (0, 0), (0, Cp - C)))                       # f32
    w1f = jnp.pad(w1f, ((0, Cp - C), (0, Hp - hid))).astype(MATMUL_DTYPE)
    b1f = jnp.pad(b1f, (0, Hp - hid)).reshape(1, Hp)
    w2f = jnp.pad(w2f, ((0, Hp - hid), (0, Cp - C))).astype(MATMUL_DTYPE)
    b2f = jnp.pad(b2f, (0, Cp - C)).reshape(1, Cp)

    # TODO(synk): for real ConvNeXt resolutions (e.g. 56x56x96) add a row-tiled
    # grid axis (8-16 output rows per step with a 6-row halo) so the (rows*W,4C)
    # hidden activation and per-step VMEM stay bounded (required under v7x's
    # 64 MiB VMEM); at these small shapes one image per grid step fits easily.
    return pl.pallas_call(
        functools.partial(_convnext_block_kernel, H, W),
        out_shape=jax.ShapeDtypeStruct((B, H, W, Cp), x.dtype),
        grid=(B,),
        in_specs=[
            pl.BlockSpec((1, H, W, Cp), lambda b: (b, 0, 0, 0)),
            _const_spec((7, 7, Cp), lambda b: (0, 0, 0)),
            _const_spec((Cp, Hp), lambda b: (0, 0)),
            _const_spec((1, Hp), lambda b: (0, 0)),
            _const_spec((Hp, Cp), lambda b: (0, 0)),
            _const_spec((1, Cp), lambda b: (0, 0)),
        ],
        out_specs=pl.BlockSpec((1, H, W, Cp), lambda b: (b, 0, 0, 0)),
        scratch_shapes=[pltpu.VMEM((H + 6, W + 11, Cp), jnp.float32)],
        compiler_params=pltpu.CompilerParams(
            dimension_semantics=("parallel",),
            vmem_limit_bytes=VMEM_LIMIT),
    )(x, wdw, w1f, b1f, w2f, b2f)


# ---------------------------------------------------------------------------
# Kernel 3: fused final BatchNorm (folded) + global average pool + head linear
# ---------------------------------------------------------------------------
def _mean_head_kernel(x_ref, w_ref, b_ref, o_ref):
    m = jnp.mean(x_ref[...].astype(jnp.float32), axis=1)     # (B, Cp) spatial mean
    o_ref[...] = jnp.dot(m.astype(w_ref.dtype), w_ref[...],
                         preferred_element_type=jnp.float32) + b_ref[...]


def mean_head(x, w, b):
    B = x.shape[0]
    n = w.shape[1]
    return pl.pallas_call(
        _mean_head_kernel,
        out_shape=jax.ShapeDtypeStruct((B, n), jnp.float32),
        compiler_params=pltpu.CompilerParams(vmem_limit_bytes=VMEM_LIMIT),
    )(x, w, b)


# ---------------------------------------------------------------------------
# Glue: im2col for the strided (non-overlapping) convs, with affines folded
# ---------------------------------------------------------------------------
def _extract_patches(x, k):
    # (B, H, W, C) -> (B*(H//k)*(W//k), C*k*k); flat patch order (c, ki, kj),
    # matching PyTorch Conv2d weight.reshape(Cout, Cin*k*k).
    B, H, W, C = x.shape
    x = x.reshape(B, H // k, k, W // k, k, C)
    x = jnp.transpose(x, (0, 1, 3, 5, 2, 4))
    return x.reshape(B * (H // k) * (W // k), C * k * k)


def patch_conv(x, w, b, k, pre_scale=None, pre_shift=None,
               post_scale=None, post_shift=None, out_cpad=None):
    """Strided conv (kernel=stride=k) as an im2col matmul.  Optional pre/post
    per-channel eval-BatchNorm affines are folded into the weight/bias:
        ((x*s0+t0) @ W + b) * s1 + t1  ==  x @ (diag(s0) W diag(s1)) + b'."""
    # TODO(synk): fold the kxk patch gather into the Pallas kernel (row-block
    # input BlockSpec + in-VMEM gather) to remove the XLA transpose's extra HBM
    # round trip of the activation; host-side im2col kept here for simplicity.
    B, H, W, cin_eff = x.shape            # cin_eff may be channel-padded
    cout, cin = w.shape[0], w.shape[1]    # real sizes from the torch weight
    patches = _extract_patches(x, k)
    wmat = w.reshape(cout, cin * k * k).T.astype(jnp.float32)   # (cin*k*k, cout)
    bvec = b.astype(jnp.float32)
    if pre_scale is not None:             # BN acts per input channel -> repeat k*k
        bvec = bvec + jnp.repeat(pre_shift, k * k) @ wmat
        wmat = jnp.repeat(pre_scale, k * k)[:, None] * wmat
    if post_scale is not None:
        bvec = bvec * post_scale + post_shift
        wmat = wmat * post_scale[None, :]
    # Zero-pad: rows to the channel-padded im2col width AND to a lane-dense
    # (multiple-of-128) K (stem K=16 -> 128); columns to a lane-dense output
    # channel count.  Cast the matmul weight to bf16 on the host.
    n_out = out_cpad if out_cpad is not None else cout
    k_eff = cin_eff * k * k
    k_pad = _cpad(k_eff)
    wmat = jnp.pad(wmat, ((0, k_pad - cin * k * k),
                          (0, n_out - cout))).astype(MATMUL_DTYPE)
    bvec = jnp.pad(bvec, (0, n_out - cout))
    if k_pad != k_eff:
        patches = jnp.pad(patches, ((0, 0), (0, k_pad - k_eff)))
    y = matmul_bias(patches, wmat, bvec.reshape(1, n_out))
    return y.reshape(B, H // k, W // k, n_out)


# ---------------------------------------------------------------------------
# Full forward
# ---------------------------------------------------------------------------
def convnext2d_forward(x, params, dims, depths):
    if x.ndim == 3:                    # torch: unsqueeze channel dim
        x = x[:, None, :, :]
    # NCHW -> NHWC; activations travel between kernels in bf16 (HBM-bandwidth).
    x = jnp.transpose(x, (0, 2, 3, 1)).astype(ACT_DTYPE)
    for i in range(4):
        if i == 0:   # stem: Conv(k=4, s=4) then BN
            s, t = _default_bn_affine(dims[0])
            x = patch_conv(x, params['stem']['w'], params['stem']['b'], 4,
                           post_scale=s, post_shift=t, out_cpad=_cpad(dims[0]))
        else:        # downsample: BN then Conv(k=2, s=2)
            s, t = _default_bn_affine(dims[i - 1])
            x = patch_conv(x, params['down'][i]['w'], params['down'][i]['b'], 2,
                           pre_scale=s, pre_shift=t, out_cpad=_cpad(dims[i]))
        s, t = _default_bn_affine(dims[i])
        for blk in params['blocks'][i]:
            x = convnext_block(x, blk, s, t)

    # final BatchNorm + global average pool + head (BN folded into the head
    # weight/bias; a per-channel affine commutes with the spatial mean).  Head
    # output is padded to 128 classes for a lane-dense store, sliced after.
    B, Hs, Ws, Cp = x.shape
    C = dims[-1]
    ncls = params['head']['w'].shape[0]
    ncls_p = _cpad(ncls)
    s, t = _default_bn_affine(C)
    w_head = params['head']['w'].astype(jnp.float32)          # (ncls, C)
    b_head = params['head']['b'].astype(jnp.float32)
    whf = jnp.pad(s[:, None] * w_head.T,
                  ((0, Cp - C), (0, ncls_p - ncls))).astype(MATMUL_DTYPE)
    bhf = jnp.pad(t @ w_head.T + b_head, (0, ncls_p - ncls))
    logits = mean_head(x.reshape(B, Hs * Ws, Cp), whf, bhf.reshape(1, ncls_p))
    return logits[:, :ncls]


# ---------------------------------------------------------------------------
# Deterministic synthetic parameters (shapes follow the PyTorch __init__)
# ---------------------------------------------------------------------------
def init_params(key, in_chans, dims, depths, num_classes,
                layer_scale_init_value, head_init_scale, std=0.2):
    # NOTE: torch uses trunc_normal_(std=0.02); we use std=0.2 so activations
    # are O(1) for a meaningful numeric check — forward semantics unchanged.
    def tn(k, shape):
        return std * jax.random.truncated_normal(k, -2.0, 2.0, shape, jnp.float32)

    n_blocks = sum(depths)
    keys = iter(jax.random.split(key, 16 + 3 * n_blocks))
    params = {
        'stem': {'w': tn(next(keys), (dims[0], in_chans, 4, 4)),
                 'b': jnp.zeros((dims[0],), jnp.float32)},
        'down': {},
        'blocks': [],
        'head': {},
    }
    for i in range(1, 4):
        params['down'][i] = {'w': tn(next(keys), (dims[i], dims[i - 1], 2, 2)),
                             'b': jnp.zeros((dims[i],), jnp.float32)}
    for i in range(4):
        stage = []
        for _ in range(depths[i]):
            C = dims[i]
            stage.append({
                'dw_w': tn(next(keys), (C, 1, 7, 7)),
                'dw_b': jnp.zeros((C,), jnp.float32),
                'w1': tn(next(keys), (4 * C, C, 1, 1)),
                'b1': jnp.zeros((4 * C,), jnp.float32),
                'w2': tn(next(keys), (C, 4 * C, 1, 1)),
                'b2': jnp.zeros((C,), jnp.float32),
                'gamma': layer_scale_init_value * jnp.ones((C,), jnp.float32),
            })
        params['blocks'].append(stage)
    params['head'] = {'w': tn(next(keys), (num_classes, dims[-1])) * head_init_scale,
                      'b': jnp.zeros((num_classes,), jnp.float32) * head_init_scale}
    return params


# ---------------------------------------------------------------------------
# Pure-JAX reference (mirrors the PyTorch ops via lax.conv) for validation
# ---------------------------------------------------------------------------
def reference_forward(x, params, dims, depths):
    if x.ndim == 3:
        x = x[:, None, :, :]
    x = x.astype(jnp.float32)
    bn = lambda v: v * (1.0 / np.sqrt(1.0 + BN_EPS))   # default-stat eval BN

    def conv(v, w, b, stride, padding, groups=1):
        y = jax.lax.conv_general_dilated(
            v, w, (stride, stride), padding,
            feature_group_count=groups,
            dimension_numbers=('NCHW', 'OIHW', 'NCHW'))
        return y + b[None, :, None, None]

    for i in range(4):
        if i == 0:
            x = bn(conv(x, params['stem']['w'], params['stem']['b'], 4, 'VALID'))
        else:
            x = conv(bn(x), params['down'][i]['w'], params['down'][i]['b'], 2, 'VALID')
        for blk in params['blocks'][i]:
            inp = x
            x = conv(x, blk['dw_w'], blk['dw_b'], 1, [(3, 3), (3, 3)], groups=dims[i])
            x = bn(x)
            x = conv(x, blk['w1'], blk['b1'], 1, 'VALID')
            x = jax.nn.gelu(x, approximate=False)       # torch nn.GELU (exact erf)
            x = conv(x, blk['w2'], blk['b2'], 1, 'VALID')
            x = blk['gamma'][None, :, None, None] * x
            x = inp + x
    x = bn(x)
    feat = x.mean(axis=(2, 3))
    return feat @ params['head']['w'].T + params['head']['b']


# ---------------------------------------------------------------------------
if __name__ == "__main__":
    key = jax.random.PRNGKey(0)
    kp, kx = jax.random.split(key)

    # Small synthetic config (constructor-compatible): dims/depths scaled down.
    in_chans, num_classes = 1, 10
    depths = [1, 1, 2, 1]
    dims = [8, 16, 32, 64]
    layer_scale_init_value = 0.5

    params = init_params(kp, in_chans, dims, depths, num_classes,
                         layer_scale_init_value, head_init_scale=1.0)
    x = jax.random.normal(kx, (2, 1, 32, 32), jnp.float32)   # NCHW, like torch

    fwd = jax.jit(functools.partial(convnext2d_forward, dims=dims, depths=depths))
    out = jax.block_until_ready(fwd(x, params))

    ref = jax.block_until_ready(reference_forward(x, params, dims, depths))
    assert out.shape == (2, num_classes), out.shape

    out_np, ref_np = np.asarray(out), np.asarray(ref)
    # The reference is exact-erf / f32.  The kernel path uses bf16 activation
    # storage + bf16 MXU operands (f32 accumulate) + tanh-approx GELU, so we
    # check relative error against the logit scale.
    rel = float(np.max(np.abs(out_np - ref_np)) / (np.max(np.abs(ref_np)) + 1e-6))
    if rel > 0.08:
        raise AssertionError(f"Pallas output mismatch vs reference, rel err={rel}")
    print("KERNEL_OK")
</pallas_src>

<mosaic_0001>
module attributes {stable_mosaic.version = 11 : i64} {
  func.func @_probe_copy_kernel(%arg0: i32, %arg1: memref<8x128xf32, #tpu.memory_space<vmem>>, %arg2: memref<8x128xf32, #tpu.memory_space<vmem>>) attributes {dimension_semantics = [#tpu.dimension_semantics<arbitrary>], iteration_bounds = array<i64: 2>, scalar_prefetch = 0 : i64, scratch_operands = 0 : i64, tpu.core_type = #tpu.core_type<tc>, window_params = [{pipeline_mode = #tpu.pipeline_mode<synchronous>, transform_indices = @transform_0, window_bounds = array<i64: 8, 128>}, {pipeline_mode = #tpu.pipeline_mode<synchronous>, transform_indices = @transform_1, window_bounds = array<i64: 8, 128>}]} {
    %c0 = arith.constant 0 : index
    %c0_0 = arith.constant 0 : index
    %0 = vector.load %arg1[%c0, %c0_0] : memref<8x128xf32, #tpu.memory_space<vmem>>, vector<8x128xf32>
    %c0_1 = arith.constant 0 : index
    %c0_2 = arith.constant 0 : index
    %1 = vector.load %arg2[%c0_1, %c0_2] : memref<8x128xf32, #tpu.memory_space<vmem>>, vector<8x128xf32>
    tpu.vector_store %arg2[%c0_1, %c0_2], %0 {strides = array<i32>} : memref<8x128xf32, #tpu.memory_space<vmem>>, vector<8x128xf32>,
    return
  }
  func.func @transform_0(%arg0: i32) -> (i32, i32) {
    %c0_i32 = arith.constant 0 : i32
    %c0_i32_0 = arith.constant 0 : i32
    %c0_i32_1 = arith.constant 0 : i32
    return %c0_i32, %c0_i32_0 : i32, i32
  }
  func.func @transform_1(%arg0: i32) -> (i32, i32) {
    %c0_i32 = arith.constant 0 : i32
    %c0_i32_0 = arith.constant 0 : i32
    %c0_i32_1 = arith.constant 0 : i32
    return %c0_i32, %c0_i32_0 : i32, i32
  }
}

module attributes {stable_mosaic.version = 11 : i64} {
  func.func @_matmul_bias_kernel(%arg0: i32, %arg1: memref<128x128xbf16, #tpu.memory_space<vmem>>, %arg2: memref<128x128xbf16, #tpu.memory_space<vmem>>, %arg3: memref<1x128xf32, #tpu.memory_space<vmem>>, %arg4: memref<128x128xbf16, #tpu.memory_space<vmem>>) attributes {dimension_semantics = [#tpu.dimension_semantics<parallel>], iteration_bounds = array<i64: 1>, scalar_prefetch = 0 : i64, scratch_operands = 0 : i64, tpu.core_type = #tpu.core_type<tc>, window_params = [{transform_indices = @transform_0, window_bounds = array<i64: 128, 128>}, {pipeline_mode = #tpu.pipeline_mode<synchronous>, transform_indices = @transform_1, window_bounds = array<i64: 128, 128>}, {pipeline_mode = #tpu.pipeline_mode<synchronous>, transform_indices = @transform_2, window_bounds = array<i64: 1, 128>}, {transform_indices = @transform_3, window_bounds = array<i64: 128, 128>}]} {
    %c0 = arith.constant 0 : index
    %c0_0 = arith.constant 0 : index
    %0 = vector.load %arg1[%c0, %c0_0] : memref<128x128xbf16, #tpu.memory_space<vmem>>, vector<128x128xbf16>
    %c0_1 = arith.constant 0 : index
    %c0_2 = arith.constant 0 : index
    %1 = vector.load %arg2[%c0_1, %c0_2] : memref<128x128xbf16, #tpu.memory_space<vmem>>, vector<128x128xbf16>
    %cst = arith.constant dense<0.000000e+00> : vector<128x128xf32>
    %2 = tpu.matmul %0, %1, %cst {dimension_numbers = #tpu.dot_dimension_numbers<[1], [0], [0], [1], [0, 0, 1, 1], [], []>} : vector<128x128xbf16>, vector<128x128xbf16>, vector<128x128xf32> -> vector<128x128xf32>
    %c0_3 = arith.constant 0 : index
    %c0_4 = arith.constant 0 : index
    %3 = vector.load %arg3[%c0_3, %c0_4] : memref<1x128xf32, #tpu.memory_space<vmem>>, vector<1x128xf32>
    %4 = vector.broadcast %3 : vector<1x128xf32> to vector<128x128xf32>
    %5 = arith.addf %2, %4 : vector<128x128xf32>
    %6 = arith.truncf %5 : vector<128x128xf32> to vector<128x128xbf16>
    %c0_5 = arith.constant 0 : index
    %c0_6 = arith.constant 0 : index
    %7 = vector.load %arg4[%c0_5, %c0_6] : memref<128x128xbf16, #tpu.memory_space<vmem>>, vector<128x128xbf16>
    tpu.vector_store %arg4[%c0_5, %c0_6], %6 {strides = array<i32>} : memref<128x128xbf16, #tpu.memory_space<vmem>>, vector<128x128xbf16>,
    return
  }
  func.func @transform_0(%arg0: i32) -> (i32, i32) {
    %c0_i32 = arith.constant 0 : i32
    %c0_i32_0 = arith.constant 0 : i32
    return %arg0, %c0_i32 : i32, i32
  }
  func.func @transform_1(%arg0: i32) -> (i32, i32) {
    %c0_i32 = arith.constant 0 : i32
    %c0_i32_0 = arith.constant 0 : i32
    %c0_i32_1 = arith.constant 0 : i32
    return %c0_i32, %c0_i32_0 : i32, i32
  }
  func.func @transform_2(%arg0: i32) -> (i32, i32) {
    %c0_i32 = arith.constant 0 : i32
    %c0_i32_0 = arith.constant 0 : i32
    %c0_i32_1 = arith.constant 0 : i32
    return %c0_i32, %c0_i32_0 : i32, i32
  }
  func.func @transform_3(%arg0: i32) -> (i32, i32) {
    %c0_i32 = arith.constant 0 : i32
    %c0_i32_0 = arith.constant 0 : i32
    return %arg0, %c0_i32 : i32, i32
  }
}

module attributes {stable_mosaic.version = 11 : i64} {
  func.func @_convnext_block_kernel(%arg0: i32, %arg1: memref<1x8x8x128xbf16, #tpu.memory_space<vmem>>, %arg2: memref<7x7x128xf32, #tpu.memory_space<vmem>>, %arg3: memref<128x128xbf16, #tpu.memory_space<vmem>>, %arg4: memref<1x128xf32, #tpu.memory_space<vmem>>, %arg5: memref<128x128xbf16, #tpu.memory_space<vmem>>, %arg6: memref<1x128xf32, #tpu.memory_space<vmem>>, %arg7: memref<1x8x8x128xbf16, #tpu.memory_space<vmem>>, %arg8: memref<14x19x128xf32, #tpu.memory_space<vmem>>) attributes {dimension_semantics = [#tpu.dimension_semantics<parallel>], iteration_bounds = array<i64: 2>, scalar_prefetch = 0 : i64, scratch_operands = 1 : i64, tpu.core_type = #tpu.core_type<tc>, window_params = [{transform_indices = @transform_0, window_bounds = array<i64: 1, 8, 8, 128>}, {pipeline_mode = #tpu.pipeline_mode<synchronous>, transform_indices = @transform_1, window_bounds = array<i64: 7, 7, 128>}, {pipeline_mode = #tpu.pipeline_mode<synchronous>, transform_indices = @transform_2, window_bounds = array<i64: 128, 128>}, {pipeline_mode = #tpu.pipeline_mode<synchronous>, transform_indices = @transform_3, window_bounds = array<i64: 1, 128>}, {pipeline_mode = #tpu.pipeline_mode<synchronous>, transform_indices = @transform_4, window_bounds = array<i64: 128, 128>}, {pipeline_mode = #tpu.pipeline_mode<synchronous>, transform_indices = @transform_5, window_bounds = array<i64: 1, 128>}, {transform_indices = @transform_6, window_bounds = array<i64: 1, 8, 8, 128>}]} {
    %c0 = arith.constant 0 : index
    %c0_0 = arith.constant 0 : index
    %c0_1 = arith.constant 0 : index
    %c0_2 = arith.constant 0 : index
    %0 = vector.load %arg1[%c0, %c0_0, %c0_1, %c0_2] : memref<1x8x8x128xbf16, #tpu.memory_space<vmem>>, vector<1x8x8x128xbf16>
    %1 = vector.shape_cast %0 : vector<1x8x8x128xbf16> to vector<8x8x128xbf16>
    %2 = arith.extf %1 : vector<8x8x128xbf16> to vector<8x8x128xf32>
    %cst = arith.constant 0.000000e+00 : f32
    %3 = vector.broadcast %cst : f32 to vector<3x19x128xf32>
    %c0_3 = arith.constant 0 : index
    %c0_4 = arith.constant 0 : index
    %c0_5 = arith.constant 0 : index
    %4 = vector.load %arg8[%c0_3, %c0_4, %c0_5] : memref<14x19x128xf32, #tpu.memory_space<vmem>>, vector<3x19x128xf32>
    tpu.vector_store %arg8[%c0_3, %c0_4, %c0_5], %3 {strides = array<i32>} : memref<14x19x128xf32, #tpu.memory_space<vmem>>, vector<3x19x128xf32>,
    %cst_6 = arith.constant 0.000000e+00 : f32
    %5 = vector.broadcast %cst_6 : f32 to vector<3x19x128xf32>
    %c11 = arith.constant 11 : index
    %c0_7 = arith.constant 0 : index
    %c0_8 = arith.constant 0 : index
    %6 = vector.load %arg8[%c11, %c0_7, %c0_8] : memref<14x19x128xf32, #tpu.memory_space<vmem>>, vector<3x19x128xf32>
    tpu.vector_store %arg8[%c11, %c0_7, %c0_8], %5 {strides = array<i32>} : memref<14x19x128xf32, #tpu.memory_space<vmem>>, vector<3x19x128xf32>,
    %cst_9 = arith.constant 0.000000e+00 : f32
    %7 = vector.broadcast %cst_9 : f32 to vector<8x8x128xf32>
    %c3 = arith.constant 3 : index
    %c0_10 = arith.constant 0 : index
    %c0_11 = arith.constant 0 : index
    %8 = vector.load %arg8[%c3, %c0_10, %c0_11] : memref<14x19x128xf32, #tpu.memory_space<vmem>>, vector<8x8x128xf32>
    tpu.vector_store %arg8[%c3, %c0_10, %c0_11], %7 {strides = array<i32>} : memref<14x19x128xf32, #tpu.memory_space<vmem>>, vector<8x8x128xf32>,
    %cst_12 = arith.constant 0.000000e+00 : f32
    %9 = vector.broadcast %cst_12 : f32 to vector<8x3x128xf32>
    %c3_13 = arith.constant 3 : index
    %c16 = arith.constant 16 : index
    %c0_14 = arith.constant 0 : index
    %10 = vector.load %arg8[%c3_13, %c16, %c0_14] : memref<14x19x128xf32, #tpu.memory_space<vmem>>, vector<8x3x128xf32>
    tpu.vector_store %arg8[%c3_13, %c16, %c0_14], %9 {strides = array<i32>} : memref<14x19x128xf32, #tpu.memory_space<vmem>>, vector<8x3x128xf32>,
    %c3_15 = arith.constant 3 : index
    %c8 = arith.constant 8 : index
    %c0_16 = arith.constant 0 : index
    %11 = vector.load %arg8[%c3_15, %c8, %c0_16] : memref<14x19x128xf32, #tpu.memory_space<vmem>>, vector<8x8x128xf32>
    tpu.vector_store %arg8[%c3_15, %c8, %c0_16], %2 {strides = array<i32>} : memref<14x19x128xf32, #tpu.memory_space<vmem>>, vector<8x8x128xf32>,
    %c0_17 = arith.constant 0 : index
    %c0_18 = arith.constant 0 : index
    %c0_19 = arith.constant 0 : index
    %12 = vector.load %arg2[%c0_17, %c0_18, %c0_19] : memref<7x7x128xf32, #tpu.memory_space<vmem>>, vector<7x7x128xf32>
    %c0_20 = arith.constant 0 : index
    %c5 = arith.constant 5 : index
    %c0_21 = arith.constant 0 : index
    %13 = vector.load %arg8[%c0_20, %c5, %c0_21] : memref<14x19x128xf32, #tpu.memory_space<vmem>>, vector<14x8x128xf32>
    %14 = vector.extract_strided_slice %13 {offsets = [0, 0, 0], sizes = [8, 8, 128], strides = [1, 1, 1]} : vector<14x8x128xf32> to vector<8x8x128xf32>
    %15 = vector.extract_strided_slice %12 {offsets = [0, 0, 0], sizes = [1, 1, 128], strides = [1, 1, 1]} : vector<7x7x128xf32> to vector<1x1x128xf32>
    %16 = vector.shape_cast %15 : vector<1x1x128xf32> to vector<1x128xf32>
    %17 = vector.shape_cast %16 : vector<1x128xf32> to vector<1x1x128xf32>
    %18 = vector.broadcast %17 : vector<1x1x128xf32> to vector<8x8x128xf32>
    %19 = arith.mulf %14, %18 : vector<8x8x128xf32>
    %20 = vector.extract_strided_slice %13 {offsets = [1, 0, 0], sizes = [8, 8, 128], strides = [1, 1, 1]} : vector<14x8x128xf32> to vector<8x8x128xf32>
    %21 = vector.extract_strided_slice %12 {offsets = [1, 0, 0], sizes = [1, 1, 128], strides = [1, 1, 1]} : vector<7x7x128xf32> to vector<1x1x128xf32>
    %22 = vector.shape_cast %21 : vector<1x1x128xf32> to vector<1x128xf32>
    %23 = vector.shape_cast %22 : vector<1x128xf32> to vector<1x1x128xf32>
    %24 = vector.broadcast %23 : vector<1x1x128xf32> to vector<8x8x128xf32>
    %25 = arith.mulf %20, %24 : vector<8x8x128xf32>
    %26 = arith.addf %19, %25 : vector<8x8x128xf32>
    %27 = vector.extract_strided_slice %13 {offsets = [2, 0, 0], sizes = [8, 8, 128], strides = [1, 1, 1]} : vector<14x8x128xf32> to vector<8x8x128xf32>
    %28 = vector.extract_strided_slice %12 {offsets = [2, 0, 0], sizes = [1, 1, 128], strides = [1, 1, 1]} : vector<7x7x128xf32> to vector<1x1x128xf32>
    %29 = vector.shape_cast %28 : vector<1x1x128xf32> to vector<1x128xf32>
    %30 = vector.shape_cast %29 : vector<1x128xf32> to vector<1x1x128xf32>
    %31 = vector.broadcast %30 : vector<1x1x128xf32> to vector<8x8x128xf32>
    %32 = arith.mulf %27, %31 : vector<8x8x128xf32>
    %33 = arith.addf %26, %32 : vector<8x8x128xf32>
    %34 = vector.extract_strided_slice %13 {offsets = [3, 0, 0], sizes = [8, 8, 128], strides = [1, 1, 1]} : vector<14x8x128xf32> to vector<8x8x128xf32>
    %35 = vector.extract_strided_slice %12 {offsets = [3, 0, 0], sizes = [1, 1, 128], strides = [1, 1, 1]} : vector<7x7x128xf32> to vector<1x1x128xf32>
    %36 = vector.shape_cast %35 : vector<1x1x128xf32> to vector<1x128xf32>
    %37 = vector.shape_cast %36 : vector<1x128xf32> to vector<1x1x128xf32>
    %38 = vector.broadcast %37 : vector<1x1x128xf32> to vector<8x8x128xf32>
    %39 = arith.mulf %34, %38 : vector<8x8x128xf32>
    %40 = arith.addf %33, %39 : vector<8x8x128xf32>
    %41 = vector.extract_strided_slice %13 {offsets = [4, 0, 0], sizes = [8, 8, 128], strides = [1, 1, 1]} : vector<14x8x128xf32> to vector<8x8x128xf32>
    %42 = vector.extract_strided_slice %12 {offsets = [4, 0, 0], sizes = [1, 1, 128], strides = [1, 1, 1]} : vector<7x7x128xf32> to vector<1x1x128xf32>
    %43 = vector.shape_cast %42 : vector<1x1x128xf32> to vector<1x128xf32>
    %44 = vector.shape_cast %43 : vector<1x128xf32> to vector<1x1x128xf32>
    %45 = vector.broadcast %44 : vector<1x1x128xf32> to vector<8x8x128xf32>
    %46 = arith.mulf %41, %45 : vector<8x8x128xf32>
    %47 = arith.addf %40, %46 : vector<8x8x128xf32>
    %48 = vector.extract_strided_slice %13 {offsets = [5, 0, 0], sizes = [8, 8, 128], strides = [1, 1, 1]} : vector<14x8x128xf32> to vector<8x8x128xf32>
    %49 = vector.extract_strided_slice %12 {offsets = [5, 0, 0], sizes = [1, 1, 128], strides = [1, 1, 1]} : vector<7x7x128xf32> to vector<1x1x128xf32>
    %50 = vector.shape_cast %49 : vector<1x1x128xf32> to vector<1x128xf32>
    %51 = vector.shape_cast %50 : vector<1x128xf32> to vector<1x1x128xf32>
    %52 = vector.broadcast %51 : vector<1x1x128xf32> to vector<8x8x128xf32>
    %53 = arith.mulf %48, %52 : vector<8x8x128xf32>
    %54 = arith.addf %47, %53 : vector<8x8x128xf32>
    %55 = vector.extract_strided_slice %13 {offsets = [6, 0, 0], sizes = [8, 8, 128], strides = [1, 1, 1]} : vector<14x8x128xf32> to vector<8x8x128xf32>
    %56 = vector.extract_strided_slice %12 {offsets = [6, 0, 0], sizes = [1, 1, 128], strides = [1, 1, 1]} : vector<7x7x128xf32> to vector<1x1x128xf32>
    %57 = vector.shape_cast %56 : vector<1x1x128xf32> to vector<1x128xf32>
    %58 = vector.shape_cast %57 : vector<1x128xf32> to vector<1x1x128xf32>
    %59 = vector.broadcast %58 : vector<1x1x128xf32> to vector<8x8x128xf32>
    %60 = arith.mulf %55, %59 : vector<8x8x128xf32>
    %61 = arith.addf %54, %60 : vector<8x8x128xf32>
    %c0_22 = arith.constant 0 : index
    %c6 = arith.constant 6 : index
    %c0_23 = arith.constant 0 : index
    %62 = vector.load %arg8[%c0_22, %c6, %c0_23] : memref<14x19x128xf32, #tpu.memory_space<vmem>>, vector<14x8x128xf32>
    %63 = vector.extract_strided_slice %62 {offsets = [0, 0, 0], sizes = [8, 8, 128], strides = [1, 1, 1]} : vector<14x8x128xf32> to vector<8x8x128xf32>
    %64 = vector.extract_strided_slice %12 {offsets = [0, 1, 0], sizes = [1, 1, 128], strides = [1, 1, 1]} : vector<7x7x128xf32> to vector<1x1x128xf32>
    %65 = vector.shape_cast %64 : vector<1x1x128xf32> to vector<1x128xf32>
    %66 = vector.shape_cast %65 : vector<1x128xf32> to vector<1x1x128xf32>
    %67 = vector.broadcast %66 : vector<1x1x128xf32> to vector<8x8x128xf32>
    %68 = arith.mulf %63, %67 : vector<8x8x128xf32>
    %69 = arith.addf %61, %68 : vector<8x8x128xf32>
    %70 = vector.extract_strided_slice %62 {offsets = [1, 0, 0], sizes = [8, 8, 128], strides = [1, 1, 1]} : vector<14x8x128xf32> to vector<8x8x128xf32>
    %71 = vector.extract_strided_slice %12 {offsets = [1, 1, 0], sizes = [1, 1, 128], strides = [1, 1, 1]} : vector<7x7x128xf32> to vector<1x1x128xf32>
    %72 = vector.shape_cast %71 : vector<1x1x128xf32> to vector<1x128xf32>
    %73 = vector.shape_cast %72 : vector<1x128xf32> to vector<1x1x128xf32>
    %74 = vector.broadcast %73 : vector<1x1x128xf32> to vector<8x8x128xf32>
    %75 = arith.mulf %70, %74 : vector<8x8x128xf32>
    %76 = arith.addf %69, %75 : vector<8x8x128xf32>
    %77 = vector.extract_strided_slice %62 {offsets = [2, 0, 0], sizes = [8, 8, 128], strides = [1, 1, 1]} : vector<14x8x128xf32> to vector<8x8x128xf32>
    %78 = vector.extract_strided_slice %12 {offsets = [2, 1, 0], sizes = [1, 1, 128], strides = [1, 1, 1]} : vector<7x7x128xf32> to vector<1x1x128xf32>
    %79 = vector.shape_cast %78 : vector<1x1x128xf32> to vector<1x128xf32>
    %80 = vector.shape_cast %79 : vector<1x128xf32> to vector<1x1x128xf32>
    %81 = vector.broadcast %80 : vector<1x1x128xf32> to vector<8x8x128xf32>
    %82 = arith.mulf %77, %81 : vector<8x8x128xf32>
    %83 = arith.addf %76, %82 : vector<8x8x128xf32>
    %84 = vector.extract_strided_slice %62 {offsets = [3, 0, 0], sizes = [8, 8, 128], strides = [1, 1, 1]} : vector<14x8x128xf32> to vector<8x8x128xf32>
    %85 = vector.extract_strided_slice %12 {offsets = [3, 1, 0], sizes = [1, 1, 128], strides = [1, 1, 1]} : vector<7x7x128xf32> to vector<1x1x128xf32>
    %86 = vector.shape_cast %85 : vector<1x1x128xf32> to vector<1x128xf32>
    %87 = vector.shape_cast %86 : vector<1x128xf32> to vector<1x1x128xf32>
    %88 = vector.broadcast %87 : vector<1x1x128xf32> to vector<8x8x128xf32>
    %89 = arith.mulf %84, %88 : vector<8x8x128xf32>
    %90 = arith.addf %83, %89 : vector<8x8x128xf32>
    %91 = vector.extract_strided_slice %62 {offsets = [4, 0, 0], sizes = [8, 8, 128], strides = [1, 1, 1]} : vector<14x8x128xf32> to vector<8x8x128xf32>
    %92 = vector.extract_strided_slice %12 {offsets = [4, 1, 0], sizes = [1, 1, 128], strides = [1, 1, 1]} : vector<7x7x128xf32> to vector<1x1x128xf32>
    %93 = vector.shape_cast %92 : vector<1x1x128xf32> to vector<1x128xf32>
    %94 = vector.shape_cast %93 : vector<1x128xf32> to vector<1x1x128xf32>
    %95 = vector.broadcast %94 : vector<1x1x128xf32> to vector<8x8x128xf32>
    %96 = arith.mulf %91, %95 : vector<8x8x128xf32>
    %97 = arith.addf %90, %96 : vector<8x8x128xf32>
    %98 = vector.extract_strided_slice %62 {offsets = [5, 0, 0], sizes = [8, 8, 128], strides = [1, 1, 1]} : vector<14x8x128xf32> to vector<8x8x128xf32>
    %99 = vector.extract_strided_slice %12 {offsets = [5, 1, 0], sizes = [1, 1, 128], strides = [1, 1, 1]} : vector<7x7x128xf32> to vector<1x1x128xf32>
    %100 = vector.shape_cast %99 : vector<1x1x128xf32> to vector<1x128xf32>
    %101 = vector.shape_cast %100 : vector<1x128xf32> to vector<1x1x128xf32>
    %102 = vector.broadcast %101 : vector<1x1x128xf32> to vector<8x8x128xf32>
    %103 = arith.mulf %98, %102 : vector<8x8x128xf32>
    %104 = arith.addf %97, %103 : vector<8x8x128xf32>
    %105 = vector.extract_strided_slice %62 {offsets = [6, 0, 0], sizes = [8, 8, 128], strides = [1, 1, 1]} : vector<14x8x128xf32> to vector<8x8x128xf32>
    %106 = vector.extract_strided_slice %12 {offsets = [6, 1, 0], sizes = [1, 1, 128], strides = [1, 1, 1]} : vector<7x7x128xf32> to vector<1x1x128xf32>
    %107 = vector.shape_cast %106 : vector<1x1x128xf32> to vector<1x128xf32>
    %108 = vector.shape_cast %107 : vector<1x128xf32> to vector<1x1x128xf32>
    %109 = vector.broadcast %108 : vector<1x1x128xf32> to vector<8x8x128xf32>
    %110 = arith.mulf %105, %109 : vector<8x8x128xf32>
    %111 = arith.addf %104, %110 : vector<8x8x128xf32>
    %c0_24 = arith.constant 0 : index
    %c7 = arith.constant 7 : index
    %c0_25 = arith.constant 0 : index
    %112 = vector.load %arg8[%c0_24, %c7, %c0_25] : memref<14x19x128xf32, #tpu.memory_space<vmem>>, vector<14x8x128xf32>
    %113 = vector.extract_strided_slice %112 {offsets = [0, 0, 0], sizes = [8, 8, 128], strides = [1, 1, 1]} : vector<14x8x128xf32> to vector<8x8x128xf32>
    %114 = vector.extract_strided_slice %12 {offsets = [0, 2, 0], sizes = [1, 1, 128], strides = [1, 1, 1]} : vector<7x7x128xf32> to vector<1x1x128xf32>
    %115 = vector.shape_cast %114 : vector<1x1x128xf32> to vector<1x128xf32>
    %116 = vector.shape_cast %115 : vector<1x128xf32> to vector<1x1x128xf32>
    %117 = vector.broadcast %116 : vector<1x1x128xf32> to vector<8x8x128xf32>
    %118 = arith.mulf %113, %117 : vector<8x8x128xf32>
    %119 = arith.addf %111, %118 : vector<8x8x128xf32>
    %120 = vector.extract_strided_slice %112 {offsets = [1, 0, 0], sizes = [8, 8, 128], strides = [1, 1, 1]} : vector<14x8x128xf32> to vector<8x8x128xf32>
    %121 = vector.extract_strided_slice %12 {offsets = [1, 2, 0], sizes = [1, 1, 128], strides = [1, 1, 1]} : vector<7x7x128xf32> to vector<1x1x128xf32>
    %122 = vector.shape_cast %121 : vector<1x1x128xf32> to vector<1x128xf32>
    %123 = vector.shape_cast %122 : vector<1x128xf32> to vector<1x1x128xf32>
    %124 = vector.broadcast %123 : vector<1x1x128xf32> to vector<8x8x128xf32>
    %125 = arith.mulf %120, %124 : vector<8x8x128xf32>
    %126 = arith.addf %119, %125 : vector<8x8x128xf32>
    %127 = vector.extract_strided_slice %112 {offsets = [2, 0, 0], sizes = [8, 8, 128], strides = [1, 1, 1]} : vector<14x8x128xf32> to vector<8x8x128xf32>
    %128 = vector.extract_strided_slice %12 {offsets = [2, 2, 0], sizes = [1, 1, 128], strides = [1, 1, 1]} : vector<7x7x128xf32> to vector<1x1x128xf32>
    %129 = vector.shape_cast %128 : vector<1x1x128xf32> to vector<1x128xf32>
    %130 = vector.shape_cast %129 : vector<1x128xf32> to vector<1x1x128xf32>
    %131 = vector.broadcast %130 : vector<1x1x128xf32> to vector<8x8x128xf32>
    %132 = arith.mulf %127, %131 : vector<8x8x128xf32>
    %133 = arith.addf %126, %132 : vector<8x8x128xf32>
    %134 = vector.extract_strided_slice %112 {offsets = [3, 0, 0], sizes = [8, 8, 128], strides = [1, 1, 1]} : vector<14x8x128xf32> to vector<8x8x128xf32>
    %135 = vector.extract_strided_slice %12 {offsets = [3, 2, 0], sizes = [1, 1, 128], strides = [1, 1, 1]} : vector<7x7x128xf32> to vector<1x1x128xf32>
    %136 = vector.shape_cast %135 : vector<1x1x128xf32> to vector<1x128xf32>
    %137 = vector.shape_cast %136 : vector<1x128xf32> to vector<1x1x128xf32>
    %138 = vector.broadcast %137 : vector<1x1x128xf32> to vector<8x8x128xf32>
    %139 = arith.mulf %134, %138 : vector<8x8x128xf32>
    %140 = arith.addf %133, %139 : vector<8x8x128xf32>
    %141 = vector.extract_strided_slice %112 {offsets = [4, 0, 0], sizes = [8, 8, 128], strides = [1, 1, 1]} : vector<14x8x128xf32> to vector<8x8x128xf32>
    %142 = vector.extract_strided_slice %12 {offsets = [4, 2, 0], sizes = [1, 1, 128], strides = [1, 1, 1]} : vector<7x7x128xf32> to vector<1x1x128xf32>
    %143 = vector.shape_cast %142 : vector<1x1x128xf32> to vector<1x128xf32>
    %144 = vector.shape_cast %143 : vector<1x128xf32> to vector<1x1x128xf32>
    %145 = vector.broadcast %144 : vector<1x1x128xf32> to vector<8x8x128xf32>
    %146 = arith.mulf %141, %145 : vector<8x8x128xf32>
    %147 = arith.addf %140, %146 : vector<8x8x128xf32>
    %148 = vector.extract_strided_slice %112 {offsets = [5, 0, 0], sizes = [8, 8, 128], strides = [1, 1, 1]} : vector<14x8x128xf32> to vector<8x8x128xf32>
    %149 = vector.extract_strided_slice %12 {offsets = [5, 2, 0], sizes = [1, 1, 128], strides = [1, 1, 1]} : vector<7x7x128xf32> to vector<1x1x128xf32>
    %150 = vector.shape_cast %149 : vector<1x1x128xf32> to vector<1x128xf32>
    %151 = vector.shape_cast %150 : vector<1x128xf32> to vector<1x1x128xf32>
    %152 = vector.broadcast %151 : vector<1x1x128xf32> to vector<8x8x128xf32>
    %153 = arith.mulf %148, %152 : vector<8x8x128xf32>
    %154 = arith.addf %147, %153 : vector<8x8x128xf32>
    %155 = vector.extract_strided_slice %112 {offsets = [6, 0, 0], sizes = [8, 8, 128], strides = [1, 1, 1]} : vector<14x8x128xf32> to vector<8x8x128xf32>
    %156 = vector.extract_strided_slice %12 {offsets = [6, 2, 0], sizes = [1, 1, 128], strides = [1, 1, 1]} : vector<7x7x128xf32> to vector<1x1x128xf32>
    %157 = vector.shape_cast %156 : vector<1x1x128xf32> to vector<1x128xf32>
    %158 = vector.shape_cast %157 : vector<1x128xf32> to vector<1x1x128xf32>
    %159 = vector.broadcast %158 : vector<1x1x128xf32> to vector<8x8x128xf32>
    %160 = arith.mulf %155, %159 : vector<8x8x128xf32>
    %161 = arith.addf %154, %160 : vector<8x8x128xf32>
    %c0_26 = arith.constant 0 : index
    %c8_27 = arith.constant 8 : index
    %c0_28 = arith.constant 0 : index
    %162 = vector.load %arg8[%c0_26, %c8_27, %c0_28] : memref<14x19x128xf32, #tpu.memory_space<vmem>>, vector<14x8x128xf32>
    %163 = vector.extract_strided_slice %162 {offsets = [0, 0, 0], sizes = [8, 8, 128], strides = [1, 1, 1]} : vector<14x8x128xf32> to vector<8x8x128xf32>
    %164 = vector.extract_strided_slice %12 {offsets = [0, 3, 0], sizes = [1, 1, 128], strides = [1, 1, 1]} : vector<7x7x128xf32> to vector<1x1x128xf32>
    %165 = vector.shape_cast %164 : vector<1x1x128xf32> to vector<1x128xf32>
    %166 = vector.shape_cast %165 : vector<1x128xf32> to vector<1x1x128xf32>
    %167 = vector.broadcast %166 : vector<1x1x128xf32> to vector<8x8x128xf32>
    %168 = arith.mulf %163, %167 : vector<8x8x128xf32>
    %169 = arith.addf %161, %168 : vector<8x8x128xf32>
    %170 = vector.extract_strided_slice %162 {offsets = [1, 0, 0], sizes = [8, 8, 128], strides = [1, 1, 1]} : vector<14x8x128xf32> to vector<8x8x128xf32>
    %171 = vector.extract_strided_slice %12 {offsets = [1, 3, 0], sizes = [1, 1, 128], strides = [1, 1, 1]} : vector<7x7x128xf32> to vector<1x1x128xf32>
    %172 = vector.shape_cast %171 : vector<1x1x128xf32> to vector<1x128xf32>
    %173 = vector.shape_cast %172 : vector<1x128xf32> to vector<1x1x128xf32>
    %174 = vector.broadcast %173 : vector<1x1x128xf32> to vector<8x8x128xf32>
    %175 = arith.mulf %170, %174 : vector<8x8x128xf32>
    %176 = arith.addf %169, %175 : vector<8x8x128xf32>
    %177 = vector.extract_strided_slice %162 {offsets = [2, 0, 0], sizes = [8, 8, 128], strides = [1, 1, 1]} : vector<14x8x128xf32> to vector<8x8x128xf32>
    %178 = vector.extract_strided_slice %12 {offsets = [2, 3, 0], sizes = [1, 1, 128], strides = [1, 1, 1]} : vector<7x7x128xf32> to vector<1x1x128xf32>
    %179 = vector.shape_cast %178 : vector<1x1x128xf32> to vector<1x128xf32>
    %180 = vector.shape_cast %179 : vector<1x128xf32> to vector<1x1x128xf32>
    %181 = vector.broadcast %180 : vector<1x1x128xf32> to vector<8x8x128xf32>
    %182 = arith.mulf %177, %181 : vector<8x8x128xf32>
    %183 = arith.addf %176, %182 : vector<8x8x128xf32>
    %184 = vector.extract_strided_slice %162 {offsets = [3, 0, 0], sizes = [8, 8, 128], strides = [1, 1, 1]} : vector<14x8x128xf32> to vector<8x8x128xf32>
    %185 = vector.extract_strided_slice %12 {offsets = [3, 3, 0], sizes = [1, 1, 128], strides = [1, 1, 1]} : vector<7x7x128xf32> to vector<1x1x128xf32>
    %186 = vector.shape_cast %185 : vector<1x1x128xf32> to vector<1x128xf32>
    %187 = vector.shape_cast %186 : vector<1x128xf32> to vector<1x1x128xf32>
    %188 = vector.broadcast %187 : vector<1x1x128xf32> to vector<8x8x128xf32>
    %189 = arith.mulf %184, %188 : vector<8x8x128xf32>
    %190 = arith.addf %183, %189 : vector<8x8x128xf32>
    %191 = vector.extract_strided_slice %162 {offsets = [4, 0, 0], sizes = [8, 8, 128], strides = [1, 1, 1]} : vector<14x8x128xf32> to vector<8x8x128xf32>
    %192 = vector.extract_strided_slice %12 {offsets = [4, 3, 0], sizes = [1, 1, 128], strides = [1, 1, 1]} : vector<7x7x128xf32> to vector<1x1x128xf32>
    %193 = vector.shape_cast %192 : vector<1x1x128xf32> to vector<1x128xf32>
    %194 = vector.shape_cast %193 : vector<1x128xf32> to vector<1x1x128xf32>
    %195 = vector.broadcast %194 : vector<1x1x128xf32> to vector<8x8x128xf32>
    %196 = arith.mulf %191, %195 : vector<8x8x128xf32>
    %197 = arith.addf %190, %196 : vector<8x8x128xf32>
    %198 = vector.extract_strided_slice %162 {offsets = [5, 0, 0], sizes = [8, 8, 128], strides = [1, 1, 1]} : vector<14x8x128xf32> to vector<8x8x128xf32>
    %199 = vector.extract_strided_slice %12 {offsets = [5, 3, 0], sizes = [1, 1, 128], strides = [1, 1, 1]} : vector<7x7x128xf32> to vector<1x1x128xf32>
    %200 = vector.shape_cast %199 : vector<1x1x128xf32> to vector<1x128xf32>
    %201 = vector.shape_cast %200 : vector<1x128xf32> to vector<1x1x128xf32>
    %202 = vector.broadcast %201 : vector<1x1x128xf32> to vector<8x8x128xf32>
    %203 = arith.mulf %198, %202 : vector<8x8x128xf32>
    %204 = arith.addf %197, %203 : vector<8x8x128xf32>
    %205 = vector.extract_strided_slice %162 {offsets = [6, 0, 0], sizes = [8, 8, 128], strides = [1, 1, 1]} : vector<14x8x128xf32> to vector<8x8x128xf32>
    %206 = vector.extract_strided_slice %12 {offsets = [6, 3, 0], sizes = [1, 1, 128], strides = [1, 1, 1]} : vector<7x7x128xf32> to vector<1x1x128xf32>
    %207 = vector.shape_cast %206 : vector<1x1x128xf32> to vector<1x128xf32>
    %208 = vector.shape_cast %207 : vector<1x128xf32> to vector<1x1x128xf32>
    %209 = vector.broadcast %208 : vector<1x1x128xf32> to vector<8x8x128xf32>
    %210 = arith.mulf %205, %209 : vector<8x8x128xf32>
    %211 = arith.addf %204, %210 : vector<8x8x128xf32>
    %c0_29 = arith.constant 0 : index
    %c9 = arith.constant 9 : index
    %c0_30 = arith.constant 0 : index
    %212 = vector.load %arg8[%c0_29, %c9, %c0_30] : memref<14x19x128xf32, #tpu.memory_space<vmem>>, vector<14x8x128xf32>
    %213 = vector.extract_strided_slice %212 {offsets = [0, 0, 0], sizes = [8, 8, 128], strides = [1, 1, 1]} : vector<14x8x128xf32> to vector<8x8x128xf32>
    %214 = vector.extract_strided_slice %12 {offsets = [0, 4, 0], sizes = [1, 1, 128], strides = [1, 1, 1]} : vector<7x7x128xf32> to vector<1x1x128xf32>
    %215 = vector.shape_cast %214 : vector<1x1x128xf32> to vector<1x128xf32>
    %216 = vector.shape_cast %215 : vector<1x128xf32> to vector<1x1x128xf32>
    %217 = vector.broadcast %216 : vector<1x1x128xf32> to vector<8x8x128xf32>
    %218 = arith.mulf %213, %217 : vector<8x8x128xf32>
    %219 = arith.addf %211, %218 : vector<8x8x128xf32>
    %220 = vector.extract_strided_slice %212 {offsets = [1, 0, 0], sizes = [8, 8, 128], strides = [1, 1, 1]} : vector<14x8x128xf32> to vector<8x8x128xf32>
    %221 = vector.extract_strided_slice %12 {offsets = [1, 4, 0], sizes = [1, 1, 128], strides = [1, 1, 1]} : vector<7x7x128xf32> to vector<1x1x128xf32>
    %222 = vector.shape_cast %221 : vector<1x1x128xf32> to vector<1x128xf32>
    %223 = vector.shape_cast %222 : vector<1x128xf32> to vector<1x1x128xf32>
    %224 = vector.broadcast %223 : vector<1x1x128xf32> to vector<8x8x128xf32>
    %225 = arith.mulf %220, %224 : vector<8x8x128xf32>
    %226 = arith.addf %219, %225 : vector<8x8x128xf32>
    %227 = vector.extract_strided_slice %212 {offsets = [2, 0, 0], sizes = [8, 8, 128], strides = [1, 1, 1]} : vector<14x8x128xf32> to vector<8x8x128xf32>
    %228 = vector.extract_strided_slice %12 {offsets = [2, 4, 0], sizes = [1, 1, 128], strides = [1, 1, 1]} : vector<7x7x128xf32> to vector<1x1x128xf32>
    %229 = vector.shape_cast %228 : vector<1x1x128xf32> to vector<1x128xf32>
    %230 = vector.shape_cast %229 : vector<1x128xf32> to vector<1x1x128xf32>
    %231 = vector.broadcast %230 : vector<1x1x128xf32> to vector<8x8x128xf32>
    %232 = arith.mulf %227, %231 : vector<8x8x128xf32>
    %233 = arith.addf %226, %232 : vector<8x8x128xf32>
    %234 = vector.extract_strided_slice %212 {offsets = [3, 0, 0], sizes = [8, 8, 128], strides = [1, 1, 1]} : vector<14x8x128xf32> to vector<8x8x128xf32>
    %235 = vector.extract_strided_slice %12 {offsets = [3, 4, 0], sizes = [1, 1, 128], strides = [1, 1, 1]} : vector<7x7x128xf32> to vector<1x1x128xf32>
    %236 = vector.shape_cast %235 : vector<1x1x128xf32> to vector<1x128xf32>
    %237 = vector.shape_cast %236 : vector<1x128xf32> to vector<1x1x128xf32>
    %238 = vector.broadcast %237 : vector<1x1x128xf32> to vector<8x8x128xf32>
    %239 = arith.mulf %234, %238 : vector<8x8x128xf32>
    %240 = arith.addf %233, %239 : vector<8x8x128xf32>
    %241 = vector.extract_strided_slice %212 {offsets = [4, 0, 0], sizes = [8, 8, 128], strides = [1, 1, 1]} : vector<14x8x128xf32> to vector<8x8x128xf32>
    %242 = vector.extract_strided_slice %12 {offsets = [4, 4, 0], sizes = [1, 1, 128], strides = [1, 1, 1]} : vector<7x7x128xf32> to vector<1x1x128xf32>
    %243 = vector.shape_cast %242 : vector<1x1x128xf32> to vector<1x128xf32>
    %244 = vector.shape_cast %243 : vector<1x128xf32> to vector<1x1x128xf32>
    %245 = vector.broadcast %244 : vector<1x1x128xf32> to vector<8x8x128xf32>
    %246 = arith.mulf %241, %245 : vector<8x8x128xf32>
    %247 = arith.addf %240, %246 : vector<8x8x128xf32>
    %248 = vector.extract_strided_slice %212 {offsets = [5, 0, 0], sizes = [8, 8, 128], strides = [1, 1, 1]} : vector<14x8x128xf32> to vector<8x8x128xf32>
    %249 = vector.extract_strided_slice %12 {offsets = [5, 4, 0], sizes = [1, 1, 128], strides = [1, 1, 1]} : vector<7x7x128xf32> to vector<1x1x128xf32>
    %250 = vector.shape_cast %249 : vector<1x1x128xf32> to vector<1x128xf32>
    %251 = vector.shape_cast %250 : vector<1x128xf32> to vector<1x1x128xf32>
    %252 = vector.broadcast %251 : vector<1x1x128xf32> to vector<8x8x128xf32>
    %253 = arith.mulf %248, %252 : vector<8x8x128xf32>
    %254 = arith.addf %247, %253 : vector<8x8x128xf32>
    %255 = vector.extract_strided_slice %212 {offsets = [6, 0, 0], sizes = [8, 8, 128], strides = [1, 1, 1]} : vector<14x8x128xf32> to vector<8x8x128xf32>
    %256 = vector.extract_strided_slice %12 {offsets = [6, 4, 0], sizes = [1, 1, 128], strides = [1, 1, 1]} : vector<7x7x128xf32> to vector<1x1x128xf32>
    %257 = vector.shape_cast %256 : vector<1x1x128xf32> to vector<1x128xf32>
    %258 = vector.shape_cast %257 : vector<1x128xf32> to vector<1x1x128xf32>
    %259 = vector.broadcast %258 : vector<1x1x128xf32> to vector<8x8x128xf32>
    %260 = arith.mulf %255, %259 : vector<8x8x128xf32>
    %261 = arith.addf %254, %260 : vector<8x8x128xf32>
    %c0_31 = arith.constant 0 : index
    %c10 = arith.constant 10 : index
    %c0_32 = arith.constant 0 : index
    %262 = vector.load %arg8[%c0_31, %c10, %c0_32] : memref<14x19x128xf32, #tpu.memory_space<vmem>>, vector<14x8x128xf32>
    %263 = vector.extract_strided_slice %262 {offsets = [0, 0, 0], sizes = [8, 8, 128], strides = [1, 1, 1]} : vector<14x8x128xf32> to vector<8x8x128xf32>
    %264 = vector.extract_strided_slice %12 {offsets = [0, 5, 0], sizes = [1, 1, 128], strides = [1, 1, 1]} : vector<7x7x128xf32> to vector<1x1x128xf32>
    %265 = vector.shape_cast %264 : vector<1x1x128xf32> to vector<1x128xf32>
    %266 = vector.shape_cast %265 : vector<1x128xf32> to vector<1x1x128xf32>
    %267 = vector.broadcast %266 : vector<1x1x128xf32> to vector<8x8x128xf32>
    %268 = arith.mulf %263, %267 : vector<8x8x128xf32>
    %269 = arith.addf %261, %268 : vector<8x8x128xf32>
    %270 = vector.extract_strided_slice %262 {offsets = [1, 0, 0], sizes = [8, 8, 128], strides = [1, 1, 1]} : vector<14x8x128xf32> to vector<8x8x128xf32>
    %271 = vector.extract_strided_slice %12 {offsets = [1, 5, 0], sizes = [1, 1, 128], strides = [1, 1, 1]} : vector<7x7x128xf32> to vector<1x1x128xf32>
    %272 = vector.shape_cast %271 : vector<1x1x128xf32> to vector<1x128xf32>
    %273 = vector.shape_cast %272 : vector<1x128xf32> to vector<1x1x128xf32>
    %274 = vector.broadcast %273 : vector<1x1x128xf32> to vector<8x8x128xf32>
    %275 = arith.mulf %270, %274 : vector<8x8x128xf32>
    %276 = arith.addf %269, %275 : vector<8x8x128xf32>
    %277 = vector.extract_strided_slice %262 {offsets = [2, 0, 0], sizes = [8, 8, 128], strides = [1, 1, 1]} : vector<14x8x128xf32> to vector<8x8x128xf32>
    %278 = vector.extract_strided_slice %12 {offsets = [2, 5, 0], sizes = [1, 1, 128], strides = [1, 1, 1]} : vector<7x7x128xf32> to vector<1x1x128xf32>
    %279 = vector.shape_cast %278 : vector<1x1x128xf32> to vector<1x128xf32>
    %280 = vector.shape_cast %279 : vector<1x128xf32> to vector<1x1x128xf32>
    %281 = vector.broadcast %280 : vector<1x1x128xf32> to vector<8x8x128xf32>
    %282 = arith.mulf %277, %281 : vector<8x8x128xf32>
    %283 = arith.addf %276, %282 : vector<8x8x128xf32>
    %284 = vector.extract_strided_slice %262 {offsets = [3, 0, 0], sizes = [8, 8, 128], strides = [1, 1, 1]} : vector<14x8x128xf32> to vector<8x8x128xf32>
    %285 = vector.extract_strided_slice %12 {offsets = [3, 5, 0], sizes = [1, 1, 128], strides = [1, 1, 1]} : vector<7x7x128xf32> to vector<1x1x128xf32>
    %286 = vector.shape_cast %285 : vector<1x1x128xf32> to vector<1x128xf32>
    %287 = vector.shape_cast %286 : vector<1x128xf32> to vector<1x1x128xf32>
    %288 = vector.broadcast %287 : vector<1x1x128xf32> to vector<8x8x128xf32>
    %289 = arith.mulf %284, %288 : vector<8x8x128xf32>
    %290 = arith.addf %283, %289 : vector<8x8x128xf32>
    %291 = vector.extract_strided_slice %262 {offsets = [4, 0, 0], sizes = [8, 8, 128], strides = [1, 1, 1]} : vector<14x8x128xf32> to vector<8x8x128xf32>
    %292 = vector.extract_strided_slice %12 {offsets = [4, 5, 0], sizes = [1, 1, 128], strides = [1, 1, 1]} : vector<7x7x128xf32> to vector<1x1x128xf32>
    %293 = vector.shape_cast %292 : vector<1x1x128xf32> to vector<1x128xf32>
    %294 = vector.shape_cast %293 : vector<1x128xf32> to vector<1x1x128xf32>
    %295 = vector.broadcast %294 : vector<1x1x128xf32> to vector<8x8x128xf32>
    %296 = arith.mulf %291, %295 : vector<8x8x128xf32>
    %297 = arith.addf %290, %296 : vector<8x8x128xf32>
    %298 = vector.extract_strided_slice %262 {offsets = [5, 0, 0], sizes = [8, 8, 128], strides = [1, 1, 1]} : vector<14x8x128xf32> to vector<8x8x128xf32>
    %299 = vector.extract_strided_slice %12 {offsets = [5, 5, 0], sizes = [1, 1, 128], strides = [1, 1, 1]} : vector<7x7x128xf32> to vector<1x1x128xf32>
    %300 = vector.shape_cast %299 : vector<1x1x128xf32> to vector<1x128xf32>
    %301 = vector.shape_cast %300 : vector<1x128xf32> to vector<1x1x128xf32>
    %302 = vector.broadcast %301 : vector<1x1x128xf32> to vector<8x8x128xf32>
    %303 = arith.mulf %298, %302 : vector<8x8x128xf32>
    %304 = arith.addf %297, %303 : vector<8x8x128xf32>
    %305 = vector.extract_strided_slice %262 {offsets = [6, 0, 0], sizes = [8, 8, 128], strides = [1, 1, 1]} : vector<14x8x128xf32> to vector<8x8x128xf32>
    %306 = vector.extract_strided_slice %12 {offsets = [6, 5, 0], sizes = [1, 1, 128], strides = [1, 1, 1]} : vector<7x7x128xf32> to vector<1x1x128xf32>
    %307 = vector.shape_cast %306 : vector<1x1x128xf32> to vector<1x128xf32>
    %308 = vector.shape_cast %307 : vector<1x128xf32> to vector<1x1x128xf32>
    %309 = vector.broadcast %308 : vector<1x1x128xf32> to vector<8x8x128xf32>
    %310 = arith.mulf %305, %309 : vector<8x8x128xf32>
    %311 = arith.addf %304, %310 : vector<8x8x128xf32>
    %c0_33 = arith.constant 0 : index
    %c11_34 = arith.constant 11 : index
    %c0_35 = arith.constant 0 : index
    %312 = vector.load %arg8[%c0_33, %c11_34, %c0_35] : memref<14x19x128xf32, #tpu.memory_space<vmem>>, vector<14x8x128xf32>
    %313 = vector.extract_strided_slice %312 {offsets = [0, 0, 0], sizes = [8, 8, 128], strides = [1, 1, 1]} : vector<14x8x128xf32> to vector<8x8x128xf32>
    %314 = vector.extract_strided_slice %12 {offsets = [0, 6, 0], sizes = [1, 1, 128], strides = [1, 1, 1]} : vector<7x7x128xf32> to vector<1x1x128xf32>
    %315 = vector.shape_cast %314 : vector<1x1x128xf32> to vector<1x128xf32>
    %316 = vector.shape_cast %315 : vector<1x128xf32> to vector<1x1x128xf32>
    %317 = vector.broadcast %316 : vector<1x1x128xf32> to vector<8x8x128xf32>
    %318 = arith.mulf %313, %317 : vector<8x8x128xf32>
    %319 = arith.addf %311, %318 : vector<8x8x128xf32>
    %320 = vector.extract_strided_slice %312 {offsets = [1, 0, 0], sizes = [8, 8, 128], strides = [1, 1, 1]} : vector<14x8x128xf32> to vector<8x8x128xf32>
    %321 = vector.extract_strided_slice %12 {offsets = [1, 6, 0], sizes = [1, 1, 128], strides = [1, 1, 1]} : vector<7x7x128xf32> to vector<1x1x128xf32>
    %322 = vector.shape_cast %321 : vector<1x1x128xf32> to vector<1x128xf32>
    %323 = vector.shape_cast %322 : vector<1x128xf32> to vector<1x1x128xf32>
    %324 = vector.broadcast %323 : vector<1x1x128xf32> to vector<8x8x128xf32>
    %325 = arith.mulf %320, %324 : vector<8x8x128xf32>
    %326 = arith.addf %319, %325 : vector<8x8x128xf32>
    %327 = vector.extract_strided_slice %312 {offsets = [2, 0, 0], sizes = [8, 8, 128], strides = [1, 1, 1]} : vector<14x8x128xf32> to vector<8x8x128xf32>
    %328 = vector.extract_strided_slice %12 {offsets = [2, 6, 0], sizes = [1, 1, 128], strides = [1, 1, 1]} : vector<7x7x128xf32> to vector<1x1x128xf32>
    %329 = vector.shape_cast %328 : vector<1x1x128xf32> to vector<1x128xf32>
    %330 = vector.shape_cast %329 : vector<1x128xf32> to vector<1x1x128xf32>
    %331 = vector.broadcast %330 : vector<1x1x128xf32> to vector<8x8x128xf32>
    %332 = arith.mulf %327, %331 : vector<8x8x128xf32>
    %333 = arith.addf %326, %332 : vector<8x8x128xf32>
    %334 = vector.extract_strided_slice %312 {offsets = [3, 0, 0], sizes = [8, 8, 128], strides = [1, 1, 1]} : vector<14x8x128xf32> to vector<8x8x128xf32>
    %335 = vector.extract_strided_slice %12 {offsets = [3, 6, 0], sizes = [1, 1, 128], strides = [1, 1, 1]} : vector<7x7x128xf32> to vector<1x1x128xf32>
    %336 = vector.shape_cast %335 : vector<1x1x128xf32> to vector<1x128xf32>
    %337 = vector.shape_cast %336 : vector<1x128xf32> to vector<1x1x128xf32>
    %338 = vector.broadcast %337 : vector<1x1x128xf32> to vector<8x8x128xf32>
    %339 = arith.mulf %334, %338 : vector<8x8x128xf32>
    %340 = arith.addf %333, %339 : vector<8x8x128xf32>
    %341 = vector.extract_strided_slice %312 {offsets = [4, 0, 0], sizes = [8, 8, 128], strides = [1, 1, 1]} : vector<14x8x128xf32> to vector<8x8x128xf32>
    %342 = vector.extract_strided_slice %12 {offsets = [4, 6, 0], sizes = [1, 1, 128], strides = [1, 1, 1]} : vector<7x7x128xf32> to vector<1x1x128xf32>
    %343 = vector.shape_cast %342 : vector<1x1x128xf32> to vector<1x128xf32>
    %344 = vector.shape_cast %343 : vector<1x128xf32> to vector<1x1x128xf32>
    %345 = vector.broadcast %344 : vector<1x1x128xf32> to vector<8x8x128xf32>
    %346 = arith.mulf %341, %345 : vector<8x8x128xf32>
    %347 = arith.addf %340, %346 : vector<8x8x128xf32>
    %348 = vector.extract_strided_slice %312 {offsets = [5, 0, 0], sizes = [8, 8, 128], strides = [1, 1, 1]} : vector<14x8x128xf32> to vector<8x8x128xf32>
    %349 = vector.extract_strided_slice %12 {offsets = [5, 6, 0], sizes = [1, 1, 128], strides = [1, 1, 1]} : vector<7x7x128xf32> to vector<1x1x128xf32>
    %350 = vector.shape_cast %349 : vector<1x1x128xf32> to vector<1x128xf32>
    %351 = vector.shape_cast %350 : vector<1x128xf32> to vector<1x1x128xf32>
    %352 = vector.broadcast %351 : vector<1x1x128xf32> to vector<8x8x128xf32>
    %353 = arith.mulf %348, %352 : vector<8x8x128xf32>
    %354 = arith.addf %347, %353 : vector<8x8x128xf32>
    %355 = vector.extract_strided_slice %312 {offsets = [6, 0, 0], sizes = [8, 8, 128], strides = [1, 1, 1]} : vector<14x8x128xf32> to vector<8x8x128xf32>
    %356 = vector.extract_strided_slice %12 {offsets = [6, 6, 0], sizes = [1, 1, 128], strides = [1, 1, 1]} : vector<7x7x128xf32> to vector<1x1x128xf32>
    %357 = vector.shape_cast %356 : vector<1x1x128xf32> to vector<1x128xf32>
    %358 = vector.shape_cast %357 : vector<1x128xf32> to vector<1x1x128xf32>
    %359 = vector.broadcast %358 : vector<1x1x128xf32> to vector<8x8x128xf32>
    %360 = arith.mulf %355, %359 : vector<8x8x128xf32>
    %361 = arith.addf %354, %360 : vector<8x8x128xf32>
    %362 = vector.shape_cast %361 : vector<8x8x128xf32> to vector<64x128xf32>
    %363 = arith.truncf %362 : vector<64x128xf32> to vector<64x128xbf16>
    %c0_36 = arith.constant 0 : index
    %c0_37 = arith.constant 0 : index
    %364 = vector.load %arg3[%c0_36, %c0_37] : memref<128x128xbf16, #tpu.memory_space<vmem>>, vector<128x128xbf16>
    %cst_38 = arith.constant dense<0.000000e+00> : vector<64x128xf32>
    %365 = tpu.matmul %363, %364, %cst_38 {dimension_numbers = #tpu.dot_dimension_numbers<[1], [0], [0], [1], [0, 0, 1, 1], [], []>} : vector<64x128xbf16>, vector<128x128xbf16>, vector<64x128xf32> -> vector<64x128xf32>
    %c0_39 = arith.constant 0 : index
    %c0_40 = arith.constant 0 : index
    %366 = vector.load %arg4[%c0_39, %c0_40] : memref<1x128xf32, #tpu.memory_space<vmem>>, vector<1x128xf32>
    %367 = vector.broadcast %366 : vector<1x128xf32> to vector<64x128xf32>
    %368 = arith.addf %365, %367 : vector<64x128xf32>
    %cst_41 = arith.constant 5.000000e-01 : f32
    %369 = vector.broadcast %cst_41 : f32 to vector<64x128xf32>
    %370 = arith.mulf %369, %368 : vector<64x128xf32>
    %cst_42 = arith.constant 4.471500e-02 : f32
    %371 = vector.broadcast %cst_42 : f32 to vector<64x128xf32>
    %372 = arith.mulf %371, %368 : vector<64x128xf32>
    %373 = arith.mulf %372, %368 : vector<64x128xf32>
    %374 = arith.mulf %373, %368 : vector<64x128xf32>
    %375 = arith.addf %368, %374 : vector<64x128xf32>
    %cst_43 = arith.constant 0.797884583 : f32
    %376 = vector.broadcast %cst_43 : f32 to vector<64x128xf32>
    %377 = arith.mulf %376, %375 : vector<64x128xf32>
    %378 = math.tanh %377 : vector<64x128xf32>
    %cst_44 = arith.constant 1.000000e+00 : f32
    %379 = vector.broadcast %cst_44 : f32 to vector<64x128xf32>
    %380 = arith.addf %379, %378 : vector<64x128xf32>
    %381 = arith.mulf %370, %380 : vector<64x128xf32>
    %382 = arith.truncf %381 : vector<64x128xf32> to vector<64x128xbf16>
    %c0_45 = arith.constant 0 : index
    %c0_46 = arith.constant 0 : index
    %383 = vector.load %arg5[%c0_45, %c0_46] : memref<128x128xbf16, #tpu.memory_space<vmem>>, vector<128x128xbf16>
    %cst_47 = arith.constant dense<0.000000e+00> : vector<64x128xf32>
    %384 = tpu.matmul %382, %383, %cst_47 {dimension_numbers = #tpu.dot_dimension_numbers<[1], [0], [0], [1], [0, 0, 1, 1], [], []>} : vector<64x128xbf16>, vector<128x128xbf16>, vector<64x128xf32> -> vector<64x128xf32>
    %c0_48 = arith.constant 0 : index
    %c0_49 = arith.constant 0 : index
    %385 = vector.load %arg6[%c0_48, %c0_49] : memref<1x128xf32, #tpu.memory_space<vmem>>, vector<1x128xf32>
    %386 = vector.broadcast %385 : vector<1x128xf32> to vector<64x128xf32>
    %387 = arith.addf %384, %386 : vector<64x128xf32>
    %388 = vector.shape_cast %387 : vector<64x128xf32> to vector<8x8x128xf32>
    %389 = arith.addf %2, %388 : vector<8x8x128xf32>
    %390 = arith.truncf %389 : vector<8x8x128xf32> to vector<8x8x128xbf16>
    %c0_50 = arith.constant 0 : index
    %c0_51 = arith.constant 0 : index
    %c0_52 = arith.constant 0 : index
    %c0_53 = arith.constant 0 : index
    %391 = vector.load %arg7[%c0_50, %c0_51, %c0_52, %c0_53] : memref<1x8x8x128xbf16, #tpu.memory_space<vmem>>, vector<1x8x8x128xbf16>
    %392 = vector.shape_cast %391 : vector<1x8x8x128xbf16> to vector<8x8x128xbf16>
    %393 = vector.shape_cast %390 : vector<8x8x128xbf16> to vector<1x8x8x128xbf16>
    tpu.vector_store %arg7[%c0_50, %c0_51, %c0_52, %c0_53], %393 {strides = array<i32>} : memref<1x8x8x128xbf16, #tpu.memory_space<vmem>>, vector<1x8x8x128xbf16>,
    return
  }
  func.func @transform_0(%arg0: i32) -> (i32, i32, i32, i32) {
    %c0_i32 = arith.constant 0 : i32
    %c0_i32_0 = arith.constant 0 : i32
    %c0_i32_1 = arith.constant 0 : i32
    %c0_i32_2 = arith.constant 0 : i32
    return %arg0, %c0_i32, %c0_i32_0, %c0_i32_1 : i32, i32, i32, i32
  }
  func.func @transform_1(%arg0: i32) -> (i32, i32, i32) {
    %c0_i32 = arith.constant 0 : i32
    %c0_i32_0 = arith.constant 0 : i32
    %c0_i32_1 = arith.constant 0 : i32
    %c0_i32_2 = arith.constant 0 : i32
    return %c0_i32, %c0_i32_0, %c0_i32_1 : i32, i32, i32
  }
  func.func @transform_2(%arg0: i32) -> (i32, i32) {
    %c0_i32 = arith.constant 0 : i32
    %c0_i32_0 = arith.constant 0 : i32
    %c0_i32_1 = arith.constant 0 : i32
    return %c0_i32, %c0_i32_0 : i32, i32
  }
  func.func @transform_3(%arg0: i32) -> (i32, i32) {
    %c0_i32 = arith.constant 0 : i32
    %c0_i32_0 = arith.constant 0 : i32
    %c0_i32_1 = arith.constant 0 : i32
    return %c0_i32, %c0_i32_0 : i32, i32
  }
  func.func @transform_4(%arg0: i32) -> (i32, i32) {
    %c0_i32 = arith.constant 0 : i32
    %c0_i32_0 = arith.constant 0 : i32
    %c0_i32_1 = arith.constant 0 : i32
    return %c0_i32, %c0_i32_0 : i32, i32
  }
  func.func @transform_5(%arg0: i32) -> (i32, i32) {
    %c0_i32 = arith.constant 0 : i32
    %c0_i32_0 = arith.constant 0 : i32
    %c0_i32_1 = arith.constant 0 : i32
    return %c0_i32, %c0_i32_0 : i32, i32
  }
  func.func @transform_6(%arg0: i32) -> (i32, i32, i32, i32) {
    %c0_i32 = arith.constant 0 : i32
    %c0_i32_0 = arith.constant 0 : i32
    %c0_i32_1 = arith.constant 0 : i32
    %c0_i32_2 = arith.constant 0 : i32
    return %arg0, %c0_i32, %c0_i32_0, %c0_i32_1 : i32, i32, i32, i32
  }
}

module attributes {stable_mosaic.version = 11 : i64} {
  func.func @_matmul_bias_kernel(%arg0: i32, %arg1: memref<32x512xbf16, #tpu.memory_space<vmem>>, %arg2: memref<512x128xbf16, #tpu.memory_space<vmem>>, %arg3: memref<1x128xf32, #tpu.memory_space<vmem>>, %arg4: memref<32x128xbf16, #tpu.memory_space<vmem>>) attributes {dimension_semantics = [#tpu.dimension_semantics<parallel>], iteration_bounds = array<i64: 1>, scalar_prefetch = 0 : i64, scratch_operands = 0 : i64, tpu.core_type = #tpu.core_type<tc>, window_params = [{transform_indices = @transform_0, window_bounds = array<i64: 32, 512>}, {pipeline_mode = #tpu.pipeline_mode<synchronous>, transform_indices = @transform_1, window_bounds = array<i64: 512, 128>}, {pipeline_mode = #tpu.pipeline_mode<synchronous>, transform_indices = @transform_2, window_bounds = array<i64: 1, 128>}, {transform_indices = @transform_3, window_bounds = array<i64: 32, 128>}]} {
    %c0 = arith.constant 0 : index
    %c0_0 = arith.constant 0 : index
    %0 = vector.load %arg1[%c0, %c0_0] : memref<32x512xbf16, #tpu.memory_space<vmem>>, vector<32x512xbf16>
    %c0_1 = arith.constant 0 : index
    %c0_2 = arith.constant 0 : index
    %1 = vector.load %arg2[%c0_1, %c0_2] : memref<512x128xbf16, #tpu.memory_space<vmem>>, vector<512x128xbf16>
    %cst = arith.constant dense<0.000000e+00> : vector<32x128xf32>
    %2 = tpu.matmul %0, %1, %cst {dimension_numbers = #tpu.dot_dimension_numbers<[1], [0], [0], [1], [0, 0, 1, 1], [], []>} : vector<32x512xbf16>, vector<512x128xbf16>, vector<32x128xf32> -> vector<32x128xf32>
    %c0_3 = arith.constant 0 : index
    %c0_4 = arith.constant 0 : index
    %3 = vector.load %arg3[%c0_3, %c0_4] : memref<1x128xf32, #tpu.memory_space<vmem>>, vector<1x128xf32>
    %4 = vector.broadcast %3 : vector<1x128xf32> to vector<32x128xf32>
    %5 = arith.addf %2, %4 : vector<32x128xf32>
    %6 = arith.truncf %5 : vector<32x128xf32> to vector<32x128xbf16>
    %c0_5 = arith.constant 0 : index
    %c0_6 = arith.constant 0 : index
    %7 = vector.load %arg4[%c0_5, %c0_6] : memref<32x128xbf16, #tpu.memory_space<vmem>>, vector<32x128xbf16>
    tpu.vector_store %arg4[%c0_5, %c0_6], %6 {strides = array<i32>} : memref<32x128xbf16, #tpu.memory_space<vmem>>, vector<32x128xbf16>,
    return
  }
  func.func @transform_0(%arg0: i32) -> (i32, i32) {
    %c0_i32 = arith.constant 0 : i32
    %c0_i32_0 = arith.constant 0 : i32
    return %arg0, %c0_i32 : i32, i32
  }
  func.func @transform_1(%arg0: i32) -> (i32, i32) {
    %c0_i32 = arith.constant 0 : i32
    %c0_i32_0 = arith.constant 0 : i32
    %c0_i32_1 = arith.constant 0 : i32
    return %c0_i32, %c0_i32_0 : i32, i32
  }
  func.func @transform_2(%arg0: i32) -> (i32, i32) {
    %c0_i32 = arith.constant 0 : i32
    %c0_i32_0 = arith.constant 0 : i32
    %c0_i32_1 = arith.constant 0 : i32
    return %c0_i32, %c0_i32_0 : i32, i32
  }
  func.func @transform_3(%arg0: i32) -> (i32, i32) {
    %c0_i32 = arith.constant 0 : i32
    %c0_i32_0 = arith.constant 0 : i32
    return %arg0, %c0_i32 : i32, i32
  }
}

module attributes {stable_mosaic.version = 11 : i64} {
  func.func @_convnext_block_kernel(%arg0: i32, %arg1: memref<1x4x4x128xbf16, #tpu.memory_space<vmem>>, %arg2: memref<7x7x128xf32, #tpu.memory_space<vmem>>, %arg3: memref<128x128xbf16, #tpu.memory_space<vmem>>, %arg4: memref<1x128xf32, #tpu.memory_space<vmem>>, %arg5: memref<128x128xbf16, #tpu.memory_space<vmem>>, %arg6: memref<1x128xf32, #tpu.memory_space<vmem>>, %arg7: memref<1x4x4x128xbf16, #tpu.memory_space<vmem>>, %arg8: memref<10x15x128xf32, #tpu.memory_space<vmem>>) attributes {dimension_semantics = [#tpu.dimension_semantics<parallel>], iteration_bounds = array<i64: 2>, scalar_prefetch = 0 : i64, scratch_operands = 1 : i64, tpu.core_type = #tpu.core_type<tc>, window_params = [{transform_indices = @transform_0, window_bounds = array<i64: 1, 4, 4, 128>}, {pipeline_mode = #tpu.pipeline_mode<synchronous>, transform_indices = @transform_1, window_bounds = array<i64: 7, 7, 128>}, {pipeline_mode = #tpu.pipeline_mode<synchronous>, transform_indices = @transform_2, window_bounds = array<i64: 128, 128>}, {pipeline_mode = #tpu.pipeline_mode<synchronous>, transform_indices = @transform_3, window_bounds = array<i64: 1, 128>}, {pipeline_mode = #tpu.pipeline_mode<synchronous>, transform_indices = @transform_4, window_bounds = array<i64: 128, 128>}, {pipeline_mode = #tpu.pipeline_mode<synchronous>, transform_indices = @transform_5, window_bounds = array<i64: 1, 128>}, {transform_indices = @transform_6, window_bounds = array<i64: 1, 4, 4, 128>}]} {
    %c0 = arith.constant 0 : index
    %c0_0 = arith.constant 0 : index
    %c0_1 = arith.constant 0 : index
    %c0_2 = arith.constant 0 : index
    %0 = vector.load %arg1[%c0, %c0_0, %c0_1, %c0_2] : memref<1x4x4x128xbf16, #tpu.memory_space<vmem>>, vector<1x4x4x128xbf16>
    %1 = vector.shape_cast %0 : vector<1x4x4x128xbf16> to vector<4x4x128xbf16>
    %2 = arith.extf %1 : vector<4x4x128xbf16> to vector<4x4x128xf32>
    %cst = arith.constant 0.000000e+00 : f32
    %3 = vector.broadcast %cst : f32 to vector<3x15x128xf32>
    %c0_3 = arith.constant 0 : index
    %c0_4 = arith.constant 0 : index
    %c0_5 = arith.constant 0 : index
    %4 = vector.load %arg8[%c0_3, %c0_4, %c0_5] : memref<10x15x128xf32, #tpu.memory_space<vmem>>, vector<3x15x128xf32>
    tpu.vector_store %arg8[%c0_3, %c0_4, %c0_5], %3 {strides = array<i32>} : memref<10x15x128xf32, #tpu.memory_space<vmem>>, vector<3x15x128xf32>,
    %cst_6 = arith.constant 0.000000e+00 : f32
    %5 = vector.broadcast %cst_6 : f32 to vector<3x15x128xf32>
    %c7 = arith.constant 7 : index
    %c0_7 = arith.constant 0 : index
    %c0_8 = arith.constant 0 : index
    %6 = vector.load %arg8[%c7, %c0_7, %c0_8] : memref<10x15x128xf32, #tpu.memory_space<vmem>>, vector<3x15x128xf32>
    tpu.vector_store %arg8[%c7, %c0_7, %c0_8], %5 {strides = array<i32>} : memref<10x15x128xf32, #tpu.memory_space<vmem>>, vector<3x15x128xf32>,
    %cst_9 = arith.constant 0.000000e+00 : f32
    %7 = vector.broadcast %cst_9 : f32 to vector<4x8x128xf32>
    %c3 = arith.constant 3 : index
    %c0_10 = arith.constant 0 : index
    %c0_11 = arith.constant 0 : index
    %8 = vector.load %arg8[%c3, %c0_10, %c0_11] : memref<10x15x128xf32, #tpu.memory_space<vmem>>, vector<4x8x128xf32>
    tpu.vector_store %arg8[%c3, %c0_10, %c0_11], %7 {strides = array<i32>} : memref<10x15x128xf32, #tpu.memory_space<vmem>>, vector<4x8x128xf32>,
    %cst_12 = arith.constant 0.000000e+00 : f32
    %9 = vector.broadcast %cst_12 : f32 to vector<4x3x128xf32>
    %c3_13 = arith.constant 3 : index
    %c12 = arith.constant 12 : index
    %c0_14 = arith.constant 0 : index
    %10 = vector.load %arg8[%c3_13, %c12, %c0_14] : memref<10x15x128xf32, #tpu.memory_space<vmem>>, vector<4x3x128xf32>
    tpu.vector_store %arg8[%c3_13, %c12, %c0_14], %9 {strides = array<i32>} : memref<10x15x128xf32, #tpu.memory_space<vmem>>, vector<4x3x128xf32>,
    %c3_15 = arith.constant 3 : index
    %c8 = arith.constant 8 : index
    %c0_16 = arith.constant 0 : index
    %11 = vector.load %arg8[%c3_15, %c8, %c0_16] : memref<10x15x128xf32, #tpu.memory_space<vmem>>, vector<4x4x128xf32>
    tpu.vector_store %arg8[%c3_15, %c8, %c0_16], %2 {strides = array<i32>} : memref<10x15x128xf32, #tpu.memory_space<vmem>>, vector<4x4x128xf32>,
    %c0_17 = arith.constant 0 : index
    %c0_18 = arith.constant 0 : index
    %c0_19 = arith.constant 0 : index
    %12 = vector.load %arg2[%c0_17, %c0_18, %c0_19] : memref<7x7x128xf32, #tpu.memory_space<vmem>>, vector<7x7x128xf32>
    %c0_20 = arith.constant 0 : index
    %c5 = arith.constant 5 : index
    %c0_21 = arith.constant 0 : index
    %13 = vector.load %arg8[%c0_20, %c5, %c0_21] : memref<10x15x128xf32, #tpu.memory_space<vmem>>, vector<10x4x128xf32>
    %14 = vector.extract_strided_slice %13 {offsets = [0, 0, 0], sizes = [4, 4, 128], strides = [1, 1, 1]} : vector<10x4x128xf32> to vector<4x4x128xf32>
    %15 = vector.extract_strided_slice %12 {offsets = [0, 0, 0], sizes = [1, 1, 128], strides = [1, 1, 1]} : vector<7x7x128xf32> to vector<1x1x128xf32>
    %16 = vector.shape_cast %15 : vector<1x1x128xf32> to vector<1x128xf32>
    %17 = vector.shape_cast %16 : vector<1x128xf32> to vector<1x1x128xf32>
    %18 = vector.broadcast %17 : vector<1x1x128xf32> to vector<4x4x128xf32>
    %19 = arith.mulf %14, %18 : vector<4x4x128xf32>
    %20 = vector.extract_strided_slice %13 {offsets = [1, 0, 0], sizes = [4, 4, 128], strides = [1, 1, 1]} : vector<10x4x128xf32> to vector<4x4x128xf32>
    %21 = vector.extract_strided_slice %12 {offsets = [1, 0, 0], sizes = [1, 1, 128], strides = [1, 1, 1]} : vector<7x7x128xf32> to vector<1x1x128xf32>
    %22 = vector.shape_cast %21 : vector<1x1x128xf32> to vector<1x128xf32>
    %23 = vector.shape_cast %22 : vector<1x128xf32> to vector<1x1x128xf32>
    %24 = vector.broadcast %23 : vector<1x1x128xf32> to vector<4x4x128xf32>
    %25 = arith.mulf %20, %24 : vector<4x4x128xf32>
    %26 = arith.addf %19, %25 : vector<4x4x128xf32>
    %27 = vector.extract_strided_slice %13 {offsets = [2, 0, 0], sizes = [4, 4, 128], strides = [1, 1, 1]} : vector<10x4x128xf32> to vector<4x4x128xf32>
    %28 = vector.extract_strided_slice %12 {offsets = [2, 0, 0], sizes = [1, 1, 128], strides = [1, 1, 1]} : vector<7x7x128xf32> to vector<1x1x128xf32>
    %29 = vector.shape_cast %28 : vector<1x1x128xf32> to vector<1x128xf32>
    %30 = vector.shape_cast %29 : vector<1x128xf32> to vector<1x1x128xf32>
    %31 = vector.broadcast %30 : vector<1x1x128xf32> to vector<4x4x128xf32>
    %32 = arith.mulf %27, %31 : vector<4x4x128xf32>
    %33 = arith.addf %26, %32 : vector<4x4x128xf32>
    %34 = vector.extract_strided_slice %13 {offsets = [3, 0, 0], sizes = [4, 4, 128], strides = [1, 1, 1]} : vector<10x4x128xf32> to vector<4x4x128xf32>
    %35 = vector.extract_strided_slice %12 {offsets = [3, 0, 0], sizes = [1, 1, 128], strides = [1, 1, 1]} : vector<7x7x128xf32> to vector<1x1x128xf32>
    %36 = vector.shape_cast %35 : vector<1x1x128xf32> to vector<1x128xf32>
    %37 = vector.shape_cast %36 : vector<1x128xf32> to vector<1x1x128xf32>
    %38 = vector.broadcast %37 : vector<1x1x128xf32> to vector<4x4x128xf32>
    %39 = arith.mulf %34, %38 : vector<4x4x128xf32>
    %40 = arith.addf %33, %39 : vector<4x4x128xf32>
    %41 = vector.extract_strided_slice %13 {offsets = [4, 0, 0], sizes = [4, 4, 128], strides = [1, 1, 1]} : vector<10x4x128xf32> to vector<4x4x128xf32>
    %42 = vector.extract_strided_slice %12 {offsets = [4, 0, 0], sizes = [1, 1, 128], strides = [1, 1, 1]} : vector<7x7x128xf32> to vector<1x1x128xf32>
    %43 = vector.shape_cast %42 : vector<1x1x128xf32> to vector<1x128xf32>
    %44 = vector.shape_cast %43 : vector<1x128xf32> to vector<1x1x128xf32>
    %45 = vector.broadcast %44 : vector<1x1x128xf32> to vector<4x4x128xf32>
    %46 = arith.mulf %41, %45 : vector<4x4x128xf32>
    %47 = arith.addf %40, %46 : vector<4x4x128xf32>
    %48 = vector.extract_strided_slice %13 {offsets = [5, 0, 0], sizes = [4, 4, 128], strides = [1, 1, 1]} : vector<10x4x128xf32> to vector<4x4x128xf32>
    %49 = vector.extract_strided_slice %12 {offsets = [5, 0, 0], sizes = [1, 1, 128], strides = [1, 1, 1]} : vector<7x7x128xf32> to vector<1x1x128xf32>
    %50 = vector.shape_cast %49 : vector<1x1x128xf32> to vector<1x128xf32>
    %51 = vector.shape_cast %50 : vector<1x128xf32> to vector<1x1x128xf32>
    %52 = vector.broadcast %51 : vector<1x1x128xf32> to vector<4x4x128xf32>
    %53 = arith.mulf %48, %52 : vector<4x4x128xf32>
    %54 = arith.addf %47, %53 : vector<4x4x128xf32>
    %55 = vector.extract_strided_slice %13 {offsets = [6, 0, 0], sizes = [4, 4, 128], strides = [1, 1, 1]} : vector<10x4x128xf32> to vector<4x4x128xf32>
    %56 = vector.extract_strided_slice %12 {offsets = [6, 0, 0], sizes = [1, 1, 128], strides = [1, 1, 1]} : vector<7x7x128xf32> to vector<1x1x128xf32>
    %57 = vector.shape_cast %56 : vector<1x1x128xf32> to vector<1x128xf32>
    %58 = vector.shape_cast %57 : vector<1x128xf32> to vector<1x1x128xf32>
    %59 = vector.broadcast %58 : vector<1x1x128xf32> to vector<4x4x128xf32>
    %60 = arith.mulf %55, %59 : vector<4x4x128xf32>
    %61 = arith.addf %54, %60 : vector<4x4x128xf32>
    %c0_22 = arith.constant 0 : index
    %c6 = arith.constant 6 : index
    %c0_23 = arith.constant 0 : index
    %62 = vector.load %arg8[%c0_22, %c6, %c0_23] : memref<10x15x128xf32, #tpu.memory_space<vmem>>, vector<10x4x128xf32>
    %63 = vector.extract_strided_slice %62 {offsets = [0, 0, 0], sizes = [4, 4, 128], strides = [1, 1, 1]} : vector<10x4x128xf32> to vector<4x4x128xf32>
    %64 = vector.extract_strided_slice %12 {offsets = [0, 1, 0], sizes = [1, 1, 128], strides = [1, 1, 1]} : vector<7x7x128xf32> to vector<1x1x128xf32>
    %65 = vector.shape_cast %64 : vector<1x1x128xf32> to vector<1x128xf32>
    %66 = vector.shape_cast %65 : vector<1x128xf32> to vector<1x1x128xf32>
    %67 = vector.broadcast %66 : vector<1x1x128xf32> to vector<4x4x128xf32>
    %68 = arith.mulf %63, %67 : vector<4x4x128xf32>
    %69 = arith.addf %61, %68 : vector<4x4x128xf32>
    %70 = vector.extract_strided_slice %62 {offsets = [1, 0, 0], sizes = [4, 4, 128], strides = [1, 1, 1]} : vector<10x4x128xf32> to vector<4x4x128xf32>
    %71 = vector.extract_strided_slice %12 {offsets = [1, 1, 0], sizes = [1, 1, 128], strides = [1, 1, 1]} : vector<7x7x128xf32> to vector<1x1x128xf32>
    %72 = vector.shape_cast %71 : vector<1x1x128xf32> to vector<1x128xf32>
    %73 = vector.shape_cast %72 : vector<1x128xf32> to vector<1x1x128xf32>
    %74 = vector.broadcast %73 : vector<1x1x128xf32> to vector<4x4x128xf32>
    %75 = arith.mulf %70, %74 : vector<4x4x128xf32>
    %76 = arith.addf %69, %75 : vector<4x4x128xf32>
    %77 = vector.extract_strided_slice %62 {offsets = [2, 0, 0], sizes = [4, 4, 128], strides = [1, 1, 1]} : vector<10x4x128xf32> to vector<4x4x128xf32>
    %78 = vector.extract_strided_slice %12 {offsets = [2, 1, 0], sizes = [1, 1, 128], strides = [1, 1, 1]} : vector<7x7x128xf32> to vector<1x1x128xf32>
    %79 = vector.shape_cast %78 : vector<1x1x128xf32> to vector<1x128xf32>
    %80 = vector.shape_cast %79 : vector<1x128xf32> to vector<1x1x128xf32>
    %81 = vector.broadcast %80 : vector<1x1x128xf32> to vector<4x4x128xf32>
    %82 = arith.mulf %77, %81 : vector<4x4x128xf32>
    %83 = arith.addf %76, %82 : vector<4x4x128xf32>
    %84 = vector.extract_strided_slice %62 {offsets = [3, 0, 0], sizes = [4, 4, 128], strides = [1, 1, 1]} : vector<10x4x128xf32> to vector<4x4x128xf32>
    %85 = vector.extract_strided_slice %12 {offsets = [3, 1, 0], sizes = [1, 1, 128], strides = [1, 1, 1]} : vector<7x7x128xf32> to vector<1x1x128xf32>
    %86 = vector.shape_cast %85 : vector<1x1x128xf32> to vector<1x128xf32>
    %87 = vector.shape_cast %86 : vector<1x128xf32> to vector<1x1x128xf32>
    %88 = vector.broadcast %87 : vector<1x1x128xf32> to vector<4x4x128xf32>
    %89 = arith.mulf %84, %88 : vector<4x4x128xf32>
    %90 = arith.addf %83, %89 : vector<4x4x128xf32>
    %91 = vector.extract_strided_slice %62 {offsets = [4, 0, 0], sizes = [4, 4, 128], strides = [1, 1, 1]} : vector<10x4x128xf32> to vector<4x4x128xf32>
    %92 = vector.extract_strided_slice %12 {offsets = [4, 1, 0], sizes = [1, 1, 128], strides = [1, 1, 1]} : vector<7x7x128xf32> to vector<1x1x128xf32>
    %93 = vector.shape_cast %92 : vector<1x1x128xf32> to vector<1x128xf32>
    %94 = vector.shape_cast %93 : vector<1x128xf32> to vector<1x1x128xf32>
    %95 = vector.broadcast %94 : vector<1x1x128xf32> to vector<4x4x128xf32>
    %96 = arith.mulf %91, %95 : vector<4x4x128xf32>
    %97 = arith.addf %90, %96 : vector<4x4x128xf32>
    %98 = vector.extract_strided_slice %62 {offsets = [5, 0, 0], sizes = [4, 4, 128], strides = [1, 1, 1]} : vector<10x4x128xf32> to vector<4x4x128xf32>
    %99 = vector.extract_strided_slice %12 {offsets = [5, 1, 0], sizes = [1, 1, 128], strides = [1, 1, 1]} : vector<7x7x128xf32> to vector<1x1x128xf32>
    %100 = vector.shape_cast %99 : vector<1x1x128xf32> to vector<1x128xf32>
    %101 = vector.shape_cast %100 : vector<1x128xf32> to vector<1x1x128xf32>
    %102 = vector.broadcast %101 : vector<1x1x128xf32> to vector<4x4x128xf32>
    %103 = arith.mulf %98, %102 : vector<4x4x128xf32>
    %104 = arith.addf %97, %103 : vector<4x4x128xf32>
    %105 = vector.extract_strided_slice %62 {offsets = [6, 0, 0], sizes = [4, 4, 128], strides = [1, 1, 1]} : vector<10x4x128xf32> to vector<4x4x128xf32>
    %106 = vector.extract_strided_slice %12 {offsets = [6, 1, 0], sizes = [1, 1, 128], strides = [1, 1, 1]} : vector<7x7x128xf32> to vector<1x1x128xf32>
    %107 = vector.shape_cast %106 : vector<1x1x128xf32> to vector<1x128xf32>
    %108 = vector.shape_cast %107 : vector<1x128xf32> to vector<1x1x128xf32>
    %109 = vector.broadcast %108 : vector<1x1x128xf32> to vector<4x4x128xf32>
    %110 = arith.mulf %105, %109 : vector<4x4x128xf32>
    %111 = arith.addf %104, %110 : vector<4x4x128xf32>
    %c0_24 = arith.constant 0 : index
    %c7_25 = arith.constant 7 : index
    %c0_26 = arith.constant 0 : index
    %112 = vector.load %arg8[%c0_24, %c7_25, %c0_26] : memref<10x15x128xf32, #tpu.memory_space<vmem>>, vector<10x4x128xf32>
    %113 = vector.extract_strided_slice %112 {offsets = [0, 0, 0], sizes = [4, 4, 128], strides = [1, 1, 1]} : vector<10x4x128xf32> to vector<4x4x128xf32>
    %114 = vector.extract_strided_slice %12 {offsets = [0, 2, 0], sizes = [1, 1, 128], strides = [1, 1, 1]} : vector<7x7x128xf32> to vector<1x1x128xf32>
    %115 = vector.shape_cast %114 : vector<1x1x128xf32> to vector<1x128xf32>
    %116 = vector.shape_cast %115 : vector<1x128xf32> to vector<1x1x128xf32>
    %117 = vector.broadcast %116 : vector<1x1x128xf32> to vector<4x4x128xf32>
    %118 = arith.mulf %113, %117 : vector<4x4x128xf32>
    %119 = arith.addf %111, %118 : vector<4x4x128xf32>
    %120 = vector.extract_strided_slice %112 {offsets = [1, 0, 0], sizes = [4, 4, 128], strides = [1, 1, 1]} : vector<10x4x128xf32> to vector<4x4x128xf32>
    %121 = vector.extract_strided_slice %12 {offsets = [1, 2, 0], sizes = [1, 1, 128], strides = [1, 1, 1]} : vector<7x7x128xf32> to vector<1x1x128xf32>
    %122 = vector.shape_cast %121 : vector<1x1x128xf32> to vector<1x128xf32>
    %123 = vector.shape_cast %122 : vector<1x128xf32> to vector<1x1x128xf32>
    %124 = vector.broadcast %123 : vector<1x1x128xf32> to vector<4x4x128xf32>
    %125 = arith.mulf %120, %124 : vector<4x4x128xf32>
    %126 = arith.addf %119, %125 : vector<4x4x128xf32>
    %127 = vector.extract_strided_slice %112 {offsets = [2, 0, 0], sizes = [4, 4, 128], strides = [1, 1, 1]} : vector<10x4x128xf32> to vector<4x4x128xf32>
    %128 = vector.extract_strided_slice %12 {offsets = [2, 2, 0], sizes = [1, 1, 128], strides = [1, 1, 1]} : vector<7x7x128xf32> to vector<1x1x128xf32>
    %129 = vector.shape_cast %128 : vector<1x1x128xf32> to vector<1x128xf32>
    %130 = vector.shape_cast %129 : vector<1x128xf32> to vector<1x1x128xf32>
    %131 = vector.broadcast %130 : vector<1x1x128xf32> to vector<4x4x128xf32>
    %132 = arith.mulf %127, %131 : vector<4x4x128xf32>
    %133 = arith.addf %126, %132 : vector<4x4x128xf32>
    %134 = vector.extract_strided_slice %112 {offsets = [3, 0, 0], sizes = [4, 4, 128], strides = [1, 1, 1]} : vector<10x4x128xf32> to vector<4x4x128xf32>
    %135 = vector.extract_strided_slice %12 {offsets = [3, 2, 0], sizes = [1, 1, 128], strides = [1, 1, 1]} : vector<7x7x128xf32> to vector<1x1x128xf32>
    %136 = vector.shape_cast %135 : vector<1x1x128xf32> to vector<1x128xf32>
    %137 = vector.shape_cast %136 : vector<1x128xf32> to vector<1x1x128xf32>
    %138 = vector.broadcast %137 : vector<1x1x128xf32> to vector<4x4x128xf32>
    %139 = arith.mulf %134, %138 : vector<4x4x128xf32>
    %140 = arith.addf %133, %139 : vector<4x4x128xf32>
    %141 = vector.extract_strided_slice %112 {offsets = [4, 0, 0], sizes = [4, 4, 128], strides = [1, 1, 1]} : vector<10x4x128xf32> to vector<4x4x128xf32>
    %142 = vector.extract_strided_slice %12 {offsets = [4, 2, 0], sizes = [1, 1, 128], strides = [1, 1, 1]} : vector<7x7x128xf32> to vector<1x1x128xf32>
    %143 = vector.shape_cast %142 : vector<1x1x128xf32> to vector<1x128xf32>
    %144 = vector.shape_cast %143 : vector<1x128xf32> to vector<1x1x128xf32>
    %145 = vector.broadcast %144 : vector<1x1x128xf32> to vector<4x4x128xf32>
    %146 = arith.mulf %141, %145 : vector<4x4x128xf32>
    %147 = arith.addf %140, %146 : vector<4x4x128xf32>
    %148 = vector.extract_strided_slice %112 {offsets = [5, 0, 0], sizes = [4, 4, 128], strides = [1, 1, 1]} : vector<10x4x128xf32> to vector<4x4x128xf32>
    %149 = vector.extract_strided_slice %12 {offsets = [5, 2, 0], sizes = [1, 1, 128], strides = [1, 1, 1]} : vector<7x7x128xf32> to vector<1x1x128xf32>
    %150 = vector.shape_cast %149 : vector<1x1x128xf32> to vector<1x128xf32>
    %151 = vector.shape_cast %150 : vector<1x128xf32> to vector<1x1x128xf32>
    %152 = vector.broadcast %151 : vector<1x1x128xf32> to vector<4x4x128xf32>
    %153 = arith.mulf %148, %152 : vector<4x4x128xf32>
    %154 = arith.addf %147, %153 : vector<4x4x128xf32>
    %155 = vector.extract_strided_slice %112 {offsets = [6, 0, 0], sizes = [4, 4, 128], strides = [1, 1, 1]} : vector<10x4x128xf32> to vector<4x4x128xf32>
    %156 = vector.extract_strided_slice %12 {offsets = [6, 2, 0], sizes = [1, 1, 128], strides = [1, 1, 1]} : vector<7x7x128xf32> to vector<1x1x128xf32>
    %157 = vector.shape_cast %156 : vector<1x1x128xf32> to vector<1x128xf32>
    %158 = vector.shape_cast %157 : vector<1x128xf32> to vector<1x1x128xf32>
    %159 = vector.broadcast %158 : vector<1x1x128xf32> to vector<4x4x128xf32>
    %160 = arith.mulf %155, %159 : vector<4x4x128xf32>
    %161 = arith.addf %154, %160 : vector<4x4x128xf32>
    %c0_27 = arith.constant 0 : index
    %c8_28 = arith.constant 8 : index
    %c0_29 = arith.constant 0 : index
    %162 = vector.load %arg8[%c0_27, %c8_28, %c0_29] : memref<10x15x128xf32, #tpu.memory_space<vmem>>, vector<10x4x128xf32>
    %163 = vector.extract_strided_slice %162 {offsets = [0, 0, 0], sizes = [4, 4, 128], strides = [1, 1, 1]} : vector<10x4x128xf32> to vector<4x4x128xf32>
    %164 = vector.extract_strided_slice %12 {offsets = [0, 3, 0], sizes = [1, 1, 128], strides = [1, 1, 1]} : vector<7x7x128xf32> to vector<1x1x128xf32>
    %165 = vector.shape_cast %164 : vector<1x1x128xf32> to vector<1x128xf32>
    %166 = vector.shape_cast %165 : vector<1x128xf32> to vector<1x1x128xf32>
    %167 = vector.broadcast %166 : vector<1x1x128xf32> to vector<4x4x128xf32>
    %168 = arith.mulf %163, %167 : vector<4x4x128xf32>
    %169 = arith.addf %161, %168 : vector<4x4x128xf32>
    %170 = vector.extract_strided_slice %162 {offsets = [1, 0, 0], sizes = [4, 4, 128], strides = [1, 1, 1]} : vector<10x4x128xf32> to vector<4x4x128xf32>
    %171 = vector.extract_strided_slice %12 {offsets = [1, 3, 0], sizes = [1, 1, 128], strides = [1, 1, 1]} : vector<7x7x128xf32> to vector<1x1x128xf32>
    %172 = vector.shape_cast %171 : vector<1x1x128xf32> to vector<1x128xf32>
    %173 = vector.shape_cast %172 : vector<1x128xf32> to vector<1x1x128xf32>
    %174 = vector.broadcast %173 : vector<1x1x128xf32> to vector<4x4x128xf32>
    %175 = arith.mulf %170, %174 : vector<4x4x128xf32>
    %176 = arith.addf %169, %175 : vector<4x4x128xf32>
    %177 = vector.extract_strided_slice %162 {offsets = [2, 0, 0], sizes = [4, 4, 128], strides = [1, 1, 1]} : vector<10x4x128xf32> to vector<4x4x128xf32>
    %178 = vector.extract_strided_slice %12 {offsets = [2, 3, 0], sizes = [1, 1, 128], strides = [1, 1, 1]} : vector<7x7x128xf32> to vector<1x1x128xf32>
    %179 = vector.shape_cast %178 : vector<1x1x128xf32> to vector<1x128xf32>
    %180 = vector.shape_cast %179 : vector<1x128xf32> to vector<1x1x128xf32>
    %181 = vector.broadcast %180 : vector<1x1x128xf32> to vector<4x4x128xf32>
    %182 = arith.mulf %177, %181 : vector<4x4x128xf32>
    %183 = arith.addf %176, %182 : vector<4x4x128xf32>
    %184 = vector.extract_strided_slice %162 {offsets = [3, 0, 0], sizes = [4, 4, 128], strides = [1, 1, 1]} : vector<10x4x128xf32> to vector<4x4x128xf32>
    %185 = vector.extract_strided_slice %12 {offsets = [3, 3, 0], sizes = [1, 1, 128], strides = [1, 1, 1]} : vector<7x7x128xf32> to vector<1x1x128xf32>
    %186 = vector.shape_cast %185 : vector<1x1x128xf32> to vector<1x128xf32>
    %187 = vector.shape_cast %186 : vector<1x128xf32> to vector<1x1x128xf32>
    %188 = vector.broadcast %187 : vector<1x1x128xf32> to vector<4x4x128xf32>
    %189 = arith.mulf %184, %188 : vector<4x4x128xf32>
    %190 = arith.addf %183, %189 : vector<4x4x128xf32>
    %191 = vector.extract_strided_slice %162 {offsets = [4, 0, 0], sizes = [4, 4, 128], strides = [1, 1, 1]} : vector<10x4x128xf32> to vector<4x4x128xf32>
    %192 = vector.extract_strided_slice %12 {offsets = [4, 3, 0], sizes = [1, 1, 128], strides = [1, 1, 1]} : vector<7x7x128xf32> to vector<1x1x128xf32>
    %193 = vector.shape_cast %192 : vector<1x1x128xf32> to vector<1x128xf32>
    %194 = vector.shape_cast %193 : vector<1x128xf32> to vector<1x1x128xf32>
    %195 = vector.broadcast %194 : vector<1x1x128xf32> to vector<4x4x128xf32>
    %196 = arith.mulf %191, %195 : vector<4x4x128xf32>
    %197 = arith.addf %190, %196 : vector<4x4x128xf32>
    %198 = vector.extract_strided_slice %162 {offsets = [5, 0, 0], sizes = [4, 4, 128], strides = [1, 1, 1]} : vector<10x4x128xf32> to vector<4x4x128xf32>
    %199 = vector.extract_strided_slice %12 {offsets = [5, 3, 0], sizes = [1, 1, 128], strides = [1, 1, 1]} : vector<7x7x128xf32> to vector<1x1x128xf32>
    %200 = vector.shape_cast %199 : vector<1x1x128xf32> to vector<1x128xf32>
    %201 = vector.shape_cast %200 : vector<1x128xf32> to vector<1x1x128xf32>
    %202 = vector.broadcast %201 : vector<1x1x128xf32> to vector<4x4x128xf32>
    %203 = arith.mulf %198, %202 : vector<4x4x128xf32>
    %204 = arith.addf %197, %203 : vector<4x4x128xf32>
    %205 = vector.extract_strided_slice %162 {offsets = [6, 0, 0], sizes = [4, 4, 128], strides = [1, 1, 1]} : vector<10x4x128xf32> to vector<4x4x128xf32>
    %206 = vector.extract_strided_slice %12 {offsets = [6, 3, 0], sizes = [1, 1, 128], strides = [1, 1, 1]} : vector<7x7x128xf32> to vector<1x1x128xf32>
    %207 = vector.shape_cast %206 : vector<1x1x128xf32> to vector<1x128xf32>
    %208 = vector.shape_cast %207 : vector<1x128xf32> to vector<1x1x128xf32>
    %209 = vector.broadcast %208 : vector<1x1x128xf32> to vector<4x4x128xf32>
    %210 = arith.mulf %205, %209 : vector<4x4x128xf32>
    %211 = arith.addf %204, %210 : vector<4x4x128xf32>
    %c0_30 = arith.constant 0 : index
    %c9 = arith.constant 9 : index
    %c0_31 = arith.constant 0 : index
    %212 = vector.load %arg8[%c0_30, %c9, %c0_31] : memref<10x15x128xf32, #tpu.memory_space<vmem>>, vector<10x4x128xf32>
    %213 = vector.extract_strided_slice %212 {offsets = [0, 0, 0], sizes = [4, 4, 128], strides = [1, 1, 1]} : vector<10x4x128xf32> to vector<4x4x128xf32>
    %214 = vector.extract_strided_slice %12 {offsets = [0, 4, 0], sizes = [1, 1, 128], strides = [1, 1, 1]} : vector<7x7x128xf32> to vector<1x1x128xf32>
    %215 = vector.shape_cast %214 : vector<1x1x128xf32> to vector<1x128xf32>
    %216 = vector.shape_cast %215 : vector<1x128xf32> to vector<1x1x128xf32>
    %217 = vector.broadcast %216 : vector<1x1x128xf32> to vector<4x4x128xf32>
    %218 = arith.mulf %213, %217 : vector<4x4x128xf32>
    %219 = arith.addf %211, %218 : vector<4x4x128xf32>
    %220 = vector.extract_strided_slice %212 {offsets = [1, 0, 0], sizes = [4, 4, 128], strides = [1, 1, 1]} : vector<10x4x128xf32> to vector<4x4x128xf32>
    %221 = vector.extract_strided_slice %12 {offsets = [1, 4, 0], sizes = [1, 1, 128], strides = [1, 1, 1]} : vector<7x7x128xf32> to vector<1x1x128xf32>
    %222 = vector.shape_cast %221 : vector<1x1x128xf32> to vector<1x128xf32>
    %223 = vector.shape_cast %222 : vector<1x128xf32> to vector<1x1x128xf32>
    %224 = vector.broadcast %223 : vector<1x1x128xf32> to vector<4x4x128xf32>
    %225 = arith.mulf %220, %224 : vector<4x4x128xf32>
    %226 = arith.addf %219, %225 : vector<4x4x128xf32>
    %227 = vector.extract_strided_slice %212 {offsets = [2, 0, 0], sizes = [4, 4, 128], strides = [1, 1, 1]} : vector<10x4x128xf32> to vector<4x4x128xf32>
    %228 = vector.extract_strided_slice %12 {offsets = [2, 4, 0], sizes = [1, 1, 128], strides = [1, 1, 1]} : vector<7x7x128xf32> to vector<1x1x128xf32>
    %229 = vector.shape_cast %228 : vector<1x1x128xf32> to vector<1x128xf32>
    %230 = vector.shape_cast %229 : vector<1x128xf32> to vector<1x1x128xf32>
    %231 = vector.broadcast %230 : vector<1x1x128xf32> to vector<4x4x128xf32>
    %232 = arith.mulf %227, %231 : vector<4x4x128xf32>
    %233 = arith.addf %226, %232 : vector<4x4x128xf32>
    %234 = vector.extract_strided_slice %212 {offsets = [3, 0, 0], sizes = [4, 4, 128], strides = [1, 1, 1]} : vector<10x4x128xf32> to vector<4x4x128xf32>
    %235 = vector.extract_strided_slice %12 {offsets = [3, 4, 0], sizes = [1, 1, 128], strides = [1, 1, 1]} : vector<7x7x128xf32> to vector<1x1x128xf32>
    %236 = vector.shape_cast %235 : vector<1x1x128xf32> to vector<1x128xf32>
    %237 = vector.shape_cast %236 : vector<1x128xf32> to vector<1x1x128xf32>
    %238 = vector.broadcast %237 : vector<1x1x128xf32> to vector<4x4x128xf32>
    %239 = arith.mulf %234, %238 : vector<4x4x128xf32>
    %240 = arith.addf %233, %239 : vector<4x4x128xf32>
    %241 = vector.extract_strided_slice %212 {offsets = [4, 0, 0], sizes = [4, 4, 128], strides = [1, 1, 1]} : vector<10x4x128xf32> to vector<4x4x128xf32>
    %242 = vector.extract_strided_slice %12 {offsets = [4, 4, 0], sizes = [1, 1, 128], strides = [1, 1, 1]} : vector<7x7x128xf32> to vector<1x1x128xf32>
    %243 = vector.shape_cast %242 : vector<1x1x128xf32> to vector<1x128xf32>
    %244 = vector.shape_cast %243 : vector<1x128xf32> to vector<1x1x128xf32>
    %245 = vector.broadcast %244 : vector<1x1x128xf32> to vector<4x4x128xf32>
    %246 = arith.mulf %241, %245 : vector<4x4x128xf32>
    %247 = arith.addf %240, %246 : vector<4x4x128xf32>
    %248 = vector.extract_strided_slice %212 {offsets = [5, 0, 0], sizes = [4, 4, 128], strides = [1, 1, 1]} : vector<10x4x128xf32> to vector<4x4x128xf32>
    %249 = vector.extract_strided_slice %12 {offsets = [5, 4, 0], sizes = [1, 1, 128], strides = [1, 1, 1]} : vector<7x7x128xf32> to vector<1x1x128xf32>
    %250 = vector.shape_cast %249 : vector<1x1x128xf32> to vector<1x128xf32>
    %251 = vector.shape_cast %250 : vector<1x128xf32> to vector<1x1x128xf32>
    %252 = vector.broadcast %251 : vector<1x1x128xf32> to vector<4x4x128xf32>
    %253 = arith.mulf %248, %252 : vector<4x4x128xf32>
    %254 = arith.addf %247, %253 : vector<4x4x128xf32>
    %255 = vector.extract_strided_slice %212 {offsets = [6, 0, 0], sizes = [4, 4, 128], strides = [1, 1, 1]} : vector<10x4x128xf32> to vector<4x4x128xf32>
    %256 = vector.extract_strided_slice %12 {offsets = [6, 4, 0], sizes = [1, 1, 128], strides = [1, 1, 1]} : vector<7x7x128xf32> to vector<1x1x128xf32>
    %257 = vector.shape_cast %256 : vector<1x1x128xf32> to vector<1x128xf32>
    %258 = vector.shape_cast %257 : vector<1x128xf32> to vector<1x1x128xf32>
    %259 = vector.broadcast %258 : vector<1x1x128xf32> to vector<4x4x128xf32>
    %260 = arith.mulf %255, %259 : vector<4x4x128xf32>
    %261 = arith.addf %254, %260 : vector<4x4x128xf32>
    %c0_32 = arith.constant 0 : index
    %c10 = arith.constant 10 : index
    %c0_33 = arith.constant 0 : index
    %262 = vector.load %arg8[%c0_32, %c10, %c0_33] : memref<10x15x128xf32, #tpu.memory_space<vmem>>, vector<10x4x128xf32>
    %263 = vector.extract_strided_slice %262 {offsets = [0, 0, 0], sizes = [4, 4, 128], strides = [1, 1, 1]} : vector<10x4x128xf32> to vector<4x4x128xf32>
    %264 = vector.extract_strided_slice %12 {offsets = [0, 5, 0], sizes = [1, 1, 128], strides = [1, 1, 1]} : vector<7x7x128xf32> to vector<1x1x128xf32>
    %265 = vector.shape_cast %264 : vector<1x1x128xf32> to vector<1x128xf32>
    %266 = vector.shape_cast %265 : vector<1x128xf32> to vector<1x1x128xf32>
    %267 = vector.broadcast %266 : vector<1x1x128xf32> to vector<4x4x128xf32>
    %268 = arith.mulf %263, %267 : vector<4x4x128xf32>
    %269 = arith.addf %261, %268 : vector<4x4x128xf32>
    %270 = vector.extract_strided_slice %262 {offsets = [1, 0, 0], sizes = [4, 4, 128], strides = [1, 1, 1]} : vector<10x4x128xf32> to vector<4x4x128xf32>
    %271 = vector.extract_strided_slice %12 {offsets = [1, 5, 0], sizes = [1, 1, 128], strides = [1, 1, 1]} : vector<7x7x128xf32> to vector<1x1x128xf32>
    %272 = vector.shape_cast %271 : vector<1x1x128xf32> to vector<1x128xf32>
    %273 = vector.shape_cast %272 : vector<1x128xf32> to vector<1x1x128xf32>
    %274 = vector.broadcast %273 : vector<1x1x128xf32> to vector<4x4x128xf32>
    %275 = arith.mulf %270, %274 : vector<4x4x128xf32>
    %276 = arith.addf %269, %275 : vector<4x4x128xf32>
    %277 = vector.extract_strided_slice %262 {offsets = [2, 0, 0], sizes = [4, 4, 128], strides = [1, 1, 1]} : vector<10x4x128xf32> to vector<4x4x128xf32>
    %278 = vector.extract_strided_slice %12 {offsets = [2, 5, 0], sizes = [1, 1, 128], strides = [1, 1, 1]} : vector<7x7x128xf32> to vector<1x1x128xf32>
    %279 = vector.shape_cast %278 : vector<1x1x128xf32> to vector<1x128xf32>
    %280 = vector.shape_cast %279 : vector<1x128xf32> to vector<1x1x128xf32>
    %281 = vector.broadcast %280 : vector<1x1x128xf32> to vector<4x4x128xf32>
    %282 = arith.mulf %277, %281 : vector<4x4x128xf32>
    %283 = arith.addf %276, %282 : vector<4x4x128xf32>
    %284 = vector.extract_strided_slice %262 {offsets = [3, 0, 0], sizes = [4, 4, 128], strides = [1, 1, 1]} : vector<10x4x128xf32> to vector<4x4x128xf32>
    %285 = vector.extract_strided_slice %12 {offsets = [3, 5, 0], sizes = [1, 1, 128], strides = [1, 1, 1]} : vector<7x7x128xf32> to vector<1x1x128xf32>
    %286 = vector.shape_cast %285 : vector<1x1x128xf32> to vector<1x128xf32>
    %287 = vector.shape_cast %286 : vector<1x128xf32> to vector<1x1x128xf32>
    %288 = vector.broadcast %287 : vector<1x1x128xf32> to vector<4x4x128xf32>
    %289 = arith.mulf %284, %288 : vector<4x4x128xf32>
    %290 = arith.addf %283, %289 : vector<4x4x128xf32>
    %291 = vector.extract_strided_slice %262 {offsets = [4, 0, 0], sizes = [4, 4, 128], strides = [1, 1, 1]} : vector<10x4x128xf32> to vector<4x4x128xf32>
    %292 = vector.extract_strided_slice %12 {offsets = [4, 5, 0], sizes = [1, 1, 128], strides = [1, 1, 1]} : vector<7x7x128xf32> to vector<1x1x128xf32>
    %293 = vector.shape_cast %292 : vector<1x1x128xf32> to vector<1x128xf32>
    %294 = vector.shape_cast %293 : vector<1x128xf32> to vector<1x1x128xf32>
    %295 = vector.broadcast %294 : vector<1x1x128xf32> to vector<4x4x128xf32>
    %296 = arith.mulf %291, %295 : vector<4x4x128xf32>
    %297 = arith.addf %290, %296 : vector<4x4x128xf32>
    %298 = vector.extract_strided_slice %262 {offsets = [5, 0, 0], sizes = [4, 4, 128], strides = [1, 1, 1]} : vector<10x4x128xf32> to vector<4x4x128xf32>
    %299 = vector.extract_strided_slice %12 {offsets = [5, 5, 0], sizes = [1, 1, 128], strides = [1, 1, 1]} : vector<7x7x128xf32> to vector<1x1x128xf32>
    %300 = vector.shape_cast %299 : vector<1x1x128xf32> to vector<1x128xf32>
    %301 = vector.shape_cast %300 : vector<1x128xf32> to vector<1x1x128xf32>
    %302 = vector.broadcast %301 : vector<1x1x128xf32> to vector<4x4x128xf32>
    %303 = arith.mulf %298, %302 : vector<4x4x128xf32>
    %304 = arith.addf %297, %303 : vector<4x4x128xf32>
    %305 = vector.extract_strided_slice %262 {offsets = [6, 0, 0], sizes = [4, 4, 128], strides = [1, 1, 1]} : vector<10x4x128xf32> to vector<4x4x128xf32>
    %306 = vector.extract_strided_slice %12 {offsets = [6, 5, 0], sizes = [1, 1, 128], strides = [1, 1, 1]} : vector<7x7x128xf32> to vector<1x1x128xf32>
    %307 = vector.shape_cast %306 : vector<1x1x128xf32> to vector<1x128xf32>
    %308 = vector.shape_cast %307 : vector<1x128xf32> to vector<1x1x128xf32>
    %309 = vector.broadcast %308 : vector<1x1x128xf32> to vector<4x4x128xf32>
    %310 = arith.mulf %305, %309 : vector<4x4x128xf32>
    %311 = arith.addf %304, %310 : vector<4x4x128xf32>
    %c0_34 = arith.constant 0 : index
    %c11 = arith.constant 11 : index
    %c0_35 = arith.constant 0 : index
    %312 = vector.load %arg8[%c0_34, %c11, %c0_35] : memref<10x15x128xf32, #tpu.memory_space<vmem>>, vector<10x4x128xf32>
    %313 = vector.extract_strided_slice %312 {offsets = [0, 0, 0], sizes = [4, 4, 128], strides = [1, 1, 1]} : vector<10x4x128xf32> to vector<4x4x128xf32>
    %314 = vector.extract_strided_slice %12 {offsets = [0, 6, 0], sizes = [1, 1, 128], strides = [1, 1, 1]} : vector<7x7x128xf32> to vector<1x1x128xf32>
    %315 = vector.shape_cast %314 : vector<1x1x128xf32> to vector<1x128xf32>
    %316 = vector.shape_cast %315 : vector<1x128xf32> to vector<1x1x128xf32>
    %317 = vector.broadcast %316 : vector<1x1x128xf32> to vector<4x4x128xf32>
    %318 = arith.mulf %313, %317 : vector<4x4x128xf32>
    %319 = arith.addf %311, %318 : vector<4x4x128xf32>
    %320 = vector.extract_strided_slice %312 {offsets = [1, 0, 0], sizes = [4, 4, 128], strides = [1, 1, 1]} : vector<10x4x128xf32> to vector<4x4x128xf32>
    %321 = vector.extract_strided_slice %12 {offsets = [1, 6, 0], sizes = [1, 1, 128], strides = [1, 1, 1]} : vector<7x7x128xf32> to vector<1x1x128xf32>
    %322 = vector.shape_cast %321 : vector<1x1x128xf32> to vector<1x128xf32>
    %323 = vector.shape_cast %322 : vector<1x128xf32> to vector<1x1x128xf32>
    %324 = vector.broadcast %323 : vector<1x1x128xf32> to vector<4x4x128xf32>
    %325 = arith.mulf %320, %324 : vector<4x4x128xf32>
    %326 = arith.addf %319, %325 : vector<4x4x128xf32>
    %327 = vector.extract_strided_slice %312 {offsets = [2, 0, 0], sizes = [4, 4, 128], strides = [1, 1, 1]} : vector<10x4x128xf32> to vector<4x4x128xf32>
    %328 = vector.extract_strided_slice %12 {offsets = [2, 6, 0], sizes = [1, 1, 128], strides = [1, 1, 1]} : vector<7x7x128xf32> to vector<1x1x128xf32>
    %329 = vector.shape_cast %328 : vector<1x1x128xf32> to vector<1x128xf32>
    %330 = vector.shape_cast %329 : vector<1x128xf32> to vector<1x1x128xf32>
    %331 = vector.broadcast %330 : vector<1x1x128xf32> to vector<4x4x128xf32>
    %332 = arith.mulf %327, %331 : vector<4x4x128xf32>
    %333 = arith.addf %326, %332 : vector<4x4x128xf32>
    %334 = vector.extract_strided_slice %312 {offsets = [3, 0, 0], sizes = [4, 4, 128], strides = [1, 1, 1]} : vector<10x4x128xf32> to vector<4x4x128xf32>
    %335 = vector.extract_strided_slice %12 {offsets = [3, 6, 0], sizes = [1, 1, 128], strides = [1, 1, 1]} : vector<7x7x128xf32> to vector<1x1x128xf32>
    %336 = vector.shape_cast %335 : vector<1x1x128xf32> to vector<1x128xf32>
    %337 = vector.shape_cast %336 : vector<1x128xf32> to vector<1x1x128xf32>
    %338 = vector.broadcast %337 : vector<1x1x128xf32> to vector<4x4x128xf32>
    %339 = arith.mulf %334, %338 : vector<4x4x128xf32>
    %340 = arith.addf %333, %339 : vector<4x4x128xf32>
    %341 = vector.extract_strided_slice %312 {offsets = [4, 0, 0], sizes = [4, 4, 128], strides = [1, 1, 1]} : vector<10x4x128xf32> to vector<4x4x128xf32>
    %342 = vector.extract_strided_slice %12 {offsets = [4, 6, 0], sizes = [1, 1, 128], strides = [1, 1, 1]} : vector<7x7x128xf32> to vector<1x1x128xf32>
    %343 = vector.shape_cast %342 : vector<1x1x128xf32> to vector<1x128xf32>
    %344 = vector.shape_cast %343 : vector<1x128xf32> to vector<1x1x128xf32>
    %345 = vector.broadcast %344 : vector<1x1x128xf32> to vector<4x4x128xf32>
    %346 = arith.mulf %341, %345 : vector<4x4x128xf32>
    %347 = arith.addf %340, %346 : vector<4x4x128xf32>
    %348 = vector.extract_strided_slice %312 {offsets = [5, 0, 0], sizes = [4, 4, 128], strides = [1, 1, 1]} : vector<10x4x128xf32> to vector<4x4x128xf32>
    %349 = vector.extract_strided_slice %12 {offsets = [5, 6, 0], sizes = [1, 1, 128], strides = [1, 1, 1]} : vector<7x7x128xf32> to vector<1x1x128xf32>
    %350 = vector.shape_cast %349 : vector<1x1x128xf32> to vector<1x128xf32>
    %351 = vector.shape_cast %350 : vector<1x128xf32> to vector<1x1x128xf32>
    %352 = vector.broadcast %351 : vector<1x1x128xf32> to vector<4x4x128xf32>
    %353 = arith.mulf %348, %352 : vector<4x4x128xf32>
    %354 = arith.addf %347, %353 : vector<4x4x128xf32>
    %355 = vector.extract_strided_slice %312 {offsets = [6, 0, 0], sizes = [4, 4, 128], strides = [1, 1, 1]} : vector<10x4x128xf32> to vector<4x4x128xf32>
    %356 = vector.extract_strided_slice %12 {offsets = [6, 6, 0], sizes = [1, 1, 128], strides = [1, 1, 1]} : vector<7x7x128xf32> to vector<1x1x128xf32>
    %357 = vector.shape_cast %356 : vector<1x1x128xf32> to vector<1x128xf32>
    %358 = vector.shape_cast %357 : vector<1x128xf32> to vector<1x1x128xf32>
    %359 = vector.broadcast %358 : vector<1x1x128xf32> to vector<4x4x128xf32>
    %360 = arith.mulf %355, %359 : vector<4x4x128xf32>
    %361 = arith.addf %354, %360 : vector<4x4x128xf32>
    %362 = vector.shape_cast %361 : vector<4x4x128xf32> to vector<16x128xf32>
    %363 = arith.truncf %362 : vector<16x128xf32> to vector<16x128xbf16>
    %c0_36 = arith.constant 0 : index
    %c0_37 = arith.constant 0 : index
    %364 = vector.load %arg3[%c0_36, %c0_37] : memref<128x128xbf16, #tpu.memory_space<vmem>>, vector<128x128xbf16>
    %cst_38 = arith.constant dense<0.000000e+00> : vector<16x128xf32>
    %365 = tpu.matmul %363, %364, %cst_38 {dimension_numbers = #tpu.dot_dimension_numbers<[1], [0], [0], [1], [0, 0, 1, 1], [], []>} : vector<16x128xbf16>, vector<128x128xbf16>, vector<16x128xf32> -> vector<16x128xf32>
    %c0_39 = arith.constant 0 : index
    %c0_40 = arith.constant 0 : index
    %366 = vector.load %arg4[%c0_39, %c0_40] : memref<1x128xf32, #tpu.memory_space<vmem>>, vector<1x128xf32>
    %367 = vector.broadcast %366 : vector<1x128xf32> to vector<16x128xf32>
    %368 = arith.addf %365, %367 : vector<16x128xf32>
    %cst_41 = arith.constant 5.000000e-01 : f32
    %369 = vector.broadcast %cst_41 : f32 to vector<16x128xf32>
    %370 = arith.mulf %369, %368 : vector<16x128xf32>
    %cst_42 = arith.constant 4.471500e-02 : f32
    %371 = vector.broadcast %cst_42 : f32 to vector<16x128xf32>
    %372 = arith.mulf %371, %368 : vector<16x128xf32>
    %373 = arith.mulf %372, %368 : vector<16x128xf32>
    %374 = arith.mulf %373, %368 : vector<16x128xf32>
    %375 = arith.addf %368, %374 : vector<16x128xf32>
    %cst_43 = arith.constant 0.797884583 : f32
    %376 = vector.broadcast %cst_43 : f32 to vector<16x128xf32>
    %377 = arith.mulf %376, %375 : vector<16x128xf32>
    %378 = math.tanh %377 : vector<16x128xf32>
    %cst_44 = arith.constant 1.000000e+00 : f32
    %379 = vector.broadcast %cst_44 : f32 to vector<16x128xf32>
    %380 = arith.addf %379, %378 : vector<16x128xf32>
    %381 = arith.mulf %370, %380 : vector<16x128xf32>
    %382 = arith.truncf %381 : vector<16x128xf32> to vector<16x128xbf16>
    %c0_45 = arith.constant 0 : index
    %c0_46 = arith.constant 0 : index
    %383 = vector.load %arg5[%c0_45, %c0_46] : memref<128x128xbf16, #tpu.memory_space<vmem>>, vector<128x128xbf16>
    %cst_47 = arith.constant dense<0.000000e+00> : vector<16x128xf32>
    %384 = tpu.matmul %382, %383, %cst_47 {dimension_numbers = #tpu.dot_dimension_numbers<[1], [0], [0], [1], [0, 0, 1, 1], [], []>} : vector<16x128xbf16>, vector<128x128xbf16>, vector<16x128xf32> -> vector<16x128xf32>
    %c0_48 = arith.constant 0 : index
    %c0_49 = arith.constant 0 : index
    %385 = vector.load %arg6[%c0_48, %c0_49] : memref<1x128xf32, #tpu.memory_space<vmem>>, vector<1x128xf32>
    %386 = vector.broadcast %385 : vector<1x128xf32> to vector<16x128xf32>
    %387 = arith.addf %384, %386 : vector<16x128xf32>
    %388 = vector.shape_cast %387 : vector<16x128xf32> to vector<4x4x128xf32>
    %389 = arith.addf %2, %388 : vector<4x4x128xf32>
    %390 = arith.truncf %389 : vector<4x4x128xf32> to vector<4x4x128xbf16>
    %c0_50 = arith.constant 0 : index
    %c0_51 = arith.constant 0 : index
    %c0_52 = arith.constant 0 : index
    %c0_53 = arith.constant 0 : index
    %391 = vector.load %arg7[%c0_50, %c0_51, %c0_52, %c0_53] : memref<1x4x4x128xbf16, #tpu.memory_space<vmem>>, vector<1x4x4x128xbf16>
    %392 = vector.shape_cast %391 : vector<1x4x4x128xbf16> to vector<4x4x128xbf16>
    %393 = vector.shape_cast %390 : vector<4x4x128xbf16> to vector<1x4x4x128xbf16>
    tpu.vector_store %arg7[%c0_50, %c0_51, %c0_52, %c0_53], %393 {strides = array<i32>} : memref<1x4x4x128xbf16, #tpu.memory_space<vmem>>, vector<1x4x4x128xbf16>,
    return
  }
  func.func @transform_0(%arg0: i32) -> (i32, i32, i32, i32) {
    %c0_i32 = arith.constant 0 : i32
    %c0_i32_0 = arith.constant 0 : i32
    %c0_i32_1 = arith.constant 0 : i32
    %c0_i32_2 = arith.constant 0 : i32
    return %arg0, %c0_i32, %c0_i32_0, %c0_i32_1 : i32, i32, i32, i32
  }
  func.func @transform_1(%arg0: i32) -> (i32, i32, i32) {
    %c0_i32 = arith.constant 0 : i32
    %c0_i32_0 = arith.constant 0 : i32
    %c0_i32_1 = arith.constant 0 : i32
    %c0_i32_2 = arith.constant 0 : i32
    return %c0_i32, %c0_i32_0, %c0_i32_1 : i32, i32, i32
  }
  func.func @transform_2(%arg0: i32) -> (i32, i32) {
    %c0_i32 = arith.constant 0 : i32
    %c0_i32_0 = arith.constant 0 : i32
    %c0_i32_1 = arith.constant 0 : i32
    return %c0_i32, %c0_i32_0 : i32, i32
  }
  func.func @transform_3(%arg0: i32) -> (i32, i32) {
    %c0_i32 = arith.constant 0 : i32
    %c0_i32_0 = arith.constant 0 : i32
    %c0_i32_1 = arith.constant 0 : i32
    return %c0_i32, %c0_i32_0 : i32, i32
  }
  func.func @transform_4(%arg0: i32) -> (i32, i32) {
    %c0_i32 = arith.constant 0 : i32
    %c0_i32_0 = arith.constant 0 : i32
    %c0_i32_1 = arith.constant 0 : i32
    return %c0_i32, %c0_i32_0 : i32, i32
  }
  func.func @transform_5(%arg0: i32) -> (i32, i32) {
    %c0_i32 = arith.constant 0 : i32
    %c0_i32_0 = arith.constant 0 : i32
    %c0_i32_1 = arith.constant 0 : i32
    return %c0_i32, %c0_i32_0 : i32, i32
  }
  func.func @transform_6(%arg0: i32) -> (i32, i32, i32, i32) {
    %c0_i32 = arith.constant 0 : i32
    %c0_i32_0 = arith.constant 0 : i32
    %c0_i32_1 = arith.constant 0 : i32
    %c0_i32_2 = arith.constant 0 : i32
    return %arg0, %c0_i32, %c0_i32_0, %c0_i32_1 : i32, i32, i32, i32
  }
}

module attributes {stable_mosaic.version = 11 : i64} {
  func.func @_matmul_bias_kernel(%arg0: i32, %arg1: memref<8x512xbf16, #tpu.memory_space<vmem>>, %arg2: memref<512x128xbf16, #tpu.memory_space<vmem>>, %arg3: memref<1x128xf32, #tpu.memory_space<vmem>>, %arg4: memref<8x128xbf16, #tpu.memory_space<vmem>>) attributes {dimension_semantics = [#tpu.dimension_semantics<parallel>], iteration_bounds = array<i64: 1>, scalar_prefetch = 0 : i64, scratch_operands = 0 : i64, tpu.core_type = #tpu.core_type<tc>, window_params = [{transform_indices = @transform_0, window_bounds = array<i64: 8, 512>}, {pipeline_mode = #tpu.pipeline_mode<synchronous>, transform_indices = @transform_1, window_bounds = array<i64: 512, 128>}, {pipeline_mode = #tpu.pipeline_mode<synchronous>, transform_indices = @transform_2, window_bounds = array<i64: 1, 128>}, {transform_indices = @transform_3, window_bounds = array<i64: 8, 128>}]} {
    %c0 = arith.constant 0 : index
    %c0_0 = arith.constant 0 : index
    %0 = vector.load %arg1[%c0, %c0_0] : memref<8x512xbf16, #tpu.memory_space<vmem>>, vector<8x512xbf16>
    %c0_1 = arith.constant 0 : index
    %c0_2 = arith.constant 0 : index
    %1 = vector.load %arg2[%c0_1, %c0_2] : memref<512x128xbf16, #tpu.memory_space<vmem>>, vector<512x128xbf16>
    %cst = arith.constant dense<0.000000e+00> : vector<8x128xf32>
    %2 = tpu.matmul %0, %1, %cst {dimension_numbers = #tpu.dot_dimension_numbers<[1], [0], [0], [1], [0, 0, 1, 1], [], []>} : vector<8x512xbf16>, vector<512x128xbf16>, vector<8x128xf32> -> vector<8x128xf32>
    %c0_3 = arith.constant 0 : index
    %c0_4 = arith.constant 0 : index
    %3 = vector.load %arg3[%c0_3, %c0_4] : memref<1x128xf32, #tpu.memory_space<vmem>>, vector<1x128xf32>
    %4 = vector.broadcast %3 : vector<1x128xf32> to vector<8x128xf32>
    %5 = arith.addf %2, %4 : vector<8x128xf32>
    %6 = arith.truncf %5 : vector<8x128xf32> to vector<8x128xbf16>
    %c0_5 = arith.constant 0 : index
    %c0_6 = arith.constant 0 : index
    %7 = vector.load %arg4[%c0_5, %c0_6] : memref<8x128xbf16, #tpu.memory_space<vmem>>, vector<8x128xbf16>
    tpu.vector_store %arg4[%c0_5, %c0_6], %6 {strides = array<i32>} : memref<8x128xbf16, #tpu.memory_space<vmem>>, vector<8x128xbf16>,
    return
  }
  func.func @transform_0(%arg0: i32) -> (i32, i32) {
    %c0_i32 = arith.constant 0 : i32
    %c0_i32_0 = arith.constant 0 : i32
    return %arg0, %c0_i32 : i32, i32
  }
  func.func @transform_1(%arg0: i32) -> (i32, i32) {
    %c0_i32 = arith.constant 0 : i32
    %c0_i32_0 = arith.constant 0 : i32
    %c0_i32_1 = arith.constant 0 : i32
    return %c0_i32, %c0_i32_0 : i32, i32
  }
  func.func @transform_2(%arg0: i32) -> (i32, i32) {
    %c0_i32 = arith.constant 0 : i32
    %c0_i32_0 = arith.constant 0 : i32
    %c0_i32_1 = arith.constant 0 : i32
    return %c0_i32, %c0_i32_0 : i32, i32
  }
  func.func @transform_3(%arg0: i32) -> (i32, i32) {
    %c0_i32 = arith.constant 0 : i32
    %c0_i32_0 = arith.constant 0 : i32
    return %arg0, %c0_i32 : i32, i32
  }
}

module attributes {stable_mosaic.version = 11 : i64} {
  func.func @_convnext_block_kernel(%arg0: i32, %arg1: memref<1x2x2x128xbf16, #tpu.memory_space<vmem>>, %arg2: memref<7x7x128xf32, #tpu.memory_space<vmem>>, %arg3: memref<128x128xbf16, #tpu.memory_space<vmem>>, %arg4: memref<1x128xf32, #tpu.memory_space<vmem>>, %arg5: memref<128x128xbf16, #tpu.memory_space<vmem>>, %arg6: memref<1x128xf32, #tpu.memory_space<vmem>>, %arg7: memref<1x2x2x128xbf16, #tpu.memory_space<vmem>>, %arg8: memref<8x13x128xf32, #tpu.memory_space<vmem>>) attributes {dimension_semantics = [#tpu.dimension_semantics<parallel>], iteration_bounds = array<i64: 2>, scalar_prefetch = 0 : i64, scratch_operands = 1 : i64, tpu.core_type = #tpu.core_type<tc>, window_params = [{transform_indices = @transform_0, window_bounds = array<i64: 1, 2, 2, 128>}, {pipeline_mode = #tpu.pipeline_mode<synchronous>, transform_indices = @transform_1, window_bounds = array<i64: 7, 7, 128>}, {pipeline_mode = #tpu.pipeline_mode<synchronous>, transform_indices = @transform_2, window_bounds = array<i64: 128, 128>}, {pipeline_mode = #tpu.pipeline_mode<synchronous>, transform_indices = @transform_3, window_bounds = array<i64: 1, 128>}, {pipeline_mode = #tpu.pipeline_mode<synchronous>, transform_indices = @transform_4, window_bounds = array<i64: 128, 128>}, {pipeline_mode = #tpu.pipeline_mode<synchronous>, transform_indices = @transform_5, window_bounds = array<i64: 1, 128>}, {transform_indices = @transform_6, window_bounds = array<i64: 1, 2, 2, 128>}]} {
    %c0 = arith.constant 0 : index
    %c0_0 = arith.constant 0 : index
    %c0_1 = arith.constant 0 : index
    %c0_2 = arith.constant 0 : index
    %0 = vector.load %arg1[%c0, %c0_0, %c0_1, %c0_2] : memref<1x2x2x128xbf16, #tpu.memory_space<vmem>>, vector<1x2x2x128xbf16>
    %1 = vector.shape_cast %0 : vector<1x2x2x128xbf16> to vector<2x2x128xbf16>
    %2 = arith.extf %1 : vector<2x2x128xbf16> to vector<2x2x128xf32>
    %cst = arith.constant 0.000000e+00 : f32
    %3 = vector.broadcast %cst : f32 to vector<3x13x128xf32>
    %c0_3 = arith.constant 0 : index
    %c0_4 = arith.constant 0 : index
    %c0_5 = arith.constant 0 : index
    %4 = vector.load %arg8[%c0_3, %c0_4, %c0_5] : memref<8x13x128xf32, #tpu.memory_space<vmem>>, vector<3x13x128xf32>
    tpu.vector_store %arg8[%c0_3, %c0_4, %c0_5], %3 {strides = array<i32>} : memref<8x13x128xf32, #tpu.memory_space<vmem>>, vector<3x13x128xf32>,
    %cst_6 = arith.constant 0.000000e+00 : f32
    %5 = vector.broadcast %cst_6 : f32 to vector<3x13x128xf32>
    %c5 = arith.constant 5 : index
    %c0_7 = arith.constant 0 : index
    %c0_8 = arith.constant 0 : index
    %6 = vector.load %arg8[%c5, %c0_7, %c0_8] : memref<8x13x128xf32, #tpu.memory_space<vmem>>, vector<3x13x128xf32>
    tpu.vector_store %arg8[%c5, %c0_7, %c0_8], %5 {strides = array<i32>} : memref<8x13x128xf32, #tpu.memory_space<vmem>>, vector<3x13x128xf32>,
    %cst_9 = arith.constant 0.000000e+00 : f32
    %7 = vector.broadcast %cst_9 : f32 to vector<2x8x128xf32>
    %c3 = arith.constant 3 : index
    %c0_10 = arith.constant 0 : index
    %c0_11 = arith.constant 0 : index
    %8 = vector.load %arg8[%c3, %c0_10, %c0_11] : memref<8x13x128xf32, #tpu.memory_space<vmem>>, vector<2x8x128xf32>
    tpu.vector_store %arg8[%c3, %c0_10, %c0_11], %7 {strides = array<i32>} : memref<8x13x128xf32, #tpu.memory_space<vmem>>, vector<2x8x128xf32>,
    %cst_12 = arith.constant 0.000000e+00 : f32
    %9 = vector.broadcast %cst_12 : f32 to vector<2x3x128xf32>
    %c3_13 = arith.constant 3 : index
    %c10 = arith.constant 10 : index
    %c0_14 = arith.constant 0 : index
    %10 = vector.load %arg8[%c3_13, %c10, %c0_14] : memref<8x13x128xf32, #tpu.memory_space<vmem>>, vector<2x3x128xf32>
    tpu.vector_store %arg8[%c3_13, %c10, %c0_14], %9 {strides = array<i32>} : memref<8x13x128xf32, #tpu.memory_space<vmem>>, vector<2x3x128xf32>,
    %c3_15 = arith.constant 3 : index
    %c8 = arith.constant 8 : index
    %c0_16 = arith.constant 0 : index
    %11 = vector.load %arg8[%c3_15, %c8, %c0_16] : memref<8x13x128xf32, #tpu.memory_space<vmem>>, vector<2x2x128xf32>
    tpu.vector_store %arg8[%c3_15, %c8, %c0_16], %2 {strides = array<i32>} : memref<8x13x128xf32, #tpu.memory_space<vmem>>, vector<2x2x128xf32>,
    %c0_17 = arith.constant 0 : index
    %c0_18 = arith.constant 0 : index
    %c0_19 = arith.constant 0 : index
    %12 = vector.load %arg2[%c0_17, %c0_18, %c0_19] : memref<7x7x128xf32, #tpu.memory_space<vmem>>, vector<7x7x128xf32>
    %c0_20 = arith.constant 0 : index
    %c5_21 = arith.constant 5 : index
    %c0_22 = arith.constant 0 : index
    %13 = vector.load %arg8[%c0_20, %c5_21, %c0_22] : memref<8x13x128xf32, #tpu.memory_space<vmem>>, vector<8x2x128xf32>
    %14 = vector.extract_strided_slice %13 {offsets = [0, 0, 0], sizes = [2, 2, 128], strides = [1, 1, 1]} : vector<8x2x128xf32> to vector<2x2x128xf32>
    %15 = vector.extract_strided_slice %12 {offsets = [0, 0, 0], sizes = [1, 1, 128], strides = [1, 1, 1]} : vector<7x7x128xf32> to vector<1x1x128xf32>
    %16 = vector.shape_cast %15 : vector<1x1x128xf32> to vector<1x128xf32>
    %17 = vector.shape_cast %16 : vector<1x128xf32> to vector<1x1x128xf32>
    %18 = vector.broadcast %17 : vector<1x1x128xf32> to vector<2x2x128xf32>
    %19 = arith.mulf %14, %18 : vector<2x2x128xf32>
    %20 = vector.extract_strided_slice %13 {offsets = [1, 0, 0], sizes = [2, 2, 128], strides = [1, 1, 1]} : vector<8x2x128xf32> to vector<2x2x128xf32>
    %21 = vector.extract_strided_slice %12 {offsets = [1, 0, 0], sizes = [1, 1, 128], strides = [1, 1, 1]} : vector<7x7x128xf32> to vector<1x1x128xf32>
    %22 = vector.shape_cast %21 : vector<1x1x128xf32> to vector<1x128xf32>
    %23 = vector.shape_cast %22 : vector<1x128xf32> to vector<1x1x128xf32>
    %24 = vector.broadcast %23 : vector<1x1x128xf32> to vector<2x2x128xf32>
    %25 = arith.mulf %20, %24 : vector<2x2x128xf32>
    %26 = arith.addf %19, %25 : vector<2x2x128xf32>
    %27 = vector.extract_strided_slice %13 {offsets = [2, 0, 0], sizes = [2, 2, 128], strides = [1, 1, 1]} : vector<8x2x128xf32> to vector<2x2x128xf32>
    %28 = vector.extract_strided_slice %12 {offsets = [2, 0, 0], sizes = [1, 1, 128], strides = [1, 1, 1]} : vector<7x7x128xf32> to vector<1x1x128xf32>
    %29 = vector.shape_cast %28 : vector<1x1x128xf32> to vector<1x128xf32>
    %30 = vector.shape_cast %29 : vector<1x128xf32> to vector<1x1x128xf32>
    %31 = vector.broadcast %30 : vector<1x1x128xf32> to vector<2x2x128xf32>
    %32 = arith.mulf %27, %31 : vector<2x2x128xf32>
    %33 = arith.addf %26, %32 : vector<2x2x128xf32>
    %34 = vector.extract_strided_slice %13 {offsets = [3, 0, 0], sizes = [2, 2, 128], strides = [1, 1, 1]} : vector<8x2x128xf32> to vector<2x2x128xf32>
    %35 = vector.extract_strided_slice %12 {offsets = [3, 0, 0], sizes = [1, 1, 128], strides = [1, 1, 1]} : vector<7x7x128xf32> to vector<1x1x128xf32>
    %36 = vector.shape_cast %35 : vector<1x1x128xf32> to vector<1x128xf32>
    %37 = vector.shape_cast %36 : vector<1x128xf32> to vector<1x1x128xf32>
    %38 = vector.broadcast %37 : vector<1x1x128xf32> to vector<2x2x128xf32>
    %39 = arith.mulf %34, %38 : vector<2x2x128xf32>
    %40 = arith.addf %33, %39 : vector<2x2x128xf32>
    %41 = vector.extract_strided_slice %13 {offsets = [4, 0, 0], sizes = [2, 2, 128], strides = [1, 1, 1]} : vector<8x2x128xf32> to vector<2x2x128xf32>
    %42 = vector.extract_strided_slice %12 {offsets = [4, 0, 0], sizes = [1, 1, 128], strides = [1, 1, 1]} : vector<7x7x128xf32> to vector<1x1x128xf32>
    %43 = vector.shape_cast %42 : vector<1x1x128xf32> to vector<1x128xf32>
    %44 = vector.shape_cast %43 : vector<1x128xf32> to vector<1x1x128xf32>
    %45 = vector.broadcast %44 : vector<1x1x128xf32> to vector<2x2x128xf32>
    %46 = arith.mulf %41, %45 : vector<2x2x128xf32>
    %47 = arith.addf %40, %46 : vector<2x2x128xf32>
    %48 = vector.extract_strided_slice %13 {offsets = [5, 0, 0], sizes = [2, 2, 128], strides = [1, 1, 1]} : vector<8x2x128xf32> to vector<2x2x128xf32>
    %49 = vector.extract_strided_slice %12 {offsets = [5, 0, 0], sizes = [1, 1, 128], strides = [1, 1, 1]} : vector<7x7x128xf32> to vector<1x1x128xf32>
    %50 = vector.shape_cast %49 : vector<1x1x128xf32> to vector<1x128xf32>
    %51 = vector.shape_cast %50 : vector<1x128xf32> to vector<1x1x128xf32>
    %52 = vector.broadcast %51 : vector<1x1x128xf32> to vector<2x2x128xf32>
    %53 = arith.mulf %48, %52 : vector<2x2x128xf32>
    %54 = arith.addf %47, %53 : vector<2x2x128xf32>
    %55 = vector.extract_strided_slice %13 {offsets = [6, 0, 0], sizes = [2, 2, 128], strides = [1, 1, 1]} : vector<8x2x128xf32> to vector<2x2x128xf32>
    %56 = vector.extract_strided_slice %12 {offsets = [6, 0, 0], sizes = [1, 1, 128], strides = [1, 1, 1]} : vector<7x7x128xf32> to vector<1x1x128xf32>
    %57 = vector.shape_cast %56 : vector<1x1x128xf32> to vector<1x128xf32>
    %58 = vector.shape_cast %57 : vector<1x128xf32> to vector<1x1x128xf32>
    %59 = vector.broadcast %58 : vector<1x1x128xf32> to vector<2x2x128xf32>
    %60 = arith.mulf %55, %59 : vector<2x2x128xf32>
    %61 = arith.addf %54, %60 : vector<2x2x128xf32>
    %c0_23 = arith.constant 0 : index
    %c6 = arith.constant 6 : index
    %c0_24 = arith.constant 0 : index
    %62 = vector.load %arg8[%c0_23, %c6, %c0_24] : memref<8x13x128xf32, #tpu.memory_space<vmem>>, vector<8x2x128xf32>
    %63 = vector.extract_strided_slice %62 {offsets = [0, 0, 0], sizes = [2, 2, 128], strides = [1, 1, 1]} : vector<8x2x128xf32> to vector<2x2x128xf32>
    %64 = vector.extract_strided_slice %12 {offsets = [0, 1, 0], sizes = [1, 1, 128], strides = [1, 1, 1]} : vector<7x7x128xf32> to vector<1x1x128xf32>
    %65 = vector.shape_cast %64 : vector<1x1x128xf32> to vector<1x128xf32>
    %66 = vector.shape_cast %65 : vector<1x128xf32> to vector<1x1x128xf32>
    %67 = vector.broadcast %66 : vector<1x1x128xf32> to vector<2x2x128xf32>
    %68 = arith.mulf %63, %67 : vector<2x2x128xf32>
    %69 = arith.addf %61, %68 : vector<2x2x128xf32>
    %70 = vector.extract_strided_slice %62 {offsets = [1, 0, 0], sizes = [2, 2, 128], strides = [1, 1, 1]} : vector<8x2x128xf32> to vector<2x2x128xf32>
    %71 = vector.extract_strided_slice %12 {offsets = [1, 1, 0], sizes = [1, 1, 128], strides = [1, 1, 1]} : vector<7x7x128xf32> to vector<1x1x128xf32>
    %72 = vector.shape_cast %71 : vector<1x1x128xf32> to vector<1x128xf32>
    %73 = vector.shape_cast %72 : vector<1x128xf32> to vector<1x1x128xf32>
    %74 = vector.broadcast %73 : vector<1x1x128xf32> to vector<2x2x128xf32>
    %75 = arith.mulf %70, %74 : vector<2x2x128xf32>
    %76 = arith.addf %69, %75 : vector<2x2x128xf32>
    %77 = vector.extract_strided_slice %62 {offsets = [2, 0, 0], sizes = [2, 2, 128], strides = [1, 1, 1]} : vector<8x2x128xf32> to vector<2x2x128xf32>
    %78 = vector.extract_strided_slice %12 {offsets = [2, 1, 0], sizes = [1, 1, 128], strides = [1, 1, 1]} : vector<7x7x128xf32> to vector<1x1x128xf32>
    %79 = vector.shape_cast %78 : vector<1x1x128xf32> to vector<1x128xf32>
    %80 = vector.shape_cast %79 : vector<1x128xf32> to vector<1x1x128xf32>
    %81 = vector.broadcast %80 : vector<1x1x128xf32> to vector<2x2x128xf32>
    %82 = arith.mulf %77, %81 : vector<2x2x128xf32>
    %83 = arith.addf %76, %82 : vector<2x2x128xf32>
    %84 = vector.extract_strided_slice %62 {offsets = [3, 0, 0], sizes = [2, 2, 128], strides = [1, 1, 1]} : vector<8x2x128xf32> to vector<2x2x128xf32>
    %85 = vector.extract_strided_slice %12 {offsets = [3, 1, 0], sizes = [1, 1, 128], strides = [1, 1, 1]} : vector<7x7x128xf32> to vector<1x1x128xf32>
    %86 = vector.shape_cast %85 : vector<1x1x128xf32> to vector<1x128xf32>
    %87 = vector.shape_cast %86 : vector<1x128xf32> to vector<1x1x128xf32>
    %88 = vector.broadcast %87 : vector<1x1x128xf32> to vector<2x2x128xf32>
    %89 = arith.mulf %84, %88 : vector<2x2x128xf32>
    %90 = arith.addf %83, %89 : vector<2x2x128xf32>
    %91 = vector.extract_strided_slice %62 {offsets = [4, 0, 0], sizes = [2, 2, 128], strides = [1, 1, 1]} : vector<8x2x128xf32> to vector<2x2x128xf32>
    %92 = vector.extract_strided_slice %12 {offsets = [4, 1, 0], sizes = [1, 1, 128], strides = [1, 1, 1]} : vector<7x7x128xf32> to vector<1x1x128xf32>
    %93 = vector.shape_cast %92 : vector<1x1x128xf32> to vector<1x128xf32>
    %94 = vector.shape_cast %93 : vector<1x128xf32> to vector<1x1x128xf32>
    %95 = vector.broadcast %94 : vector<1x1x128xf32> to vector<2x2x128xf32>
    %96 = arith.mulf %91, %95 : vector<2x2x128xf32>
    %97 = arith.addf %90, %96 : vector<2x2x128xf32>
    %98 = vector.extract_strided_slice %62 {offsets = [5, 0, 0], sizes = [2, 2, 128], strides = [1, 1, 1]} : vector<8x2x128xf32> to vector<2x2x128xf32>
    %99 = vector.extract_strided_slice %12 {offsets = [5, 1, 0], sizes = [1, 1, 128], strides = [1, 1, 1]} : vector<7x7x128xf32> to vector<1x1x128xf32>
    %100 = vector.shape_cast %99 : vector<1x1x128xf32> to vector<1x128xf32>
    %101 = vector.shape_cast %100 : vector<1x128xf32> to vector<1x1x128xf32>
    %102 = vector.broadcast %101 : vector<1x1x128xf32> to vector<2x2x128xf32>
    %103 = arith.mulf %98, %102 : vector<2x2x128xf32>
    %104 = arith.addf %97, %103 : vector<2x2x128xf32>
    %105 = vector.extract_strided_slice %62 {offsets = [6, 0, 0], sizes = [2, 2, 128], strides = [1, 1, 1]} : vector<8x2x128xf32> to vector<2x2x128xf32>
    %106 = vector.extract_strided_slice %12 {offsets = [6, 1, 0], sizes = [1, 1, 128], strides = [1, 1, 1]} : vector<7x7x128xf32> to vector<1x1x128xf32>
    %107 = vector.shape_cast %106 : vector<1x1x128xf32> to vector<1x128xf32>
    %108 = vector.shape_cast %107 : vector<1x128xf32> to vector<1x1x128xf32>
    %109 = vector.broadcast %108 : vector<1x1x128xf32> to vector<2x2x128xf32>
    %110 = arith.mulf %105, %109 : vector<2x2x128xf32>
    %111 = arith.addf %104, %110 : vector<2x2x128xf32>
    %c0_25 = arith.constant 0 : index
    %c7 = arith.constant 7 : index
    %c0_26 = arith.constant 0 : index
    %112 = vector.load %arg8[%c0_25, %c7, %c0_26] : memref<8x13x128xf32, #tpu.memory_space<vmem>>, vector<8x2x128xf32>
    %113 = vector.extract_strided_slice %112 {offsets = [0, 0, 0], sizes = [2, 2, 128], strides = [1, 1, 1]} : vector<8x2x128xf32> to vector<2x2x128xf32>
    %114 = vector.extract_strided_slice %12 {offsets = [0, 2, 0], sizes = [1, 1, 128], strides = [1, 1, 1]} : vector<7x7x128xf32> to vector<1x1x128xf32>
    %115 = vector.shape_cast %114 : vector<1x1x128xf32> to vector<1x128xf32>
    %116 = vector.shape_cast %115 : vector<1x128xf32> to vector<1x1x128xf32>
    %117 = vector.broadcast %116 : vector<1x1x128xf32> to vector<2x2x128xf32>
    %118 = arith.mulf %113, %117 : vector<2x2x128xf32>
    %119 = arith.addf %111, %118 : vector<2x2x128xf32>
    %120 = vector.extract_strided_slice %112 {offsets = [1, 0, 0], sizes = [2, 2, 128], strides = [1, 1, 1]} : vector<8x2x128xf32> to vector<2x2x128xf32>
    %121 = vector.extract_strided_slice %12 {offsets = [1, 2, 0], sizes = [1, 1, 128], strides = [1, 1, 1]} : vector<7x7x128xf32> to vector<1x1x128xf32>
    %122 = vector.shape_cast %121 : vector<1x1x128xf32> to vector<1x128xf32>
    %123 = vector.shape_cast %122 : vector<1x128xf32> to vector<1x1x128xf32>
    %124 = vector.broadcast %123 : vector<1x1x128xf32> to vector<2x2x128xf32>
    %125 = arith.mulf %120, %124 : vector<2x2x128xf32>
    %126 = arith.addf %119, %125 : vector<2x2x128xf32>
    %127 = vector.extract_strided_slice %112 {offsets = [2, 0, 0], sizes = [2, 2, 128], strides = [1, 1, 1]} : vector<8x2x128xf32> to vector<2x2x128xf32>
    %128 = vector.extract_strided_slice %12 {offsets = [2, 2, 0], sizes = [1, 1, 128], strides = [1, 1, 1]} : vector<7x7x128xf32> to vector<1x1x128xf32>
    %129 = vector.shape_cast %128 : vector<1x1x128xf32> to vector<1x128xf32>
    %130 = vector.shape_cast %129 : vector<1x128xf32> to vector<1x1x128xf32>
    %131 = vector.broadcast %130 : vector<1x1x128xf32> to vector<2x2x128xf32>
    %132 = arith.mulf %127, %131 : vector<2x2x128xf32>
    %133 = arith.addf %126, %132 : vector<2x2x128xf32>
    %134 = vector.extract_strided_slice %112 {offsets = [3, 0, 0], sizes = [2, 2, 128], strides = [1, 1, 1]} : vector<8x2x128xf32> to vector<2x2x128xf32>
    %135 = vector.extract_strided_slice %12 {offsets = [3, 2, 0], sizes = [1, 1, 128], strides = [1, 1, 1]} : vector<7x7x128xf32> to vector<1x1x128xf32>
    %136 = vector.shape_cast %135 : vector<1x1x128xf32> to vector<1x128xf32>
    %137 = vector.shape_cast %136 : vector<1x128xf32> to vector<1x1x128xf32>
    %138 = vector.broadcast %137 : vector<1x1x128xf32> to vector<2x2x128xf32>
    %139 = arith.mulf %134, %138 : vector<2x2x128xf32>
    %140 = arith.addf %133, %139 : vector<2x2x128xf32>
    %141 = vector.extract_strided_slice %112 {offsets = [4, 0, 0], sizes = [2, 2, 128], strides = [1, 1, 1]} : vector<8x2x128xf32> to vector<2x2x128xf32>
    %142 = vector.extract_strided_slice %12 {offsets = [4, 2, 0], sizes = [1, 1, 128], strides = [1, 1, 1]} : vector<7x7x128xf32> to vector<1x1x128xf32>
    %143 = vector.shape_cast %142 : vector<1x1x128xf32> to vector<1x128xf32>
    %144 = vector.shape_cast %143 : vector<1x128xf32> to vector<1x1x128xf32>
    %145 = vector.broadcast %144 : vector<1x1x128xf32> to vector<2x2x128xf32>
    %146 = arith.mulf %141, %145 : vector<2x2x128xf32>
    %147 = arith.addf %140, %146 : vector<2x2x128xf32>
    %148 = vector.extract_strided_slice %112 {offsets = [5, 0, 0], sizes = [2, 2, 128], strides = [1, 1, 1]} : vector<8x2x128xf32> to vector<2x2x128xf32>
    %149 = vector.extract_strided_slice %12 {offsets = [5, 2, 0], sizes = [1, 1, 128], strides = [1, 1, 1]} : vector<7x7x128xf32> to vector<1x1x128xf32>
    %150 = vector.shape_cast %149 : vector<1x1x128xf32> to vector<1x128xf32>
    %151 = vector.shape_cast %150 : vector<1x128xf32> to vector<1x1x128xf32>
    %152 = vector.broadcast %151 : vector<1x1x128xf32> to vector<2x2x128xf32>
    %153 = arith.mulf %148, %152 : vector<2x2x128xf32>
    %154 = arith.addf %147, %153 : vector<2x2x128xf32>
    %155 = vector.extract_strided_slice %112 {offsets = [6, 0, 0], sizes = [2, 2, 128], strides = [1, 1, 1]} : vector<8x2x128xf32> to vector<2x2x128xf32>
    %156 = vector.extract_strided_slice %12 {offsets = [6, 2, 0], sizes = [1, 1, 128], strides = [1, 1, 1]} : vector<7x7x128xf32> to vector<1x1x128xf32>
    %157 = vector.shape_cast %156 : vector<1x1x128xf32> to vector<1x128xf32>
    %158 = vector.shape_cast %157 : vector<1x128xf32> to vector<1x1x128xf32>
    %159 = vector.broadcast %158 : vector<1x1x128xf32> to vector<2x2x128xf32>
    %160 = arith.mulf %155, %159 : vector<2x2x128xf32>
    %161 = arith.addf %154, %160 : vector<2x2x128xf32>
    %c0_27 = arith.constant 0 : index
    %c8_28 = arith.constant 8 : index
    %c0_29 = arith.constant 0 : index
    %162 = vector.load %arg8[%c0_27, %c8_28, %c0_29] : memref<8x13x128xf32, #tpu.memory_space<vmem>>, vector<8x2x128xf32>
    %163 = vector.extract_strided_slice %162 {offsets = [0, 0, 0], sizes = [2, 2, 128], strides = [1, 1, 1]} : vector<8x2x128xf32> to vector<2x2x128xf32>
    %164 = vector.extract_strided_slice %12 {offsets = [0, 3, 0], sizes = [1, 1, 128], strides = [1, 1, 1]} : vector<7x7x128xf32> to vector<1x1x128xf32>
    %165 = vector.shape_cast %164 : vector<1x1x128xf32> to vector<1x128xf32>
    %166 = vector.shape_cast %165 : vector<1x128xf32> to vector<1x1x128xf32>
    %167 = vector.broadcast %166 : vector<1x1x128xf32> to vector<2x2x128xf32>
    %168 = arith.mulf %163, %167 : vector<2x2x128xf32>
    %169 = arith.addf %161, %168 : vector<2x2x128xf32>
    %170 = vector.extract_strided_slice %162 {offsets = [1, 0, 0], sizes = [2, 2, 128], strides = [1, 1, 1]} : vector<8x2x128xf32> to vector<2x2x128xf32>
    %171 = vector.extract_strided_slice %12 {offsets = [1, 3, 0], sizes = [1, 1, 128], strides = [1, 1, 1]} : vector<7x7x128xf32> to vector<1x1x128xf32>
    %172 = vector.shape_cast %171 : vector<1x1x128xf32> to vector<1x128xf32>
    %173 = vector.shape_cast %172 : vector<1x128xf32> to vector<1x1x128xf32>
    %174 = vector.broadcast %173 : vector<1x1x128xf32> to vector<2x2x128xf32>
    %175 = arith.mulf %170, %174 : vector<2x2x128xf32>
    %176 = arith.addf %169, %175 : vector<2x2x128xf32>
    %177 = vector.extract_strided_slice %162 {offsets = [2, 0, 0], sizes = [2, 2, 128], strides = [1, 1, 1]} : vector<8x2x128xf32> to vector<2x2x128xf32>
    %178 = vector.extract_strided_slice %12 {offsets = [2, 3, 0], sizes = [1, 1, 128], strides = [1, 1, 1]} : vector<7x7x128xf32> to vector<1x1x128xf32>
    %179 = vector.shape_cast %178 : vector<1x1x128xf32> to vector<1x128xf32>
    %180 = vector.shape_cast %179 : vector<1x128xf32> to vector<1x1x128xf32>
    %181 = vector.broadcast %180 : vector<1x1x128xf32> to vector<2x2x128xf32>
    %182 = arith.mulf %177, %181 : vector<2x2x128xf32>
    %183 = arith.addf %176, %182 : vector<2x2x128xf32>
    %184 = vector.extract_strided_slice %162 {offsets = [3, 0, 0], sizes = [2, 2, 128], strides = [1, 1, 1]} : vector<8x2x128xf32> to vector<2x2x128xf32>
    %185 = vector.extract_strided_slice %12 {offsets = [3, 3, 0], sizes = [1, 1, 128], strides = [1, 1, 1]} : vector<7x7x128xf32> to vector<1x1x128xf32>
    %186 = vector.shape_cast %185 : vector<1x1x128xf32> to vector<1x128xf32>
    %187 = vector.shape_cast %186 : vector<1x128xf32> to vector<1x1x128xf32>
    %188 = vector.broadcast %187 : vector<1x1x128xf32> to vector<2x2x128xf32>
    %189 = arith.mulf %184, %188 : vector<2x2x128xf32>
    %190 = arith.addf %183, %189 : vector<2x2x128xf32>
    %191 = vector.extract_strided_slice %162 {offsets = [4, 0, 0], sizes = [2, 2, 128], strides = [1, 1, 1]} : vector<8x2x128xf32> to vector<2x2x128xf32>
    %192 = vector.extract_strided_slice %12 {offsets = [4, 3, 0], sizes = [1, 1, 128], strides = [1, 1, 1]} : vector<7x7x128xf32> to vector<1x1x128xf32>
    %193 = vector.shape_cast %192 : vector<1x1x128xf32> to vector<1x128xf32>
    %194 = vector.shape_cast %193 : vector<1x128xf32> to vector<1x1x128xf32>
    %195 = vector.broadcast %194 : vector<1x1x128xf32> to vector<2x2x128xf32>
    %196 = arith.mulf %191, %195 : vector<2x2x128xf32>
    %197 = arith.addf %190, %196 : vector<2x2x128xf32>
    %198 = vector.extract_strided_slice %162 {offsets = [5, 0, 0], sizes = [2, 2, 128], strides = [1, 1, 1]} : vector<8x2x128xf32> to vector<2x2x128xf32>
    %199 = vector.extract_strided_slice %12 {offsets = [5, 3, 0], sizes = [1, 1, 128], strides = [1, 1, 1]} : vector<7x7x128xf32> to vector<1x1x128xf32>
    %200 = vector.shape_cast %199 : vector<1x1x128xf32> to vector<1x128xf32>
    %201 = vector.shape_cast %200 : vector<1x128xf32> to vector<1x1x128xf32>
    %202 = vector.broadcast %201 : vector<1x1x128xf32> to vector<2x2x128xf32>
    %203 = arith.mulf %198, %202 : vector<2x2x128xf32>
    %204 = arith.addf %197, %203 : vector<2x2x128xf32>
    %205 = vector.extract_strided_slice %162 {offsets = [6, 0, 0], sizes = [2, 2, 128], strides = [1, 1, 1]} : vector<8x2x128xf32> to vector<2x2x128xf32>
    %206 = vector.extract_strided_slice %12 {offsets = [6, 3, 0], sizes = [1, 1, 128], strides = [1, 1, 1]} : vector<7x7x128xf32> to vector<1x1x128xf32>
    %207 = vector.shape_cast %206 : vector<1x1x128xf32> to vector<1x128xf32>
    %208 = vector.shape_cast %207 : vector<1x128xf32> to vector<1x1x128xf32>
    %209 = vector.broadcast %208 : vector<1x1x128xf32> to vector<2x2x128xf32>
    %210 = arith.mulf %205, %209 : vector<2x2x128xf32>
    %211 = arith.addf %204, %210 : vector<2x2x128xf32>
    %c0_30 = arith.constant 0 : index
    %c9 = arith.constant 9 : index
    %c0_31 = arith.constant 0 : index
    %212 = vector.load %arg8[%c0_30, %c9, %c0_31] : memref<8x13x128xf32, #tpu.memory_space<vmem>>, vector<8x2x128xf32>
    %213 = vector.extract_strided_slice %212 {offsets = [0, 0, 0], sizes = [2, 2, 128], strides = [1, 1, 1]} : vector<8x2x128xf32> to vector<2x2x128xf32>
    %214 = vector.extract_strided_slice %12 {offsets = [0, 4, 0], sizes = [1, 1, 128], strides = [1, 1, 1]} : vector<7x7x128xf32> to vector<1x1x128xf32>
    %215 = vector.shape_cast %214 : vector<1x1x128xf32> to vector<1x128xf32>
    %216 = vector.shape_cast %215 : vector<1x128xf32> to vector<1x1x128xf32>
    %217 = vector.broadcast %216 : vector<1x1x128xf32> to vector<2x2x128xf32>
    %218 = arith.mulf %213, %217 : vector<2x2x128xf32>
    %219 = arith.addf %211, %218 : vector<2x2x128xf32>
    %220 = vector.extract_strided_slice %212 {offsets = [1, 0, 0], sizes = [2, 2, 128], strides = [1, 1, 1]} : vector<8x2x128xf32> to vector<2x2x128xf32>
    %221 = vector.extract_strided_slice %12 {offsets = [1, 4, 0], sizes = [1, 1, 128], strides = [1, 1, 1]} : vector<7x7x128xf32> to vector<1x1x128xf32>
    %222 = vector.shape_cast %221 : vector<1x1x128xf32> to vector<1x128xf32>
    %223 = vector.shape_cast %222 : vector<1x128xf32> to vector<1x1x128xf32>
    %224 = vector.broadcast %223 : vector<1x1x128xf32> to vector<2x2x128xf32>
    %225 = arith.mulf %220, %224 : vector<2x2x128xf32>
    %226 = arith.addf %219, %225 : vector<2x2x128xf32>
    %227 = vector.extract_strided_slice %212 {offsets = [2, 0, 0], sizes = [2, 2, 128], strides = [1, 1, 1]} : vector<8x2x128xf32> to vector<2x2x128xf32>
    %228 = vector.extract_strided_slice %12 {offsets = [2, 4, 0], sizes = [1, 1, 128], strides = [1, 1, 1]} : vector<7x7x128xf32> to vector<1x1x128xf32>
    %229 = vector.shape_cast %228 : vector<1x1x128xf32> to vector<1x128xf32>
    %230 = vector.shape_cast %229 : vector<1x128xf32> to vector<1x1x128xf32>
    %231 = vector.broadcast %230 : vector<1x1x128xf32> to vector<2x2x128xf32>
    %232 = arith.mulf %227, %231 : vector<2x2x128xf32>
    %233 = arith.addf %226, %232 : vector<2x2x128xf32>
    %234 = vector.extract_strided_slice %212 {offsets = [3, 0, 0], sizes = [2, 2, 128], strides = [1, 1, 1]} : vector<8x2x128xf32> to vector<2x2x128xf32>
    %235 = vector.extract_strided_slice %12 {offsets = [3, 4, 0], sizes = [1, 1, 128], strides = [1, 1, 1]} : vector<7x7x128xf32> to vector<1x1x128xf32>
    %236 = vector.shape_cast %235 : vector<1x1x128xf32> to vector<1x128xf32>
    %237 = vector.shape_cast %236 : vector<1x128xf32> to vector<1x1x128xf32>
    %238 = vector.broadcast %237 : vector<1x1x128xf32> to vector<2x2x128xf32>
    %239 = arith.mulf %234, %238 : vector<2x2x128xf32>
    %240 = arith.addf %233, %239 : vector<2x2x128xf32>
    %241 = vector.extract_strided_slice %212 {offsets = [4, 0, 0], sizes = [2, 2, 128], strides = [1, 1, 1]} : vector<8x2x128xf32> to vector<2x2x128xf32>
    %242 = vector.extract_strided_slice %12 {offsets = [4, 4, 0], sizes = [1, 1, 128], strides = [1, 1, 1]} : vector<7x7x128xf32> to vector<1x1x128xf32>
    %243 = vector.shape_cast %242 : vector<1x1x128xf32> to vector<1x128xf32>
    %244 = vector.shape_cast %243 : vector<1x128xf32> to vector<1x1x128xf32>
    %245 = vector.broadcast %244 : vector<1x1x128xf32> to vector<2x2x128xf32>
    %246 = arith.mulf %241, %245 : vector<2x2x128xf32>
    %247 = arith.addf %240, %246 : vector<2x2x128xf32>
    %248 = vector.extract_strided_slice %212 {offsets = [5, 0, 0], sizes = [2, 2, 128], strides = [1, 1, 1]} : vector<8x2x128xf32> to vector<2x2x128xf32>
    %249 = vector.extract_strided_slice %12 {offsets = [5, 4, 0], sizes = [1, 1, 128], strides = [1, 1, 1]} : vector<7x7x128xf32> to vector<1x1x128xf32>
    %250 = vector.shape_cast %249 : vector<1x1x128xf32> to vector<1x128xf32>
    %251 = vector.shape_cast %250 : vector<1x128xf32> to vector<1x1x128xf32>
    %252 = vector.broadcast %251 : vector<1x1x128xf32> to vector<2x2x128xf32>
    %253 = arith.mulf %248, %252 : vector<2x2x128xf32>
    %254 = arith.addf %247, %253 : vector<2x2x128xf32>
    %255 = vector.extract_strided_slice %212 {offsets = [6, 0, 0], sizes = [2, 2, 128], strides = [1, 1, 1]} : vector<8x2x128xf32> to vector<2x2x128xf32>
    %256 = vector.extract_strided_slice %12 {offsets = [6, 4, 0], sizes = [1, 1, 128], strides = [1, 1, 1]} : vector<7x7x128xf32> to vector<1x1x128xf32>
    %257 = vector.shape_cast %256 : vector<1x1x128xf32> to vector<1x128xf32>
    %258 = vector.shape_cast %257 : vector<1x128xf32> to vector<1x1x128xf32>
    %259 = vector.broadcast %258 : vector<1x1x128xf32> to vector<2x2x128xf32>
    %260 = arith.mulf %255, %259 : vector<2x2x128xf32>
    %261 = arith.addf %254, %260 : vector<2x2x128xf32>
    %c0_32 = arith.constant 0 : index
    %c10_33 = arith.constant 10 : index
    %c0_34 = arith.constant 0 : index
    %262 = vector.load %arg8[%c0_32, %c10_33, %c0_34] : memref<8x13x128xf32, #tpu.memory_space<vmem>>, vector<8x2x128xf32>
    %263 = vector.extract_strided_slice %262 {offsets = [0, 0, 0], sizes = [2, 2, 128], strides = [1, 1, 1]} : vector<8x2x128xf32> to vector<2x2x128xf32>
    %264 = vector.extract_strided_slice %12 {offsets = [0, 5, 0], sizes = [1, 1, 128], strides = [1, 1, 1]} : vector<7x7x128xf32> to vector<1x1x128xf32>
    %265 = vector.shape_cast %264 : vector<1x1x128xf32> to vector<1x128xf32>
    %266 = vector.shape_cast %265 : vector<1x128xf32> to vector<1x1x128xf32>
    %267 = vector.broadcast %266 : vector<1x1x128xf32> to vector<2x2x128xf32>
    %268 = arith.mulf %263, %267 : vector<2x2x128xf32>
    %269 = arith.addf %261, %268 : vector<2x2x128xf32>
    %270 = vector.extract_strided_slice %262 {offsets = [1, 0, 0], sizes = [2, 2, 128], strides = [1, 1, 1]} : vector<8x2x128xf32> to vector<2x2x128xf32>
    %271 = vector.extract_strided_slice %12 {offsets = [1, 5, 0], sizes = [1, 1, 128], strides = [1, 1, 1]} : vector<7x7x128xf32> to vector<1x1x128xf32>
    %272 = vector.shape_cast %271 : vector<1x1x128xf32> to vector<1x128xf32>
    %273 = vector.shape_cast %272 : vector<1x128xf32> to vector<1x1x128xf32>
    %274 = vector.broadcast %273 : vector<1x1x128xf32> to vector<2x2x128xf32>
    %275 = arith.mulf %270, %274 : vector<2x2x128xf32>
    %276 = arith.addf %269, %275 : vector<2x2x128xf32>
    %277 = vector.extract_strided_slice %262 {offsets = [2, 0, 0], sizes = [2, 2, 128], strides = [1, 1, 1]} : vector<8x2x128xf32> to vector<2x2x128xf32>
    %278 = vector.extract_strided_slice %12 {offsets = [2, 5, 0], sizes = [1, 1, 128], strides = [1, 1, 1]} : vector<7x7x128xf32> to vector<1x1x128xf32>
    %279 = vector.shape_cast %278 : vector<1x1x128xf32> to vector<1x128xf32>
    %280 = vector.shape_cast %279 : vector<1x128xf32> to vector<1x1x128xf32>
    %281 = vector.broadcast %280 : vector<1x1x128xf32> to vector<2x2x128xf32>
    %282 = arith.mulf %277, %281 : vector<2x2x128xf32>
    %283 = arith.addf %276, %282 : vector<2x2x128xf32>
    %284 = vector.extract_strided_slice %262 {offsets = [3, 0, 0], sizes = [2, 2, 128], strides = [1, 1, 1]} : vector<8x2x128xf32> to vector<2x2x128xf32>
    %285 = vector.extract_strided_slice %12 {offsets = [3, 5, 0], sizes = [1, 1, 128], strides = [1, 1, 1]} : vector<7x7x128xf32> to vector<1x1x128xf32>
    %286 = vector.shape_cast %285 : vector<1x1x128xf32> to vector<1x128xf32>
    %287 = vector.shape_cast %286 : vector<1x128xf32> to vector<1x1x128xf32>
    %288 = vector.broadcast %287 : vector<1x1x128xf32> to vector<2x2x128xf32>
    %289 = arith.mulf %284, %288 : vector<2x2x128xf32>
    %290 = arith.addf %283, %289 : vector<2x2x128xf32>
    %291 = vector.extract_strided_slice %262 {offsets = [4, 0, 0], sizes = [2, 2, 128], strides = [1, 1, 1]} : vector<8x2x128xf32> to vector<2x2x128xf32>
    %292 = vector.extract_strided_slice %12 {offsets = [4, 5, 0], sizes = [1, 1, 128], strides = [1, 1, 1]} : vector<7x7x128xf32> to vector<1x1x128xf32>
    %293 = vector.shape_cast %292 : vector<1x1x128xf32> to vector<1x128xf32>
    %294 = vector.shape_cast %293 : vector<1x128xf32> to vector<1x1x128xf32>
    %295 = vector.broadcast %294 : vector<1x1x128xf32> to vector<2x2x128xf32>
    %296 = arith.mulf %291, %295 : vector<2x2x128xf32>
    %297 = arith.addf %290, %296 : vector<2x2x128xf32>
    %298 = vector.extract_strided_slice %262 {offsets = [5, 0, 0], sizes = [2, 2, 128], strides = [1, 1, 1]} : vector<8x2x128xf32> to vector<2x2x128xf32>
    %299 = vector.extract_strided_slice %12 {offsets = [5, 5, 0], sizes = [1, 1, 128], strides = [1, 1, 1]} : vector<7x7x128xf32> to vector<1x1x128xf32>
    %300 = vector.shape_cast %299 : vector<1x1x128xf32> to vector<1x128xf32>
    %301 = vector.shape_cast %300 : vector<1x128xf32> to vector<1x1x128xf32>
    %302 = vector.broadcast %301 : vector<1x1x128xf32> to vector<2x2x128xf32>
    %303 = arith.mulf %298, %302 : vector<2x2x128xf32>
    %304 = arith.addf %297, %303 : vector<2x2x128xf32>
    %305 = vector.extract_strided_slice %262 {offsets = [6, 0, 0], sizes = [2, 2, 128], strides = [1, 1, 1]} : vector<8x2x128xf32> to vector<2x2x128xf32>
    %306 = vector.extract_strided_slice %12 {offsets = [6, 5, 0], sizes = [1, 1, 128], strides = [1, 1, 1]} : vector<7x7x128xf32> to vector<1x1x128xf32>
    %307 = vector.shape_cast %306 : vector<1x1x128xf32> to vector<1x128xf32>
    %308 = vector.shape_cast %307 : vector<1x128xf32> to vector<1x1x128xf32>
    %309 = vector.broadcast %308 : vector<1x1x128xf32> to vector<2x2x128xf32>
    %310 = arith.mulf %305, %309 : vector<2x2x128xf32>
    %311 = arith.addf %304, %310 : vector<2x2x128xf32>
    %c0_35 = arith.constant 0 : index
    %c11 = arith.constant 11 : index
    %c0_36 = arith.constant 0 : index
    %312 = vector.load %arg8[%c0_35, %c11, %c0_36] : memref<8x13x128xf32, #tpu.memory_space<vmem>>, vector<8x2x128xf32>
    %313 = vector.extract_strided_slice %312 {offsets = [0, 0, 0], sizes = [2, 2, 128], strides = [1, 1, 1]} : vector<8x2x128xf32> to vector<2x2x128xf32>
    %314 = vector.extract_strided_slice %12 {offsets = [0, 6, 0], sizes = [1, 1, 128], strides = [1, 1, 1]} : vector<7x7x128xf32> to vector<1x1x128xf32>
    %315 = vector.shape_cast %314 : vector<1x1x128xf32> to vector<1x128xf32>
    %316 = vector.shape_cast %315 : vector<1x128xf32> to vector<1x1x128xf32>
    %317 = vector.broadcast %316 : vector<1x1x128xf32> to vector<2x2x128xf32>
    %318 = arith.mulf %313, %317 : vector<2x2x128xf32>
    %319 = arith.addf %311, %318 : vector<2x2x128xf32>
    %320 = vector.extract_strided_slice %312 {offsets = [1, 0, 0], sizes = [2, 2, 128], strides = [1, 1, 1]} : vector<8x2x128xf32> to vector<2x2x128xf32>
    %321 = vector.extract_strided_slice %12 {offsets = [1, 6, 0], sizes = [1, 1, 128], strides = [1, 1, 1]} : vector<7x7x128xf32> to vector<1x1x128xf32>
    %322 = vector.shape_cast %321 : vector<1x1x128xf32> to vector<1x128xf32>
    %323 = vector.shape_cast %322 : vector<1x128xf32> to vector<1x1x128xf32>
    %324 = vector.broadcast %323 : vector<1x1x128xf32> to vector<2x2x128xf32>
    %325 = arith.mulf %320, %324 : vector<2x2x128xf32>
    %326 = arith.addf %319, %325 : vector<2x2x128xf32>
    %327 = vector.extract_strided_slice %312 {offsets = [2, 0, 0], sizes = [2, 2, 128], strides = [1, 1, 1]} : vector<8x2x128xf32> to vector<2x2x128xf32>
    %328 = vector.extract_strided_slice %12 {offsets = [2, 6, 0], sizes = [1, 1, 128], strides = [1, 1, 1]} : vector<7x7x128xf32> to vector<1x1x128xf32>
    %329 = vector.shape_cast %328 : vector<1x1x128xf32> to vector<1x128xf32>
    %330 = vector.shape_cast %329 : vector<1x128xf32> to vector<1x1x128xf32>
    %331 = vector.broadcast %330 : vector<1x1x128xf32> to vector<2x2x128xf32>
    %332 = arith.mulf %327, %331 : vector<2x2x128xf32>
    %333 = arith.addf %326, %332 : vector<2x2x128xf32>
    %334 = vector.extract_strided_slice %312 {offsets = [3, 0, 0], sizes = [2, 2, 128], strides = [1, 1, 1]} : vector<8x2x128xf32> to vector<2x2x128xf32>
    %335 = vector.extract_strided_slice %12 {offsets = [3, 6, 0], sizes = [1, 1, 128], strides = [1, 1, 1]} : vector<7x7x128xf32> to vector<1x1x128xf32>
    %336 = vector.shape_cast %335 : vector<1x1x128xf32> to vector<1x128xf32>
    %337 = vector.shape_cast %336 : vector<1x128xf32> to vector<1x1x128xf32>
    %338 = vector.broadcast %337 : vector<1x1x128xf32> to vector<2x2x128xf32>
    %339 = arith.mulf %334, %338 : vector<2x2x128xf32>
    %340 = arith.addf %333, %339 : vector<2x2x128xf32>
    %341 = vector.extract_strided_slice %312 {offsets = [4, 0, 0], sizes = [2, 2, 128], strides = [1, 1, 1]} : vector<8x2x128xf32> to vector<2x2x128xf32>
    %342 = vector.extract_strided_slice %12 {offsets = [4, 6, 0], sizes = [1, 1, 128], strides = [1, 1, 1]} : vector<7x7x128xf32> to vector<1x1x128xf32>
    %343 = vector.shape_cast %342 : vector<1x1x128xf32> to vector<1x128xf32>
    %344 = vector.shape_cast %343 : vector<1x128xf32> to vector<1x1x128xf32>
    %345 = vector.broadcast %344 : vector<1x1x128xf32> to vector<2x2x128xf32>
    %346 = arith.mulf %341, %345 : vector<2x2x128xf32>
    %347 = arith.addf %340, %346 : vector<2x2x128xf32>
    %348 = vector.extract_strided_slice %312 {offsets = [5, 0, 0], sizes = [2, 2, 128], strides = [1, 1, 1]} : vector<8x2x128xf32> to vector<2x2x128xf32>
    %349 = vector.extract_strided_slice %12 {offsets = [5, 6, 0], sizes = [1, 1, 128], strides = [1, 1, 1]} : vector<7x7x128xf32> to vector<1x1x128xf32>
    %350 = vector.shape_cast %349 : vector<1x1x128xf32> to vector<1x128xf32>
    %351 = vector.shape_cast %350 : vector<1x128xf32> to vector<1x1x128xf32>
    %352 = vector.broadcast %351 : vector<1x1x128xf32> to vector<2x2x128xf32>
    %353 = arith.mulf %348, %352 : vector<2x2x128xf32>
    %354 = arith.addf %347, %353 : vector<2x2x128xf32>
    %355 = vector.extract_strided_slice %312 {offsets = [6, 0, 0], sizes = [2, 2, 128], strides = [1, 1, 1]} : vector<8x2x128xf32> to vector<2x2x128xf32>
    %356 = vector.extract_strided_slice %12 {offsets = [6, 6, 0], sizes = [1, 1, 128], strides = [1, 1, 1]} : vector<7x7x128xf32> to vector<1x1x128xf32>
    %357 = vector.shape_cast %356 : vector<1x1x128xf32> to vector<1x128xf32>
    %358 = vector.shape_cast %357 : vector<1x128xf32> to vector<1x1x128xf32>
    %359 = vector.broadcast %358 : vector<1x1x128xf32> to vector<2x2x128xf32>
    %360 = arith.mulf %355, %359 : vector<2x2x128xf32>
    %361 = arith.addf %354, %360 : vector<2x2x128xf32>
    %362 = vector.shape_cast %361 : vector<2x2x128xf32> to vector<4x128xf32>
    %363 = arith.truncf %362 : vector<4x128xf32> to vector<4x128xbf16>
    %c0_37 = arith.constant 0 : index
    %c0_38 = arith.constant 0 : index
    %364 = vector.load %arg3[%c0_37, %c0_38] : memref<128x128xbf16, #tpu.memory_space<vmem>>, vector<128x128xbf16>
    %cst_39 = arith.constant dense<0.000000e+00> : vector<4x128xf32>
    %365 = tpu.matmul %363, %364, %cst_39 {dimension_numbers = #tpu.dot_dimension_numbers<[1], [0], [0], [1], [0, 0, 1, 1], [], []>} : vector<4x128xbf16>, vector<128x128xbf16>, vector<4x128xf32> -> vector<4x128xf32>
    %c0_40 = arith.constant 0 : index
    %c0_41 = arith.constant 0 : index
    %366 = vector.load %arg4[%c0_40, %c0_41] : memref<1x128xf32, #tpu.memory_space<vmem>>, vector<1x128xf32>
    %367 = vector.broadcast %366 : vector<1x128xf32> to vector<4x128xf32>
    %368 = arith.addf %365, %367 : vector<4x128xf32>
    %cst_42 = arith.constant 5.000000e-01 : f32
    %369 = vector.broadcast %cst_42 : f32 to vector<4x128xf32>
    %370 = arith.mulf %369, %368 : vector<4x128xf32>
    %cst_43 = arith.constant 4.471500e-02 : f32
    %371 = vector.broadcast %cst_43 : f32 to vector<4x128xf32>
    %372 = arith.mulf %371, %368 : vector<4x128xf32>
    %373 = arith.mulf %372, %368 : vector<4x128xf32>
    %374 = arith.mulf %373, %368 : vector<4x128xf32>
    %375 = arith.addf %368, %374 : vector<4x128xf32>
    %cst_44 = arith.constant 0.797884583 : f32
    %376 = vector.broadcast %cst_44 : f32 to vector<4x128xf32>
    %377 = arith.mulf %376, %375 : vector<4x128xf32>
    %378 = math.tanh %377 : vector<4x128xf32>
    %cst_45 = arith.constant 1.000000e+00 : f32
    %379 = vector.broadcast %cst_45 : f32 to vector<4x128xf32>
    %380 = arith.addf %379, %378 : vector<4x128xf32>
    %381 = arith.mulf %370, %380 : vector<4x128xf32>
    %382 = arith.truncf %381 : vector<4x128xf32> to vector<4x128xbf16>
    %c0_46 = arith.constant 0 : index
    %c0_47 = arith.constant 0 : index
    %383 = vector.load %arg5[%c0_46, %c0_47] : memref<128x128xbf16, #tpu.memory_space<vmem>>, vector<128x128xbf16>
    %cst_48 = arith.constant dense<0.000000e+00> : vector<4x128xf32>
    %384 = tpu.matmul %382, %383, %cst_48 {dimension_numbers = #tpu.dot_dimension_numbers<[1], [0], [0], [1], [0, 0, 1, 1], [], []>} : vector<4x128xbf16>, vector<128x128xbf16>, vector<4x128xf32> -> vector<4x128xf32>
    %c0_49 = arith.constant 0 : index
    %c0_50 = arith.constant 0 : index
    %385 = vector.load %arg6[%c0_49, %c0_50] : memref<1x128xf32, #tpu.memory_space<vmem>>, vector<1x128xf32>
    %386 = vector.broadcast %385 : vector<1x128xf32> to vector<4x128xf32>
    %387 = arith.addf %384, %386 : vector<4x128xf32>
    %388 = vector.shape_cast %387 : vector<4x128xf32> to vector<2x2x128xf32>
    %389 = arith.addf %2, %388 : vector<2x2x128xf32>
    %390 = arith.truncf %389 : vector<2x2x128xf32> to vector<2x2x128xbf16>
    %c0_51 = arith.constant 0 : index
    %c0_52 = arith.constant 0 : index
    %c0_53 = arith.constant 0 : index
    %c0_54 = arith.constant 0 : index
    %391 = vector.load %arg7[%c0_51, %c0_52, %c0_53, %c0_54] : memref<1x2x2x128xbf16, #tpu.memory_space<vmem>>, vector<1x2x2x128xbf16>
    %392 = vector.shape_cast %391 : vector<1x2x2x128xbf16> to vector<2x2x128xbf16>
    %393 = vector.shape_cast %390 : vector<2x2x128xbf16> to vector<1x2x2x128xbf16>
    tpu.vector_store %arg7[%c0_51, %c0_52, %c0_53, %c0_54], %393 {strides = array<i32>} : memref<1x2x2x128xbf16, #tpu.memory_space<vmem>>, vector<1x2x2x128xbf16>,
    return
  }
  func.func @transform_0(%arg0: i32) -> (i32, i32, i32, i32) {
    %c0_i32 = arith.constant 0 : i32
    %c0_i32_0 = arith.constant 0 : i32
    %c0_i32_1 = arith.constant 0 : i32
    %c0_i32_2 = arith.constant 0 : i32
    return %arg0, %c0_i32, %c0_i32_0, %c0_i32_1 : i32, i32, i32, i32
  }
  func.func @transform_1(%arg0: i32) -> (i32, i32, i32) {
    %c0_i32 = arith.constant 0 : i32
    %c0_i32_0 = arith.constant 0 : i32
    %c0_i32_1 = arith.constant 0 : i32
    %c0_i32_2 = arith.constant 0 : i32
    return %c0_i32, %c0_i32_0, %c0_i32_1 : i32, i32, i32
  }
  func.func @transform_2(%arg0: i32) -> (i32, i32) {
    %c0_i32 = arith.constant 0 : i32
    %c0_i32_0 = arith.constant 0 : i32
    %c0_i32_1 = arith.constant 0 : i32
    return %c0_i32, %c0_i32_0 : i32, i32
  }
  func.func @transform_3(%arg0: i32) -> (i32, i32) {
    %c0_i32 = arith.constant 0 : i32
    %c0_i32_0 = arith.constant 0 : i32
    %c0_i32_1 = arith.constant 0 : i32
    return %c0_i32, %c0_i32_0 : i32, i32
  }
  func.func @transform_4(%arg0: i32) -> (i32, i32) {
    %c0_i32 = arith.constant 0 : i32
    %c0_i32_0 = arith.constant 0 : i32
    %c0_i32_1 = arith.constant 0 : i32
    return %c0_i32, %c0_i32_0 : i32, i32
  }
  func.func @transform_5(%arg0: i32) -> (i32, i32) {
    %c0_i32 = arith.constant 0 : i32
    %c0_i32_0 = arith.constant 0 : i32
    %c0_i32_1 = arith.constant 0 : i32
    return %c0_i32, %c0_i32_0 : i32, i32
  }
  func.func @transform_6(%arg0: i32) -> (i32, i32, i32, i32) {
    %c0_i32 = arith.constant 0 : i32
    %c0_i32_0 = arith.constant 0 : i32
    %c0_i32_1 = arith.constant 0 : i32
    %c0_i32_2 = arith.constant 0 : i32
    return %arg0, %c0_i32, %c0_i32_0, %c0_i32_1 : i32, i32, i32, i32
  }
}

module attributes {stable_mosaic.version = 11 : i64} {
  func.func @_matmul_bias_kernel(%arg0: i32, %arg1: memref<2x512xbf16, #tpu.memory_space<vmem>>, %arg2: memref<512x128xbf16, #tpu.memory_space<vmem>>, %arg3: memref<1x128xf32, #tpu.memory_space<vmem>>, %arg4: memref<2x128xbf16, #tpu.memory_space<vmem>>) attributes {dimension_semantics = [#tpu.dimension_semantics<parallel>], iteration_bounds = array<i64: 1>, scalar_prefetch = 0 : i64, scratch_operands = 0 : i64, tpu.core_type = #tpu.core_type<tc>, window_params = [{transform_indices = @transform_0, window_bounds = array<i64: 2, 512>}, {pipeline_mode = #tpu.pipeline_mode<synchronous>, transform_indices = @transform_1, window_bounds = array<i64: 512, 128>}, {pipeline_mode = #tpu.pipeline_mode<synchronous>, transform_indices = @transform_2, window_bounds = array<i64: 1, 128>}, {transform_indices = @transform_3, window_bounds = array<i64: 2, 128>}]} {
    %c0 = arith.constant 0 : index
    %c0_0 = arith.constant 0 : index
    %0 = vector.load %arg1[%c0, %c0_0] : memref<2x512xbf16, #tpu.memory_space<vmem>>, vector<2x512xbf16>
    %c0_1 = arith.constant 0 : index
    %c0_2 = arith.constant 0 : index
    %1 = vector.load %arg2[%c0_1, %c0_2] : memref<512x128xbf16, #tpu.memory_space<vmem>>, vector<512x128xbf16>
    %cst = arith.constant dense<0.000000e+00> : vector<2x128xf32>
    %2 = tpu.matmul %0, %1, %cst {dimension_numbers = #tpu.dot_dimension_numbers<[1], [0], [0], [1], [0, 0, 1, 1], [], []>} : vector<2x512xbf16>, vector<512x128xbf16>, vector<2x128xf32> -> vector<2x128xf32>
    %c0_3 = arith.constant 0 : index
    %c0_4 = arith.constant 0 : index
    %3 = vector.load %arg3[%c0_3, %c0_4] : memref<1x128xf32, #tpu.memory_space<vmem>>, vector<1x128xf32>
    %4 = vector.broadcast %3 : vector<1x128xf32> to vector<2x128xf32>
    %5 = arith.addf %2, %4 : vector<2x128xf32>
    %6 = arith.truncf %5 : vector<2x128xf32> to vector<2x128xbf16>
    %c0_5 = arith.constant 0 : index
    %c0_6 = arith.constant 0 : index
    %7 = vector.load %arg4[%c0_5, %c0_6] : memref<2x128xbf16, #tpu.memory_space<vmem>>, vector<2x128xbf16>
    tpu.vector_store %arg4[%c0_5, %c0_6], %6 {strides = array<i32>} : memref<2x128xbf16, #tpu.memory_space<vmem>>, vector<2x128xbf16>,
    return
  }
  func.func @transform_0(%arg0: i32) -> (i32, i32) {
    %c0_i32 = arith.constant 0 : i32
    %c0_i32_0 = arith.constant 0 : i32
    return %arg0, %c0_i32 : i32, i32
  }
  func.func @transform_1(%arg0: i32) -> (i32, i32) {
    %c0_i32 = arith.constant 0 : i32
    %c0_i32_0 = arith.constant 0 : i32
    %c0_i32_1 = arith.constant 0 : i32
    return %c0_i32, %c0_i32_0 : i32, i32
  }
  func.func @transform_2(%arg0: i32) -> (i32, i32) {
    %c0_i32 = arith.constant 0 : i32
    %c0_i32_0 = arith.constant 0 : i32
    %c0_i32_1 = arith.constant 0 : i32
    return %c0_i32, %c0_i32_0 : i32, i32
  }
  func.func @transform_3(%arg0: i32) -> (i32, i32) {
    %c0_i32 = arith.constant 0 : i32
    %c0_i32_0 = arith.constant 0 : i32
    return %arg0, %c0_i32 : i32, i32
  }
}

module attributes {stable_mosaic.version = 11 : i64} {
  func.func @_convnext_block_kernel(%arg0: i32, %arg1: memref<1x1x1x128xbf16, #tpu.memory_space<vmem>>, %arg2: memref<7x7x128xf32, #tpu.memory_space<vmem>>, %arg3: memref<128x256xbf16, #tpu.memory_space<vmem>>, %arg4: memref<1x256xf32, #tpu.memory_space<vmem>>, %arg5: memref<256x128xbf16, #tpu.memory_space<vmem>>, %arg6: memref<1x128xf32, #tpu.memory_space<vmem>>, %arg7: memref<1x1x1x128xbf16, #tpu.memory_space<vmem>>, %arg8: memref<7x12x128xf32, #tpu.memory_space<vmem>>) attributes {dimension_semantics = [#tpu.dimension_semantics<parallel>], iteration_bounds = array<i64: 2>, scalar_prefetch = 0 : i64, scratch_operands = 1 : i64, tpu.core_type = #tpu.core_type<tc>, window_params = [{transform_indices = @transform_0, window_bounds = array<i64: 1, 1, 1, 128>}, {pipeline_mode = #tpu.pipeline_mode<synchronous>, transform_indices = @transform_1, window_bounds = array<i64: 7, 7, 128>}, {pipeline_mode = #tpu.pipeline_mode<synchronous>, transform_indices = @transform_2, window_bounds = array<i64: 128, 256>}, {pipeline_mode = #tpu.pipeline_mode<synchronous>, transform_indices = @transform_3, window_bounds = array<i64: 1, 256>}, {pipeline_mode = #tpu.pipeline_mode<synchronous>, transform_indices = @transform_4, window_bounds = array<i64: 256, 128>}, {pipeline_mode = #tpu.pipeline_mode<synchronous>, transform_indices = @transform_5, window_bounds = array<i64: 1, 128>}, {transform_indices = @transform_6, window_bounds = array<i64: 1, 1, 1, 128>}]} {
    %c0 = arith.constant 0 : index
    %c0_0 = arith.constant 0 : index
    %c0_1 = arith.constant 0 : index
    %c0_2 = arith.constant 0 : index
    %0 = vector.load %arg1[%c0, %c0_0, %c0_1, %c0_2] : memref<1x1x1x128xbf16, #tpu.memory_space<vmem>>, vector<1x1x1x128xbf16>
    %1 = vector.shape_cast %0 : vector<1x1x1x128xbf16> to vector<1x1x128xbf16>
    %2 = arith.extf %1 : vector<1x1x128xbf16> to vector<1x1x128xf32>
    %cst = arith.constant 0.000000e+00 : f32
    %3 = vector.broadcast %cst : f32 to vector<3x12x128xf32>
    %c0_3 = arith.constant 0 : index
    %c0_4 = arith.constant 0 : index
    %c0_5 = arith.constant 0 : index
    %4 = vector.load %arg8[%c0_3, %c0_4, %c0_5] : memref<7x12x128xf32, #tpu.memory_space<vmem>>, vector<3x12x128xf32>
    tpu.vector_store %arg8[%c0_3, %c0_4, %c0_5], %3 {strides = array<i32>} : memref<7x12x128xf32, #tpu.memory_space<vmem>>, vector<3x12x128xf32>,
    %cst_6 = arith.constant 0.000000e+00 : f32
    %5 = vector.broadcast %cst_6 : f32 to vector<3x12x128xf32>
    %c4 = arith.constant 4 : index
    %c0_7 = arith.constant 0 : index
    %c0_8 = arith.constant 0 : index
    %6 = vector.load %arg8[%c4, %c0_7, %c0_8] : memref<7x12x128xf32, #tpu.memory_space<vmem>>, vector<3x12x128xf32>
    tpu.vector_store %arg8[%c4, %c0_7, %c0_8], %5 {strides = array<i32>} : memref<7x12x128xf32, #tpu.memory_space<vmem>>, vector<3x12x128xf32>,
    %cst_9 = arith.constant 0.000000e+00 : f32
    %7 = vector.broadcast %cst_9 : f32 to vector<1x8x128xf32>
    %c3 = arith.constant 3 : index
    %c0_10 = arith.constant 0 : index
    %c0_11 = arith.constant 0 : index
    %8 = vector.load %arg8[%c3, %c0_10, %c0_11] : memref<7x12x128xf32, #tpu.memory_space<vmem>>, vector<1x8x128xf32>
    tpu.vector_store %arg8[%c3, %c0_10, %c0_11], %7 {strides = array<i32>} : memref<7x12x128xf32, #tpu.memory_space<vmem>>, vector<1x8x128xf32>,
    %cst_12 = arith.constant 0.000000e+00 : f32
    %9 = vector.broadcast %cst_12 : f32 to vector<1x3x128xf32>
    %c3_13 = arith.constant 3 : index
    %c9 = arith.constant 9 : index
    %c0_14 = arith.constant 0 : index
    %10 = vector.load %arg8[%c3_13, %c9, %c0_14] : memref<7x12x128xf32, #tpu.memory_space<vmem>>, vector<1x3x128xf32>
    tpu.vector_store %arg8[%c3_13, %c9, %c0_14], %9 {strides = array<i32>} : memref<7x12x128xf32, #tpu.memory_space<vmem>>, vector<1x3x128xf32>,
    %c3_15 = arith.constant 3 : index
    %c8 = arith.constant 8 : index
    %c0_16 = arith.constant 0 : index
    %11 = vector.load %arg8[%c3_15, %c8, %c0_16] : memref<7x12x128xf32, #tpu.memory_space<vmem>>, vector<1x1x128xf32>
    tpu.vector_store %arg8[%c3_15, %c8, %c0_16], %2 {strides = array<i32>} : memref<7x12x128xf32, #tpu.memory_space<vmem>>, vector<1x1x128xf32>,
    %c0_17 = arith.constant 0 : index
    %c0_18 = arith.constant 0 : index
    %c0_19 = arith.constant 0 : index
    %12 = vector.load %arg2[%c0_17, %c0_18, %c0_19] : memref<7x7x128xf32, #tpu.memory_space<vmem>>, vector<7x7x128xf32>
    %c0_20 = arith.constant 0 : index
    %c5 = arith.constant 5 : index
    %c0_21 = arith.constant 0 : index
    %13 = vector.load %arg8[%c0_20, %c5, %c0_21] : memref<7x12x128xf32, #tpu.memory_space<vmem>>, vector<7x1x128xf32>
    %14 = vector.extract_strided_slice %13 {offsets = [0, 0, 0], sizes = [1, 1, 128], strides = [1, 1, 1]} : vector<7x1x128xf32> to vector<1x1x128xf32>
    %15 = vector.extract_strided_slice %12 {offsets = [0, 0, 0], sizes = [1, 1, 128], strides = [1, 1, 1]} : vector<7x7x128xf32> to vector<1x1x128xf32>
    %16 = vector.shape_cast %15 : vector<1x1x128xf32> to vector<1x128xf32>
    %17 = vector.shape_cast %16 : vector<1x128xf32> to vector<1x1x128xf32>
    %18 = arith.mulf %14, %17 : vector<1x1x128xf32>
    %19 = vector.extract_strided_slice %13 {offsets = [1, 0, 0], sizes = [1, 1, 128], strides = [1, 1, 1]} : vector<7x1x128xf32> to vector<1x1x128xf32>
    %20 = vector.extract_strided_slice %12 {offsets = [1, 0, 0], sizes = [1, 1, 128], strides = [1, 1, 1]} : vector<7x7x128xf32> to vector<1x1x128xf32>
    %21 = vector.shape_cast %20 : vector<1x1x128xf32> to vector<1x128xf32>
    %22 = vector.shape_cast %21 : vector<1x128xf32> to vector<1x1x128xf32>
    %23 = arith.mulf %19, %22 : vector<1x1x128xf32>
    %24 = arith.addf %18, %23 : vector<1x1x128xf32>
    %25 = vector.extract_strided_slice %13 {offsets = [2, 0, 0], sizes = [1, 1, 128], strides = [1, 1, 1]} : vector<7x1x128xf32> to vector<1x1x128xf32>
    %26 = vector.extract_strided_slice %12 {offsets = [2, 0, 0], sizes = [1, 1, 128], strides = [1, 1, 1]} : vector<7x7x128xf32> to vector<1x1x128xf32>
    %27 = vector.shape_cast %26 : vector<1x1x128xf32> to vector<1x128xf32>
    %28 = vector.shape_cast %27 : vector<1x128xf32> to vector<1x1x128xf32>
    %29 = arith.mulf %25, %28 : vector<1x1x128xf32>
    %30 = arith.addf %24, %29 : vector<1x1x128xf32>
    %31 = vector.extract_strided_slice %13 {offsets = [3, 0, 0], sizes = [1, 1, 128], strides = [1, 1, 1]} : vector<7x1x128xf32> to vector<1x1x128xf32>
    %32 = vector.extract_strided_slice %12 {offsets = [3, 0, 0], sizes = [1, 1, 128], strides = [1, 1, 1]} : vector<7x7x128xf32> to vector<1x1x128xf32>
    %33 = vector.shape_cast %32 : vector<1x1x128xf32> to vector<1x128xf32>
    %34 = vector.shape_cast %33 : vector<1x128xf32> to vector<1x1x128xf32>
    %35 = arith.mulf %31, %34 : vector<1x1x128xf32>
    %36 = arith.addf %30, %35 : vector<1x1x128xf32>
    %37 = vector.extract_strided_slice %13 {offsets = [4, 0, 0], sizes = [1, 1, 128], strides = [1, 1, 1]} : vector<7x1x128xf32> to vector<1x1x128xf32>
    %38 = vector.extract_strided_slice %12 {offsets = [4, 0, 0], sizes = [1, 1, 128], strides = [1, 1, 1]} : vector<7x7x128xf32> to vector<1x1x128xf32>
    %39 = vector.shape_cast %38 : vector<1x1x128xf32> to vector<1x128xf32>
    %40 = vector.shape_cast %39 : vector<1x128xf32> to vector<1x1x128xf32>
    %41 = arith.mulf %37, %40 : vector<1x1x128xf32>
    %42 = arith.addf %36, %41 : vector<1x1x128xf32>
    %43 = vector.extract_strided_slice %13 {offsets = [5, 0, 0], sizes = [1, 1, 128], strides = [1, 1, 1]} : vector<7x1x128xf32> to vector<1x1x128xf32>
    %44 = vector.extract_strided_slice %12 {offsets = [5, 0, 0], sizes = [1, 1, 128], strides = [1, 1, 1]} : vector<7x7x128xf32> to vector<1x1x128xf32>
    %45 = vector.shape_cast %44 : vector<1x1x128xf32> to vector<1x128xf32>
    %46 = vector.shape_cast %45 : vector<1x128xf32> to vector<1x1x128xf32>
    %47 = arith.mulf %43, %46 : vector<1x1x128xf32>
    %48 = arith.addf %42, %47 : vector<1x1x128xf32>
    %49 = vector.extract_strided_slice %13 {offsets = [6, 0, 0], sizes = [1, 1, 128], strides = [1, 1, 1]} : vector<7x1x128xf32> to vector<1x1x128xf32>
    %50 = vector.extract_strided_slice %12 {offsets = [6, 0, 0], sizes = [1, 1, 128], strides = [1, 1, 1]} : vector<7x7x128xf32> to vector<1x1x128xf32>
    %51 = vector.shape_cast %50 : vector<1x1x128xf32> to vector<1x128xf32>
    %52 = vector.shape_cast %51 : vector<1x128xf32> to vector<1x1x128xf32>
    %53 = arith.mulf %49, %52 : vector<1x1x128xf32>
    %54 = arith.addf %48, %53 : vector<1x1x128xf32>
    %c0_22 = arith.constant 0 : index
    %c6 = arith.constant 6 : index
    %c0_23 = arith.constant 0 : index
    %55 = vector.load %arg8[%c0_22, %c6, %c0_23] : memref<7x12x128xf32, #tpu.memory_space<vmem>>, vector<7x1x128xf32>
    %56 = vector.extract_strided_slice %55 {offsets = [0, 0, 0], sizes = [1, 1, 128], strides = [1, 1, 1]} : vector<7x1x128xf32> to vector<1x1x128xf32>
    %57 = vector.extract_strided_slice %12 {offsets = [0, 1, 0], sizes = [1, 1, 128], strides = [1, 1, 1]} : vector<7x7x128xf32> to vector<1x1x128xf32>
    %58 = vector.shape_cast %57 : vector<1x1x128xf32> to vector<1x128xf32>
    %59 = vector.shape_cast %58 : vector<1x128xf32> to vector<1x1x128xf32>
    %60 = arith.mulf %56, %59 : vector<1x1x128xf32>
    %61 = arith.addf %54, %60 : vector<1x1x128xf32>
    %62 = vector.extract_strided_slice %55 {offsets = [1, 0, 0], sizes = [1, 1, 128], strides = [1, 1, 1]} : vector<7x1x128xf32> to vector<1x1x128xf32>
    %63 = vector.extract_strided_slice %12 {offsets = [1, 1, 0], sizes = [1, 1, 128], strides = [1, 1, 1]} : vector<7x7x128xf32> to vector<1x1x128xf32>
    %64 = vector.shape_cast %63 : vector<1x1x128xf32> to vector<1x128xf32>
    %65 = vector.shape_cast %64 : vector<1x128xf32> to vector<1x1x128xf32>
    %66 = arith.mulf %62, %65 : vector<1x1x128xf32>
    %67 = arith.addf %61, %66 : vector<1x1x128xf32>
    %68 = vector.extract_strided_slice %55 {offsets = [2, 0, 0], sizes = [1, 1, 128], strides = [1, 1, 1]} : vector<7x1x128xf32> to vector<1x1x128xf32>
    %69 = vector.extract_strided_slice %12 {offsets = [2, 1, 0], sizes = [1, 1, 128], strides = [1, 1, 1]} : vector<7x7x128xf32> to vector<1x1x128xf32>
    %70 = vector.shape_cast %69 : vector<1x1x128xf32> to vector<1x128xf32>
    %71 = vector.shape_cast %70 : vector<1x128xf32> to vector<1x1x128xf32>
    %72 = arith.mulf %68, %71 : vector<1x1x128xf32>
    %73 = arith.addf %67, %72 : vector<1x1x128xf32>
    %74 = vector.extract_strided_slice %55 {offsets = [3, 0, 0], sizes = [1, 1, 128], strides = [1, 1, 1]} : vector<7x1x128xf32> to vector<1x1x128xf32>
    %75 = vector.extract_strided_slice %12 {offsets = [3, 1, 0], sizes = [1, 1, 128], strides = [1, 1, 1]} : vector<7x7x128xf32> to vector<1x1x128xf32>
    %76 = vector.shape_cast %75 : vector<1x1x128xf32> to vector<1x128xf32>
    %77 = vector.shape_cast %76 : vector<1x128xf32> to vector<1x1x128xf32>
    %78 = arith.mulf %74, %77 : vector<1x1x128xf32>
    %79 = arith.addf %73, %78 : vector<1x1x128xf32>
    %80 = vector.extract_strided_slice %55 {offsets = [4, 0, 0], sizes = [1, 1, 128], strides = [1, 1, 1]} : vector<7x1x128xf32> to vector<1x1x128xf32>
    %81 = vector.extract_strided_slice %12 {offsets = [4, 1, 0], sizes = [1, 1, 128], strides = [1, 1, 1]} : vector<7x7x128xf32> to vector<1x1x128xf32>
    %82 = vector.shape_cast %81 : vector<1x1x128xf32> to vector<1x128xf32>
    %83 = vector.shape_cast %82 : vector<1x128xf32> to vector<1x1x128xf32>
    %84 = arith.mulf %80, %83 : vector<1x1x128xf32>
    %85 = arith.addf %79, %84 : vector<1x1x128xf32>
    %86 = vector.extract_strided_slice %55 {offsets = [5, 0, 0], sizes = [1, 1, 128], strides = [1, 1, 1]} : vector<7x1x128xf32> to vector<1x1x128xf32>
    %87 = vector.extract_strided_slice %12 {offsets = [5, 1, 0], sizes = [1, 1, 128], strides = [1, 1, 1]} : vector<7x7x128xf32> to vector<1x1x128xf32>
    %88 = vector.shape_cast %87 : vector<1x1x128xf32> to vector<1x128xf32>
    %89 = vector.shape_cast %88 : vector<1x128xf32> to vector<1x1x128xf32>
    %90 = arith.mulf %86, %89 : vector<1x1x128xf32>
    %91 = arith.addf %85, %90 : vector<1x1x128xf32>
    %92 = vector.extract_strided_slice %55 {offsets = [6, 0, 0], sizes = [1, 1, 128], strides = [1, 1, 1]} : vector<7x1x128xf32> to vector<1x1x128xf32>
    %93 = vector.extract_strided_slice %12 {offsets = [6, 1, 0], sizes = [1, 1, 128], strides = [1, 1, 1]} : vector<7x7x128xf32> to vector<1x1x128xf32>
    %94 = vector.shape_cast %93 : vector<1x1x128xf32> to vector<1x128xf32>
    %95 = vector.shape_cast %94 : vector<1x128xf32> to vector<1x1x128xf32>
    %96 = arith.mulf %92, %95 : vector<1x1x128xf32>
    %97 = arith.addf %91, %96 : vector<1x1x128xf32>
    %c0_24 = arith.constant 0 : index
    %c7 = arith.constant 7 : index
    %c0_25 = arith.constant 0 : index
    %98 = vector.load %arg8[%c0_24, %c7, %c0_25] : memref<7x12x128xf32, #tpu.memory_space<vmem>>, vector<7x1x128xf32>
    %99 = vector.extract_strided_slice %98 {offsets = [0, 0, 0], sizes = [1, 1, 128], strides = [1, 1, 1]} : vector<7x1x128xf32> to vector<1x1x128xf32>
    %100 = vector.extract_strided_slice %12 {offsets = [0, 2, 0], sizes = [1, 1, 128], strides = [1, 1, 1]} : vector<7x7x128xf32> to vector<1x1x128xf32>
    %101 = vector.shape_cast %100 : vector<1x1x128xf32> to vector<1x128xf32>
    %102 = vector.shape_cast %101 : vector<1x128xf32> to vector<1x1x128xf32>
    %103 = arith.mulf %99, %102 : vector<1x1x128xf32>
    %104 = arith.addf %97, %103 : vector<1x1x128xf32>
    %105 = vector.extract_strided_slice %98 {offsets = [1, 0, 0], sizes = [1, 1, 128], strides = [1, 1, 1]} : vector<7x1x128xf32> to vector<1x1x128xf32>
    %106 = vector.extract_strided_slice %12 {offsets = [1, 2, 0], sizes = [1, 1, 128], strides = [1, 1, 1]} : vector<7x7x128xf32> to vector<1x1x128xf32>
    %107 = vector.shape_cast %106 : vector<1x1x128xf32> to vector<1x128xf32>
    %108 = vector.shape_cast %107 : vector<1x128xf32> to vector<1x1x128xf32>
    %109 = arith.mulf %105, %108 : vector<1x1x128xf32>
    %110 = arith.addf %104, %109 : vector<1x1x128xf32>
    %111 = vector.extract_strided_slice %98 {offsets = [2, 0, 0], sizes = [1, 1, 128], strides = [1, 1, 1]} : vector<7x1x128xf32> to vector<1x1x128xf32>
    %112 = vector.extract_strided_slice %12 {offsets = [2, 2, 0], sizes = [1, 1, 128], strides = [1, 1, 1]} : vector<7x7x128xf32> to vector<1x1x128xf32>
    %113 = vector.shape_cast %112 : vector<1x1x128xf32> to vector<1x128xf32>
    %114 = vector.shape_cast %113 : vector<1x128xf32> to vector<1x1x128xf32>
    %115 = arith.mulf %111, %114 : vector<1x1x128xf32>
    %116 = arith.addf %110, %115 : vector<1x1x128xf32>
    %117 = vector.extract_strided_slice %98 {offsets = [3, 0, 0], sizes = [1, 1, 128], strides = [1, 1, 1]} : vector<7x1x128xf32> to vector<1x1x128xf32>
    %118 = vector.extract_strided_slice %12 {offsets = [3, 2, 0], sizes = [1, 1, 128], strides = [1, 1, 1]} : vector<7x7x128xf32> to vector<1x1x128xf32>
    %119 = vector.shape_cast %118 : vector<1x1x128xf32> to vector<1x128xf32>
    %120 = vector.shape_cast %119 : vector<1x128xf32> to vector<1x1x128xf32>
    %121 = arith.mulf %117, %120 : vector<1x1x128xf32>
    %122 = arith.addf %116, %121 : vector<1x1x128xf32>
    %123 = vector.extract_strided_slice %98 {offsets = [4, 0, 0], sizes = [1, 1, 128], strides = [1, 1, 1]} : vector<7x1x128xf32> to vector<1x1x128xf32>
    %124 = vector.extract_strided_slice %12 {offsets = [4, 2, 0], sizes = [1, 1, 128], strides = [1, 1, 1]} : vector<7x7x128xf32> to vector<1x1x128xf32>
    %125 = vector.shape_cast %124 : vector<1x1x128xf32> to vector<1x128xf32>
    %126 = vector.shape_cast %125 : vector<1x128xf32> to vector<1x1x128xf32>
    %127 = arith.mulf %123, %126 : vector<1x1x128xf32>
    %128 = arith.addf %122, %127 : vector<1x1x128xf32>
    %129 = vector.extract_strided_slice %98 {offsets = [5, 0, 0], sizes = [1, 1, 128], strides = [1, 1, 1]} : vector<7x1x128xf32> to vector<1x1x128xf32>
    %130 = vector.extract_strided_slice %12 {offsets = [5, 2, 0], sizes = [1, 1, 128], strides = [1, 1, 1]} : vector<7x7x128xf32> to vector<1x1x128xf32>
    %131 = vector.shape_cast %130 : vector<1x1x128xf32> to vector<1x128xf32>
    %132 = vector.shape_cast %131 : vector<1x128xf32> to vector<1x1x128xf32>
    %133 = arith.mulf %129, %132 : vector<1x1x128xf32>
    %134 = arith.addf %128, %133 : vector<1x1x128xf32>
    %135 = vector.extract_strided_slice %98 {offsets = [6, 0, 0], sizes = [1, 1, 128], strides = [1, 1, 1]} : vector<7x1x128xf32> to vector<1x1x128xf32>
    %136 = vector.extract_strided_slice %12 {offsets = [6, 2, 0], sizes = [1, 1, 128], strides = [1, 1, 1]} : vector<7x7x128xf32> to vector<1x1x128xf32>
    %137 = vector.shape_cast %136 : vector<1x1x128xf32> to vector<1x128xf32>
    %138 = vector.shape_cast %137 : vector<1x128xf32> to vector<1x1x128xf32>
    %139 = arith.mulf %135, %138 : vector<1x1x128xf32>
    %140 = arith.addf %134, %139 : vector<1x1x128xf32>
    %c0_26 = arith.constant 0 : index
    %c8_27 = arith.constant 8 : index
    %c0_28 = arith.constant 0 : index
    %141 = vector.load %arg8[%c0_26, %c8_27, %c0_28] : memref<7x12x128xf32, #tpu.memory_space<vmem>>, vector<7x1x128xf32>
    %142 = vector.extract_strided_slice %141 {offsets = [0, 0, 0], sizes = [1, 1, 128], strides = [1, 1, 1]} : vector<7x1x128xf32> to vector<1x1x128xf32>
    %143 = vector.extract_strided_slice %12 {offsets = [0, 3, 0], sizes = [1, 1, 128], strides = [1, 1, 1]} : vector<7x7x128xf32> to vector<1x1x128xf32>
    %144 = vector.shape_cast %143 : vector<1x1x128xf32> to vector<1x128xf32>
    %145 = vector.shape_cast %144 : vector<1x128xf32> to vector<1x1x128xf32>
    %146 = arith.mulf %142, %145 : vector<1x1x128xf32>
    %147 = arith.addf %140, %146 : vector<1x1x128xf32>
    %148 = vector.extract_strided_slice %141 {offsets = [1, 0, 0], sizes = [1, 1, 128], strides = [1, 1, 1]} : vector<7x1x128xf32> to vector<1x1x128xf32>
    %149 = vector.extract_strided_slice %12 {offsets = [1, 3, 0], sizes = [1, 1, 128], strides = [1, 1, 1]} : vector<7x7x128xf32> to vector<1x1x128xf32>
    %150 = vector.shape_cast %149 : vector<1x1x128xf32> to vector<1x128xf32>
    %151 = vector.shape_cast %150 : vector<1x128xf32> to vector<1x1x128xf32>
    %152 = arith.mulf %148, %151 : vector<1x1x128xf32>
    %153 = arith.addf %147, %152 : vector<1x1x128xf32>
    %154 = vector.extract_strided_slice %141 {offsets = [2, 0, 0], sizes = [1, 1, 128], strides = [1, 1, 1]} : vector<7x1x128xf32> to vector<1x1x128xf32>
    %155 = vector.extract_strided_slice %12 {offsets = [2, 3, 0], sizes = [1, 1, 128], strides = [1, 1, 1]} : vector<7x7x128xf32> to vector<1x1x128xf32>
    %156 = vector.shape_cast %155 : vector<1x1x128xf32> to vector<1x128xf32>
    %157 = vector.shape_cast %156 : vector<1x128xf32> to vector<1x1x128xf32>
    %158 = arith.mulf %154, %157 : vector<1x1x128xf32>
    %159 = arith.addf %153, %158 : vector<1x1x128xf32>
    %160 = vector.extract_strided_slice %141 {offsets = [3, 0, 0], sizes = [1, 1, 128], strides = [1, 1, 1]} : vector<7x1x128xf32> to vector<1x1x128xf32>
    %161 = vector.extract_strided_slice %12 {offsets = [3, 3, 0], sizes = [1, 1, 128], strides = [1, 1, 1]} : vector<7x7x128xf32> to vector<1x1x128xf32>
    %162 = vector.shape_cast %161 : vector<1x1x128xf32> to vector<1x128xf32>
    %163 = vector.shape_cast %162 : vector<1x128xf32> to vector<1x1x128xf32>
    %164 = arith.mulf %160, %163 : vector<1x1x128xf32>
    %165 = arith.addf %159, %164 : vector<1x1x128xf32>
    %166 = vector.extract_strided_slice %141 {offsets = [4, 0, 0], sizes = [1, 1, 128], strides = [1, 1, 1]} : vector<7x1x128xf32> to vector<1x1x128xf32>
    %167 = vector.extract_strided_slice %12 {offsets = [4, 3, 0], sizes = [1, 1, 128], strides = [1, 1, 1]} : vector<7x7x128xf32> to vector<1x1x128xf32>
    %168 = vector.shape_cast %167 : vector<1x1x128xf32> to vector<1x128xf32>
    %169 = vector.shape_cast %168 : vector<1x128xf32> to vector<1x1x128xf32>
    %170 = arith.mulf %166, %169 : vector<1x1x128xf32>
    %171 = arith.addf %165, %170 : vector<1x1x128xf32>
    %172 = vector.extract_strided_slice %141 {offsets = [5, 0, 0], sizes = [1, 1, 128], strides = [1, 1, 1]} : vector<7x1x128xf32> to vector<1x1x128xf32>
    %173 = vector.extract_strided_slice %12 {offsets = [5, 3, 0], sizes = [1, 1, 128], strides = [1, 1, 1]} : vector<7x7x128xf32> to vector<1x1x128xf32>
    %174 = vector.shape_cast %173 : vector<1x1x128xf32> to vector<1x128xf32>
    %175 = vector.shape_cast %174 : vector<1x128xf32> to vector<1x1x128xf32>
    %176 = arith.mulf %172, %175 : vector<1x1x128xf32>
    %177 = arith.addf %171, %176 : vector<1x1x128xf32>
    %178 = vector.extract_strided_slice %141 {offsets = [6, 0, 0], sizes = [1, 1, 128], strides = [1, 1, 1]} : vector<7x1x128xf32> to vector<1x1x128xf32>
    %179 = vector.extract_strided_slice %12 {offsets = [6, 3, 0], sizes = [1, 1, 128], strides = [1, 1, 1]} : vector<7x7x128xf32> to vector<1x1x128xf32>
    %180 = vector.shape_cast %179 : vector<1x1x128xf32> to vector<1x128xf32>
    %181 = vector.shape_cast %180 : vector<1x128xf32> to vector<1x1x128xf32>
    %182 = arith.mulf %178, %181 : vector<1x1x128xf32>
    %183 = arith.addf %177, %182 : vector<1x1x128xf32>
    %c0_29 = arith.constant 0 : index
    %c9_30 = arith.constant 9 : index
    %c0_31 = arith.constant 0 : index
    %184 = vector.load %arg8[%c0_29, %c9_30, %c0_31] : memref<7x12x128xf32, #tpu.memory_space<vmem>>, vector<7x1x128xf32>
    %185 = vector.extract_strided_slice %184 {offsets = [0, 0, 0], sizes = [1, 1, 128], strides = [1, 1, 1]} : vector<7x1x128xf32> to vector<1x1x128xf32>
    %186 = vector.extract_strided_slice %12 {offsets = [0, 4, 0], sizes = [1, 1, 128], strides = [1, 1, 1]} : vector<7x7x128xf32> to vector<1x1x128xf32>
    %187 = vector.shape_cast %186 : vector<1x1x128xf32> to vector<1x128xf32>
    %188 = vector.shape_cast %187 : vector<1x128xf32> to vector<1x1x128xf32>
    %189 = arith.mulf %185, %188 : vector<1x1x128xf32>
    %190 = arith.addf %183, %189 : vector<1x1x128xf32>
    %191 = vector.extract_strided_slice %184 {offsets = [1, 0, 0], sizes = [1, 1, 128], strides = [1, 1, 1]} : vector<7x1x128xf32> to vector<1x1x128xf32>
    %192 = vector.extract_strided_slice %12 {offsets = [1, 4, 0], sizes = [1, 1, 128], strides = [1, 1, 1]} : vector<7x7x128xf32> to vector<1x1x128xf32>
    %193 = vector.shape_cast %192 : vector<1x1x128xf32> to vector<1x128xf32>
    %194 = vector.shape_cast %193 : vector<1x128xf32> to vector<1x1x128xf32>
    %195 = arith.mulf %191, %194 : vector<1x1x128xf32>
    %196 = arith.addf %190, %195 : vector<1x1x128xf32>
    %197 = vector.extract_strided_slice %184 {offsets = [2, 0, 0], sizes = [1, 1, 128], strides = [1, 1, 1]} : vector<7x1x128xf32> to vector<1x1x128xf32>
    %198 = vector.extract_strided_slice %12 {offsets = [2, 4, 0], sizes = [1, 1, 128], strides = [1, 1, 1]} : vector<7x7x128xf32> to vector<1x1x128xf32>
    %199 = vector.shape_cast %198 : vector<1x1x128xf32> to vector<1x128xf32>
    %200 = vector.shape_cast %199 : vector<1x128xf32> to vector<1x1x128xf32>
    %201 = arith.mulf %197, %200 : vector<1x1x128xf32>
    %202 = arith.addf %196, %201 : vector<1x1x128xf32>
    %203 = vector.extract_strided_slice %184 {offsets = [3, 0, 0], sizes = [1, 1, 128], strides = [1, 1, 1]} : vector<7x1x128xf32> to vector<1x1x128xf32>
    %204 = vector.extract_strided_slice %12 {offsets = [3, 4, 0], sizes = [1, 1, 128], strides = [1, 1, 1]} : vector<7x7x128xf32> to vector<1x1x128xf32>
    %205 = vector.shape_cast %204 : vector<1x1x128xf32> to vector<1x128xf32>
    %206 = vector.shape_cast %205 : vector<1x128xf32> to vector<1x1x128xf32>
    %207 = arith.mulf %203, %206 : vector<1x1x128xf32>
    %208 = arith.addf %202, %207 : vector<1x1x128xf32>
    %209 = vector.extract_strided_slice %184 {offsets = [4, 0, 0], sizes = [1, 1, 128], strides = [1, 1, 1]} : vector<7x1x128xf32> to vector<1x1x128xf32>
    %210 = vector.extract_strided_slice %12 {offsets = [4, 4, 0], sizes = [1, 1, 128], strides = [1, 1, 1]} : vector<7x7x128xf32> to vector<1x1x128xf32>
    %211 = vector.shape_cast %210 : vector<1x1x128xf32> to vector<1x128xf32>
    %212 = vector.shape_cast %211 : vector<1x128xf32> to vector<1x1x128xf32>
    %213 = arith.mulf %209, %212 : vector<1x1x128xf32>
    %214 = arith.addf %208, %213 : vector<1x1x128xf32>
    %215 = vector.extract_strided_slice %184 {offsets = [5, 0, 0], sizes = [1, 1, 128], strides = [1, 1, 1]} : vector<7x1x128xf32> to vector<1x1x128xf32>
    %216 = vector.extract_strided_slice %12 {offsets = [5, 4, 0], sizes = [1, 1, 128], strides = [1, 1, 1]} : vector<7x7x128xf32> to vector<1x1x128xf32>
    %217 = vector.shape_cast %216 : vector<1x1x128xf32> to vector<1x128xf32>
    %218 = vector.shape_cast %217 : vector<1x128xf32> to vector<1x1x128xf32>
    %219 = arith.mulf %215, %218 : vector<1x1x128xf32>
    %220 = arith.addf %214, %219 : vector<1x1x128xf32>
    %221 = vector.extract_strided_slice %184 {offsets = [6, 0, 0], sizes = [1, 1, 128], strides = [1, 1, 1]} : vector<7x1x128xf32> to vector<1x1x128xf32>
    %222 = vector.extract_strided_slice %12 {offsets = [6, 4, 0], sizes = [1, 1, 128], strides = [1, 1, 1]} : vector<7x7x128xf32> to vector<1x1x128xf32>
    %223 = vector.shape_cast %222 : vector<1x1x128xf32> to vector<1x128xf32>
    %224 = vector.shape_cast %223 : vector<1x128xf32> to vector<1x1x128xf32>
    %225 = arith.mulf %221, %224 : vector<1x1x128xf32>
    %226 = arith.addf %220, %225 : vector<1x1x128xf32>
    %c0_32 = arith.constant 0 : index
    %c10 = arith.constant 10 : index
    %c0_33 = arith.constant 0 : index
    %227 = vector.load %arg8[%c0_32, %c10, %c0_33] : memref<7x12x128xf32, #tpu.memory_space<vmem>>, vector<7x1x128xf32>
    %228 = vector.extract_strided_slice %227 {offsets = [0, 0, 0], sizes = [1, 1, 128], strides = [1, 1, 1]} : vector<7x1x128xf32> to vector<1x1x128xf32>
    %229 = vector.extract_strided_slice %12 {offsets = [0, 5, 0], sizes = [1, 1, 128], strides = [1, 1, 1]} : vector<7x7x128xf32> to vector<1x1x128xf32>
    %230 = vector.shape_cast %229 : vector<1x1x128xf32> to vector<1x128xf32>
    %231 = vector.shape_cast %230 : vector<1x128xf32> to vector<1x1x128xf32>
    %232 = arith.mulf %228, %231 : vector<1x1x128xf32>
    %233 = arith.addf %226, %232 : vector<1x1x128xf32>
    %234 = vector.extract_strided_slice %227 {offsets = [1, 0, 0], sizes = [1, 1, 128], strides = [1, 1, 1]} : vector<7x1x128xf32> to vector<1x1x128xf32>
    %235 = vector.extract_strided_slice %12 {offsets = [1, 5, 0], sizes = [1, 1, 128], strides = [1, 1, 1]} : vector<7x7x128xf32> to vector<1x1x128xf32>
    %236 = vector.shape_cast %235 : vector<1x1x128xf32> to vector<1x128xf32>
    %237 = vector.shape_cast %236 : vector<1x128xf32> to vector<1x1x128xf32>
    %238 = arith.mulf %234, %237 : vector<1x1x128xf32>
    %239 = arith.addf %233, %238 : vector<1x1x128xf32>
    %240 = vector.extract_strided_slice %227 {offsets = [2, 0, 0], sizes = [1, 1, 128], strides = [1, 1, 1]} : vector<7x1x128xf32> to vector<1x1x128xf32>
    %241 = vector.extract_strided_slice %12 {offsets = [2, 5, 0], sizes = [1, 1, 128], strides = [1, 1, 1]} : vector<7x7x128xf32> to vector<1x1x128xf32>
    %242 = vector.shape_cast %241 : vector<1x1x128xf32> to vector<1x128xf32>
    %243 = vector.shape_cast %242 : vector<1x128xf32> to vector<1x1x128xf32>
    %244 = arith.mulf %240, %243 : vector<1x1x128xf32>
    %245 = arith.addf %239, %244 : vector<1x1x128xf32>
    %246 = vector.extract_strided_slice %227 {offsets = [3, 0, 0], sizes = [1, 1, 128], strides = [1, 1, 1]} : vector<7x1x128xf32> to vector<1x1x128xf32>
    %247 = vector.extract_strided_slice %12 {offsets = [3, 5, 0], sizes = [1, 1, 128], strides = [1, 1, 1]} : vector<7x7x128xf32> to vector<1x1x128xf32>
    %248 = vector.shape_cast %247 : vector<1x1x128xf32> to vector<1x128xf32>
    %249 = vector.shape_cast %248 : vector<1x128xf32> to vector<1x1x128xf32>
    %250 = arith.mulf %246, %249 : vector<1x1x128xf32>
    %251 = arith.addf %245, %250 : vector<1x1x128xf32>
    %252 = vector.extract_strided_slice %227 {offsets = [4, 0, 0], sizes = [1, 1, 128], strides = [1, 1, 1]} : vector<7x1x128xf32> to vector<1x1x128xf32>
    %253 = vector.extract_strided_slice %12 {offsets = [4, 5, 0], sizes = [1, 1, 128], strides = [1, 1, 1]} : vector<7x7x128xf32> to vector<1x1x128xf32>
    %254 = vector.shape_cast %253 : vector<1x1x128xf32> to vector<1x128xf32>
    %255 = vector.shape_cast %254 : vector<1x128xf32> to vector<1x1x128xf32>
    %256 = arith.mulf %252, %255 : vector<1x1x128xf32>
    %257 = arith.addf %251, %256 : vector<1x1x128xf32>
    %258 = vector.extract_strided_slice %227 {offsets = [5, 0, 0], sizes = [1, 1, 128], strides = [1, 1, 1]} : vector<7x1x128xf32> to vector<1x1x128xf32>
    %259 = vector.extract_strided_slice %12 {offsets = [5, 5, 0], sizes = [1, 1, 128], strides = [1, 1, 1]} : vector<7x7x128xf32> to vector<1x1x128xf32>
    %260 = vector.shape_cast %259 : vector<1x1x128xf32> to vector<1x128xf32>
    %261 = vector.shape_cast %260 : vector<1x128xf32> to vector<1x1x128xf32>
    %262 = arith.mulf %258, %261 : vector<1x1x128xf32>
    %263 = arith.addf %257, %262 : vector<1x1x128xf32>
    %264 = vector.extract_strided_slice %227 {offsets = [6, 0, 0], sizes = [1, 1, 128], strides = [1, 1, 1]} : vector<7x1x128xf32> to vector<1x1x128xf32>
    %265 = vector.extract_strided_slice %12 {offsets = [6, 5, 0], sizes = [1, 1, 128], strides = [1, 1, 1]} : vector<7x7x128xf32> to vector<1x1x128xf32>
    %266 = vector.shape_cast %265 : vector<1x1x128xf32> to vector<1x128xf32>
    %267 = vector.shape_cast %266 : vector<1x128xf32> to vector<1x1x128xf32>
    %268 = arith.mulf %264, %267 : vector<1x1x128xf32>
    %269 = arith.addf %263, %268 : vector<1x1x128xf32>
    %c0_34 = arith.constant 0 : index
    %c11 = arith.constant 11 : index
    %c0_35 = arith.constant 0 : index
    %270 = vector.load %arg8[%c0_34, %c11, %c0_35] : memref<7x12x128xf32, #tpu.memory_space<vmem>>, vector<7x1x128xf32>
    %271 = vector.extract_strided_slice %270 {offsets = [0, 0, 0], sizes = [1, 1, 128], strides = [1, 1, 1]} : vector<7x1x128xf32> to vector<1x1x128xf32>
    %272 = vector.extract_strided_slice %12 {offsets = [0, 6, 0], sizes = [1, 1, 128], strides = [1, 1, 1]} : vector<7x7x128xf32> to vector<1x1x128xf32>
    %273 = vector.shape_cast %272 : vector<1x1x128xf32> to vector<1x128xf32>
    %274 = vector.shape_cast %273 : vector<1x128xf32> to vector<1x1x128xf32>
    %275 = arith.mulf %271, %274 : vector<1x1x128xf32>
    %276 = arith.addf %269, %275 : vector<1x1x128xf32>
    %277 = vector.extract_strided_slice %270 {offsets = [1, 0, 0], sizes = [1, 1, 128], strides = [1, 1, 1]} : vector<7x1x128xf32> to vector<1x1x128xf32>
    %278 = vector.extract_strided_slice %12 {offsets = [1, 6, 0], sizes = [1, 1, 128], strides = [1, 1, 1]} : vector<7x7x128xf32> to vector<1x1x128xf32>
    %279 = vector.shape_cast %278 : vector<1x1x128xf32> to vector<1x128xf32>
    %280 = vector.shape_cast %279 : vector<1x128xf32> to vector<1x1x128xf32>
    %281 = arith.mulf %277, %280 : vector<1x1x128xf32>
    %282 = arith.addf %276, %281 : vector<1x1x128xf32>
    %283 = vector.extract_strided_slice %270 {offsets = [2, 0, 0], sizes = [1, 1, 128], strides = [1, 1, 1]} : vector<7x1x128xf32> to vector<1x1x128xf32>
    %284 = vector.extract_strided_slice %12 {offsets = [2, 6, 0], sizes = [1, 1, 128], strides = [1, 1, 1]} : vector<7x7x128xf32> to vector<1x1x128xf32>
    %285 = vector.shape_cast %284 : vector<1x1x128xf32> to vector<1x128xf32>
    %286 = vector.shape_cast %285 : vector<1x128xf32> to vector<1x1x128xf32>
    %287 = arith.mulf %283, %286 : vector<1x1x128xf32>
    %288 = arith.addf %282, %287 : vector<1x1x128xf32>
    %289 = vector.extract_strided_slice %270 {offsets = [3, 0, 0], sizes = [1, 1, 128], strides = [1, 1, 1]} : vector<7x1x128xf32> to vector<1x1x128xf32>
    %290 = vector.extract_strided_slice %12 {offsets = [3, 6, 0], sizes = [1, 1, 128], strides = [1, 1, 1]} : vector<7x7x128xf32> to vector<1x1x128xf32>
    %291 = vector.shape_cast %290 : vector<1x1x128xf32> to vector<1x128xf32>
    %292 = vector.shape_cast %291 : vector<1x128xf32> to vector<1x1x128xf32>
    %293 = arith.mulf %289, %292 : vector<1x1x128xf32>
    %294 = arith.addf %288, %293 : vector<1x1x128xf32>
    %295 = vector.extract_strided_slice %270 {offsets = [4, 0, 0], sizes = [1, 1, 128], strides = [1, 1, 1]} : vector<7x1x128xf32> to vector<1x1x128xf32>
    %296 = vector.extract_strided_slice %12 {offsets = [4, 6, 0], sizes = [1, 1, 128], strides = [1, 1, 1]} : vector<7x7x128xf32> to vector<1x1x128xf32>
    %297 = vector.shape_cast %296 : vector<1x1x128xf32> to vector<1x128xf32>
    %298 = vector.shape_cast %297 : vector<1x128xf32> to vector<1x1x128xf32>
    %299 = arith.mulf %295, %298 : vector<1x1x128xf32>
    %300 = arith.addf %294, %299 : vector<1x1x128xf32>
    %301 = vector.extract_strided_slice %270 {offsets = [5, 0, 0], sizes = [1, 1, 128], strides = [1, 1, 1]} : vector<7x1x128xf32> to vector<1x1x128xf32>
    %302 = vector.extract_strided_slice %12 {offsets = [5, 6, 0], sizes = [1, 1, 128], strides = [1, 1, 1]} : vector<7x7x128xf32> to vector<1x1x128xf32>
    %303 = vector.shape_cast %302 : vector<1x1x128xf32> to vector<1x128xf32>
    %304 = vector.shape_cast %303 : vector<1x128xf32> to vector<1x1x128xf32>
    %305 = arith.mulf %301, %304 : vector<1x1x128xf32>
    %306 = arith.addf %300, %305 : vector<1x1x128xf32>
    %307 = vector.extract_strided_slice %270 {offsets = [6, 0, 0], sizes = [1, 1, 128], strides = [1, 1, 1]} : vector<7x1x128xf32> to vector<1x1x128xf32>
    %308 = vector.extract_strided_slice %12 {offsets = [6, 6, 0], sizes = [1, 1, 128], strides = [1, 1, 1]} : vector<7x7x128xf32> to vector<1x1x128xf32>
    %309 = vector.shape_cast %308 : vector<1x1x128xf32> to vector<1x128xf32>
    %310 = vector.shape_cast %309 : vector<1x128xf32> to vector<1x1x128xf32>
    %311 = arith.mulf %307, %310 : vector<1x1x128xf32>
    %312 = arith.addf %306, %311 : vector<1x1x128xf32>
    %313 = vector.shape_cast %312 : vector<1x1x128xf32> to vector<1x128xf32>
    %314 = arith.truncf %313 : vector<1x128xf32> to vector<1x128xbf16>
    %c0_36 = arith.constant 0 : index
    %c0_37 = arith.constant 0 : index
    %315 = vector.load %arg3[%c0_36, %c0_37] : memref<128x256xbf16, #tpu.memory_space<vmem>>, vector<128x256xbf16>
    %cst_38 = arith.constant dense<0.000000e+00> : vector<1x256xf32>
    %316 = tpu.matmul %314, %315, %cst_38 {dimension_numbers = #tpu.dot_dimension_numbers<[1], [0], [0], [1], [0, 0, 1, 1], [], []>} : vector<1x128xbf16>, vector<128x256xbf16>, vector<1x256xf32> -> vector<1x256xf32>
    %c0_39 = arith.constant 0 : index
    %c0_40 = arith.constant 0 : index
    %317 = vector.load %arg4[%c0_39, %c0_40] : memref<1x256xf32, #tpu.memory_space<vmem>>, vector<1x256xf32>
    %318 = arith.addf %316, %317 : vector<1x256xf32>
    %cst_41 = arith.constant 5.000000e-01 : f32
    %319 = vector.broadcast %cst_41 : f32 to vector<1x256xf32>
    %320 = arith.mulf %319, %318 : vector<1x256xf32>
    %cst_42 = arith.constant 4.471500e-02 : f32
    %321 = vector.broadcast %cst_42 : f32 to vector<1x256xf32>
    %322 = arith.mulf %321, %318 : vector<1x256xf32>
    %323 = arith.mulf %322, %318 : vector<1x256xf32>
    %324 = arith.mulf %323, %318 : vector<1x256xf32>
    %325 = arith.addf %318, %324 : vector<1x256xf32>
    %cst_43 = arith.constant 0.797884583 : f32
    %326 = vector.broadcast %cst_43 : f32 to vector<1x256xf32>
    %327 = arith.mulf %326, %325 : vector<1x256xf32>
    %328 = math.tanh %327 : vector<1x256xf32>
    %cst_44 = arith.constant 1.000000e+00 : f32
    %329 = vector.broadcast %cst_44 : f32 to vector<1x256xf32>
    %330 = arith.addf %329, %328 : vector<1x256xf32>
    %331 = arith.mulf %320, %330 : vector<1x256xf32>
    %332 = arith.truncf %331 : vector<1x256xf32> to vector<1x256xbf16>
    %c0_45 = arith.constant 0 : index
    %c0_46 = arith.constant 0 : index
    %333 = vector.load %arg5[%c0_45, %c0_46] : memref<256x128xbf16, #tpu.memory_space<vmem>>, vector<256x128xbf16>
    %cst_47 = arith.constant dense<0.000000e+00> : vector<1x128xf32>
    %334 = tpu.matmul %332, %333, %cst_47 {dimension_numbers = #tpu.dot_dimension_numbers<[1], [0], [0], [1], [0, 0, 1, 1], [], []>} : vector<1x256xbf16>, vector<256x128xbf16>, vector<1x128xf32> -> vector<1x128xf32>
    %c0_48 = arith.constant 0 : index
    %c0_49 = arith.constant 0 : index
    %335 = vector.load %arg6[%c0_48, %c0_49] : memref<1x128xf32, #tpu.memory_space<vmem>>, vector<1x128xf32>
    %336 = arith.addf %334, %335 : vector<1x128xf32>
    %337 = vector.shape_cast %336 : vector<1x128xf32> to vector<1x1x128xf32>
    %338 = arith.addf %2, %337 : vector<1x1x128xf32>
    %339 = arith.truncf %338 : vector<1x1x128xf32> to vector<1x1x128xbf16>
    %c0_50 = arith.constant 0 : index
    %c0_51 = arith.constant 0 : index
    %c0_52 = arith.constant 0 : index
    %c0_53 = arith.constant 0 : index
    %340 = vector.load %arg7[%c0_50, %c0_51, %c0_52, %c0_53] : memref<1x1x1x128xbf16, #tpu.memory_space<vmem>>, vector<1x1x1x128xbf16>
    %341 = vector.shape_cast %340 : vector<1x1x1x128xbf16> to vector<1x1x128xbf16>
    %342 = vector.shape_cast %339 : vector<1x1x128xbf16> to vector<1x1x1x128xbf16>
    tpu.vector_store %arg7[%c0_50, %c0_51, %c0_52, %c0_53], %342 {strides = array<i32>} : memref<1x1x1x128xbf16, #tpu.memory_space<vmem>>, vector<1x1x1x128xbf16>,
    return
  }
  func.func @transform_0(%arg0: i32) -> (i32, i32, i32, i32) {
    %c0_i32 = arith.constant 0 : i32
    %c0_i32_0 = arith.constant 0 : i32
    %c0_i32_1 = arith.constant 0 : i32
    %c0_i32_2 = arith.constant 0 : i32
    return %arg0, %c0_i32, %c0_i32_0, %c0_i32_1 : i32, i32, i32, i32
  }
  func.func @transform_1(%arg0: i32) -> (i32, i32, i32) {
    %c0_i32 = arith.constant 0 : i32
    %c0_i32_0 = arith.constant 0 : i32
    %c0_i32_1 = arith.constant 0 : i32
    %c0_i32_2 = arith.constant 0 : i32
    return %c0_i32, %c0_i32_0, %c0_i32_1 : i32, i32, i32
  }
  func.func @transform_2(%arg0: i32) -> (i32, i32) {
    %c0_i32 = arith.constant 0 : i32
    %c0_i32_0 = arith.constant 0 : i32
    %c0_i32_1 = arith.constant 0 : i32
    return %c0_i32, %c0_i32_0 : i32, i32
  }
  func.func @transform_3(%arg0: i32) -> (i32, i32) {
    %c0_i32 = arith.constant 0 : i32
    %c0_i32_0 = arith.constant 0 : i32
    %c0_i32_1 = arith.constant 0 : i32
    return %c0_i32, %c0_i32_0 : i32, i32
  }
  func.func @transform_4(%arg0: i32) -> (i32, i32) {
    %c0_i32 = arith.constant 0 : i32
    %c0_i32_0 = arith.constant 0 : i32
    %c0_i32_1 = arith.constant 0 : i32
    return %c0_i32, %c0_i32_0 : i32, i32
  }
  func.func @transform_5(%arg0: i32) -> (i32, i32) {
    %c0_i32 = arith.constant 0 : i32
    %c0_i32_0 = arith.constant 0 : i32
    %c0_i32_1 = arith.constant 0 : i32
    return %c0_i32, %c0_i32_0 : i32, i32
  }
  func.func @transform_6(%arg0: i32) -> (i32, i32, i32, i32) {
    %c0_i32 = arith.constant 0 : i32
    %c0_i32_0 = arith.constant 0 : i32
    %c0_i32_1 = arith.constant 0 : i32
    %c0_i32_2 = arith.constant 0 : i32
    return %arg0, %c0_i32, %c0_i32_0, %c0_i32_1 : i32, i32, i32, i32
  }
}

module attributes {stable_mosaic.version = 11 : i64} {
  func.func @_mean_head_kernel(%arg0: memref<2x1x128xbf16, #tpu.memory_space<vmem>>, %arg1: memref<128x128xbf16, #tpu.memory_space<vmem>>, %arg2: memref<1x128xf32, #tpu.memory_space<vmem>>, %arg3: memref<2x128xf32, #tpu.memory_space<vmem>>) attributes {dimension_semantics = [], scalar_prefetch = 0 : i64, scratch_operands = 0 : i64, tpu.core_type = #tpu.core_type<tc>} {
    %c0 = arith.constant 0 : index
    %c0_0 = arith.constant 0 : index
    %c0_1 = arith.constant 0 : index
    %0 = vector.load %arg0[%c0, %c0_0, %c0_1] : memref<2x1x128xbf16, #tpu.memory_space<vmem>>, vector<2x1x128xbf16>
    %1 = arith.extf %0 : vector<2x1x128xbf16> to vector<2x1x128xf32>
    %cst = arith.constant dense<0.000000e+00> : vector<2x128xf32>
    %2 = vector.multi_reduction <add>, %1, %cst [1] : vector<2x1x128xf32> to vector<2x128xf32>
    %cst_2 = arith.constant 1.000000e+00 : f32
    %3 = vector.broadcast %cst_2 : f32 to vector<2x128xf32>
    %4 = arith.divf %2, %3 : vector<2x128xf32>
    %5 = arith.truncf %4 : vector<2x128xf32> to vector<2x128xbf16>
    %c0_3 = arith.constant 0 : index
    %c0_4 = arith.constant 0 : index
    %6 = vector.load %arg1[%c0_3, %c0_4] : memref<128x128xbf16, #tpu.memory_space<vmem>>, vector<128x128xbf16>
    %cst_5 = arith.constant dense<0.000000e+00> : vector<2x128xf32>
    %7 = tpu.matmul %5, %6, %cst_5 {dimension_numbers = #tpu.dot_dimension_numbers<[1], [0], [0], [1], [0, 0, 1, 1], [], []>} : vector<2x128xbf16>, vector<128x128xbf16>, vector<2x128xf32> -> vector<2x128xf32>
    %c0_6 = arith.constant 0 : index
    %c0_7 = arith.constant 0 : index
    %8 = vector.load %arg2[%c0_6, %c0_7] : memref<1x128xf32, #tpu.memory_space<vmem>>, vector<1x128xf32>
    %9 = vector.broadcast %8 : vector<1x128xf32> to vector<2x128xf32>
    %10 = arith.addf %7, %9 : vector<2x128xf32>
    %c0_8 = arith.constant 0 : index
    %c0_9 = arith.constant 0 : index
    %11 = vector.load %arg3[%c0_8, %c0_9] : memref<2x128xf32, #tpu.memory_space<vmem>>, vector<2x128xf32>
    tpu.vector_store %arg3[%c0_8, %c0_9], %10 {strides = array<i32>} : memref<2x128xf32, #tpu.memory_space<vmem>>, vector<2x128xf32>,
    return
  }
}

</mosaic_0001>

<bundles_post_ra>
// kernel: tpu_custom_call.1
= control target key start
LH: loop header
LB: loop body
LE: loop exit
PB: predicated region body
PF: predicated region fallthrough
CT: control target
= control target key end

     0   :  { %6 = vsyncpa [#allocation3], 0  ;;  %s304_s0 = inlined_call_operand.hbm [shape: f32[8,128], index: 0, kind: input, shape index: {}]   ;;  %s305_s1 = inlined_call_operand.hbm [shape: f32[8,128], index: 1, kind: output, shape index: {}]  }
   0x1   :  { %7 = vsyncpa [#allocation4], 0  ;;  %s257_s6 = smov 0  }
   0x2 LB: > { %s144_s7 = sadd.s32 4294967295, %s243_s6   ;;  %p145_p0 = scmp.ge.s32.totalorder %s243_s6, 1  ;;  %s243_s6 = sphi %s257_s6, %s13_s6  }
   0x3   : > { %p60_p1 = scmp.lt.s32.totalorder %s243_s6, 3  ;;  %p269_p3 = scmp.eq.s32.totalorder %s144_s7, 0 }
   0x4   : > { %s245_s10 = smov [#allocation2]  }
   0x5   : > { %p265_p2 = pnand %p145_p0, %p60_p1  ;;  %s73_s11 = sshll.u32 %s245_s10, 4  ;;  %s74_s11 = int_to_ptr.vmem [resolvable:$true] %s73_s11 }
   0x6   : > { %s190_s12 = scalar_lea.vmem %s74_s11, 128  ;;  %p198_p10 = scmp.lt.s32.totalorder %s74_s11, %s74_s11 }
   0x7   : > { %p161_p4 = pneg %p265_p2  ;;  %p191_p7 = scmp.ne.s32.totalorder %s74_s11, %s190_s12 }
   0x8   : > { %p199_p11 = scmp.lt.s32.totalorder %s190_s12, %s190_s12 }
   0x9   : > { %p162_p5 = pnand %p269_p3, %p161_p4 }
   0xa   : > { %p200_p12 = por %p199_p11, %p198_p10 }
   0xb   : > { %p181_p6 = pneg %p162_p5 }
   0xd   : > { %p193_p8 = pnand %p191_p7, %p181_p6 }
   0xf   : > { %p194_p9 = pneg %p193_p8 }
  0x11   : > { %p201_p13 = pnand %p200_p12, %p194_p9 }
  0x13   : > { %204 = shalt.err (!%p201_p13)
}
  0x14   : > { %164 = dma.hbm_to_vmem [thread:$0]  (!%p162_p5), %s304_s0, 128, %s74_s11, [#allocation3]  }
  0x15   : > { %86 = sbr.rel (%p265_p2) target bundleno = 42 (0x2a), region = 24 }
  0x1a   : > { %234 = dma.done.wait (%p269_p3), [#allocation3], 128  }
  0x1b   : > { %236 = vsyncadd (%p269_p3), [#allocation3], 4294967168  ;;  %s246_s15 = smov [#allocation5]   ;;  %p286_p0 = scmp.eq.s32.totalorder %s144_s7, 1  ;;  %v96_v0 = vld [vmem:[#allocation2] sm:$0xff] }
  0x1c   : > { %s105_s16 = sshll.u32 %s246_s15, 4  ;;  %97 = vst [vmem:[#allocation5] sm:$0xff] %v96_v0  ;;  %s106_s16 = int_to_ptr.vmem [resolvable:$true] %s105_s16 }
  0x1d   : > { %s205_s18 = scalar_lea.vmem %s106_s16, 128  ;;  %p212_p5 = scmp.lt.s32.totalorder %s106_s16, %s106_s16 }
  0x1e   : > { %p206_p1 = scmp.ne.s32.totalorder %s106_s16, %s205_s18  ;;  %p213_p6 = scmp.lt.s32.totalorder %s205_s18, %s205_s18 }
  0x20   : > { %p207_p2 = pnand %p206_p1, %p286_p0  ;;  %p214_p7 = por %p213_p6, %p212_p5 }
  0x22   : > { %p208_p4 = pneg %p207_p2 }
  0x24   : > { %p215_p8 = pnand %p214_p7, %p208_p4 }
  0x26   : > { %218 = shalt.err (!%p215_p8)
}
  0x27   : > { %158 = dma.vmem_to_hbm [thread:$0]  (%p286_p0), %s106_s16, 128, %s305_s1, [#allocation4]  }
  0x28   : > { %238 = dma.done.wait (%p286_p0), [#allocation4], 128  }
  0x29   : > { %240 = vsyncadd (%p286_p0), [#allocation4], 4294967168 }
  0x2a PF: > { %s13_s6 = sadd.s32 1, %s243_s6  }
  0x2b   : > { %p10_p3 = scmp.ge.s32.totalorder %s13_s6, 4  }
  0x2d   :  { %12 = sbr.rel (!%p10_p3) target bundleno = 2 (0x2), region = 53 }
  0x32   :  { %118 = vsyncpa [#allocation3], 1 }
  0x33   :  { %120 = vsyncpa [#allocation3 + $0x1], 1 }
  0x34   :  { %121 = vsyncpa [#allocation4], 1 }
  0x35   :  { %123 = vsyncpa [#allocation4 + $0x1], 1 }

// kernel: mul.48
= control target key start
LH: loop header
LB: loop body
LE: loop exit
PB: predicated region body
PF: predicated region fallthrough
CT: control target
= control target key end

     0   :  { %s34_s0 = inlined_call_operand.vmem [shape: f32[8], index: 0, kind: input, shape index: {}]   ;;  %s35_s1 = inlined_call_operand.vmem [shape: f32[8], index: 1, kind: input, shape index: {}]   ;;  %s36_s2 = inlined_call_operand.vmem [shape: f32[8], index: 2, kind: output, shape index: {}]  }
   0x1   :  { %v3_v0 = vld [vmem:[%s34_s0] sm:$0x1] }
   0x2   :  { %v4_v1 = vld [vmem:[%s35_s1] sm:$0x1] }
   0x3   :  { %v7_v2 = vmul.f32 %v4_v1, %v3_v0 }
   0x5   :  { %9 = vst [vmem:[%s36_s2] sm:$0x1] %v7_v2 }

// kernel: convnext2d_forward.10
= control target key start
LH: loop header
LB: loop body
LE: loop exit
PB: predicated region body
PF: predicated region fallthrough
CT: control target
= control target key end

     0   :  { %s602_s1 = inlined_call_operand.vmem [shape: bf16[128,128], index: 1, kind: input, shape index: {}]   ;;  %s603_s0 = inlined_call_operand.vmem [shape: bf16[128,128], index: 0, kind: input, shape index: {}]   ;;  %s604_s2 = inlined_call_operand.vmem [shape: f32[1,128], index: 2, kind: input, shape index: {}]   ;;  %s605_s3 = inlined_call_operand.vmem [shape: bf16[128,128], index: 3, kind: output, shape index: {}]  }
   0x1   :  { %v491_v0 = vld [vmem:[%s602_s1 + $0x38] sm:$0xff]   ;;  %v492_v1 = vld [vmem:[%s602_s1 + $0x30] sm:$0xff]   ;;  %v493_v2 = vld [vmem:[%s602_s1 + $0x28] sm:$0xff]  }
   0x2   :  { %443 = vmatprep.subr.bf16.mxu0 %v491_v0  ;;  %475 = vmatprep.subr.bf16.mxu1 %v491_v0  ;;  %v494_v3 = vld [vmem:[%s602_s1 + $0x20] sm:$0xff]   ;;  %v495_v6 = vld [vmem:[%s602_s1 + $0x18] sm:$0xff]   ;;  %v496_v7 = vld [vmem:[%s602_s1 + $0x10] sm:$0xff]  }
   0x3   :  { %444 = vmatpush3.bf16.msra.mxu0 %v491_v0  ;;  %483 = vmatpush3.bf16.msra.mxu1 %v491_v0  ;;  %v499_v4 = vld [vmem:[%s603_s0] sm:$0xff]   ;;  %v497_v8 = vld [vmem:[%s602_s1 + $0x8] sm:$0xff]   ;;  %v503_v12 = vld [vmem:[%s603_s0 + $0x10] sm:$0xff]  }
   0x4   :  { %445 = vmatprep.subr.bf16.mxu0 %v492_v1  ;;  %476 = vmatprep.subr.bf16.mxu1 %v492_v1  ;;  %v500_v5 = vld [vmem:[%s603_s0 + $0x20] sm:$0xff]   ;;  %v501_v10 = vld [vmem:[%s603_s0 + $0x8] sm:$0xff]   ;;  %v504_v13 = vld [vmem:[%s603_s0 + $0x30] sm:$0xff]  }
   0x5   :  { %459 = vmatprep.mubr.bf16.mxu0 %v499_v4  ;;  %467 = vmatprep.mubr.bf16.mxu1 %v500_v5  ;;  %v498_v9 = vld [vmem:[%s602_s1] sm:$0xff]   ;;  %v502_v11 = vld [vmem:[%s603_s0 + $0x28] sm:$0xff]   ;;  %v505_v14 = vld [vmem:[%s603_s0 + $0x18] sm:$0xff]  }
   0x6   :  { %v506_v15 = vld [vmem:[%s603_s0 + $0x38] sm:$0xff]   ;;  %v331_v18 = vld [vmem:[%s604_s2] ss:$0 sm:$0xff] }
   0x7   :  { %446 = vmatpush3.bf16.msra.mxu0 %v492_v1  ;;  %484 = vmatpush3.bf16.msra.mxu1 %v492_v1 }
   0x8   :  { %447 = vmatprep.subr.bf16.mxu0 %v493_v2  ;;  %477 = vmatprep.subr.bf16.mxu1 %v493_v2 }
   0xb   :  { %448 = vmatpush3.bf16.msra.mxu0 %v493_v2  ;;  %485 = vmatpush3.bf16.msra.mxu1 %v493_v2 }
   0xc   :  { %449 = vmatprep.subr.bf16.mxu0 %v494_v3  ;;  %478 = vmatprep.subr.bf16.mxu1 %v494_v3 }
   0xf   :  { %450 = vmatpush3.bf16.msra.mxu0 %v494_v3  ;;  %486 = vmatpush3.bf16.msra.mxu1 %v494_v3 }
  0x10   :  { %451 = vmatprep.subr.bf16.mxu0 %v495_v6  ;;  %479 = vmatprep.subr.bf16.mxu1 %v495_v6 }
  0x13   :  { %452 = vmatpush3.bf16.msra.mxu0 %v495_v6  ;;  %487 = vmatpush3.bf16.msra.mxu1 %v495_v6 }
  0x14   :  { %453 = vmatprep.subr.bf16.mxu0 %v496_v7  ;;  %480 = vmatprep.subr.bf16.mxu1 %v496_v7 }
  0x17   :  { %454 = vmatpush3.bf16.msra.mxu0 %v496_v7  ;;  %488 = vmatpush3.bf16.msra.mxu1 %v496_v7 }
  0x18   :  { %455 = vmatprep.subr.bf16.mxu0 %v497_v8  ;;  %481 = vmatprep.subr.bf16.mxu1 %v497_v8 }
  0x1b   :  { %456 = vmatpush3.bf16.msra.mxu0 %v497_v8  ;;  %489 = vmatpush3.bf16.msra.mxu1 %v497_v8 }
  0x1c   :  { %457 = vmatprep.subr.bf16.mxu0 %v498_v9  ;;  %482 = vmatprep.subr.bf16.mxu1 %v498_v9 }
  0x1f   :  { %458 = vmatpush3.bf16.msra.mxu0 %v498_v9  ;;  %490 = vmatpush3.bf16.msra.mxu1 %v498_v9 }
  0x22   :  { %460 = vmatmul.mubr.bf16.vlgmr.msra.gmra.mxu0 %v501_v10  ;;  %468 = vmatmul.mubr.bf16.vlgmr.msra.gmra.mxu1 %v502_v11 }
  0x23   :  { %463 = vmatprep.mubr.bf16.mxu0 %v503_v12  ;;  %471 = vmatprep.mubr.bf16.mxu1 %v504_v13 }
  0x2a   :  { %464 = vmatmul.mubr.bf16.gmra.mxu0 %v505_v14  ;;  %472 = vmatmul.mubr.bf16.gmra.mxu1 %v506_v15 }
  0xe2   :  { %v461_v16 = vpop.f32.mrf.mxu0  ;;  %v469_v17 = vpop.f32.mrf.mxu1 }
  0xe3   :  { %v193_v23 = vadd.f32 %v461_v16, %v331_v18  ;;  %v225_v24 = vadd.f32 %v469_v17, %v331_v18 }
  0xe4   :  { %v184_v19 = vpop.f32.mrf.mxu0  ;;  %v216_v20 = vpop.f32.mrf.mxu1 }
  0xe5   :  { %v185_v27 = vadd.f32 %v331_v18, %v184_v19  ;;  %v217_v28 = vadd.f32 %v331_v18, %v216_v20 }
  0xe6   :  { %v462_v21 = vpop.f32.mrf.mxu0  ;;  %v470_v22 = vpop.f32.mrf.mxu1 }
  0xe7   :  { %v196_v25 = vadd.f32 %v462_v21, %v331_v18  ;;  %v228_v26 = vadd.f32 %v470_v22, %v331_v18 }
  0xe8   :  { %v187_v29 = vpop.f32.mrf.mxu0  ;;  %v219_v30 = vpop.f32.mrf.mxu1 }
  0xe9   :  { %v388_v31 = vpack.c.bf16 %v196_v25, %v193_v23  ;;  %v408_v32 = vpack.c.bf16 %v228_v26, %v225_v24  ;;  %v188_v33 = vadd.f32 %v331_v18, %v187_v29  ;;  %v220_v34 = vadd.f32 %v331_v18, %v219_v30 }
  0xea   :  { %v465_v35 = vpop.f32.mrf.mxu0  ;;  %v473_v36 = vpop.f32.mrf.mxu1 }
  0xeb   :  { %420 = vst [vmem:[%s605_s3 + $0x8] sm:$0xff] %v388_v31   ;;  %424 = vst [vmem:[%s605_s3 + $0x28] sm:$0xff] %v408_v32   ;;  %v383_v37 = vpack.c.bf16 %v188_v33, %v185_v27  ;;  %v403_v38 = vpack.c.bf16 %v220_v34, %v217_v28  ;;  %v209_v43 = vadd.f32 %v465_v35, %v331_v18 }
  0xec   :  { %v200_v39 = vpop.f32.mrf.mxu0  ;;  %v232_v40 = vpop.f32.mrf.mxu1  ;;  %v241_v44 = vadd.f32 %v473_v36, %v331_v18 }
  0xed   :  { %384 = vst [vmem:[%s605_s3] sm:$0xff] %v383_v37   ;;  %423 = vst [vmem:[%s605_s3 + $0x20] sm:$0xff] %v403_v38   ;;  %v201_v47 = vadd.f32 %v331_v18, %v200_v39  ;;  %v233_v48 = vadd.f32 %v331_v18, %v232_v40 }
  0xee   :  { %v466_v41 = vpop.f32.mrf.mxu0  ;;  %v474_v42 = vpop.f32.mrf.mxu1 }
  0xef   :  { %v212_v45 = vadd.f32 %v466_v41, %v331_v18  ;;  %v244_v46 = vadd.f32 %v474_v42, %v331_v18 }
  0xf0   :  { %v203_v49 = vpop.f32.mrf.mxu0  ;;  %v235_v50 = vpop.f32.mrf.mxu1 }
  0xf1   :  { %v398_v51 = vpack.c.bf16 %v212_v45, %v209_v43  ;;  %v418_v52 = vpack.c.bf16 %v244_v46, %v241_v44  ;;  %v204_v53 = vadd.f32 %v331_v18, %v203_v49  ;;  %v236_v54 = vadd.f32 %v331_v18, %v235_v50 }
  0xf3   :  { %422 = vst [vmem:[%s605_s3 + $0x18] sm:$0xff] %v398_v51   ;;  %426 = vst [vmem:[%s605_s3 + $0x38] sm:$0xff] %v418_v52   ;;  %v393_v55 = vpack.c.bf16 %v204_v53, %v201_v47  ;;  %v413_v56 = vpack.c.bf16 %v236_v54, %v233_v48 }
  0xf5   :  { %421 = vst [vmem:[%s605_s3 + $0x10] sm:$0xff] %v393_v55   ;;  %425 = vst [vmem:[%s605_s3 + $0x30] sm:$0xff] %v413_v56  }

// kernel: convnext2d_forward.12
= control target key start
LH: loop header
LB: loop body
LE: loop exit
PB: predicated region body
PF: predicated region fallthrough
CT: control target
= control target key end

     0   :  { %s757_s1 = inlined_call_operand.vmem [shape: bf16[512,128], index: 1, kind: input, shape index: {}]   ;;  %s758_s0 = inlined_call_operand.vmem [shape: bf16[32,512], index: 0, kind: input, shape index: {}]   ;;  %s759_s2 = inlined_call_operand.vmem [shape: f32[1,128], index: 2, kind: input, shape index: {}]   ;;  %s760_s3 = inlined_call_operand.vmem [shape: bf16[32,128], index: 3, kind: output, shape index: {}]  }
   0x1   :  { %v564_v0 = vld [vmem:[%s757_s1 + $0x78] sm:$0xff]   ;;  %v568_v4 = vld [vmem:[%s757_s1 + $0x70] sm:$0xff]   ;;  %v572_v8 = vld [vmem:[%s757_s1 + $0x68] sm:$0xff]  }
   0x2   :  { %v565_v1 = vld [vmem:[%s757_s1 + $0xf8] sm:$0xff]   ;;  %508 = vmatprep.subr.bf16.mxu0 %v564_v0  ;;  %v569_v5 = vld [vmem:[%s757_s1 + $0xf0] sm:$0xff]   ;;  %v573_v9 = vld [vmem:[%s757_s1 + $0xe8] sm:$0xff]  }
   0x3   :  { %v566_v2 = vld [vmem:[%s757_s1 + $0x38] sm:$0xff]   ;;  %536 = vmatprep.subr.bf16.mxu1 %v565_v1  ;;  %v570_v6 = vld [vmem:[%s757_s1 + $0x30] sm:$0xff]   ;;  %v574_v10 = vld [vmem:[%s757_s1 + $0x28] sm:$0xff]  }
   0x4   :  { %v567_v3 = vld [vmem:[%s757_s1 + $0xb8] sm:$0xff]   ;;  %509 = vmatpush3.bf16.msra.mxu0 %v566_v2  ;;  %v571_v7 = vld [vmem:[%s757_s1 + $0xb0] sm:$0xff]   ;;  %v575_v11 = vld [vmem:[%s757_s1 + $0xa8] sm:$0xff]  }
   0x5   :  { %537 = vmatpush3.bf16.msra.mxu1 %v567_v3  ;;  %510 = vmatprep.subr.bf16.mxu0 %v568_v4  ;;  %v576_v12 = vld [vmem:[%s757_s1 + $0x60] sm:$0xff]   ;;  %v580_v16 = vld [vmem:[%s757_s1 + $0x58] sm:$0xff]   ;;  %v584_v20 = vld [vmem:[%s757_s1 + $0x50] sm:$0xff]  }
   0x6   :  { %538 = vmatprep.subr.bf16.mxu1 %v569_v5  ;;  %v577_v13 = vld [vmem:[%s757_s1 + $0xe0] sm:$0xff]   ;;  %v581_v17 = vld [vmem:[%s757_s1 + $0xd8] sm:$0xff]   ;;  %v585_v21 = vld [vmem:[%s757_s1 + $0xd0] sm:$0xff]  }
   0x7   :  { %v578_v14 = vld [vmem:[%s757_s1 + $0x20] sm:$0xff]   ;;  %v582_v18 = vld [vmem:[%s757_s1 + $0x18] sm:$0xff]   ;;  %v586_v22 = vld [vmem:[%s757_s1 + $0x10] sm:$0xff]  }
   0x8   :  { %511 = vmatpush3.bf16.msra.mxu0 %v570_v6  ;;  %v579_v15 = vld [vmem:[%s757_s1 + $0xa0] sm:$0xff]   ;;  %v583_v19 = vld [vmem:[%s757_s1 + $0x98] sm:$0xff]   ;;  %v587_v23 = vld [vmem:[%s757_s1 + $0x90] sm:$0xff]  }
   0x9   :  { %539 = vmatpush3.bf16.msra.mxu1 %v571_v7  ;;  %512 = vmatprep.subr.bf16.mxu0 %v572_v8  ;;  %v588_v24 = vld [vmem:[%s757_s1 + $0x48] sm:$0xff]   ;;  %v592_v28 = vld [vmem:[%s757_s1 + $0x40] sm:$0xff]  }
   0xa   :  { %540 = vmatprep.subr.bf16.mxu1 %v573_v9  ;;  %v589_v25 = vld [vmem:[%s757_s1 + $0xc8] sm:$0xff]   ;;  %v593_v29 = vld [vmem:[%s757_s1 + $0xc0] sm:$0xff]  }
   0xb   :  { %v590_v26 = vld [vmem:[%s757_s1 + $0x8] sm:$0xff]   ;;  %v594_v30 = vld [vmem:[%s757_s1] sm:$0xff]  }
   0xc   :  { %513 = vmatpush3.bf16.msra.mxu0 %v574_v10  ;;  %v591_v27 = vld [vmem:[%s757_s1 + $0x88] sm:$0xff]   ;;  %v595_v31 = vld [vmem:[%s757_s1 + $0x80] sm:$0xff]  }
   0xd   :  { %541 = vmatpush3.bf16.msra.mxu1 %v575_v11  ;;  %514 = vmatprep.subr.bf16.mxu0 %v576_v12  ;;  %v596_v32 = vld [vmem:[%s758_s0] ss:$16 sps:$4 sm:$0xff]   ;;  %v598_v33 = vld [vmem:[%s758_s0 + $0x4] ss:$16 sps:$4 sm:$0xff]   ;;  %v599_v34 = vld [vmem:[%s758_s0 + $0x8] ss:$16 sps:$4 sm:$0xff]  }
   0xe   :  { %542 = vmatprep.subr.bf16.mxu1 %v577_v13  ;;  %v601_v35 = vld [vmem:[%s758_s0 + $0xc] ss:$16 sps:$4 sm:$0xff]   ;;  %358 = vmatprep.mubr.bf16.mxu0 %v598_v33  ;;  %v602_v36 = vld [vmem:[%s758_s0 + $0x24] ss:$16 sps:$4 sm:$0xff]   ;;  %v606_v38 = vld [vmem:[%s758_s0 + $0x20] ss:$16 sps:$4 sm:$0xff]  }
   0xf   :  { %407 = vmatprep.mubr.bf16.mxu1 %v601_v35  ;;  %v604_v37 = vld [vmem:[%s758_s0 + $0x2c] ss:$16 sps:$4 sm:$0xff]   ;;  %v607_v39 = vld [vmem:[%s758_s0 + $0x28] ss:$16 sps:$4 sm:$0xff]   ;;  %v448_v45 = vld [vmem:[%s759_s2] ss:$0 sm:$0xff] }
  0x10   :  { %515 = vmatpush3.bf16.msra.mxu0 %v578_v14 }
  0x11   :  { %543 = vmatpush3.bf16.msra.mxu1 %v579_v15  ;;  %516 = vmatprep.subr.bf16.mxu0 %v580_v16 }
  0x12   :  { %544 = vmatprep.subr.bf16.mxu1 %v581_v17 }
  0x14   :  { %517 = vmatpush3.bf16.msra.mxu0 %v582_v18 }
  0x15   :  { %545 = vmatpush3.bf16.msra.mxu1 %v583_v19  ;;  %518 = vmatprep.subr.bf16.mxu0 %v584_v20 }
  0x16   :  { %546 = vmatprep.subr.bf16.mxu1 %v585_v21 }
  0x18   :  { %519 = vmatpush3.bf16.msra.mxu0 %v586_v22 }
  0x19   :  { %547 = vmatpush3.bf16.msra.mxu1 %v587_v23  ;;  %520 = vmatprep.subr.bf16.mxu0 %v588_v24 }
  0x1a   :  { %548 = vmatprep.subr.bf16.mxu1 %v589_v25 }
  0x1c   :  { %521 = vmatpush3.bf16.msra.mxu0 %v590_v26 }
  0x1d   :  { %549 = vmatpush3.bf16.msra.mxu1 %v591_v27  ;;  %522 = vmatprep.subr.bf16.mxu0 %v592_v28 }
  0x1e   :  { %550 = vmatprep.subr.bf16.mxu1 %v593_v29 }
  0x20   :  { %523 = vmatpush3.bf16.msra.mxu0 %v594_v30 }
  0x21   :  { %551 = vmatpush3.bf16.msra.mxu1 %v595_v31 }
  0x23   :  { %359 = vmatmul.mubr.bf16.vlgmr.msra.gmra.mxu0 %v596_v32 }
  0x24   :  { %408 = vmatmul.mubr.bf16.vlgmr.msra.gmra.mxu1 %v599_v34  ;;  %366 = vmatprep.mubr.bf16.mxu0 %v602_v36 }
  0x25   :  { %415 = vmatprep.mubr.bf16.mxu1 %v604_v37 }
  0x2b   :  { %367 = vmatmul.mubr.bf16.gmra.mxu0 %v606_v38 }
  0x2c   :  { %416 = vmatmul.mubr.bf16.gmra.mxu1 %v607_v39 }
  0xe3   :  { %v524_v40 = vpop.f32.mrf.mxu0 }
  0xe4   :  { %v552_v41 = vpop.f32.mrf.mxu1 }
  0xe5   :  { %v525_v42 = vpop.f32.mrf.mxu0 }
  0xe6   :  { %v526_v43 = vadd.f32 %v525_v42, %v524_v40  ;;  %v553_v44 = vpop.f32.mrf.mxu1 }
  0xe7   :  { %v527_v46 = vpop.f32.mrf.mxu0  ;;  %v554_v53 = vadd.f32 %v553_v44, %v552_v41 }
  0xe8   :  { %v555_v47 = vpop.f32.mrf.mxu1  ;;  %v361_v49 = vadd.f32 %v526_v43, %v448_v45 }
  0xe9   :  { %v528_v48 = vpop.f32.mrf.mxu0 }
  0xea   :  { %v529_v50 = vadd.f32 %v528_v48, %v527_v46  ;;  %v556_v51 = vpop.f32.mrf.mxu1  ;;  %v410_v58 = vadd.f32 %v554_v53, %v361_v49 }
  0xeb   :  { %v530_v52 = vpop.f32.mrf.mxu0  ;;  %v557_v55 = vadd.f32 %v556_v51, %v555_v47 }
  0xec   :  { %v364_v54 = vadd.f32 %v529_v50, %v448_v45  ;;  %v558_v56 = vpop.f32.mrf.mxu1 }
  0xed   :  { %v531_v57 = vpop.f32.mrf.mxu0 }
  0xee   :  { %v413_v59 = vadd.f32 %v557_v55, %v364_v54  ;;  %v532_v60 = vadd.f32 %v531_v57, %v530_v52  ;;  %v559_v61 = vpop.f32.mrf.mxu1 }
  0xef   :  { %v533_v62 = vpop.f32.mrf.mxu0  ;;  %v560_v5 = vadd.f32 %v559_v61, %v558_v56 }
  0xf0   :  { %v500_v63 = vpack.c.bf16 %v413_v59, %v410_v58  ;;  %v561_v0 = vpop.f32.mrf.mxu1  ;;  %v369_v2 = vadd.f32 %v532_v60, %v448_v45 }
  0xf1   :  { %v534_v1 = vpop.f32.mrf.mxu0 }
  0xf2   :  { %501 = vst [vmem:[%s760_s3] sm:$0xff] %v500_v63   ;;  %v535_v3 = vadd.f32 %v534_v1, %v533_v62  ;;  %v562_v4 = vpop.f32.mrf.mxu1  ;;  %v418_v8 = vadd.f32 %v560_v5, %v369_v2 }
  0xf3   :  { %v563_v7 = vadd.f32 %v562_v4, %v561_v0 }
  0xf4   :  { %v372_v6 = vadd.f32 %v535_v3, %v448_v45 }
  0xf6   :  { %v421_v9 = vadd.f32 %v563_v7, %v372_v6 }
  0xf8   :  { %v505_v10 = vpack.c.bf16 %v421_v9, %v418_v8 }
  0xfa   :  { %507 = vst [vmem:[%s760_s3 + $0x8] sm:$0xff] %v505_v10  }

// kernel: convnext2d_forward.11
= control target key start
LH: loop header
LB: loop body
LE: loop exit
PB: predicated region body
PF: predicated region fallthrough
CT: control target
= control target key end

     0   :  { %s2072_s21 = smov 0   ;;  %s3350_s0 = inlined_call_operand.vmem [shape: bf16[2,8,8,128], index: 0, kind: input, shape index: {}]   ;;  %s3351_s1 = inlined_call_operand.vmem [shape: f32[7,7,128], index: 1, kind: input, shape index: {}]   ;;  %s3352_s2 = inlined_call_operand.vmem [shape: bf16[128,128], index: 2, kind: input, shape index: {}]   ;;  %s3353_s3 = inlined_call_operand.vmem [shape: f32[1,128], index: 3, kind: input, shape index: {}]   ;;  %s3354_s4 = inlined_call_operand.vmem [shape: bf16[128,128], index: 4, kind: input, shape index: {}]   ;;  %s3355_s5 = inlined_call_operand.vmem [shape: f32[1,128], index: 5, kind: input, shape index: {}]   ;;  %s3356_s6 = inlined_call_operand.vmem [shape: bf16[2,8,8,128], index: 6, kind: output, shape index: {}]  }
   0x1 LB: > { %s1821_s22 = sadd.s32 4294967295, %s2034_s21   ;;  %p1825_p0 = scmp.ge.s32.totalorder %s2034_s21, 1  ;;  %s2034_s21 = sphi %s2072_s21, %s16_s21  }
   0x2   : > { %p212_p1 = scmp.lt.s32.totalorder %s2034_s21, 3 }
   0x4   : > { %p213_p2 = pnand %p1825_p0, %p212_p1 }
   0x6   : > { %216 = sbr.rel (%p213_p2) target bundleno = 718 (0x2ce), region = 44 }
   0xb   : > { %v1975_v0 = vld [vmem:[%s3352_s2 + $0x38] sm:$0xff]   ;;  %p242_p3 = scmp.lt.s32.totalorder %s1821_s22, 1  ;;  %v334_v1 = vlaneseq  ;;  %v1976_v2 = vld [vmem:[%s3352_s2 + $0x30] sm:$0xff]   ;;  %v2036_v3 = vmov 0.0   ;;  %v1977_v5 = vld [vmem:[%s3352_s2 + $0x28] sm:$0xff]  }
   0xc   : > { %1918 = vmatprep.subr.bf16.mxu0 %v1975_v0  ;;  %269 = vst [vmem:[#allocation2] sm:$0xff] %v2036_v3  ;;  %270 = vst [vmem:[#allocation2 + $0x8] sm:$0xff] %v2036_v3  ;;  %v1978_v7 = vld [vmem:[%s3352_s2 + $0x20] sm:$0xff]   ;;  %v2128_v16 = vld [vmem:[%s3351_s1 + $0x8] sm:$0x7f] }
   0xd   : > { %s3799_s22 = smov (!%p242_p3, %s1821_s22), 1  ;;  %271 = vst [vmem:[#allocation2 + $0x10] sm:$0x7] %v2036_v3  ;;  %272 = vst [vmem:[#allocation2 + $0x18] sm:$0xff] %v2036_v3  ;;  %1919 = vmatpush3.bf16.msra.mxu0 %v1975_v0  ;;  %v2088_v4 = vshrl.u32 %v334_v1, 7  ;;  %v1979_v24 = vld [vmem:[%s3352_s2 + $0x18] sm:$0xff]  }
   0xe   : > { %273 = vst [vmem:[#allocation2 + $0x20] sm:$0xff] %v2036_v3  ;;  %274 = vst [vmem:[#allocation2 + $0x28] sm:$0x7] %v2036_v3  ;;  %1920 = vmatprep.subr.bf16.mxu0 %v1976_v2  ;;  %s1850_s29 = sshll.u32 %s3799_s22, 5  ;;  %v2123_v15 = vld [vmem:[%s3351_s1] sm:$0x7f] }
   0xf   : > { %275 = vst [vmem:[#allocation2 + $0x30] sm:$0xff] %v2036_v3  ;;  %276 = vst [vmem:[#allocation2 + $0x38] sm:$0xff] %v2036_v3  ;;  %s2099_s8 = scalar_lea.vmem %s3350_s0, %s1850_s29  ;;  %v2102_v6 = vsub.s32 0, %v2088_v4  ;;  %v2133_v17 = vld [vmem:[%s3351_s1 + $0x10] sm:$0x7f]  ;;  %v1981_v43 = vld [vmem:[%s3352_s2 + $0x8] sm:$0xff]   ;;  %s251_s13 = scalar_lea.vmem %s3356_s6, %s1850_s29 }
  0x10   : > { %277 = vst [vmem:[#allocation2 + $0x40] sm:$0x7] %v2036_v3  ;;  %289 = vst [vmem:[#allocation2 + $0x48] sm:$0xff] %v2036_v3  ;;  %v1853_v8 = vld [vmem:[%s2099_s8] sm:$0xff]   ;;  %v1888_v9 = vld [vmem:[%s2099_s8 + $0x8] sm:$0xff]   ;;  %v482_v48 = vsub.s32 1, %v2088_v4 }
  0x11   : > { %290 = vst [vmem:[#allocation2 + $0x60] sm:$0xff] %v2036_v3  ;;  %291 = vst [vmem:[#allocation2 + $0x78] sm:$0xff] %v2036_v3  ;;  %1921 = vmatpush3.bf16.msra.mxu0 %v1976_v2  ;;  %v2110_v10 = vld [vmem:[%s2099_s8 + $0x10] sm:$0xff]   ;;  %v2112_v11 = vunpack.c.l.bf16 %v1853_v8  ;;  %v2114_v12 = vunpack.c.h.bf16 %v1853_v8  ;;  %v2116_v13 = vunpack.c.l.bf16 %v1888_v9  ;;  %v2118_v14 = vunpack.c.h.bf16 %v1888_v9  ;;  %v2163_v28 = vld [vmem:[%s3351_s1 + $0x18] sm:$0x7f] }
  0x12   : > { %292 = vst [vmem:[#allocation2 + $0x90] sm:$0xff] %v2036_v3  ;;  %293 = vst [vmem:[#allocation2 + $0xa8] sm:$0xff] %v2036_v3  ;;  %1922 = vmatprep.subr.bf16.mxu0 %v1977_v5  ;;  %v2136_v18 = vunpack.c.l.bf16 %v2110_v10  ;;  %v2140_v19 = vrot.slane %v2123_v15, %v2102_v6  ;;  %v2144_v20 = vrot.slane %v2128_v16, %v2102_v6  ;;  %v1980_v33 = vld [vmem:[%s3352_s2 + $0x10] sm:$0xff]   ;;  %v2174_v34 = vld [vmem:[%s3351_s1 + $0x20] sm:$0x7f] }
  0x13   : > { %297 = vst [vmem:[#allocation2 + $0x58] sm:$0x7] %v2036_v3  ;;  %298 = vst [vmem:[#allocation2 + $0x70] sm:$0x7] %v2036_v3  ;;  %v320_v21 = vld [vmem:[#allocation2 + $0x5] sm:$0xff]  ;;  %v2152_v23 = vrot.slane %v2133_v17, %v2102_v6  ;;  %v2178_v35 = vrot.slane %v2163_v28, %v2102_v6  ;;  %v2201_v47 = vrot.slane %v2174_v34, %v2102_v6 }
  0x14   : > { %299 = vst [vmem:[#allocation2 + $0x88] sm:$0x7] %v2036_v3  ;;  %300 = vst [vmem:[#allocation2 + $0xa0] sm:$0x7] %v2036_v3  ;;  %v338_v26 = vmul.f32 %v2140_v19, %v320_v21  ;;  %v2183_v39 = vld [vmem:[%s3351_s1 + $0x28] sm:$0x7f]  ;;  %v2221_v59 = vrot.slane %v2123_v15, %v482_v48 }
  0x15   : > { %301 = vst [vmem:[#allocation2 + $0xb8] sm:$0x7] %v2036_v3  ;;  %279 = vst [vmem:[#allocation2 + $0x108] sm:$0xff] %v2036_v3  ;;  %1923 = vmatpush3.bf16.msra.mxu0 %v1977_v5  ;;  %v321_v22 = vld [vmem:[#allocation2 + $0x1d] sm:$0xff]  ;;  %v2194_v44 = vld [vmem:[%s3351_s1 + $0x30] sm:$0x7f]  ;;  %v2210_v53 = vrot.slane %v2183_v39, %v2102_v6 }
  0x16   : > { %280 = vst [vmem:[#allocation2 + $0x110] sm:$0xff] %v2036_v3  ;;  %281 = vst [vmem:[#allocation2 + $0x118] sm:$0x7] %v2036_v3  ;;  %1924 = vmatprep.subr.bf16.mxu0 %v1978_v7  ;;  %v322_v25 = vld [vmem:[#allocation2 + $0x35] sm:$0xff]  ;;  %v350_v27 = vmul.f32 %v2144_v20, %v321_v22  ;;  %v339_v29 = vmul.f32 %v2140_v19, %v321_v22  ;;  %v2214_v55 = vrot.slane %v2194_v44, %v2102_v6  ;;  %v1982_v56 = vld [vmem:[%s3352_s2] sm:$0xff]  }
  0x17   : > { %282 = vst [vmem:[#allocation2 + $0x120] sm:$0xff] %v2036_v3  ;;  %283 = vst [vmem:[#allocation2 + $0x128] sm:$0xff] %v2036_v3  ;;  %v351_v30 = vmul.f32 %v2144_v20, %v322_v25  ;;  %v370_v32 = vmul.f32 %v2152_v23, %v322_v25  ;;  %v466_v62 = vld [vmem:[#allocation2 + $0x6] sm:$0xff]  ;;  %v467_v2 = vld [vmem:[#allocation2 + $0x1e] sm:$0xff] }
  0x18   : > { %284 = vst [vmem:[#allocation2 + $0x130] sm:$0x7] %v2036_v3  ;;  %285 = vst [vmem:[#allocation2 + $0x138] sm:$0xff] %v2036_v3  ;;  %v358_v31 = vadd.f32 %v350_v27, %v338_v26  ;;  %v2240_v21 = vld [vmem:[#allocation2 + $0x36] sm:$0xff]  ;;  %v484_v22 = vmul.f32 %v2221_v59, %v466_v62  ;;  %v340_v26 = vmul.f32 %v2140_v19, %v322_v25  ;;  %v2275_v62 = vsub.s32 2, %v2088_v4 }
  0x19   : > { %286 = vst [vmem:[#allocation2 + $0x140] sm:$0xff] %v2036_v3  ;;  %287 = vst [vmem:[#allocation2 + $0x148] sm:$0x7] %v2036_v3  ;;  %1925 = vmatpush3.bf16.msra.mxu0 %v1978_v7  ;;  %v359_v38 = vadd.f32 %v351_v30, %v339_v29  ;;  %v485_v30 = vmul.f32 %v2221_v59, %v467_v2  ;;  %v2258_v25 = vrot.slane %v2174_v34, %v482_v48 }
  0x1a   : > { %294 = vst [vmem:[#allocation2 + $0xc0] sm:$0xff] %v2036_v3  ;;  %295 = vst [vmem:[#allocation2 + $0xd8] sm:$0xff] %v2036_v3  ;;  %1926 = vmatprep.subr.bf16.mxu0 %v1979_v24  ;;  %v378_v42 = vadd.f32 %v370_v32, %v358_v31 }
  0x1b   : > { %296 = vst [vmem:[#allocation2 + $0xf0] sm:$0xff] %v2036_v3  ;;  %302 = vst [vmem:[#allocation2 + $0xd0] sm:$0x7] %v2036_v3 }
  0x1c   : > { %303 = vst [vmem:[#allocation2 + $0xe8] sm:$0x7] %v2036_v3  ;;  %304 = vst [vmem:[#allocation2 + $0x100] sm:$0x7] %v2036_v3  ;;  %v2232_v3 = vrot.slane %v2128_v16, %v482_v48 }
  0x1d   : > { %3568 = vst [vmem:[#allocation3_spill] sm:$0xff] %v2112_v11  ;;  %3569 = vst [vmem:[#allocation4_spill] sm:$0xff] %v2114_v12  ;;  %1927 = vmatpush3.bf16.msra.mxu0 %v1979_v24  ;;  %v2244_v24 = vrot.slane %v2133_v17, %v482_v48 }
  0x1e   : > { %3570 = vst [vmem:[#allocation5_spill] sm:$0xff] %v2116_v13  ;;  %3571 = vst [vmem:[#allocation6_spill] sm:$0xff] %v2118_v14  ;;  %1928 = vmatprep.subr.bf16.mxu0 %v1980_v33 }
  0x1f   : > { %3572 = vst [vmem:[#allocation7_spill] sm:$0xff] %v2136_v18  ;;  %3573 = vst [vmem:[#allocation8_spill] sm:$0xff] %v2140_v19 }
  0x20   : > { %3574 = vst [vmem:[#allocation9_spill] sm:$0xff] %v2144_v20  ;;  %305 = vst [vmem:[#allocation2 + $0x50] sm:$0xff] %v2112_v11 }
  0x21   : > { %306 = vst [vmem:[#allocation2 + $0x68] sm:$0xff] %v2114_v12  ;;  %307 = vst [vmem:[#allocation2 + $0x80] sm:$0xff] %v2116_v13  ;;  %1929 = vmatpush3.bf16.msra.mxu0 %v1980_v33  ;;  %v504_v33 = vmul.f32 %v2232_v3, %v467_v2 }
  0x22   : > { %308 = vst [vmem:[#allocation2 + $0x98] sm:$0xff] %v2118_v14  ;;  %3575 = vst [vmem:[#allocation10_spill] sm:$0xff] %v2152_v23  ;;  %1930 = vmatprep.subr.bf16.mxu0 %v1981_v43 }
  0x23   : > { %309 = vst [vmem:[#allocation2 + $0xb0] sm:$0xff] %v2136_v18  ;;  %3576 = vst [vmem:[#allocation11_spill] sm:$0xff] %v2178_v35 }
  0x24   : > { %3577 = vst [vmem:[#allocation12_spill] sm:$0xff] %v2201_v47  ;;  %3578 = vst [vmem:[#allocation13_spill] sm:$0xff] %v2210_v53 }
  0x25   : > { %3579 = vst [vmem:[#allocation14_spill] sm:$0xff] %v2214_v55  ;;  %3580 = vst [vmem:[#allocation15_spill] sm:$0xff] %v2221_v59  ;;  %1931 = vmatpush3.bf16.msra.mxu0 %v1981_v43 }
  0x26   : > { %3582 = vst [vmem:[#allocation17_spill] sm:$0xff] %v2232_v3  ;;  %1932 = vmatprep.subr.bf16.mxu0 %v1982_v56  ;;  %3584 = vst [vmem:[#allocation19_spill] sm:$0xff] %v2244_v24 }
  0x27   : > { %v323_v36 = vld [vmem:[#allocation2 + $0x4d] sm:$0xff]  ;;  %3586 = vst [vmem:[#allocation21_spill] sm:$0xff] %v2258_v25 }
  0x28   : > { %v324_v37 = vld [vmem:[#allocation2 + $0x65] sm:$0xff]  ;;  %v2185_v40 = vld [vmem:[#allocation2 + $0x7d] sm:$0xff]  ;;  %v371_v46 = vmul.f32 %v2152_v23, %v323_v36  ;;  %v390_v49 = vmul.f32 %v2178_v35, %v323_v36  ;;  %v352_v27 = vmul.f32 %v2144_v20, %v323_v36  ;;  %v2249_v32 = vld [vmem:[#allocation2 + $0x4e] sm:$0xff]  ;;  %v341_v43 = vmul.f32 %v2140_v19, %v323_v36 }
  0x29   : > { %v342_v41 = vmul.f32 %v2140_v19, %v324_v37  ;;  %v354_v45 = vmul.f32 %v2144_v20, %v2185_v40  ;;  %v391_v52 = vmul.f32 %v2178_v35, %v324_v37  ;;  %v410_v58 = vmul.f32 %v2201_v47, %v324_v37  ;;  %v2223_v60 = vld [vmem:[#allocation2 + $0x95] sm:$0xff]  ;;  %1933 = vmatpush3.bf16.msra.mxu0 %v1982_v56 }
  0x2a   : > { %v379_v51 = vadd.f32 %v371_v46, %v359_v38  ;;  %v398_v54 = vadd.f32 %v390_v49, %v378_v42  ;;  %3581 = vst [vmem:[#allocation16_spill] sm:$0xff] %v2223_v60  ;;  %v411_v61 = vmul.f32 %v2201_v47, %v2185_v40  ;;  %v430_v0 = vmul.f32 %v2210_v53, %v2185_v40  ;;  %v2234_v5 = vld [vmem:[#allocation2 + $0xad] sm:$0xff] }
  0x2b   : > { %v2205_v50 = vadd.f32 %v354_v45, %v342_v41  ;;  %v431_v1 = vmul.f32 %v2210_v53, %v2223_v60  ;;  %3583 = vst [vmem:[#allocation18_spill] sm:$0xff] %v2234_v5  ;;  %v450_v7 = vmul.f32 %v2214_v55, %v2223_v60  ;;  %v451_v9 = vmul.f32 %v2214_v55, %v2234_v5 }
  0x2c   : > { %v399_v57 = vadd.f32 %v391_v52, %v379_v51  ;;  %v418_v63 = vadd.f32 %v410_v58, %v398_v54  ;;  %v2253_v38 = vrot.slane %v2163_v28, %v482_v48  ;;  %v505_v42 = vmul.f32 %v2232_v3, %v2240_v21 }
  0x2d   : > { %v353_v45 = vmul.f32 %v2144_v20, %v324_v37  ;;  %v524_v49 = vmul.f32 %v2244_v24, %v2240_v21  ;;  %v360_v51 = vadd.f32 %v352_v27, %v340_v26  ;;  %v372_v52 = vmul.f32 %v2152_v23, %v324_v37 }
  0x2e   : > { %v419_v6 = vadd.f32 %v411_v61, %v399_v57  ;;  %v438_v8 = vadd.f32 %v430_v0, %v418_v63  ;;  %3585 = vst [vmem:[#allocation20_spill] sm:$0xff] %v2253_v38  ;;  %v525_v56 = vmul.f32 %v2244_v24, %v2249_v32  ;;  %v2267_v57 = vld [vmem:[#allocation2 + $0x66] sm:$0xff]  ;;  %v544_v61 = vmul.f32 %v2253_v38, %v2249_v32 }
  0x2f   : > { %v2272_v36 = vrot.slane %v2183_v39, %v482_v48  ;;  %v545_v37 = vmul.f32 %v2253_v38, %v2267_v57  ;;  %v2280_v0 = vrot.slane %v2194_v44, %v482_v48  ;;  %v373_v2 = vmul.f32 %v2152_v23, %v2185_v40  ;;  %v2292_v48 = vld [vmem:[#allocation2 + $0x96] sm:$0xff] }
  0x30   : > { %v439_v29 = vadd.f32 %v431_v1, %v419_v6  ;;  %v458_v31 = vadd.f32 %v450_v7, %v438_v8  ;;  %v361_v1 = vadd.f32 %v353_v45, %v341_v43  ;;  %v2284_v6 = vld [vmem:[#allocation2 + $0x7e] sm:$0xff]  ;;  %v564_v8 = vmul.f32 %v2258_v25, %v2267_v57  ;;  %v620_v43 = vld [vmem:[#allocation2 + $0x7] sm:$0xff] }
  0x31   : > { %3587 = vst [vmem:[#allocation22_spill] sm:$0xff] %v2272_v36  ;;  %3588 = vst [vmem:[#allocation23_spill] sm:$0xff] %v2280_v0  ;;  %v565_v27 = vmul.f32 %v2258_v25, %v2284_v6  ;;  %v2307_v45 = vrot.slane %v2128_v16, %v2275_v62 }
  0x32   : > { %v459_v41 = vadd.f32 %v451_v9, %v439_v29  ;;  %v492_v46 = vadd.f32 %v484_v22, %v458_v31  ;;  %v380_v9 = vadd.f32 %v372_v52, %v360_v51  ;;  %v392_v22 = vmul.f32 %v2178_v35, %v2185_v40  ;;  %v2314_v52 = vld [vmem:[#allocation2 + $0xae] sm:$0xff] }
  0x33   : > { %v2298_v31 = vrot.slane %v2123_v15, %v2275_v62  ;;  %3590 = vst [vmem:[#allocation25_spill] sm:$0xff] %v2307_v45  ;;  %v393_v51 = vmul.f32 %v2178_v35, %v2223_v60 }
  0x34   : > { %v493_v54 = vadd.f32 %v485_v30, %v459_v41  ;;  %v512_v58 = vadd.f32 %v504_v33, %v492_v46  ;;  %v584_v30 = vmul.f32 %v2272_v36, %v2284_v6  ;;  %v2301_v33 = vsub.s32 3, %v2088_v4 }
  0x35   : > { %3589 = vst [vmem:[#allocation24_spill] sm:$0xff] %v2298_v31  ;;  %v2310_v46 = vsub.s32 4, %v2088_v4 }
  0x36   : > { %v513_v63 = vadd.f32 %v505_v42, %v493_v54  ;;  %v532_v7 = vadd.f32 %v524_v49, %v512_v58  ;;  %v585_v42 = vmul.f32 %v2272_v36, %v2292_v48  ;;  %v381_v49 = vadd.f32 %v373_v2, %v361_v1  ;;  %v621_v58 = vld [vmem:[#allocation2 + $0x1f] sm:$0xff]  ;;  %v2322_v1 = vld [vmem:[#allocation2 + $0x37] sm:$0xff] }
  0x37   : > { %v638_v2 = vmul.f32 %v2298_v31, %v620_v43  ;;  %v413_v43 = vmul.f32 %v2201_v47, %v2234_v5  ;;  %v658_v35 = vmul.f32 %v2307_v45, %v621_v58 }
  0x38   : > { %v533_v26 = vadd.f32 %v525_v56, %v513_v63  ;;  %v552_v29 = vadd.f32 %v544_v61, %v532_v7  ;;  %v604_v56 = vmul.f32 %v2280_v0, %v2292_v48  ;;  %v400_v61 = vadd.f32 %v392_v22, %v380_v9 }
  0x39   : > { %v412_v63 = vmul.f32 %v2201_v47, %v2223_v60  ;;  %v605_v7 = vmul.f32 %v2280_v0, %v2314_v52  ;;  %v374_v9 = vmul.f32 %v2152_v23, %v2223_v60  ;;  %v432_v0 = vmul.f32 %v2210_v53, %v2234_v5  ;;  %v2350_v23 = vld [vmem:[#allocation2 + $0x4f] sm:$0xff] }
  0x3a   : > { %v553_v41 = vadd.f32 %v545_v37, %v533_v26  ;;  %v572_v54 = vadd.f32 %v564_v8, %v552_v29  ;;  %v2327_v8 = vrot.slane %v2133_v17, %v2275_v62  ;;  %v2330_v29 = vsub.s32 5, %v2088_v4 }
  0x3b   : > { %v420_v20 = vadd.f32 %v412_v63, %v400_v61  ;;  %v2464_v60 = vmul.f32 %v2244_v24, %v2267_v57 }
  0x3c   : > { %v573_v37 = vadd.f32 %v565_v27, %v553_v41  ;;  %v592_v26 = vadd.f32 %v584_v30, %v572_v54  ;;  %3591 = vst [vmem:[#allocation26_spill] sm:$0xff] %v2327_v8  ;;  %v639_v27 = vmul.f32 %v2298_v31, %v621_v58  ;;  %v2337_v30 = vrot.slane %v2163_v28, %v2275_v62 }
  0x3d   : > { %v401_v41 = vadd.f32 %v393_v51, %v381_v49  ;;  %v678_v51 = vmul.f32 %v2327_v8, %v2322_v1  ;;  %v2360_v58 = vmul.f32 %v2140_v19, %v2185_v40  ;;  %v679_v63 = vmul.f32 %v2327_v8, %v2350_v23 }
  0x3e   : > { %v593_v22 = vadd.f32 %v585_v42, %v573_v37  ;;  %3592 = vst [vmem:[#allocation27_spill] sm:$0xff] %v2337_v30  ;;  %v612_v54 = vadd.f32 %v604_v56, %v592_v26  ;;  %v659_v42 = vmul.f32 %v2307_v45, %v2322_v1  ;;  %v2348_v37 = vmul.f32 %v2221_v59, %v2240_v21 }
  0x3f   : > { %v2356_v56 = vrot.slane %v2174_v34, %v2275_v62  ;;  %3594 = vst [vmem:[#allocation29_spill] sm:$0xff] %v2360_v58  ;;  %v2366_v21 = vrot.slane %v2183_v39, %v2275_v62  ;;  %v2371_v26 = vadd.f32 %v413_v43, %v401_v41  ;;  %v698_v40 = vmul.f32 %v2337_v30, %v2350_v23 }
  0x40   : > { %v613_v36 = vadd.f32 %v605_v7, %v593_v22  ;;  %v646_v49 = vadd.f32 %v638_v2, %v612_v54  ;;  %v2369_v7 = vadd.f32 %v374_v9, %v2205_v50  ;;  %v2373_v2 = vld [vmem:[#allocation2 + $0x67] sm:$0xff]  ;;  %v2377_v54 = vadd.f32 %v432_v0, %v420_v20  ;;  %v2389_v9 = vld [vmem:[#allocation2 + $0x7f] sm:$0xff] }
  0x41   : > { %3593 = vst [vmem:[#allocation28_spill] sm:$0xff] %v2356_v56  ;;  %3595 = vst [vmem:[#allocation30_spill] sm:$0xff] %v2366_v21  ;;  %v699_v19 = vmul.f32 %v2337_v30, %v2373_v2  ;;  %v2387_v50 = vmul.f32 %v2221_v59, %v2267_v57  ;;  %v718_v41 = vmul.f32 %v2356_v56, %v2373_v2 }
  0x42   : > { %v647_v61 = vadd.f32 %v639_v27, %v613_v36  ;;  %3596 = vst [vmem:[#allocation31_spill] sm:$0xff] %v2369_v7  ;;  %v666_v22 = vadd.f32 %v658_v35, %v646_v49  ;;  %v2381_v36 = vmul.f32 %v2221_v59, %v2249_v32  ;;  %v2395_v20 = vrot.slane %v2194_v44, %v2275_v62 }
  0x43   : > { %3597 = vst [vmem:[#allocation32_spill] sm:$0xff] %v2387_v50  ;;  %v719_v43 = vmul.f32 %v2356_v56, %v2389_v9  ;;  %v2405_v49 = vrot.slane %v2123_v15, %v2330_v29  ;;  %v2413_v62 = vmul.f32 %v2232_v3, %v2267_v57  ;;  %v2444_v58 = vrot.slane %v2128_v16, %v2330_v29  ;;  %v2481_v57 = vld [vmem:[%s2099_s8 + $0x18] sm:$0xff]  }
  0x44   : > { %v667_v27 = vadd.f32 %v659_v42, %v647_v61  ;;  %v686_v35 = vadd.f32 %v678_v51, %v666_v22  ;;  %3598 = vst [vmem:[#allocation33_spill] sm:$0xff] %v2395_v20  ;;  %v2401_v42 = vrot.slane %v2123_v15, %v2301_v33  ;;  %v2409_v51 = vmul.f32 %v2232_v3, %v2249_v32  ;;  %v2415_v61 = vld [vmem:[#allocation2 + $0x97] sm:$0xff] }
  0x45   : > { %3600 = vst [vmem:[#allocation35_spill] sm:$0xff] %v2415_v61  ;;  %v738_v22 = vmul.f32 %v2366_v21, %v2389_v9  ;;  %v739_v59 = vmul.f32 %v2366_v21, %v2415_v61  ;;  %v2425_v32 = vrot.slane %v2128_v16, %v2301_v33  ;;  %v2429_v3 = vrot.slane %v2133_v17, %v2301_v33 }
  0x46   : > { %v687_v0 = vadd.f32 %v679_v63, %v667_v27  ;;  %3599 = vst [vmem:[#allocation34_spill] sm:$0xff] %v2401_v42  ;;  %v706_v63 = vadd.f32 %v698_v40, %v686_v35  ;;  %v2419_v27 = vld [vmem:[#allocation2 + $0xaf] sm:$0xff]  ;;  %v758_v40 = vmul.f32 %v2395_v20, %v2415_v61  ;;  %v2440_v7 = vmul.f32 0.0, %v2401_v42  ;;  %3606 = vst [vmem:[#allocation41_spill] sm:$0xff] %v2444_v58 }
  0x47   : > { %3601 = vst [vmem:[#allocation36_spill] sm:$0xff] %v2419_v27  ;;  %3602 = vst [vmem:[#allocation37_spill] sm:$0xff] %v2425_v32  ;;  %v759_v35 = vmul.f32 %v2395_v20, %v2419_v27  ;;  %v2452_v5 = vrot.slane %v2163_v28, %v2330_v29  ;;  %v2468_v20 = vmul.f32 %v2298_v31, %v2322_v1  ;;  %v812_v56 = vmul.f32 0.0, %v2425_v32 }
  0x48   : > { %v707_v50 = vadd.f32 %v699_v19, %v687_v0  ;;  %3603 = vst [vmem:[#allocation38_spill] sm:$0xff] %v2429_v3  ;;  %v726_v47 = vadd.f32 %v718_v41, %v706_v63  ;;  %v2437_v19 = vrot.slane %v2163_v28, %v2301_v33  ;;  %3605 = vst [vmem:[#allocation40_spill] sm:$0xff] %v2440_v7  ;;  %v832_v61 = vmul.f32 0.0, %v2429_v3 }
  0x49   : > { %v2448_v41 = vrot.slane %v2133_v17, %v2330_v29  ;;  %3608 = vst [vmem:[#allocation43_spill] sm:$0xff] %v2452_v5  ;;  %v2476_v27 = vmul.f32 %v2112_v11, %v2401_v42  ;;  %3612 = vst [vmem:[#allocation47_spill] sm:$0xff] %v2481_v57  ;;  %v833_v1 = vmul.f32 %v2112_v11, %v2429_v3 }
  0x4a   : > { %3604 = vst [vmem:[#allocation39_spill] sm:$0xff] %v2437_v19  ;;  %v727_v0 = vadd.f32 %v719_v43, %v707_v50  ;;  %v746_v63 = vadd.f32 %v738_v22, %v726_v47  ;;  %v2456_v50 = vrot.slane %v2174_v34, %v2330_v29  ;;  %v2460_v43 = vrot.slane %v2183_v39, %v2330_v29 }
  0x4b   : > { %3607 = vst [vmem:[#allocation42_spill] sm:$0xff] %v2448_v41  ;;  %v2472_v47 = vmul.f32 %v2298_v31, %v2350_v23  ;;  %3611 = vst [vmem:[#allocation46_spill] sm:$0xff] %v2476_v27  ;;  %v852_v31 = vmul.f32 %v2112_v11, %v2437_v19  ;;  %v2502_v42 = vrot.slane %v2183_v39, %v2301_v33  ;;  %v2505_v27 = vunpack.c.h.bf16 %v2110_v10 }
  0x4c   : > { %3609 = vst [vmem:[#allocation44_spill] sm:$0xff] %v2456_v50  ;;  %3610 = vst [vmem:[#allocation45_spill] sm:$0xff] %v2460_v43  ;;  %v747_v22 = vadd.f32 %v739_v59, %v727_v0  ;;  %v766_v21 = vadd.f32 %v758_v40, %v746_v63  ;;  %v853_v59 = vmul.f32 %v2114_v12, %v2437_v19 }
  0x4d   : > { %v2492_v0 = vrot.slane %v2174_v34, %v2301_v33  ;;  %v2496_v63 = vrot.slane %v2194_v44, %v2330_v29  ;;  %3615 = vst [vmem:[#allocation50_spill] sm:$0xff] %v2502_v42  ;;  %3616 = vst [vmem:[#allocation51_spill] sm:$0xff] %v2505_v27  ;;  %v2512_v3 = vrot.slane %v2194_v44, %v2301_v33 }
  0x4e   : > { %v767_v30 = vadd.f32 %v759_v35, %v747_v22  ;;  %v800_v40 = vadd.f32 %v2440_v7, %v766_v21  ;;  %v1252_v35 = vsub.s32 6, %v2088_v4  ;;  %v2508_v21 = vunpack.c.l.bf16 %v2481_v57  ;;  %310 = vst [vmem:[#allocation2 + $0xc8] sm:$0xff] %v2505_v27 }
  0x4f   : > { %3613 = vst [vmem:[#allocation48_spill] sm:$0xff] %v2492_v0  ;;  %3614 = vst [vmem:[#allocation49_spill] sm:$0xff] %v2496_v63  ;;  %v2516_v4 = vrot.slane %v2123_v15, %v2310_v46  ;;  %v873_v32 = vmul.f32 %v2116_v13, %v2492_v0  ;;  %v892_v27 = vmul.f32 %v2116_v13, %v2502_v42 }
  0x50   : > { %v801_v22 = vadd.f32 %v2440_v7, %v767_v30  ;;  %3617 = vst [vmem:[#allocation52_spill] sm:$0xff] %v2508_v21  ;;  %v820_v19 = vadd.f32 %v812_v56, %v800_v40  ;;  %3618 = vst [vmem:[#allocation53_spill] sm:$0xff] %v2512_v3  ;;  %v2519_v29 = vrot.slane %v2123_v15, %v1252_v35  ;;  %v928_v7 = vld [vmem:[#allocation2 + $0x9] sm:$0xff] }
  0x51   : > { %3619 = vst [vmem:[#allocation54_spill] sm:$0xff] %v2516_v4  ;;  %v2522_v10 = vrot.slane %v2128_v16, %v1252_v35  ;;  %v2525_v57 = vrot.slane %v2133_v17, %v1252_v35  ;;  %v2528_v40 = vrot.slane %v2163_v28, %v1252_v35  ;;  %311 = vst [vmem:[#allocation2 + $0xe0] sm:$0xff] %v2508_v21 }
  0x52   : > { %3620 = vst [vmem:[#allocation55_spill] sm:$0xff] %v2519_v29  ;;  %v821_v30 = vadd.f32 %v812_v56, %v801_v22  ;;  %v840_v33 = vadd.f32 %v832_v61, %v820_v19  ;;  %v872_v15 = vmul.f32 %v2114_v12, %v2492_v0  ;;  %v2536_v56 = vrot.slane %v2128_v16, %v2310_v46  ;;  %v929_v19 = vld [vmem:[#allocation2 + $0x21] sm:$0xff] }
  0x53   : > { %3621 = vst [vmem:[#allocation56_spill] sm:$0xff] %v2522_v10  ;;  %3622 = vst [vmem:[#allocation57_spill] sm:$0xff] %v2525_v57  ;;  %v2540_v22 = vrot.slane %v2133_v17, %v2310_v46  ;;  %v893_v61 = vmul.f32 %v2118_v14, %v2502_v42  ;;  %v912_v16 = vmul.f32 %v2118_v14, %v2512_v3  ;;  %v2552_v17 = vld [vmem:[#allocation2 + $0x39] sm:$0xff] }
  0x54   : > { %3623 = vst [vmem:[#allocation58_spill] sm:$0xff] %v2528_v40  ;;  %3624 = vst [vmem:[#allocation59_spill] sm:$0xff] %v2536_v56  ;;  %v841_v11 = vadd.f32 %v833_v1, %v821_v30  ;;  %v860_v21 = vadd.f32 %v852_v31, %v840_v33  ;;  %v913_v12 = vmul.f32 %v2136_v18, %v2512_v3 }
  0x55   : > { %3625 = vst [vmem:[#allocation60_spill] sm:$0xff] %v2540_v22  ;;  %3626 = vst [vmem:[#allocation61_spill] sm:$0xff] %v2552_v17  ;;  %v946_v1 = vmul.f32 %v2516_v4, %v928_v7  ;;  %v2557_v0 = vrot.slane %v2163_v28, %v2310_v46  ;;  %v2560_v13 = vrot.slane %v2174_v34, %v1252_v35 }
  0x56   : > { %v861_v30 = vadd.f32 %v853_v59, %v841_v11  ;;  %v2563_v31 = vrot.slane %v2183_v39, %v1252_v35  ;;  %v880_v33 = vadd.f32 %v872_v15, %v860_v21  ;;  %v947_v42 = vmul.f32 %v2516_v4, %v929_v19  ;;  %v2573_v59 = vld [vmem:[#allocation2 + $0x51] sm:$0xff] }
  0x57   : > { %3627 = vst [vmem:[#allocation62_spill] sm:$0xff] %v2557_v0  ;;  %3628 = vst [vmem:[#allocation63_spill] sm:$0xff] %v2560_v13  ;;  %v2568_v3 = vrot.slane %v2174_v34, %v2310_v46  ;;  %v2571_v7 = vrot.slane %v2194_v44, %v1252_v35  ;;  %v966_v28 = vmul.f32 %v2536_v56, %v929_v19  ;;  %v2590_v35 = vld [vmem:[#allocation2 + $0xc5] sm:$0xff] }
  0x58   : > { %3629 = vst [vmem:[#allocation64_spill] sm:$0xff] %v2563_v31  ;;  %v881_v11 = vadd.f32 %v873_v32, %v861_v30  ;;  %3632 = vst [vmem:[#allocation67_spill] sm:$0xff] %v2573_v59  ;;  %v967_v18 = vmul.f32 %v2536_v56, %v2552_v17  ;;  %v986_v21 = vmul.f32 %v2540_v22, %v2552_v17  ;;  %v2592_v19 = vld [vmem:[#allocation2 + $0xdd] sm:$0xff]  ;;  %v2594_v56 = vld [vmem:[#allocation2 + $0x69] sm:$0xff] }
  0x59   : > { %3630 = vst [vmem:[#allocation65_spill] sm:$0xff] %v2568_v3  ;;  %3631 = vst [vmem:[#allocation66_spill] sm:$0xff] %v2571_v7  ;;  %v900_v15 = vadd.f32 %v892_v27, %v880_v33  ;;  %v987_v4 = vmul.f32 %v2540_v22, %v2573_v59  ;;  %v2584_v34 = vrot.slane %v2183_v39, %v2310_v46  ;;  %v2602_v17 = vld [vmem:[#allocation2 + $0x81] sm:$0xff]  ;;  %v2616_v7 = vld [vmem:[#allocation2 + $0xb1] sm:$0xff] }
  0x5a   : > { %v2588_v32 = vrot.slane %v2194_v44, %v2310_v46  ;;  %3635 = vst [vmem:[#allocation70_spill] sm:$0xff] %v2590_v35  ;;  %3636 = vst [vmem:[#allocation71_spill] sm:$0xff] %v2592_v19  ;;  %v901_v30 = vadd.f32 %v893_v61, %v881_v11  ;;  %v1006_v27 = vmul.f32 %v2557_v0, %v2573_v59  ;;  %v2610_v59 = vld [vmem:[#allocation2 + $0x99] sm:$0xff] }
  0x5b   : > { %3633 = vst [vmem:[#allocation68_spill] sm:$0xff] %v2584_v34  ;;  %3637 = vst [vmem:[#allocation72_spill] sm:$0xff] %v2594_v56  ;;  %v433_v33 = vmul.f32 %v2210_v53, %v2590_v35  ;;  %v452_v39 = vmul.f32 %v2214_v55, %v2590_v35  ;;  %v920_v22 = vadd.f32 %v912_v16, %v900_v15  ;;  %v1082_v53 = vld [vmem:[#allocation2 + $0xa] sm:$0xff]  ;;  %v1083_v35 = vld [vmem:[#allocation2 + $0x22] sm:$0xff] }
  0x5c   : > { %3634 = vst [vmem:[#allocation69_spill] sm:$0xff] %v2588_v32  ;;  %v1007_v44 = vmul.f32 %v2557_v0, %v2594_v56  ;;  %v1026_v46 = vmul.f32 %v2568_v3, %v2594_v56  ;;  %v453_v61 = vmul.f32 %v2214_v55, %v2592_v19  ;;  %v921_v11 = vadd.f32 %v913_v12, %v901_v30  ;;  %v2626_v19 = vld [vmem:[#allocation2 + $0x3a] sm:$0xff] }
  0x5d   : > { %3638 = vst [vmem:[#allocation73_spill] sm:$0xff] %v2610_v59  ;;  %v1027_v14 = vmul.f32 %v2568_v3, %v2602_v17  ;;  %v441_v16 = vadd.f32 %v433_v33, %v2371_v26  ;;  %v460_v15 = vadd.f32 %v452_v39, %v2377_v54  ;;  %v954_v0 = vadd.f32 %v946_v1, %v920_v22 }
  0x5e   : > { %v1046_v56 = vmul.f32 %v2584_v34, %v2602_v17  ;;  %v1047_v12 = vmul.f32 %v2584_v34, %v2610_v59  ;;  %v1066_v30 = vmul.f32 %v2588_v32, %v2610_v59  ;;  %v955_v55 = vadd.f32 %v947_v42, %v921_v11 }
  0x5f   : > { %v1067_v3 = vmul.f32 %v2588_v32, %v2616_v7  ;;  %v461_v26 = vadd.f32 %v453_v61, %v441_v16  ;;  %v494_v54 = vadd.f32 %v2348_v37, %v460_v15  ;;  %v974_v33 = vadd.f32 %v966_v28, %v954_v0  ;;  %v2642_v28 = vld [vmem:[#allocation2 + $0x52] sm:$0xff]  ;;  %v2656_v15 = vld [vmem:[#allocation2 + $0x6a] sm:$0xff] }
  0x60   : > { %v1100_v22 = vmul.f32 %v2405_v49, %v1082_v53  ;;  %v1101_v1 = vmul.f32 %v2405_v49, %v1083_v35  ;;  %v527_v39 = vmul.f32 %v2244_v24, %v2284_v6  ;;  %v975_v34 = vadd.f32 %v967_v18, %v955_v55  ;;  %3639 = vst [vmem:[#allocation74_spill] sm:$0xff] %v2642_v28  ;;  %v2644_v18 = vld [vmem:[#allocation2 + $0xc6] sm:$0xff] }
  0x61   : > { %v495_v59 = vadd.f32 %v2381_v36, %v461_v26  ;;  %v514_v42 = vadd.f32 %v2409_v51, %v494_v54  ;;  %v546_v11 = vmul.f32 %v2253_v38, %v2284_v6  ;;  %v994_v32 = vadd.f32 %v986_v21, %v974_v33  ;;  %3640 = vst [vmem:[#allocation75_spill] sm:$0xff] %v2656_v15  ;;  %v2664_v33 = vld [vmem:[#allocation2 + $0xde] sm:$0xff] }
  0x62   : > { %v1120_v61 = vmul.f32 %v2444_v58, %v1083_v35  ;;  %v1121_v37 = vmul.f32 %v2444_v58, %v2626_v19  ;;  %v547_v53 = vmul.f32 %v2253_v38, %v2292_v48  ;;  %v995_v0 = vadd.f32 %v987_v4, %v975_v34  ;;  %3642 = vst [vmem:[#allocation76_spill] sm:$0xff] %v2664_v33  ;;  %v1236_v58 = vld [vmem:[#allocation2 + $0xb] sm:$0xff] }
  0x63   : > { %v515_v55 = vadd.f32 %v2413_v62, %v495_v59  ;;  %v534_v36 = vadd.f32 %v2464_v60, %v514_v42  ;;  %v566_v51 = vmul.f32 %v2258_v25, %v2292_v48  ;;  %v1014_v21 = vadd.f32 %v1006_v27, %v994_v32  ;;  %v3641_v60 = vld [vmem:[#allocation22_spill] sm:$0xff] }
  0x64   : > { %v1140_v35 = vmul.f32 %v2448_v41, %v2626_v19  ;;  %v1141_v16 = vmul.f32 %v2448_v41, %v2642_v28  ;;  %v567_v4 = vmul.f32 %v2258_v25, %v2314_v52  ;;  %v1015_v34 = vadd.f32 %v1007_v44, %v995_v0  ;;  %v2668_v0 = vld [vmem:[#allocation2 + $0x82] sm:$0xff] }
  0x65   : > { %v535_v26 = vadd.f32 %v527_v39, %v515_v55  ;;  %v554_v62 = vadd.f32 %v546_v11, %v534_v36  ;;  %v586_v59 = vmul.f32 %v3641_v60, %v2314_v52  ;;  %v1034_v54 = vadd.f32 %v1026_v46, %v1014_v21  ;;  %3643 = vst [vmem:[#allocation77_spill] sm:$0xff] %v2668_v0  ;;  %v3644_v55 = vld [vmem:[#allocation23_spill] sm:$0xff] }
  0x66   : > { %v1160_v32 = vmul.f32 %v2452_v5, %v2642_v28  ;;  %v1161_v27 = vmul.f32 %v2452_v5, %v2656_v15  ;;  %v587_v42 = vmul.f32 %v3641_v60, %v2644_v18  ;;  %v1035_v44 = vadd.f32 %v1027_v14, %v1015_v34  ;;  %v2680_v34 = vld [vmem:[#allocation2 + $0x9a] sm:$0xff] }
  0x67   : > { %v555_v39 = vadd.f32 %v547_v53, %v535_v26  ;;  %v574_v11 = vadd.f32 %v566_v51, %v554_v62  ;;  %v606_v36 = vmul.f32 %v3644_v55, %v2644_v18  ;;  %v1054_v46 = vadd.f32 %v1046_v56, %v1034_v54  ;;  %3645 = vst [vmem:[#allocation78_spill] sm:$0xff] %v2680_v34  ;;  %v2682_v53 = vld [vmem:[#allocation2 + $0xb2] sm:$0xff]  ;;  %v1237_v51 = vld [vmem:[#allocation2 + $0x23] sm:$0xff] }
  0x68   : > { %v1180_v21 = vmul.f32 %v2456_v50, %v2656_v15  ;;  %v1181_v5 = vmul.f32 %v2456_v50, %v2668_v0  ;;  %v2678_v41 = vmul.f32 %v2460_v43, %v2668_v0  ;;  %v1055_v14 = vadd.f32 %v1047_v12, %v1035_v44  ;;  %3646 = vst [vmem:[#allocation79_spill] sm:$0xff] %v2682_v53  ;;  %v2694_v15 = vld [vmem:[#allocation2 + $0x3b] sm:$0xff] }
  0x69   : > { %v575_v26 = vadd.f32 %v567_v4, %v555_v39  ;;  %v594_v62 = vadd.f32 %v586_v59, %v574_v11  ;;  %v607_v56 = vmul.f32 %v3644_v55, %v2664_v33  ;;  %v1074_v54 = vadd.f32 %v1066_v30, %v1054_v46 }
  0x6a   : > { %v1201_v50 = vmul.f32 %v2460_v43, %v2680_v34  ;;  %v1220_v0 = vmul.f32 %v2496_v63, %v2680_v34  ;;  %v2692_v12 = vmul.f32 %v2496_v63, %v2682_v53  ;;  %v1075_v44 = vadd.f32 %v1067_v3, %v1055_v14 }
  0x6b   : > { %v595_v28 = vadd.f32 %v587_v42, %v575_v26  ;;  %v614_v4 = vadd.f32 %v606_v36, %v594_v62  ;;  %v660_v59 = vmul.f32 %v2307_v45, %v2350_v23  ;;  %v1108_v39 = vadd.f32 %v1100_v22, %v1074_v54  ;;  %v2714_v26 = vld [vmem:[#allocation2 + $0x53] sm:$0xff] }
  0x6c   : > { %v1254_v30 = vmul.f32 %v2519_v29, %v1236_v58  ;;  %v2700_v11 = vmul.f32 %v2519_v29, %v1237_v51  ;;  %v661_v46 = vmul.f32 %v2307_v45, %v2373_v2  ;;  %v1109_v43 = vadd.f32 %v1101_v1, %v1075_v44  ;;  %3647 = vst [vmem:[#allocation80_spill] sm:$0xff] %v2714_v26  ;;  %v3649_v54 = vld [vmem:[#allocation35_spill] sm:$0xff] }
  0x6d   : > { %v615_v63 = vadd.f32 %v607_v56, %v595_v28  ;;  %v648_v3 = vadd.f32 %v2468_v20, %v614_v4  ;;  %v680_v42 = vmul.f32 %v2327_v8, %v2373_v2  ;;  %v1128_v36 = vadd.f32 %v1120_v61, %v1108_v39  ;;  %v3648_v20 = vld [vmem:[#allocation27_spill] sm:$0xff]  ;;  %v2729_v4 = vld [vmem:[#allocation2 + $0xc7] sm:$0xff] }
  0x6e   : > { %v1274_v14 = vmul.f32 %v2522_v10, %v1237_v51  ;;  %v2710_v23 = vmul.f32 %v2522_v10, %v2694_v15  ;;  %v681_v58 = vmul.f32 %v2327_v8, %v2389_v9  ;;  %v1129_v22 = vadd.f32 %v1121_v37, %v1109_v43  ;;  %v2727_v37 = vld [vmem:[#allocation2 + $0x6b] sm:$0xff]  ;;  %3651 = vst [vmem:[#allocation82_spill] sm:$0xff] %v2729_v4  ;;  %v2741_v10 = vld [vmem:[#allocation2 + $0x83] sm:$0xff] }
  0x6f   : > { %v649_v1 = vadd.f32 %v2472_v47, %v615_v63  ;;  %v668_v28 = vadd.f32 %v660_v59, %v648_v3  ;;  %v700_v62 = vmul.f32 %v3648_v20, %v2389_v9  ;;  %v1148_v56 = vadd.f32 %v1140_v35, %v1128_v36  ;;  %3650 = vst [vmem:[#allocation81_spill] sm:$0xff] %v2727_v37  ;;  %v3652_v59 = vld [vmem:[#allocation28_spill] sm:$0xff] }
  0x70   : > { %v1294_v61 = vmul.f32 %v2525_v57, %v2694_v15  ;;  %v2723_v51 = vmul.f32 %v2525_v57, %v2714_v26  ;;  %v701_v44 = vmul.f32 %v3648_v20, %v3649_v54  ;;  %v1149_v43 = vadd.f32 %v1141_v16, %v1129_v22  ;;  %v3653_v57 = vld [vmem:[#allocation36_spill] sm:$0xff]  ;;  %3654 = vst [vmem:[#allocation83_spill] sm:$0xff] %v2741_v10 }
  0x71   : > { %v669_v47 = vadd.f32 %v661_v46, %v649_v1  ;;  %v688_v63 = vadd.f32 %v680_v42, %v668_v28  ;;  %v720_v35 = vmul.f32 %v3652_v59, %v3649_v54  ;;  %v1168_v39 = vadd.f32 %v1160_v32, %v1148_v56  ;;  %v3655_v42 = vld [vmem:[#allocation30_spill] sm:$0xff] }
  0x72   : > { %v1314_v3 = vmul.f32 %v2528_v40, %v2714_v26  ;;  %v2737_v36 = vmul.f32 %v2528_v40, %v2727_v37  ;;  %v721_v16 = vmul.f32 %v3652_v59, %v3653_v57  ;;  %v1169_v22 = vadd.f32 %v1161_v27, %v1149_v43  ;;  %v2749_v40 = vld [vmem:[#allocation2 + $0xdf] sm:$0xff] }
  0x73   : > { %v689_v53 = vadd.f32 %v681_v58, %v669_v47  ;;  %v708_v46 = vadd.f32 %v700_v62, %v688_v63  ;;  %v740_v1 = vmul.f32 %v3655_v42, %v3653_v57  ;;  %v1188_v28 = vadd.f32 %v1180_v21, %v1168_v39  ;;  %3656 = vst [vmem:[#allocation84_spill] sm:$0xff] %v2749_v40  ;;  %v2753_v43 = vld [vmem:[#allocation2 + $0x9b] sm:$0xff] }
  0x74   : > { %v1334_v32 = vmul.f32 %v2560_v13, %v2727_v37  ;;  %v1335_v56 = vmul.f32 %v2560_v13, %v2741_v10  ;;  %v741_v26 = vmul.f32 %v3655_v42, %v2729_v4  ;;  %v1189_v27 = vadd.f32 %v1181_v5, %v1169_v22  ;;  %3657 = vst [vmem:[#allocation85_spill] sm:$0xff] %v2753_v43  ;;  %v3658_v47 = vld [vmem:[#allocation33_spill] sm:$0xff]  ;;  %v3659_v37 = vld [vmem:[#allocation66_spill] sm:$0xff]  ;;  %v2766_v22 = vld [vmem:[#allocation2 + $0xb3] sm:$0xff] }
  0x75   : > { %v709_v58 = vadd.f32 %v701_v44, %v689_v53  ;;  %v728_v62 = vadd.f32 %v720_v35, %v708_v46  ;;  %v760_v63 = vmul.f32 %v3658_v47, %v2729_v4  ;;  %v1208_v21 = vadd.f32 %v2678_v41, %v1188_v28  ;;  %3660 = vst [vmem:[#allocation86_spill] sm:$0xff] %v2766_v22  ;;  %v3661_v28 = vld [vmem:[#allocation71_spill] sm:$0xff]  ;;  %v3669_v57 = vld [vmem:[#allocation40_spill] sm:$0xff] }
  0x76   : > { %v1354_v39 = vmul.f32 %v2563_v31, %v2741_v10  ;;  %v1355_v13 = vmul.f32 %v2563_v31, %v2753_v43  ;;  %v2764_v59 = vmul.f32 %v3659_v37, %v2753_v43  ;;  %v1209_v5 = vadd.f32 %v1201_v50, %v1189_v27  ;;  %v3662_v10 = vld [vmem:[#allocation13_spill] sm:$0xff]  ;;  %v3664_v4 = vld [vmem:[#allocation3_spill] sm:$0xff] }
  0x77   : > { %v729_v53 = vadd.f32 %v721_v16, %v709_v58  ;;  %v748_v44 = vadd.f32 %v740_v1, %v728_v62  ;;  %v761_v35 = vmul.f32 %v3658_v47, %v2749_v40  ;;  %v1228_v46 = vadd.f32 %v1220_v0, %v1208_v21  ;;  %v3663_v31 = vld [vmem:[#allocation37_spill] sm:$0xff]  ;;  %v3665_v16 = vld [vmem:[#allocation4_spill] sm:$0xff]  ;;  %v3666_v62 = vld [vmem:[#allocation38_spill] sm:$0xff] }
  0x78   : > { %v1375_v41 = vmul.f32 %v3659_v37, %v2766_v22  ;;  %v434_v42 = vmul.f32 %v3662_v10, %v3661_v28  ;;  %v814_v20 = vmul.f32 %v3664_v4, %v3663_v31  ;;  %v1229_v43 = vadd.f32 %v2692_v12, %v1209_v5  ;;  %v3667_v21 = vld [vmem:[#allocation5_spill] sm:$0xff]  ;;  %v3668_v22 = vld [vmem:[#allocation39_spill] sm:$0xff] }
  0x79   : > { %v749_v50 = vadd.f32 %v741_v26, %v729_v53  ;;  %v768_v27 = vadd.f32 %v760_v63, %v748_v44  ;;  %v815_v1 = vmul.f32 %v3665_v16, %v3663_v31  ;;  %v1262_v58 = vadd.f32 %v1254_v30, %v1228_v46  ;;  %v3670_v26 = vld [vmem:[#allocation6_spill] sm:$0xff]  ;;  %v3671_v53 = vld [vmem:[#allocation48_spill] sm:$0xff]  ;;  %v3672_v44 = vld [vmem:[#allocation7_spill] sm:$0xff] }
  0x7a   : > { %v834_v0 = vmul.f32 %v3665_v16, %v3666_v62  ;;  %v835_v37 = vmul.f32 %v3667_v21, %v3666_v62  ;;  %v854_v47 = vmul.f32 %v3667_v21, %v3668_v22  ;;  %v1263_v40 = vadd.f32 %v2700_v11, %v1229_v43  ;;  %v3673_v16 = vld [vmem:[#allocation50_spill] sm:$0xff] }
  0x7b   : > { %v769_v4 = vadd.f32 %v761_v35, %v749_v50  ;;  %v802_v12 = vadd.f32 %v3669_v57, %v768_v27  ;;  %v855_v63 = vmul.f32 %v3670_v26, %v3668_v22  ;;  %v1282_v5 = vadd.f32 %v1274_v14, %v1262_v58  ;;  %v3674_v31 = vld [vmem:[#allocation46_spill] sm:$0xff]  ;;  %v3675_v35 = vld [vmem:[#allocation47_spill] sm:$0xff]  ;;  %v3676_v27 = vld [vmem:[#allocation16_spill] sm:$0xff] }
  0x7c   : > { %v874_v30 = vmul.f32 %v3670_v26, %v3671_v53  ;;  %v875_v46 = vmul.f32 %v3672_v44, %v3671_v53  ;;  %v894_v62 = vmul.f32 %v3672_v44, %v3673_v16  ;;  %v1283_v21 = vadd.f32 %v2710_v23, %v1263_v40  ;;  %v3677_v14 = vld [vmem:[#allocation9_spill] sm:$0xff]  ;;  %v3678_v22 = vld [vmem:[#allocation18_spill] sm:$0xff]  ;;  %v3680_v53 = vld [vmem:[#allocation11_spill] sm:$0xff] }
  0x7d   : > { %v803_v11 = vadd.f32 %v3674_v31, %v769_v4  ;;  %v822_v43 = vadd.f32 %v814_v20, %v802_v12  ;;  %v2798_v57 = vunpack.c.h.bf16 %v3675_v35  ;;  %v1302_v50 = vadd.f32 %v1294_v61, %v1282_v5  ;;  %v3679_v26 = vld [vmem:[#allocation10_spill] sm:$0xff]  ;;  %v3682_v61 = vld [vmem:[#allocation29_spill] sm:$0xff]  ;;  %v3683_v12 = vld [vmem:[#allocation31_spill] sm:$0xff] }
  0x7e   : > { %v355_v58 = vmul.f32 %v3677_v14, %v3676_v27  ;;  %v375_v34 = vmul.f32 %v3679_v26, %v3678_v22  ;;  %v394_v8 = vmul.f32 %v3680_v53, %v3678_v22  ;;  %v1303_v44 = vadd.f32 %v2723_v51, %v1283_v21  ;;  %v3681_v31 = vld [vmem:[#allocation70_spill] sm:$0xff]  ;;  %v3684_v35 = vld [vmem:[#allocation12_spill] sm:$0xff]  ;;  %v3685_v51 = vld [vmem:[#allocation51_spill] sm:$0xff] }
  0x7f   : > { %v823_v54 = vadd.f32 %v815_v1, %v803_v11  ;;  %v842_v40 = vadd.f32 %v834_v0, %v822_v43  ;;  %312 = vst [vmem:[#allocation2 + $0xf8] sm:$0xff] %v2798_v57  ;;  %v395_v23 = vmul.f32 %v3680_v53, %v3681_v31  ;;  %v1322_v20 = vadd.f32 %v1314_v3, %v1302_v50 }
  0x80   : > { %v363_v4 = vadd.f32 %v355_v58, %v3682_v61  ;;  %v402_v5 = vadd.f32 %v394_v8, %v3683_v12  ;;  %v414_v27 = vmul.f32 %v3684_v35, %v3681_v31  ;;  %v1323_v26 = vadd.f32 %v2737_v36, %v1303_v44  ;;  %v3686_v8 = vld [vmem:[#allocation53_spill] sm:$0xff]  ;;  %v3688_v31 = vld [vmem:[#allocation54_spill] sm:$0xff] }
  0x81   : > { %v843_v22 = vadd.f32 %v835_v37, %v823_v54  ;;  %v862_v14 = vadd.f32 %v854_v47, %v842_v40  ;;  %v895_v1 = vmul.f32 %v3685_v51, %v3673_v16  ;;  %v1342_v0 = vadd.f32 %v1334_v32, %v1322_v20  ;;  %v3687_v12 = vld [vmem:[#allocation61_spill] sm:$0xff]  ;;  %v3689_v54 = vld [vmem:[#allocation67_spill] sm:$0xff]  ;;  %v3690_v20 = vld [vmem:[#allocation52_spill] sm:$0xff] }
  0x82   : > { %v383_v21 = vadd.f32 %v375_v34, %v363_v4  ;;  %v415_v11 = vmul.f32 %v3684_v35, %v3661_v28  ;;  %v422_v3 = vadd.f32 %v414_v27, %v402_v5  ;;  %v1343_v43 = vadd.f32 %v1335_v56, %v1323_v26 }
  0x83   : > { %v863_v50 = vadd.f32 %v855_v63, %v843_v22  ;;  %v882_v58 = vadd.f32 %v874_v30, %v862_v14  ;;  %v914_v61 = vmul.f32 %v3685_v51, %v3686_v8  ;;  %v948_v36 = vmul.f32 %v3688_v31, %v3687_v12  ;;  %v3696_v12 = vld [vmem:[#allocation17_spill] sm:$0xff] }
  0x84   : > { %v949_v37 = vmul.f32 %v3688_v31, %v3689_v54  ;;  %v1362_v47 = vadd.f32 %v1354_v39, %v1342_v0  ;;  %v403_v44 = vadd.f32 %v395_v23, %v383_v21  ;;  %v1363_v32 = vadd.f32 %v1355_v13, %v1343_v43  ;;  %v3691_v39 = vld [vmem:[#allocation59_spill] sm:$0xff] }
  0x85   : > { %v883_v34 = vadd.f32 %v875_v46, %v863_v50  ;;  %v902_v40 = vadd.f32 %v894_v62, %v882_v58  ;;  %v915_v4 = vmul.f32 %v3690_v20, %v3686_v8  ;;  %v2829_v56 = vmul.f32 %v2405_v49, %v2626_v19  ;;  %v2836_v62 = vld [vmem:[#allocation2 + $0x10d] sm:$0xff]  ;;  %v3692_v46 = vld [vmem:[#allocation72_spill] sm:$0xff] }
  0x86   : > { %v1382_v63 = vadd.f32 %v2764_v59, %v1362_v47  ;;  %v423_v30 = vadd.f32 %v415_v11, %v403_v44  ;;  %v442_v14 = vadd.f32 %v434_v42, %v422_v3  ;;  %v1383_v26 = vadd.f32 %v1375_v41, %v1363_v32  ;;  %v2834_v13 = vld [vmem:[#allocation2 + $0xf5] sm:$0xff]  ;;  %v3693_v59 = vld [vmem:[#allocation14_spill] sm:$0xff] }
  0x87   : > { %v903_v5 = vadd.f32 %v895_v1, %v883_v34  ;;  %v922_v27 = vadd.f32 %v914_v61, %v902_v40  ;;  %v968_v23 = vmul.f32 %v3691_v39, %v3689_v54  ;;  %v969_v22 = vmul.f32 %v3691_v39, %v3692_v46  ;;  %v3694_v11 = vld [vmem:[#allocation60_spill] sm:$0xff]  ;;  %v3695_v58 = vld [vmem:[#allocation15_spill] sm:$0xff]  ;;  %v3697_v34 = vld [vmem:[#allocation62_spill] sm:$0xff] }
  0x88   : > { %v435_v19 = vmul.f32 %v3662_v10, %v2834_v13  ;;  %v454_v0 = vmul.f32 %v3693_v59, %v2834_v13  ;;  %v455_v42 = vmul.f32 %v3693_v59, %v2836_v62  ;;  %v1390_v41 = vpack.c.bf16 %v1383_v26, %v1382_v63 }
  0x89   : > { %v923_v1 = vadd.f32 %v915_v4, %v903_v5  ;;  %v956_v21 = vadd.f32 %v948_v36, %v922_v27  ;;  %v988_v3 = vmul.f32 %v3694_v11, %v3692_v46  ;;  %v489_v61 = vmul.f32 %v3695_v58, %v2284_v6  ;;  %v3698_v4 = vld [vmem:[#allocation32_spill] sm:$0xff]  ;;  %v3699_v5 = vld [vmem:[#allocation73_spill] sm:$0xff] }
  0x8a   : > { %v443_v43 = vadd.f32 %v435_v19, %v423_v30  ;;  %v462_v50 = vadd.f32 %v454_v0, %v442_v14  ;;  %v508_v54 = vmul.f32 %v3696_v12, %v2284_v6  ;;  %1934 = vmatprep.mubr.bf16.mxu0 %v1390_v41  ;;  %v989_v32 = vmul.f32 %v3694_v11, %v2602_v17  ;;  %v3700_v27 = vld [vmem:[#allocation65_spill] sm:$0xff]  ;;  %v2865_v19 = vld [vmem:[#allocation2 + $0xc9] sm:$0xff] }
  0x8b   : > { %v957_v47 = vadd.f32 %v949_v37, %v923_v1  ;;  %v976_v44 = vadd.f32 %v968_v23, %v956_v21  ;;  %v1008_v36 = vmul.f32 %v3697_v34, %v2602_v17  ;;  %v509_v30 = vmul.f32 %v3696_v12, %v2292_v48 }
  0x8c   : > { %v463_v40 = vadd.f32 %v455_v42, %v443_v43  ;;  %v496_v63 = vadd.f32 %v3698_v4, %v462_v50  ;;  %v528_v14 = vmul.f32 %v2244_v24, %v2292_v48  ;;  %v1009_v37 = vmul.f32 %v3697_v34, %v3699_v5  ;;  %v2875_v50 = vld [vmem:[#allocation2 + $0xe1] sm:$0xff] }
  0x8d   : > { %v977_v26 = vadd.f32 %v969_v22, %v957_v47  ;;  %v996_v6 = vadd.f32 %v988_v3, %v976_v44  ;;  %v1028_v23 = vmul.f32 %v3700_v27, %v3699_v5  ;;  %v529_v41 = vmul.f32 %v2244_v24, %v2314_v52  ;;  %v3701_v3 = vld [vmem:[#allocation68_spill] sm:$0xff] }
  0x8e   : > { %v497_v0 = vadd.f32 %v489_v61, %v463_v40  ;;  %v516_v42 = vadd.f32 %v508_v54, %v496_v63  ;;  %v548_v1 = vmul.f32 %v2253_v38, %v2314_v52  ;;  %v1029_v22 = vmul.f32 %v3700_v27, %v2616_v7 }
  0x8f   : > { %v997_v21 = vadd.f32 %v989_v32, %v977_v26  ;;  %v1016_v48 = vadd.f32 %v1008_v36, %v996_v6  ;;  %v1048_v43 = vmul.f32 %v3701_v3, %v2616_v7  ;;  %v549_v61 = vmul.f32 %v2253_v38, %v2644_v18  ;;  %v3702_v36 = vld [vmem:[#allocation69_spill] sm:$0xff]  ;;  %v3703_v6 = vld [vmem:[#allocation74_spill] sm:$0xff] }
  0x90   : > { %v517_v47 = vadd.f32 %v509_v30, %v497_v0  ;;  %v536_v44 = vadd.f32 %v528_v14, %v516_v42  ;;  %v568_v54 = vmul.f32 %v2258_v25, %v2644_v18  ;;  %v1049_v32 = vmul.f32 %v3701_v3, %v2865_v19 }
  0x91   : > { %v1017_v40 = vadd.f32 %v1009_v37, %v997_v21  ;;  %v1036_v52 = vadd.f32 %v1028_v23, %v1016_v48  ;;  %v1068_v4 = vmul.f32 %v3702_v36, %v2865_v19  ;;  %v569_v30 = vmul.f32 %v2258_v25, %v2664_v33  ;;  %v2893_v21 = vld [vmem:[#allocation2 + $0xf6] sm:$0xff] }
  0x92   : > { %v537_v63 = vadd.f32 %v529_v41, %v517_v47  ;;  %v556_v26 = vadd.f32 %v548_v1, %v536_v44  ;;  %v588_v14 = vmul.f32 %v3641_v60, %v2664_v33  ;;  %v1103_v0 = vmul.f32 %v2405_v49, %v3703_v6  ;;  %3704 = vst [vmem:[#allocation71_spill] sm:$0xff] %v2893_v21  ;;  %v3714_v33 = vld [vmem:[#allocation78_spill] sm:$0xff] }
  0x93   : > { %v1037_v42 = vadd.f32 %v1029_v22, %v1017_v40  ;;  %v1056_v37 = vadd.f32 %v1048_v43, %v1036_v52  ;;  %v1069_v23 = vmul.f32 %v3702_v36, %v2875_v50  ;;  %v589_v41 = vmul.f32 %v3641_v60, %v2893_v21  ;;  %v3705_v43 = vld [vmem:[#allocation41_spill] sm:$0xff]  ;;  %v2905_v52 = vld [vmem:[#allocation2 + $0x10e] sm:$0xff] }
  0x94   : > { %v557_v48 = vadd.f32 %v549_v61, %v537_v63  ;;  %v576_v38 = vadd.f32 %v568_v54, %v556_v26  ;;  %v608_v1 = vmul.f32 %v3644_v55, %v2893_v21  ;;  %v2901_v47 = vmul.f32 %v2519_v29, %v2694_v15  ;;  %3706 = vst [vmem:[#allocation13_spill] sm:$0xff] %v2905_v52  ;;  %v3707_v63 = vld [vmem:[#allocation24_spill] sm:$0xff]  ;;  %v3708_v15 = vld [vmem:[#allocation75_spill] sm:$0xff] }
  0x95   : > { %v1057_v44 = vadd.f32 %v1049_v32, %v1037_v42  ;;  %v1076_v22 = vadd.f32 %v1068_v4, %v1056_v37  ;;  %v1122_v40 = vmul.f32 %v3705_v43, %v3703_v6  ;;  %v609_v54 = vmul.f32 %v3644_v55, %v2905_v52  ;;  %v3709_v4 = vld [vmem:[#allocation42_spill] sm:$0xff]  ;;  %v3712_v52 = vld [vmem:[#allocation35_spill] sm:$0xff] }
  0x96   : > { %v577_v25 = vadd.f32 %v569_v30, %v557_v48  ;;  %v596_v61 = vadd.f32 %v588_v14, %v576_v38  ;;  %v642_v26 = vmul.f32 %v3707_v63, %v2373_v2  ;;  %v1123_v32 = vmul.f32 %v3705_v43, %v3708_v15  ;;  %v3710_v2 = vld [vmem:[#allocation77_spill] sm:$0xff] }
  0x97   : > { %v1077_v60 = vadd.f32 %v1069_v23, %v1057_v44  ;;  %v1110_v21 = vadd.f32 %v2829_v56, %v1076_v22  ;;  %v1142_v42 = vmul.f32 %v3709_v4, %v3708_v15  ;;  %v643_v38 = vmul.f32 %v3707_v63, %v2389_v9  ;;  %v3711_v56 = vld [vmem:[#allocation43_spill] sm:$0xff] }
  0x98   : > { %v597_v6 = vadd.f32 %v589_v41, %v577_v25  ;;  %v616_v37 = vadd.f32 %v608_v1, %v596_v61  ;;  %v662_v30 = vmul.f32 %v2307_v45, %v2389_v9  ;;  %v1143_v23 = vmul.f32 %v3709_v4, %v3710_v2  ;;  %v3713_v41 = vld [vmem:[#allocation26_spill] sm:$0xff] }
  0x99   : > { %v1111_v14 = vadd.f32 %v1103_v0, %v1077_v60  ;;  %v1130_v48 = vadd.f32 %v1122_v40, %v1110_v21  ;;  %v1162_v44 = vmul.f32 %v3711_v56, %v3710_v2  ;;  %v663_v25 = vmul.f32 %v2307_v45, %v3712_v52  ;;  %v3715_v60 = vld [vmem:[#allocation44_spill] sm:$0xff]  ;;  %v2932_v21 = vld [vmem:[#allocation2 + $0xca] sm:$0xff] }
  0x9a   : > { %v617_v22 = vadd.f32 %v609_v54, %v597_v6  ;;  %v650_v55 = vadd.f32 %v642_v26, %v616_v37  ;;  %v682_v1 = vmul.f32 %v3713_v41, %v3712_v52  ;;  %v1163_v9 = vmul.f32 %v3711_v56, %v3714_v33  ;;  %v3716_v54 = vld [vmem:[#allocation36_spill] sm:$0xff]  ;;  %v3717_v6 = vld [vmem:[#allocation27_spill] sm:$0xff]  ;;  %v2942_v56 = vld [vmem:[#allocation2 + $0xe2] sm:$0xff] }
  0x9b   : > { %v1131_v61 = vadd.f32 %v1123_v32, %v1111_v14  ;;  %v1150_v63 = vadd.f32 %v1142_v42, %v1130_v48  ;;  %v1182_v0 = vmul.f32 %v3715_v60, %v3714_v33  ;;  %v683_v26 = vmul.f32 %v3713_v41, %v3716_v54  ;;  %v3718_v32 = vld [vmem:[#allocation79_spill] sm:$0xff]  ;;  %v3719_v14 = vld [vmem:[#allocation45_spill] sm:$0xff] }
  0x9c   : > { %v651_v40 = vadd.f32 %v643_v38, %v617_v22  ;;  %v670_v4 = vadd.f32 %v662_v30, %v650_v55  ;;  %v702_v37 = vmul.f32 %v3717_v6, %v3716_v54  ;;  %v1183_v42 = vmul.f32 %v3715_v60, %v3718_v32  ;;  %v3720_v38 = vld [vmem:[#allocation82_spill] sm:$0xff]  ;;  %v3721_v30 = vld [vmem:[#allocation28_spill] sm:$0xff] }
  0x9d   : > { %v1151_v45 = vadd.f32 %v1143_v23, %v1131_v61  ;;  %v1170_v52 = vadd.f32 %v1162_v44, %v1150_v63  ;;  %v1202_v48 = vmul.f32 %v3719_v14, %v3718_v32  ;;  %v703_v55 = vmul.f32 %v3717_v6, %v3720_v38  ;;  %v3722_v23 = vld [vmem:[#allocation49_spill] sm:$0xff]  ;;  %v3723_v32 = vld [vmem:[#allocation84_spill] sm:$0xff] }
  0x9e   : > { %v671_v33 = vadd.f32 %v663_v25, %v651_v40  ;;  %v690_v24 = vadd.f32 %v682_v1, %v670_v4  ;;  %v722_v22 = vmul.f32 %v3721_v30, %v3720_v38  ;;  %v1203_v63 = vmul.f32 %v3719_v14, %v2932_v21  ;;  %v3724_v4 = vld [vmem:[#allocation30_spill] sm:$0xff]  ;;  %v3725_v40 = vld [vmem:[#allocation80_spill] sm:$0xff] }
  0x9f   : > { %v1171_v41 = vadd.f32 %v1163_v9, %v1151_v45  ;;  %v1190_v54 = vadd.f32 %v1182_v0, %v1170_v52  ;;  %v1222_v44 = vmul.f32 %v3722_v23, %v2932_v21  ;;  %v723_v25 = vmul.f32 %v3721_v30, %v3723_v32  ;;  %v2960_v0 = vld [vmem:[#allocation2 + $0xf7] sm:$0xff] }
  0xa0   : > { %v691_v61 = vadd.f32 %v683_v26, %v671_v33  ;;  %v710_v60 = vadd.f32 %v702_v37, %v690_v24  ;;  %v742_v1 = vmul.f32 %v3724_v4, %v3723_v32  ;;  %v1257_v6 = vmul.f32 %v2519_v29, %v3725_v40  ;;  %3726 = vst [vmem:[#allocation3_spill] sm:$0xff] %v2960_v0  ;;  %v3727_v33 = vld [vmem:[#allocation33_spill] sm:$0xff]  ;;  %v3728_v32 = vld [vmem:[#allocation56_spill] sm:$0xff] }
  0xa1   : > { %v1191_v38 = vadd.f32 %v1183_v42, %v1171_v41  ;;  %v1210_v45 = vadd.f32 %v1202_v48, %v1190_v54  ;;  %v1223_v9 = vmul.f32 %v3722_v23, %v2942_v56  ;;  %v743_v24 = vmul.f32 %v3724_v4, %v2960_v0  ;;  %v3729_v41 = vld [vmem:[#allocation81_spill] sm:$0xff]  ;;  %v2970_v48 = vld [vmem:[#allocation2 + $0x10f] sm:$0xff] }
  0xa2   : > { %v711_v52 = vadd.f32 %v703_v55, %v691_v61  ;;  %v730_v14 = vadd.f32 %v722_v22, %v710_v60  ;;  %v762_v26 = vmul.f32 %v3727_v33, %v2960_v0  ;;  %v1276_v29 = vmul.f32 %v3728_v32, %v3725_v40  ;;  %3730 = vst [vmem:[#allocation4_spill] sm:$0xff] %v2970_v48  ;;  %v2974_v55 = vld [vmem:[#allocation2 + $0x68] sm:$0xff] }
  0xa3   : > { %v1211_v37 = vadd.f32 %v1203_v63, %v1191_v38  ;;  %v1230_v30 = vadd.f32 %v1222_v44, %v1210_v45  ;;  %v1277_v42 = vmul.f32 %v3728_v32, %v3729_v41  ;;  %v763_v60 = vmul.f32 %v3727_v33, %v2970_v48  ;;  %3731 = vst [vmem:[#allocation5_spill] sm:$0xff] %v2974_v55  ;;  %v3732_v22 = vld [vmem:[#allocation34_spill] sm:$0xff]  ;;  %v3733_v44 = vld [vmem:[#allocation57_spill] sm:$0xff]  ;;  %v3734_v45 = vld [vmem:[#allocation83_spill] sm:$0xff] }
  0xa4   : > { %v731_v54 = vadd.f32 %v723_v25, %v711_v52  ;;  %v750_v23 = vadd.f32 %v742_v1, %v730_v14  ;;  %v796_v61 = vmul.f32 %v2974_v55, %v3732_v22  ;;  %v1296_v40 = vmul.f32 %v3733_v44, %v3729_v41  ;;  %v2983_v14 = vld [vmem:[#allocation2 + $0x80] sm:$0xff]  ;;  %v2993_v32 = vld [vmem:[#allocation2 + $0xcb] sm:$0xff] }
  0xa5   : > { %v1231_v38 = vadd.f32 %v1223_v9, %v1211_v37  ;;  %v1264_v63 = vadd.f32 %v2901_v47, %v1230_v30  ;;  %v1297_v4 = vmul.f32 %v3733_v44, %v3734_v45  ;;  %3735 = vst [vmem:[#allocation40_spill] sm:$0xff] %v2983_v14  ;;  %v797_v1 = vmul.f32 %v2983_v14, %v3732_v22  ;;  %v3736_v52 = vld [vmem:[#allocation37_spill] sm:$0xff]  ;;  %v3737_v47 = vld [vmem:[#allocation58_spill] sm:$0xff] }
  0xa6   : > { %v751_v0 = vadd.f32 %v743_v24, %v731_v54  ;;  %v770_v25 = vadd.f32 %v762_v26, %v750_v23  ;;  %v816_v33 = vmul.f32 %v2983_v14, %v3736_v52  ;;  %v1316_v30 = vmul.f32 %v3737_v47, %v3734_v45  ;;  %v3738_v37 = vld [vmem:[#allocation85_spill] sm:$0xff]  ;;  %v2995_v26 = vld [vmem:[#allocation2 + $0x98] sm:$0xff]  ;;  %v3740_v22 = vld [vmem:[#allocation38_spill] sm:$0xff] }
  0xa7   : > { %v1265_v55 = vadd.f32 %v1257_v6, %v1231_v38  ;;  %v1284_v9 = vadd.f32 %v1276_v29, %v1264_v63  ;;  %v1317_v48 = vmul.f32 %v3737_v47, %v3738_v37  ;;  %3739 = vst [vmem:[#allocation6_spill] sm:$0xff] %v2995_v26  ;;  %v817_v54 = vmul.f32 %v2995_v26, %v3736_v52  ;;  %v3741_v38 = vld [vmem:[#allocation63_spill] sm:$0xff]  ;;  %v3742_v44 = vld [vmem:[#allocation86_spill] sm:$0xff] }
  0xa8   : > { %v771_v24 = vadd.f32 %v763_v60, %v751_v0  ;;  %v804_v23 = vadd.f32 %v796_v61, %v770_v25  ;;  %v836_v14 = vmul.f32 %v2995_v26, %v3740_v22  ;;  %v1336_v63 = vmul.f32 %v3741_v38, %v3738_v37  ;;  %v3005_v45 = vld [vmem:[#allocation2 + $0xe3] sm:$0xff]  ;;  %v3007_v61 = vld [vmem:[#allocation2 + $0xb0] sm:$0xff] }
  0xa9   : > { %v1285_v6 = vadd.f32 %v1277_v42, %v1265_v55  ;;  %v1304_v29 = vadd.f32 %v1296_v40, %v1284_v9  ;;  %v1337_v47 = vmul.f32 %v3741_v38, %v3742_v44  ;;  %3743 = vst [vmem:[#allocation7_spill] sm:$0xff] %v3007_v61  ;;  %v837_v25 = vmul.f32 %v3007_v61, %v3740_v22  ;;  %v3744_v52 = vld [vmem:[#allocation39_spill] sm:$0xff]  ;;  %v3745_v40 = vld [vmem:[#allocation64_spill] sm:$0xff] }
  0xaa   : > { %v805_v0 = vadd.f32 %v797_v1, %v771_v24  ;;  %v824_v60 = vadd.f32 %v816_v33, %v804_v23  ;;  %v856_v26 = vmul.f32 %v3007_v61, %v3744_v52  ;;  %v1356_v9 = vmul.f32 %v3745_v40, %v3742_v44  ;;  %v3746_v1 = vld [vmem:[#allocation48_spill] sm:$0xff]  ;;  %v3747_v61 = vld [vmem:[#allocation66_spill] sm:$0xff] }
  0xab   : > { %v1305_v42 = vadd.f32 %v1297_v4, %v1285_v6  ;;  %v1324_v55 = vadd.f32 %v1316_v30, %v1304_v29  ;;  %v1357_v38 = vmul.f32 %v3745_v40, %v2993_v32  ;;  %v857_v33 = vmul.f32 %v3685_v51, %v3744_v52 }
  0xac   : > { %v825_v37 = vadd.f32 %v817_v54, %v805_v0  ;;  %v844_v41 = vadd.f32 %v836_v14, %v824_v60  ;;  %v876_v24 = vmul.f32 %v3685_v51, %v3746_v1  ;;  %v1376_v4 = vmul.f32 %v3747_v61, %v2993_v32 }
  0xad   : > { %v1325_v23 = vadd.f32 %v1317_v48, %v1305_v42  ;;  %v1344_v22 = vadd.f32 %v1336_v63, %v1324_v55  ;;  %v1377_v30 = vmul.f32 %v3747_v61, %v3005_v45  ;;  %v877_v54 = vmul.f32 %v3690_v20, %v3746_v1 }
  0xae   : > { %v845_v6 = vadd.f32 %v837_v25, %v825_v37  ;;  %v864_v29 = vadd.f32 %v856_v26, %v844_v41  ;;  %v896_v14 = vmul.f32 %v3690_v20, %v3673_v16  ;;  %v397_v51 = vmul.f32 %v3680_v53, %v2834_v13  ;;  %v3035_v41 = vld [vmem:[#allocation2] sm:$0xff] }
  0xaf   : > { %v1345_v0 = vadd.f32 %v1337_v47, %v1325_v23  ;;  %v1364_v60 = vadd.f32 %v1356_v9, %v1344_v22  ;;  %v897_v48 = vmul.f32 %v2798_v57, %v3673_v16  ;;  %v916_v37 = vmul.f32 %v2798_v57, %v3686_v8 }
  0xb0   : > { %v865_v63 = vadd.f32 %v857_v33, %v845_v6  ;;  %v884_v42 = vadd.f32 %v876_v24, %v864_v29  ;;  %v3039_v26 = vmul.f32 %v3035_v41, %v3686_v8  ;;  %v950_v22 = vmul.f32 %v3688_v31, %v3692_v46  ;;  %v2012_v6 = vld [vmem:[#allocation2 + $0x95] sm:$0xff] }
  0xb1   : > { %v1365_v20 = vadd.f32 %v1357_v38, %v1345_v0  ;;  %v1384_v47 = vadd.f32 %v1376_v4, %v1364_v60  ;;  %v951_v25 = vmul.f32 %v3688_v31, %v2602_v17  ;;  %v970_v33 = vmul.f32 %v3691_v39, %v2602_v17  ;;  %v3748_v8 = vld [vmem:[#allocation8_spill] sm:$0xff]  ;;  %v2013_v38 = vld [vmem:[#allocation2 + $0xad] sm:$0xff]  ;;  %v3749_v0 = vld [vmem:[#allocation9_spill] sm:$0xff] }
  0xb2   : > { %v885_v55 = vadd.f32 %v877_v54, %v865_v63  ;;  %v904_v9 = vadd.f32 %v896_v14, %v884_v42  ;;  %v971_v24 = vmul.f32 %v3691_v39, %v3699_v5  ;;  %v344_v29 = vmul.f32 %v2012_v6, %v3748_v8  ;;  %v3750_v31 = vld [vmem:[#allocation70_spill] sm:$0xff] }
  0xb3   : > { %v1385_v23 = vadd.f32 %v1377_v30, %v1365_v20  ;;  %v345_v4 = vmul.f32 %v2013_v38, %v3748_v8  ;;  %v356_v46 = vmul.f32 %v2013_v38, %v3749_v0  ;;  %v357_v54 = vmul.f32 %v3749_v0, %v3750_v31  ;;  %v3751_v14 = vld [vmem:[#allocation10_spill] sm:$0xff] }
  0xb4   : > { %v905_v60 = vadd.f32 %v897_v48, %v885_v55  ;;  %v924_v16 = vadd.f32 %v916_v37, %v904_v9  ;;  %v376_v17 = vmul.f32 %v3751_v14, %v3750_v31  ;;  %v377_v30 = vmul.f32 %v3751_v14, %v3661_v28  ;;  %v332_v9 = vld [vmem:[#allocation2 + $0x125] sm:$0xff] }
  0xb5   : > { %v1391_v63 = vpack.c.bf16 %v1385_v23, %v1384_v47  ;;  %v364_v42 = vadd.f32 %v356_v46, %v344_v29  ;;  %v396_v20 = vmul.f32 %v3680_v53, %v3661_v28  ;;  %v990_v48 = vmul.f32 %v3694_v11, %v3699_v5  ;;  %v333_v29 = vld [vmem:[#allocation2 + $0x13d] sm:$0xff] }
  0xb6   : > { %v925_v6 = vadd.f32 %v3039_v26, %v905_v60  ;;  %v958_v8 = vadd.f32 %v950_v22, %v924_v16  ;;  %v365_v37 = vadd.f32 %v357_v54, %v345_v4  ;;  %v416_v55 = vmul.f32 %v3684_v35, %v2834_v13  ;;  %v3083_v54 = vld [vmem:[#allocation2 + $0xf9] sm:$0xff] }
  0xb7   : > { %1935 = vmatmul.mubr.bf16.vlgmr.msra.gmra.mxu0 %v1391_v63  ;;  %v417_v31 = vmul.f32 %v3684_v35, %v2836_v62  ;;  %v991_v47 = vmul.f32 %v3694_v11, %v2616_v7  ;;  %v384_v23 = vadd.f32 %v376_v17, %v364_v42  ;;  %v1010_v16 = vmul.f32 %v3697_v34, %v2616_v7 }
  0xb8   : > { %v959_v28 = vadd.f32 %v951_v25, %v925_v6  ;;  %v978_v53 = vadd.f32 %v970_v33, %v958_v8  ;;  %v385_v22 = vadd.f32 %v377_v30, %v365_v37  ;;  %v436_v5 = vmul.f32 %v3662_v10, %v2836_v62  ;;  %v2014_v30 = vld [vmem:[#allocation2 + $0x96] sm:$0xff] }
  0xb9   : > { %v1011_v13 = vmul.f32 %v3697_v34, %v2865_v19  ;;  %v1030_v35 = vmul.f32 %v3700_v27, %v2865_v19  ;;  %v404_v38 = vadd.f32 %v396_v20, %v384_v23  ;;  %v437_v25 = vmul.f32 %v3662_v10, %v332_v9  ;;  %v3091_v6 = vld [vmem:[#allocation2 + $0x111] sm:$0xff] }
  0xba   : > { %v979_v4 = vadd.f32 %v971_v24, %v959_v28  ;;  %v998_v0 = vadd.f32 %v990_v48, %v978_v53  ;;  %v405_v46 = vadd.f32 %v397_v51, %v385_v22  ;;  %v1031_v7 = vmul.f32 %v3700_v27, %v2875_v50 }
  0xbb   : > { %v1050_v33 = vmul.f32 %v3701_v3, %v2875_v50  ;;  %v424_v62 = vadd.f32 %v416_v55, %v404_v38  ;;  %v456_v60 = vmul.f32 %v3693_v59, %v332_v9  ;;  %v457_v24 = vmul.f32 %v3693_v59, %v333_v29  ;;  %v2015_v55 = vld [vmem:[#allocation2 + $0xae] sm:$0xff] }
  0xbc   : > { %v999_v14 = vadd.f32 %v991_v47, %v979_v4  ;;  %v1018_v17 = vadd.f32 %v1010_v16, %v998_v0  ;;  %v425_v63 = vadd.f32 %v417_v31, %v405_v46  ;;  %v1051_v51 = vmul.f32 %v3701_v3, %v3083_v54  ;;  %v3753_v0 = vld [vmem:[#allocation76_spill] sm:$0xff] }
  0xbd   : > { %v1070_v10 = vmul.f32 %v3702_v36, %v3083_v54  ;;  %v444_v42 = vadd.f32 %v436_v5, %v424_v62  ;;  %v490_v20 = vmul.f32 %v2014_v30, %v3695_v58  ;;  %v491_v31 = vmul.f32 %v2015_v55, %v3695_v58 }
  0xbe   : > { %v1019_v8 = vadd.f32 %v1011_v13, %v999_v14  ;;  %v1038_v48 = vadd.f32 %v1030_v35, %v1018_v17  ;;  %v445_v37 = vadd.f32 %v437_v25, %v425_v63  ;;  %v1071_v59 = vmul.f32 %v3702_v36, %v3091_v6  ;;  %v3752_v35 = vld [vmem:[#allocation19_spill] sm:$0xff] }
  0xbf   : > { %v1104_v47 = vmul.f32 %v2405_v49, %v3708_v15  ;;  %v464_v9 = vadd.f32 %v456_v60, %v444_v42  ;;  %v510_v23 = vmul.f32 %v2015_v55, %v3696_v12  ;;  %v511_v22 = vmul.f32 %v3696_v12, %v2644_v18  ;;  %v3754_v25 = vld [vmem:[#allocation71_spill] sm:$0xff]  ;;  %v3756_v12 = vld [vmem:[#allocation78_spill] sm:$0xff]  ;;  %v3759_v42 = vld [vmem:[#allocation13_spill] sm:$0xff] }
  0xc0   : > { %v1039_v28 = vadd.f32 %v1031_v7, %v1019_v8  ;;  %v1058_v53 = vadd.f32 %v1050_v33, %v1038_v48  ;;  %v465_v16 = vadd.f32 %v457_v24, %v445_v37  ;;  %v1105_v5 = vmul.f32 %v2405_v49, %v3710_v2  ;;  %v3755_v7 = vld [vmem:[#allocation20_spill] sm:$0xff]  ;;  %v478_v48 = vld [vmem:[#allocation2 + $0x126] sm:$0xff] }
  0xc1   : > { %v1124_v58 = vmul.f32 %v3705_v43, %v3710_v2  ;;  %v498_v13 = vadd.f32 %v490_v20, %v464_v9  ;;  %v530_v29 = vmul.f32 %v3752_v35, %v2644_v18  ;;  %v531_v46 = vmul.f32 %v3752_v35, %v3753_v0  ;;  %v3757_v18 = vld [vmem:[#allocation42_spill] sm:$0xff]  ;;  %v3760_v20 = vld [vmem:[#allocation79_spill] sm:$0xff] }
  0xc2   : > { %v1059_v15 = vadd.f32 %v1051_v51, %v1039_v28  ;;  %v1078_v38 = vadd.f32 %v1070_v10, %v1058_v53  ;;  %v499_v4 = vadd.f32 %v491_v31, %v465_v16  ;;  %v551_v33 = vmul.f32 %v3755_v7, %v3754_v25  ;;  %v3758_v51 = vld [vmem:[#allocation21_spill] sm:$0xff]  ;;  %v3763_v16 = vld [vmem:[#allocation44_spill] sm:$0xff] }
  0xc3   : > { %v1125_v62 = vmul.f32 %v3705_v43, %v3756_v12  ;;  %v518_v60 = vadd.f32 %v510_v23, %v498_v13  ;;  %v550_v2 = vmul.f32 %v3755_v7, %v3753_v0  ;;  %v1144_v63 = vmul.f32 %v3757_v18, %v3756_v12  ;;  %v3762_v23 = vld [vmem:[#allocation22_spill] sm:$0xff]  ;;  %v479_v13 = vld [vmem:[#allocation2 + $0x13e] sm:$0xff] }
  0xc4   : > { %v1079_v14 = vadd.f32 %v1071_v59, %v1059_v15  ;;  %v1112_v17 = vadd.f32 %v1104_v47, %v1078_v38  ;;  %v519_v24 = vadd.f32 %v511_v22, %v499_v4  ;;  %v570_v10 = vmul.f32 %v3758_v51, %v3754_v25  ;;  %v3761_v59 = vld [vmem:[#allocation43_spill] sm:$0xff]  ;;  %v3764_v4 = vld [vmem:[#allocation45_spill] sm:$0xff] }
  0xc5   : > { %v571_v30 = vmul.f32 %v3758_v51, %v3759_v42  ;;  %v1145_v8 = vmul.f32 %v3757_v18, %v3760_v20  ;;  %v538_v37 = vadd.f32 %v530_v29, %v518_v60  ;;  %v1164_v47 = vmul.f32 %v3761_v59, %v3760_v20  ;;  %v3765_v25 = vld [vmem:[#allocation23_spill] sm:$0xff]  ;;  %v3137_v12 = vld [vmem:[#allocation2 + $0xfa] sm:$0xff] }
  0xc6   : > { %v1113_v55 = vadd.f32 %v1105_v5, %v1079_v14  ;;  %v1132_v31 = vadd.f32 %v1124_v58, %v1112_v17  ;;  %v539_v9 = vadd.f32 %v531_v46, %v519_v24  ;;  %v590_v28 = vmul.f32 %v3762_v23, %v3759_v42  ;;  %v2016_v51 = vld [vmem:[#allocation2 + $0x97] sm:$0xff] }
  0xc7   : > { %v1165_v53 = vmul.f32 %v3761_v59, %v2932_v21  ;;  %v1184_v22 = vmul.f32 %v3763_v16, %v2932_v21  ;;  %v558_v35 = vadd.f32 %v550_v2, %v538_v37  ;;  %v591_v5 = vmul.f32 %v3762_v23, %v478_v48  ;;  %v3766_v2 = vld [vmem:[#allocation49_spill] sm:$0xff]  ;;  %v3767_v42 = vld [vmem:[#allocation24_spill] sm:$0xff] }
  0xc8   : > { %v1133_v15 = vadd.f32 %v1125_v62, %v1113_v55  ;;  %v1152_v38 = vadd.f32 %v1144_v63, %v1132_v31  ;;  %v559_v29 = vadd.f32 %v551_v33, %v539_v9  ;;  %v1185_v58 = vmul.f32 %v3763_v16, %v2942_v56  ;;  %v3769_v9 = vld [vmem:[#allocation55_spill] sm:$0xff] }
  0xc9   : > { %v1204_v0 = vmul.f32 %v3764_v4, %v2942_v56  ;;  %v578_v46 = vadd.f32 %v570_v10, %v558_v35  ;;  %v610_v7 = vmul.f32 %v3765_v25, %v478_v48  ;;  %v611_v62 = vmul.f32 %v3765_v25, %v479_v13  ;;  %v3145_v10 = vld [vmem:[#allocation2 + $0x112] sm:$0xff]  ;;  %v3770_v35 = vld [vmem:[#allocation25_spill] sm:$0xff] }
  0xca   : > { %v1153_v60 = vadd.f32 %v1145_v8, %v1133_v15  ;;  %v1172_v14 = vadd.f32 %v1164_v47, %v1152_v38  ;;  %v579_v17 = vadd.f32 %v571_v30, %v559_v29  ;;  %v1205_v33 = vmul.f32 %v3764_v4, %v3137_v12  ;;  %v2017_v8 = vld [vmem:[#allocation2 + $0xaf] sm:$0xff]  ;;  %v3768_v47 = vld [vmem:[#allocation81_spill] sm:$0xff]  ;;  %v3773_v25 = vld [vmem:[#allocation56_spill] sm:$0xff] }
  0xcb   : > { %v1224_v63 = vmul.f32 %v3766_v2, %v3137_v12  ;;  %v598_v24 = vadd.f32 %v590_v28, %v578_v46  ;;  %v644_v20 = vmul.f32 %v2016_v51, %v3767_v42  ;;  %v645_v30 = vmul.f32 %v2017_v8, %v3767_v42  ;;  %v3771_v46 = vld [vmem:[#allocation82_spill] sm:$0xff] }
  0xcc   : > { %v1173_v48 = vadd.f32 %v1165_v53, %v1153_v60  ;;  %v1192_v37 = vadd.f32 %v1184_v22, %v1172_v14  ;;  %v599_v55 = vadd.f32 %v591_v5, %v579_v17  ;;  %v1225_v31 = vmul.f32 %v3766_v2, %v3145_v10  ;;  %v3772_v22 = vld [vmem:[#allocation83_spill] sm:$0xff]  ;;  %v3774_v17 = vld [vmem:[#allocation26_spill] sm:$0xff] }
  0xcd   : > { %v1258_v23 = vmul.f32 %v3769_v9, %v3768_v47  ;;  %v618_v13 = vadd.f32 %v610_v7, %v598_v24  ;;  %v664_v28 = vmul.f32 %v2017_v8, %v3770_v35  ;;  %v665_v53 = vmul.f32 %v3770_v35, %v3771_v46  ;;  %v3775_v8 = vld [vmem:[#allocation84_spill] sm:$0xff]  ;;  %v3778_v47 = vld [vmem:[#allocation27_spill] sm:$0xff] }
  0xce   : > { %v1193_v15 = vadd.f32 %v1185_v58, %v1173_v48  ;;  %v1212_v38 = vadd.f32 %v1204_v0, %v1192_v37  ;;  %v619_v29 = vadd.f32 %v611_v62, %v599_v55  ;;  %v1259_v5 = vmul.f32 %v3769_v9, %v3772_v22  ;;  %v3776_v0 = vld [vmem:[#allocation85_spill] sm:$0xff] }
  0xcf   : > { %v1278_v60 = vmul.f32 %v3773_v25, %v3772_v22  ;;  %v652_v14 = vadd.f32 %v644_v20, %v618_v13  ;;  %v684_v51 = vmul.f32 %v3774_v17, %v3771_v46  ;;  %v685_v58 = vmul.f32 %v3774_v17, %v3775_v8  ;;  %v3777_v48 = vld [vmem:[#allocation57_spill] sm:$0xff]  ;;  %v3779_v46 = vld [vmem:[#allocation3_spill] sm:$0xff]  ;;  %v3781_v17 = vld [vmem:[#allocation28_spill] sm:$0xff] }
  0xd0   : > { %v1213_v42 = vadd.f32 %v1205_v33, %v1193_v15  ;;  %v1232_v7 = vadd.f32 %v1224_v63, %v1212_v38  ;;  %v653_v24 = vadd.f32 %v645_v30, %v619_v29  ;;  %v1279_v62 = vmul.f32 %v3773_v25, %v3776_v0  ;;  %v3780_v30 = vld [vmem:[#allocation58_spill] sm:$0xff] }
  0xd1   : > { %v1298_v37 = vmul.f32 %v3777_v48, %v3776_v0  ;;  %v672_v55 = vadd.f32 %v664_v28, %v652_v14  ;;  %v704_v35 = vmul.f32 %v3778_v47, %v3775_v8  ;;  %v705_v33 = vmul.f32 %v3778_v47, %v3779_v46  ;;  %v632_v38 = vld [vmem:[#allocation2 + $0x127] sm:$0xff] }
  0xd2   : > { %v1233_v20 = vadd.f32 %v1225_v31, %v1213_v42  ;;  %v1266_v13 = vadd.f32 %v1258_v23, %v1232_v7  ;;  %v673_v22 = vadd.f32 %v665_v53, %v653_v24  ;;  %v1299_v63 = vmul.f32 %v3777_v48, %v3742_v44  ;;  %v3782_v31 = vld [vmem:[#allocation4_spill] sm:$0xff]  ;;  %v3783_v42 = vld [vmem:[#allocation63_spill] sm:$0xff] }
  0xd3   : > { %v1318_v15 = vmul.f32 %v3780_v30, %v3742_v44  ;;  %v692_v29 = vadd.f32 %v684_v51, %v672_v55  ;;  %v724_v28 = vmul.f32 %v3781_v17, %v3779_v46  ;;  %v725_v23 = vmul.f32 %v3781_v17, %v3782_v31  ;;  %v633_v24 = vld [vmem:[#allocation2 + $0x13f] sm:$0xff]  ;;  %v3784_v44 = vld [vmem:[#allocation30_spill] sm:$0xff] }
  0xd4   : > { %v1267_v14 = vadd.f32 %v1259_v5, %v1233_v20  ;;  %v1286_v0 = vadd.f32 %v1278_v60, %v1266_v13  ;;  %v693_v8 = vadd.f32 %v685_v58, %v673_v22  ;;  %v1319_v53 = vmul.f32 %v3780_v30, %v2993_v32  ;;  %v3785_v13 = vld [vmem:[#allocation33_spill] sm:$0xff] }
  0xd5   : > { %v1338_v7 = vmul.f32 %v3783_v42, %v2993_v32  ;;  %v712_v47 = vadd.f32 %v704_v35, %v692_v29  ;;  %v744_v51 = vmul.f32 %v3784_v44, %v3782_v31  ;;  %v745_v5 = vmul.f32 %v3784_v44, %v632_v38  ;;  %v3191_v17 = vld [vmem:[#allocation2 + $0xfb] sm:$0xff] }
  0xd6   : > { %v1287_v55 = vadd.f32 %v1279_v62, %v1267_v14  ;;  %v1306_v48 = vadd.f32 %v1298_v37, %v1286_v0  ;;  %v713_v46 = vadd.f32 %v705_v33, %v693_v8  ;;  %v1339_v60 = vmul.f32 %v3783_v42, %v3005_v45  ;;  %v3786_v0 = vld [vmem:[#allocation34_spill] sm:$0xff] }
  0xd7   : > { %v1358_v58 = vmul.f32 %v3745_v40, %v3005_v45  ;;  %v732_v20 = vadd.f32 %v724_v28, %v712_v47  ;;  %v764_v22 = vmul.f32 %v3785_v13, %v632_v38  ;;  %v765_v62 = vmul.f32 %v3785_v13, %v633_v24  ;;  %v3787_v8 = vld [vmem:[#allocation6_spill] sm:$0xff]  ;;  %v3200_v28 = vld [vmem:[#allocation2 + $0x113] sm:$0xff]  ;;  %v3789_v24 = vld [vmem:[#allocation37_spill] sm:$0xff] }
  0xd8   : > { %v1307_v35 = vadd.f32 %v1299_v63, %v1287_v55  ;;  %v1326_v29 = vadd.f32 %v1318_v15, %v1306_v48  ;;  %v733_v30 = vadd.f32 %v725_v23, %v713_v46  ;;  %v1359_v37 = vmul.f32 %v3745_v40, %v3191_v17  ;;  %v3788_v48 = vld [vmem:[#allocation7_spill] sm:$0xff]  ;;  %v3208_v13 = vld [vmem:[#allocation2 + $0xc8] sm:$0xff] }
  0xd9   : > { %v1378_v33 = vmul.f32 %v3747_v61, %v3191_v17  ;;  %v752_v14 = vadd.f32 %v744_v51, %v732_v20  ;;  %v798_v31 = vmul.f32 %v3787_v8, %v3786_v0  ;;  %v799_v63 = vmul.f32 %v3788_v48, %v3786_v0  ;;  %v3214_v8 = vld [vmem:[#allocation2 + $0xe0] sm:$0xff] }
  0xda   : > { %v1327_v38 = vadd.f32 %v1319_v53, %v1307_v35  ;;  %v1346_v47 = vadd.f32 %v1338_v7, %v1326_v29  ;;  %v753_v44 = vadd.f32 %v745_v5, %v733_v30  ;;  %v1379_v15 = vmul.f32 %v3747_v61, %v3200_v28  ;;  %v3790_v30 = vld [vmem:[#allocation38_spill] sm:$0xff] }
  0xdb   : > { %v772_v23 = vadd.f32 %v764_v22, %v752_v14  ;;  %v818_v55 = vmul.f32 %v3788_v48, %v3789_v24  ;;  %v819_v53 = vmul.f32 %v3208_v13, %v3789_v24  ;;  %v838_v5 = vmul.f32 %v3208_v13, %v3790_v30 }
  0xdc   : > { %v1347_v46 = vadd.f32 %v1339_v60, %v1327_v38  ;;  %v1366_v51 = vadd.f32 %v1358_v58, %v1346_v47  ;;  %v773_v20 = vadd.f32 %v765_v62, %v753_v44  ;;  %v839_v22 = vmul.f32 %v3214_v8, %v3790_v30  ;;  %v2021_v30 = vld [vmem:[#allocation2 + $0xb1] sm:$0xff] }
  0xdd   : > { %v806_v7 = vadd.f32 %v798_v31, %v772_v23  ;;  %v858_v58 = vmul.f32 %v3214_v8, %v3744_v52  ;;  %v859_v31 = vmul.f32 %v2798_v57, %v3744_v52  ;;  %v879_v44 = vmul.f32 %v3035_v41, %v3746_v1  ;;  %v3791_v23 = vld [vmem:[#allocation50_spill] sm:$0xff] }
  0xde   : > { %v1367_v35 = vadd.f32 %v1359_v37, %v1347_v46  ;;  %v1386_v29 = vadd.f32 %v1378_v33, %v1366_v51  ;;  %v807_v0 = vadd.f32 %v799_v63, %v773_v20  ;;  %v878_v37 = vmul.f32 %v2798_v57, %v3746_v1  ;;  %v2020_v20 = vld [vmem:[#allocation2 + $0x99] sm:$0xff]  ;;  %v3792_v52 = vld [vmem:[#allocation54_spill] sm:$0xff] }
  0xdf   : > { %v826_v60 = vadd.f32 %v818_v55, %v806_v7  ;;  %v898_v24 = vmul.f32 %v3035_v41, %v3791_v23  ;;  %v953_v57 = vmul.f32 %v2021_v30, %v3792_v52  ;;  %v972_v1 = vmul.f32 %v2021_v30, %v3691_v39 }
  0xe0   : > { %v1387_v62 = vadd.f32 %v1379_v15, %v1367_v35  ;;  %v827_v14 = vadd.f32 %v819_v53, %v807_v0  ;;  %v952_v53 = vmul.f32 %v2020_v20, %v3792_v52  ;;  %v973_v41 = vmul.f32 %v3691_v39, %v2865_v19 }
  0xe1   : > { %v846_v38 = vadd.f32 %v838_v5, %v826_v60  ;;  %v992_v0 = vmul.f32 %v3694_v11, %v2865_v19  ;;  %v993_v60 = vmul.f32 %v3694_v11, %v2875_v50  ;;  %v1032_v39 = vmul.f32 %v3700_v27, %v3083_v54 }
  0xe2   : > { %v1392_v33 = vpack.c.bf16 %v1387_v62, %v1386_v29  ;;  %v847_v47 = vadd.f32 %v839_v22, %v827_v14  ;;  %v1012_v62 = vmul.f32 %v3697_v34, %v2875_v50  ;;  %v1033_v19 = vmul.f32 %v3700_v27, %v3091_v6  ;;  %v2023_v27 = vld [vmem:[#allocation2 + $0xb2] sm:$0xff] }
  0xe3   : > { %v866_v63 = vadd.f32 %v858_v58, %v846_v38  ;;  %v1052_v11 = vmul.f32 %v3701_v3, %v3091_v6  ;;  %v1126_v6 = vmul.f32 %v2023_v27, %v3705_v43  ;;  %v1147_v30 = vmul.f32 %v3757_v18, %v2942_v56 }
  0xe4   : > { %1938 = vmatprep.mubr.bf16.mxu0 %v1392_v33  ;;  %v867_v55 = vadd.f32 %v859_v31, %v847_v47  ;;  %v1013_v31 = vmul.f32 %v3697_v34, %v3083_v54  ;;  %v941_v33 = vld [vmem:[#allocation2 + $0x141] sm:$0xff] }
  0xe5   : > { %v886_v15 = vadd.f32 %v878_v37, %v866_v63  ;;  %v2022_v54 = vld [vmem:[#allocation2 + $0x9a] sm:$0xff] }
  0xe6   : > { %v887_v46 = vadd.f32 %v879_v44, %v867_v55 }
  0xe7   : > { %v906_v51 = vadd.f32 %v898_v24, %v886_v15  ;;  %v1106_v15 = vmul.f32 %v2022_v54, %v2405_v49 }
  0xe8   : > { %v907_v7 = vadd.f32 %v898_v24, %v887_v46  ;;  %v1073_v24 = vmul.f32 %v3702_v36, %v941_v33 }
  0xe9   : > { %v926_v5 = vadd.f32 %v3039_v26, %v906_v51  ;;  %v1107_v51 = vmul.f32 %v2023_v27, %v2405_v49  ;;  %v1360_v27 = vmul.f32 %v3745_v40, %v3200_v28 }
  0xea   : > { %v927_v35 = vadd.f32 %v3039_v26, %v907_v7  ;;  %v940_v26 = vld [vmem:[#allocation2 + $0x129] sm:$0xff]  ;;  %v1146_v7 = vmul.f32 %v3757_v18, %v2932_v21  ;;  %v1206_v18 = vmul.f32 %v3764_v4, %v3145_v10 }
  0xeb   : > { %v960_v29 = vadd.f32 %v952_v53, %v926_v5  ;;  %v1053_v50 = vmul.f32 %v3701_v3, %v940_v26  ;;  %v1072_v34 = vmul.f32 %v3702_v36, %v940_v26  ;;  %v1127_v3 = vmul.f32 %v3705_v43, %v2932_v21 }
  0xec   : > { %v961_v22 = vadd.f32 %v953_v57, %v927_v35  ;;  %v1166_v5 = vmul.f32 %v3761_v59, %v2942_v56  ;;  %v1094_v35 = vld [vmem:[#allocation2 + $0x12a] sm:$0xff]  ;;  %v1186_v43 = vmul.f32 %v3763_v16, %v3137_v12  ;;  %v1187_v21 = vmul.f32 %v3763_v16, %v3145_v10  ;;  %v2025_v16 = vld [vmem:[#allocation2 + $0xb3] sm:$0xff] }
  0xed   : > { %v980_v58 = vadd.f32 %v972_v1, %v960_v29  ;;  %v1167_v1 = vmul.f32 %v3761_v59, %v3137_v12  ;;  %v1207_v56 = vmul.f32 %v3764_v4, %v1094_v35  ;;  %v1226_v59 = vmul.f32 %v3766_v2, %v1094_v35  ;;  %v2024_v12 = vld [vmem:[#allocation2 + $0x9b] sm:$0xff] }
  0xee   : > { %v981_v14 = vadd.f32 %v973_v41, %v961_v22  ;;  %v1260_v26 = vmul.f32 %v2024_v12, %v3769_v9  ;;  %v1280_v10 = vmul.f32 %v2025_v16, %v3773_v25  ;;  %v1281_v4 = vmul.f32 %v3773_v25, %v2993_v32  ;;  %v3323_v35 = vld [vmem:[%s3353_s3] ss:$0 sm:$0xff] }
  0xef   : > { %v1000_v38 = vadd.f32 %v992_v0, %v980_v58  ;;  %v1095_v0 = vld [vmem:[#allocation2 + $0x142] sm:$0xff]  ;;  %v1340_v25 = vmul.f32 %v3783_v42, %v3191_v17 }
  0xf0   : > { %v1001_v37 = vadd.f32 %v993_v60, %v981_v14  ;;  %v1227_v14 = vmul.f32 %v3766_v2, %v1095_v0 }
  0xf1   : > { %v1020_v47 = vadd.f32 %v1012_v62, %v1000_v38 }
  0xf2   : > { %v1021_v44 = vadd.f32 %v1013_v31, %v1001_v37 }
  0xf3   : > { %v1040_v63 = vadd.f32 %v1032_v39, %v1020_v47  ;;  %v1261_v39 = vmul.f32 %v2025_v16, %v3769_v9  ;;  %v3793_v47 = vld [vmem:[#allocation57_spill] sm:$0xff] }
  0xf4   : > { %v1041_v23 = vadd.f32 %v1033_v19, %v1021_v44  ;;  %v1301_v44 = vmul.f32 %v3793_v47, %v3005_v45 }
  0xf5   : > { %v1060_v55 = vadd.f32 %v1052_v11, %v1040_v63  ;;  %v1300_v11 = vmul.f32 %v3793_v47, %v2993_v32  ;;  %v3794_v63 = vld [vmem:[#allocation58_spill] sm:$0xff]  ;;  %v1341_v32 = vmul.f32 %v3783_v42, %v3200_v28  ;;  %v1983_v42 = vld [vmem:[%s3354_s4 + $0x38] sm:$0xff]   ;;  %v1986_v28 = vld [vmem:[%s3354_s4 + $0x20] sm:$0xff]  }
  0xf6   : > { %v1061_v46 = vadd.f32 %v1053_v50, %v1041_v23  ;;  %v1321_v23 = vmul.f32 %v3794_v63, %v3191_v17  ;;  %1942 = vmatprep.subr.bf16.mxu1 %v1983_v42 }
  0xf7   : > { %v1080_v20 = vadd.f32 %v1072_v34, %v1060_v55  ;;  %v1320_v34 = vmul.f32 %v3794_v63, %v3005_v45  ;;  %1943 = vmatpush3.bf16.msra.mxu1 %v1983_v42 }
  0xf8   : > { %v1081_v52 = vadd.f32 %v1073_v24, %v1061_v46  ;;  %v1248_v24 = vld [vmem:[#allocation2 + $0x12b] sm:$0xff] }
  0xf9   : > { %v1114_v53 = vadd.f32 %v1106_v15, %v1080_v20  ;;  %v1249_v15 = vld [vmem:[#allocation2 + $0x143] sm:$0xff]  ;;  %v1361_v45 = vmul.f32 %v3745_v40, %v1248_v24  ;;  %v1984_v40 = vld [vmem:[%s3354_s4 + $0x30] sm:$0xff]  }
  0xfa   : > { %v1115_v36 = vadd.f32 %v1107_v51, %v1081_v52  ;;  %1944 = vmatprep.subr.bf16.mxu1 %v1984_v40 }
  0xfb   : > { %v1134_v57 = vadd.f32 %v1126_v6, %v1114_v53  ;;  %v1380_v6 = vmul.f32 %v3747_v61, %v1248_v24  ;;  %1945 = vmatpush3.bf16.msra.mxu1 %v1984_v40 }
  0xfc   : > { %v1135_v49 = vadd.f32 %v1127_v3, %v1115_v36  ;;  %v1381_v3 = vmul.f32 %v3747_v61, %v1249_v15  ;;  %v1985_v61 = vld [vmem:[%s3354_s4 + $0x28] sm:$0xff]  }
  0xfd   : > { %v1154_v41 = vadd.f32 %v1146_v7, %v1134_v57  ;;  %1946 = vmatprep.subr.bf16.mxu1 %v1985_v61  ;;  %v1987_v57 = vld [vmem:[%s3354_s4 + $0x18] sm:$0xff]  }
  0xfe   : > { %v1155_v29 = vadd.f32 %v1147_v30, %v1135_v49  ;;  %v1989_v49 = vld [vmem:[%s3354_s4 + $0x8] sm:$0xff]  }
  0xff   : > { %v1174_v22 = vadd.f32 %v1166_v5, %v1154_v41  ;;  %1947 = vmatpush3.bf16.msra.mxu1 %v1985_v61  ;;  %v1988_v5 = vld [vmem:[%s3354_s4 + $0x10] sm:$0xff]  }
 0x100   : > { %v1175_v60 = vadd.f32 %v1167_v1, %v1155_v29  ;;  %1948 = vmatprep.subr.bf16.mxu1 %v1986_v28  ;;  %v1990_v1 = vld [vmem:[%s3354_s4] sm:$0xff]  }
 0x101   : > { %v1194_v58 = vadd.f32 %v1186_v43, %v1174_v22 }
 0x102   : > { %v1195_v62 = vadd.f32 %v1187_v21, %v1175_v60 }
 0x103   : > { %v1214_v31 = vadd.f32 %v1206_v18, %v1194_v58  ;;  %1949 = vmatpush3.bf16.msra.mxu1 %v1986_v28 }
 0x104   : > { %v1215_v38 = vadd.f32 %v1207_v56, %v1195_v62  ;;  %1950 = vmatprep.subr.bf16.mxu1 %v1987_v57 }
 0x105   : > { %v1234_v37 = vadd.f32 %v1226_v59, %v1214_v31 }
 0x106   : > { %v1235_v19 = vadd.f32 %v1227_v14, %v1215_v38 }
 0x107   : > { %v1268_v33 = vadd.f32 %v1260_v26, %v1234_v37  ;;  %1951 = vmatpush3.bf16.msra.mxu1 %v1987_v57 }
 0x108   : > { %v1269_v2 = vadd.f32 %v1261_v39, %v1235_v19  ;;  %1952 = vmatprep.subr.bf16.mxu1 %v1988_v5 }
 0x109   : > { %v1288_v50 = vadd.f32 %v1280_v10, %v1268_v33 }
 0x10a   : > { %v1289_v9 = vadd.f32 %v1281_v4, %v1269_v2 }
 0x10b   : > { %v1308_v55 = vadd.f32 %v1300_v11, %v1288_v50  ;;  %1953 = vmatpush3.bf16.msra.mxu1 %v1988_v5 }
 0x10c   : > { %v1309_v54 = vadd.f32 %v1301_v44, %v1289_v9  ;;  %1954 = vmatprep.subr.bf16.mxu1 %v1989_v49 }
 0x10d   : > { %v1328_v46 = vadd.f32 %v1320_v34, %v1308_v55 }
 0x10e   : > { %v1329_v51 = vadd.f32 %v1321_v23, %v1309_v54 }
 0x10f   : > { %v1348_v20 = vadd.f32 %v1340_v25, %v1328_v46  ;;  %1955 = vmatpush3.bf16.msra.mxu1 %v1989_v49 }
 0x110   : > { %v1349_v52 = vadd.f32 %v1341_v32, %v1329_v51  ;;  %1956 = vmatprep.subr.bf16.mxu1 %v1990_v1 }
 0x111   : > { %v1368_v53 = vadd.f32 %v1360_v27, %v1348_v20 }
 0x112   : > { %v1369_v17 = vadd.f32 %v1361_v45, %v1349_v52 }
 0x113   : > { %v1388_v7 = vadd.f32 %v1380_v6, %v1368_v53  ;;  %1957 = vmatpush3.bf16.msra.mxu1 %v1990_v1 }
 0x114   : > { %v1389_v36 = vadd.f32 %v1381_v3, %v1369_v17 }
 0x116   : > { %v1393_v30 = vpack.c.bf16 %v1389_v36, %v1388_v7 }
 0x118   : > { %1939 = vmatmul.mubr.bf16.gmra.mxu0 %v1393_v30 }
 0x177   : > { %v1936_v41 = vpop.f32.mrf.mxu0 }
 0x178   : > { %v1508_v43 = vadd.f32 %v1936_v41, %v3323_v35 }
 0x179   : > { %v1499_v29 = vpop.f32.mrf.mxu0 }
 0x17a   : > { %v1540_v21 = vmul.f32 0.044715, %v1508_v43  ;;  %v1500_v0 = vadd.f32 %v3323_v35, %v1499_v29  ;;  %v1532_v46 = vmul.f32 0.5, %v1508_v43 }
 0x17b   : > { %v1937_v22 = vpop.f32.mrf.mxu0 }
 0x17c   : > { %v1548_v18 = vmul.f32 %v1540_v21, %v1508_v43  ;;  %v1538_v60 = vmul.f32 0.044715, %v1500_v0  ;;  %v1511_v56 = vadd.f32 %v1937_v22, %v3323_v35  ;;  %v1530_v54 = vmul.f32 0.5, %v1500_v0 }
 0x17d   : > { %v1502_v58 = vpop.f32.mrf.mxu0 }
 0x17e   : > { %v1556_v59 = vmul.f32 %v1548_v18, %v1508_v43  ;;  %v1541_v62 = vmul.f32 0.044715, %v1511_v56  ;;  %v1503_v14 = vadd.f32 %v3323_v35, %v1502_v58  ;;  %v1546_v31 = vmul.f32 %v1538_v60, %v1500_v0 }
 0x17f   : > { %v1533_v55 = vmul.f32 0.5, %v1511_v56 }
 0x180   : > { %v1549_v12 = vmul.f32 %v1541_v62, %v1511_v56  ;;  %v1539_v26 = vmul.f32 0.044715, %v1503_v14  ;;  %v1554_v38 = vmul.f32 %v1546_v31, %v1500_v0  ;;  %v1564_v16 = vadd.f32 %v1556_v59, %v1508_v43 }
 0x181   : > { %v1531_v32 = vmul.f32 0.5, %v1503_v14 }
 0x182   : > { %v1557_v39 = vmul.f32 %v1549_v12, %v1511_v56  ;;  %v1547_v37 = vmul.f32 %v1539_v26, %v1503_v14  ;;  %v1562_v10 = vadd.f32 %v1554_v38, %v1500_v0  ;;  %v1572_v19 = vmul.f32 0.7978846, %v1564_v16 }
 0x184   : > { %v1555_v4 = vmul.f32 %v1547_v37, %v1503_v14  ;;  %v1570_v33 = vmul.f32 0.7978846, %v1562_v10  ;;  %v1565_v47 = vadd.f32 %v1557_v39, %v1511_v56 }
 0x186   : > { %v1563_v11 = vadd.f32 %v1555_v4, %v1503_v14  ;;  %1991 = vtanh.f32 %v1570_v33  ;;  %v1573_v2 = vmul.f32 0.7978846, %v1565_v47 }
 0x187   : > { %1993 = vtanh.f32 %v1572_v19 }
 0x188   : > { %v1571_v44 = vmul.f32 0.7978846, %v1563_v11  ;;  %1995 = vtanh.f32 %v1573_v2 }
 0x18a   : > { %1997 = vtanh.f32 %v1571_v44 }
 0x193   : > { %v1992_v50 = vpop.eup %1991 }
 0x194   : > { %v1994_v63 = vpop.eup %1993  ;;  %v1586_v9 = vadd.f32 1.0, %v1992_v50 }
 0x195   : > { %v1996_v34 = vpop.eup %1995  ;;  %v1588_v25 = vadd.f32 1.0, %v1994_v63 }
 0x196   : > { %v1589_v23 = vadd.f32 1.0, %v1996_v34  ;;  %v1594_v51 = vmul.f32 %v1586_v9, %v1530_v54 }
 0x197   : > { %v1998_v24 = vpop.eup %1997  ;;  %v1596_v20 = vmul.f32 %v1588_v25, %v1532_v46  ;;  %v3795_v46 = vld [vmem:[#allocation40_spill] sm:$0xff] }
 0x198   : > { %v1587_v15 = vadd.f32 1.0, %v1998_v24  ;;  %v1597_v27 = vmul.f32 %v1589_v23, %v1533_v55  ;;  %v1839_v23 = vld [vmem:[%s3355_s5] ss:$0 sm:$0xff] }
 0x19a   : > { %v1595_v45 = vmul.f32 %v1587_v15, %v1531_v32  ;;  %v1603_v52 = vpack.c.bf16 %v1597_v27, %v1596_v20 }
 0x19c   : > { %v1602_v6 = vpack.c.bf16 %v1595_v45, %v1594_v51  ;;  %v3796_v51 = vld [vmem:[#allocation6_spill] sm:$0xff] }
 0x19e   : > { %1958 = vmatprep.mubr.bf16.mxu1 %v1602_v6  ;;  %v2026_v6 = vld [vmem:[#allocation2 + $0x50] sm:$0xff] }
 0x19f   : > { %1959 = vmatmul.mubr.bf16.vlgmr.msra.gmra.mxu1 %v1603_v52 }
 0x1d8   : > { %v1940_v3 = vpop.f32.mrf.mxu0 }
 0x1d9   : > { %v1524_v53 = vadd.f32 %v1940_v3, %v3323_v35 }
 0x1da   : > { %v1515_v17 = vpop.f32.mrf.mxu0 }
 0x1db   : > { %v1544_v7 = vmul.f32 0.044715, %v1524_v53  ;;  %v1516_v36 = vadd.f32 %v3323_v35, %v1515_v17  ;;  %v1536_v47 = vmul.f32 0.5, %v1524_v53 }
 0x1dc   : > { %v1941_v30 = vpop.f32.mrf.mxu0 }
 0x1dd   : > { %v1552_v42 = vmul.f32 %v1544_v7, %v1524_v53  ;;  %v1542_v40 = vmul.f32 0.044715, %v1516_v36  ;;  %v1527_v61 = vadd.f32 %v1941_v30, %v3323_v35  ;;  %v1534_v19 = vmul.f32 0.5, %v1516_v36 }
 0x1de   : > { %v1518_v28 = vpop.f32.mrf.mxu0 }
 0x1df   : > { %v1560_v57 = vmul.f32 %v1552_v42, %v1524_v53  ;;  %v1550_v5 = vmul.f32 %v1542_v40, %v1516_v36  ;;  %v1545_v49 = vmul.f32 0.044715, %v1527_v61  ;;  %v1519_v1 = vadd.f32 %v3323_v35, %v1518_v28 }
 0x1e0   : > { %v1537_v37 = vmul.f32 0.5, %v1527_v61 }
 0x1e1   : > { %v1558_v41 = vmul.f32 %v1550_v5, %v1516_v36  ;;  %v1553_v43 = vmul.f32 %v1545_v49, %v1527_v61  ;;  %v1543_v29 = vmul.f32 0.044715, %v1519_v1  ;;  %v1568_v21 = vadd.f32 %v1560_v57, %v1524_v53  ;;  %v3797_v53 = vld [vmem:[#allocation5_spill] sm:$0xff]  ;;  %v2027_v49 = vld [vmem:[#allocation2 + $0xf8] sm:$0xff] }
 0x1e2   : > { %v1535_v4 = vmul.f32 0.5, %v1519_v1 }
 0x1e3   : > { %v1561_v0 = vmul.f32 %v1553_v43, %v1527_v61  ;;  %v1551_v22 = vmul.f32 %v1543_v29, %v1519_v1  ;;  %v1566_v18 = vadd.f32 %v1558_v41, %v1516_v36  ;;  %v1576_v60 = vmul.f32 0.7978846, %v1568_v21 }
 0x1e5   : > { %v1559_v56 = vmul.f32 %v1551_v22, %v1519_v1  ;;  %v1574_v58 = vmul.f32 0.7978846, %v1566_v18  ;;  %v1569_v59 = vadd.f32 %v1561_v0, %v1527_v61 }
 0x1e7   : > { %v1567_v62 = vadd.f32 %v1559_v56, %v1519_v1  ;;  %1999 = vtanh.f32 %v1574_v58  ;;  %v1577_v14 = vmul.f32 0.7978846, %v1569_v59 }
 0x1e8   : > { %2001 = vtanh.f32 %v1576_v60 }
 0x1e9   : > { %v1575_v31 = vmul.f32 0.7978846, %v1567_v62  ;;  %2003 = vtanh.f32 %v1577_v14 }
 0x1eb   : > { %2005 = vtanh.f32 %v1575_v31 }
 0x1f4   : > { %v2000_v12 = vpop.eup %1999 }
 0x1f5   : > { %v2002_v35 = vpop.eup %2001  ;;  %v1590_v38 = vadd.f32 1.0, %v2000_v12 }
 0x1f6   : > { %v2004_v26 = vpop.eup %2003  ;;  %v1592_v10 = vadd.f32 1.0, %v2002_v35 }
 0x1f7   : > { %v1593_v16 = vadd.f32 1.0, %v2004_v26  ;;  %v1598_v2 = vmul.f32 %v1590_v38, %v1534_v19 }
 0x1f8   : > { %v2006_v39 = vpop.eup %2005  ;;  %v1600_v50 = vmul.f32 %v1592_v10, %v1536_v47 }
 0x1f9   : > { %v1591_v33 = vadd.f32 1.0, %v2006_v39  ;;  %v1601_v11 = vmul.f32 %v1593_v16, %v1537_v37 }
 0x1fb   : > { %v1599_v44 = vmul.f32 %v1591_v33, %v1535_v4  ;;  %v1605_v34 = vpack.c.bf16 %v1601_v11, %v1600_v50 }
 0x1fd   : > { %v1604_v63 = vpack.c.bf16 %v1599_v44, %v1598_v2 }
 0x1ff   : > { %1962 = vmatprep.mubr.bf16.mxu1 %v1604_v63 }
 0x200   : > { %1963 = vmatmul.mubr.bf16.gmra.mxu1 %v1605_v34 }
 0x25f   : > { %v1960_v9 = vpop.f32.mrf.mxu1 }
 0x260   : > { %v1720_v55 = vadd.f32 %v1960_v9, %v1839_v23 }
 0x261   : > { %v1711_v24 = vpop.f32.mrf.mxu1 }
 0x262   : > { %v1712_v54 = vadd.f32 %v1839_v23, %v1711_v24  ;;  %v1744_v27 = vadd.f32 %v3795_v46, %v1720_v55 }
 0x263   : > { %v1961_v25 = vpop.f32.mrf.mxu1 }
 0x264   : > { %v1723_v32 = vadd.f32 %v1961_v25, %v1839_v23  ;;  %v1742_v52 = vadd.f32 %v2026_v6, %v1712_v54 }
 0x265   : > { %v1714_v15 = vpop.f32.mrf.mxu1 }
 0x266   : > { %v1745_v45 = vadd.f32 %v3796_v51, %v1723_v32  ;;  %v1715_v20 = vadd.f32 %v1839_v23, %v1714_v15 }
 0x268   : > { %v1876_v3 = vpack.c.bf16 %v1745_v45, %v1744_v27  ;;  %v1743_v17 = vadd.f32 %v3797_v53, %v1715_v20 }
 0x26a   : > { %1891 = vst [vmem:[%s251_s13 + $0x8] sm:$0xff] %v1876_v3   ;;  %v1871_v7 = vpack.c.bf16 %v1743_v17, %v1742_v52 }
 0x26c   : > { %1872 = vst [vmem:[%s251_s13] sm:$0xff] %v1871_v7  }
 0x2c0   : > { %v1964_v36 = vpop.f32.mrf.mxu1 }
 0x2c1   : > { %v1736_v42 = vadd.f32 %v1964_v36, %v1839_v23 }
 0x2c2   : > { %v1727_v30 = vpop.f32.mrf.mxu1 }
 0x2c3   : > { %v1728_v61 = vadd.f32 %v1839_v23, %v1727_v30  ;;  %v1748_v5 = vadd.f32 %v3214_v8, %v1736_v42 }
 0x2c4   : > { %v1965_v40 = vpop.f32.mrf.mxu1 }
 0x2c5   : > { %v1739_v28 = vadd.f32 %v1965_v40, %v1839_v23  ;;  %v1746_v43 = vadd.f32 %v3788_v48, %v1728_v61 }
 0x2c6   : > { %v1730_v57 = vpop.f32.mrf.mxu1 }
 0x2c7   : > { %v1749_v1 = vadd.f32 %v2027_v49, %v1739_v28  ;;  %v1731_v41 = vadd.f32 %v1839_v23, %v1730_v57 }
 0x2c9   : > { %v1886_v29 = vpack.c.bf16 %v1749_v1, %v1748_v5  ;;  %v1747_v21 = vadd.f32 %v3208_v13, %v1731_v41 }
 0x2cb   : > { %1893 = vst [vmem:[%s251_s13 + $0x18] sm:$0xff] %v1886_v29   ;;  %v1881_v0 = vpack.c.bf16 %v1747_v21, %v1746_v43 }
 0x2cd   : > { %1892 = vst [vmem:[%s251_s13 + $0x10] sm:$0xff] %v1881_v0  }
 0x2ce PF: > { %s16_s21 = sadd.s32 1, %s2034_s21  }
 0x2cf   : > { %p13_p4 = scmp.ge.s32.totalorder %s16_s21, 4  }
 0x2d1   :  { %15 = sbr.rel (!%p13_p4) target bundleno = 1 (0x1), region = 76 }

// kernel: mul.55
= control target key start
LH: loop header
LB: loop body
LE: loop exit
PB: predicated region body
PF: predicated region fallthrough
CT: control target
= control target key end

     0   :  { %s34_s0 = inlined_call_operand.vmem [shape: f32[16], index: 0, kind: input, shape index: {}]   ;;  %s35_s1 = inlined_call_operand.vmem [shape: f32[16], index: 1, kind: input, shape index: {}]   ;;  %s36_s2 = inlined_call_operand.vmem [shape: f32[16], index: 2, kind: output, shape index: {}]  }
   0x1   :  { %v3_v0 = vld [vmem:[%s34_s0] sm:$0x1] }
   0x2   :  { %v4_v1 = vld [vmem:[%s35_s1] sm:$0x1] }
   0x3   :  { %v7_v2 = vmul.f32 %v4_v1, %v3_v0 }
   0x5   :  { %9 = vst [vmem:[%s36_s2] sm:$0x1] %v7_v2 }

// kernel: convnext2d_forward.13
= control target key start
LH: loop header
LB: loop body
LE: loop exit
PB: predicated region body
PF: predicated region fallthrough
CT: control target
= control target key end

     0   :  { %s1440_s21 = smov 0   ;;  %s1816_s0 = inlined_call_operand.vmem [shape: bf16[2,4,4,128], index: 0, kind: input, shape index: {}]   ;;  %s1817_s1 = inlined_call_operand.vmem [shape: f32[7,7,128], index: 1, kind: input, shape index: {}]   ;;  %s1818_s2 = inlined_call_operand.vmem [shape: bf16[128,128], index: 2, kind: input, shape index: {}]   ;;  %s1819_s3 = inlined_call_operand.vmem [shape: f32[1,128], index: 3, kind: input, shape index: {}]   ;;  %s1820_s4 = inlined_call_operand.vmem [shape: bf16[128,128], index: 4, kind: input, shape index: {}]   ;;  %s1821_s5 = inlined_call_operand.vmem [shape: f32[1,128], index: 5, kind: input, shape index: {}]   ;;  %s1822_s6 = inlined_call_operand.vmem [shape: bf16[2,4,4,128], index: 6, kind: output, shape index: {}]  }
   0x1 LB: > { %s1273_s22 = sadd.s32 4294967295, %s1401_s21   ;;  %p1277_p0 = scmp.ge.s32.totalorder %s1401_s21, 1  ;;  %s1401_s21 = sphi %s1440_s21, %s16_s21  }
   0x2   : > { %p212_p1 = scmp.lt.s32.totalorder %s1401_s21, 3 }
   0x4   : > { %p213_p2 = pnand %p1277_p0, %p212_p1 }
   0x5   : > { %p242_p3 = scmp.lt.s32.totalorder (!%p213_p2), %s1273_s22, 1 }
   0x6   : > { %216 = sbr.rel (%p213_p2) target bundleno = 575 (0x23f), region = 44 }
   0xb   : > { %v1372_v0 = vld [vmem:[%s1818_s2 + $0x38] sm:$0xff]   ;;  %v304_v1 = vlaneseq  ;;  %v1403_v2 = vmov 0.0   ;;  %v1373_v3 = vld [vmem:[%s1818_s2 + $0x30] sm:$0xff]   ;;  %vm1404_vm0 = vmmov 0   ;;  %s1832_s22 = smov (!%p242_p3, %s1273_s22), 1  ;;  %v1374_v5 = vld [vmem:[%s1818_s2 + $0x28] sm:$0xff]  }
   0xc   : > { %1322 = vmatprep.subr.bf16.mxu0 %v1403_v2  ;;  %261 = vst [vmem:[#allocation2] sm:$0xff] %v1403_v2  ;;  %262 = vst [vmem:[#allocation2 + $0x8] sm:$0x7f] %v1403_v2  ;;  %1342 = vmatprep.subr.bf16.mxu1 %v1403_v2  ;;  %s1302_s29 = sshll.u32 %s1832_s22, 3  ;;  %v1375_v8 = vld [vmem:[%s1818_s2 + $0x20] sm:$0xff]   ;;  %v1376_v46 = vld [vmem:[%s1818_s2 + $0x18] sm:$0xff]  }
   0xd   : > { %263 = vst [vmem:[#allocation2 + $0x10] sm:$0xff] %v1403_v2  ;;  %264 = vst [vmem:[#allocation2 + $0x18] sm:$0x7f] %v1403_v2  ;;  %1323 = vmatpush3.bf16.msra.mxu0 %v1372_v0  ;;  %1338 = vmatprep.mubr.msk.bf16.mxu0 %vm1404_vm0, %v1403_v2  ;;  %v1480_v4 = vshrl.u32 %v304_v1, 7  ;;  %s246_s8 = scalar_lea.vmem %s1816_s0, %s1302_s29  ;;  %v1518_v16 = vld [vmem:[%s1817_s1] sm:$0x7f]  ;;  %s251_s17 = scalar_lea.vmem %s1822_s6, %s1302_s29 }
   0xe   : > { %265 = vst [vmem:[#allocation2 + $0x20] sm:$0xff] %v1403_v2  ;;  %266 = vst [vmem:[#allocation2 + $0x28] sm:$0x7f] %v1403_v2  ;;  %1324 = vmatprep.subr.bf16.mxu0 %v1403_v2  ;;  %1358 = vmatprep.mubr.msk.bf16.mxu1 %vm1404_vm0, %v1403_v2  ;;  %v1504_v9 = vld [vmem:[%s246_s8] sm:$0x3]  ;;  %v1377_v61 = vld [vmem:[%s1818_s2 + $0x10] sm:$0xff]  }
   0xf   : > { %268 = vst [vmem:[#allocation2 + $0x70] sm:$0xff] %v1403_v2  ;;  %269 = vst [vmem:[#allocation2 + $0x78] sm:$0x7f] %v1403_v2  ;;  %v306_v6 = vsub.s32 0, %v1480_v4  ;;  %v1499_v7 = vsub.s32 1, %v1480_v4  ;;  %v1826_v13 = vunpack.c.l.bf16 %v1504_v9 }
  0x10   : > { %270 = vst [vmem:[#allocation2 + $0x80] sm:$0xff] %v1403_v2  ;;  %271 = vst [vmem:[#allocation2 + $0x88] sm:$0x7f] %v1403_v2  ;;  %v1506_v10 = vld [vmem:[%s246_s8 + $0x2] sm:$0x3] }
  0x11   : > { %272 = vst [vmem:[#allocation2 + $0x90] sm:$0xff] %v1403_v2  ;;  %273 = vst [vmem:[#allocation2 + $0x98] sm:$0x7f] %v1403_v2  ;;  %1325 = vmatpush3.bf16.msra.mxu0 %v1373_v3  ;;  %v1508_v11 = vld [vmem:[%s246_s8 + $0x4] sm:$0x3]  ;;  %v1825_v14 = vunpack.c.l.bf16 %v1506_v10  ;;  %v307_v22 = vrot.slane %v1518_v16, %v306_v6  ;;  %v1545_v24 = vrot.slane %v1518_v16, %v1499_v7 }
  0x12   : > { %275 = vst [vmem:[#allocation2 + $0x30] sm:$0xff] %v1403_v2  ;;  %276 = vst [vmem:[#allocation2 + $0x40] sm:$0xff] %v1403_v2  ;;  %1326 = vmatprep.subr.bf16.mxu0 %v1403_v2  ;;  %v1510_v12 = vld [vmem:[%s246_s8 + $0x6] sm:$0x3]  ;;  %v1824_v15 = vunpack.c.l.bf16 %v1508_v11  ;;  %v1523_v17 = vld [vmem:[%s1817_s1 + $0x8] sm:$0x7f] }
  0x13   : > { %277 = vst [vmem:[#allocation2 + $0x50] sm:$0xff] %v1403_v2  ;;  %278 = vst [vmem:[#allocation2 + $0x60] sm:$0xff] %v1403_v2  ;;  %v1823_v18 = vunpack.c.l.bf16 %v1510_v12  ;;  %v1529_v19 = vld [vmem:[%s1817_s1 + $0x10] sm:$0x7f]  ;;  %v1534_v20 = vld [vmem:[%s1817_s1 + $0x18] sm:$0x7f]  ;;  %v315_v23 = vrot.slane %v1523_v17, %v306_v6  ;;  %v1573_v31 = vrot.slane %v1523_v17, %v1499_v7 }
  0x14   : > { %279 = vst [vmem:[#allocation2 + $0x3c] sm:$0x7] %v1403_v2  ;;  %280 = vst [vmem:[#allocation2 + $0x4c] sm:$0x7] %v1403_v2  ;;  %v1539_v21 = vld [vmem:[%s1817_s1 + $0x20] sm:$0x7f]  ;;  %v327_v28 = vrot.slane %v1529_v19, %v306_v6  ;;  %v1566_v29 = vrot.slane %v1534_v20, %v306_v6  ;;  %v1585_v38 = vrot.slane %v1529_v19, %v1499_v7 }
  0x15   : > { %281 = vst [vmem:[#allocation2 + $0x5c] sm:$0x7] %v1403_v2  ;;  %282 = vst [vmem:[#allocation2 + $0x6c] sm:$0x7] %v1403_v2  ;;  %1327 = vmatpush3.bf16.msra.mxu0 %v1374_v5  ;;  %v1557_v25 = vld [vmem:[%s1817_s1 + $0x28] sm:$0x7f]  ;;  %v1569_v30 = vrot.slane %v1539_v21, %v306_v6 }
  0x16   : > { %1328 = vmatprep.subr.bf16.mxu0 %v1403_v2  ;;  %283 = vst [vmem:[#allocation2 + $0x38] sm:$0xf] %v1826_v13  ;;  %284 = vst [vmem:[#allocation2 + $0x48] sm:$0xf] %v1825_v14  ;;  %v1562_v26 = vld [vmem:[%s1817_s1 + $0x30] sm:$0x7f]  ;;  %v1578_v36 = vrot.slane %v1557_v25, %v306_v6 }
  0x17   : > { %285 = vst [vmem:[#allocation2 + $0x58] sm:$0xf] %v1824_v15  ;;  %v294_v27 = vld [vmem:[#allocation2 + $0x5] sm:$0xf]  ;;  %286 = vst [vmem:[#allocation2 + $0x68] sm:$0xf] %v1823_v18  ;;  %v1581_v37 = vrot.slane %v1562_v26, %v306_v6 }
  0x18   : > { %v295_v32 = vld [vmem:[#allocation2 + $0x15] sm:$0xf]  ;;  %v296_v33 = vld [vmem:[#allocation2 + $0x25] sm:$0xf]  ;;  %v308_v35 = vmul.f32 %v307_v22, %v294_v27  ;;  %v1636_v27 = vrot.slane %v1539_v21, %v1499_v7 }
  0x19   : > { %v301_v34 = vld [vmem:[#allocation2 + $0x75] sm:$0xf]  ;;  %v302_v39 = vld [vmem:[#allocation2 + $0x85] sm:$0xf]  ;;  %v309_v41 = vmul.f32 %v307_v22, %v295_v32  ;;  %v310_v42 = vmul.f32 %v307_v22, %v296_v33  ;;  %v316_v43 = vmul.f32 %v315_v23, %v295_v32  ;;  %v317_v44 = vmul.f32 %v315_v23, %v296_v33  ;;  %1329 = vmatpush3.bf16.msra.mxu0 %v1375_v8 }
  0x1a   : > { %v303_v40 = vld [vmem:[#allocation2 + $0x95] sm:$0xf]  ;;  %v384_v45 = vld [vmem:[#allocation2 + $0x6] sm:$0xf]  ;;  %v328_v47 = vmul.f32 %v327_v28, %v296_v33  ;;  %v1591_v48 = vmul.f32 %v1569_v30, %v301_v34  ;;  %v1594_v49 = vmul.f32 %v1578_v36, %v301_v34  ;;  %v1597_v50 = vmul.f32 %v1578_v36, %v302_v39  ;;  %1330 = vmatprep.subr.bf16.mxu0 %v1403_v2 }
  0x1b   : > { %v385_v51 = vld [vmem:[#allocation2 + $0x16] sm:$0xf]  ;;  %v386_v52 = vld [vmem:[#allocation2 + $0x26] sm:$0xf]  ;;  %v320_v53 = vadd.f32 %v316_v43, %v308_v35  ;;  %v321_v54 = vadd.f32 %v317_v44, %v309_v41  ;;  %v1601_v55 = vmul.f32 %v1581_v37, %v301_v34  ;;  %v1604_v56 = vmul.f32 %v1581_v37, %v302_v39 }
  0x1c   : > { %v1607_v57 = vmul.f32 %v1581_v37, %v303_v40  ;;  %v1610_v58 = vmul.f32 %v1545_v24, %v384_v45  ;;  %v1613_v59 = vmul.f32 %v1545_v24, %v385_v51  ;;  %v1616_v60 = vmul.f32 %v1545_v24, %v386_v52 }
  0x1d   : > { %v332_v62 = vadd.f32 %v328_v47, %v320_v53  ;;  %v1622_v63 = vmul.f32 %v1573_v31, %v385_v51  ;;  %v1625_v0 = vmul.f32 %v1573_v31, %v386_v52  ;;  %v1628_v1 = vmul.f32 %v1585_v38, %v386_v52  ;;  %1331 = vmatpush3.bf16.msra.mxu0 %v1376_v46  ;;  %v297_v3 = vld [vmem:[#allocation2 + $0x35] sm:$0xf]  ;;  %v298_v5 = vld [vmem:[#allocation2 + $0x45] sm:$0xf] }
  0x1e   : > { %v299_v6 = vld [vmem:[#allocation2 + $0x55] sm:$0xf]  ;;  %v1632_v8 = vrot.slane %v1534_v20, %v1499_v7  ;;  %v1640_v32 = vrot.slane %v1557_v25, %v1499_v7  ;;  %v1644_v33 = vrot.slane %v1562_v26, %v1499_v7  ;;  %1332 = vmatprep.subr.bf16.mxu0 %v1403_v2  ;;  %v300_v34 = vld [vmem:[#allocation2 + $0x65] sm:$0xf]  ;;  %v311_v35 = vmul.f32 %v307_v22, %v297_v3 }
  0x1f   : > { %v318_v39 = vmul.f32 %v315_v23, %v297_v3  ;;  %v319_v40 = vmul.f32 %v315_v23, %v298_v5  ;;  %v329_v41 = vmul.f32 %v327_v28, %v297_v3  ;;  %v330_v43 = vmul.f32 %v327_v28, %v298_v5  ;;  %v1378_v7 = vld [vmem:[%s1818_s2 + $0x8] sm:$0xff]   ;;  %v389_v14 = vld [vmem:[#allocation2 + $0x56] sm:$0xf] }
  0x20   : > { %v331_v44 = vmul.f32 %v327_v28, %v299_v6  ;;  %v340_v45 = vmul.f32 %v1566_v29, %v297_v3  ;;  %v341_v46 = vmul.f32 %v1566_v29, %v298_v5  ;;  %v342_v53 = vmul.f32 %v1566_v29, %v299_v6  ;;  %v387_v3 = vld [vmem:[#allocation2 + $0x36] sm:$0xf] }
  0x21   : > { %v322_v47 = vadd.f32 %v318_v39, %v310_v42  ;;  %v323_v51 = vadd.f32 %v319_v40, %v311_v35  ;;  %v333_v52 = vadd.f32 %v329_v41, %v321_v54  ;;  %1333 = vmatpush3.bf16.msra.mxu0 %v1377_v61  ;;  %v343_v22 = vmul.f32 %v1566_v29, %v300_v34  ;;  %v388_v61 = vld [vmem:[#allocation2 + $0x46] sm:$0xf] }
  0x22   : > { %v344_v23 = vadd.f32 %v340_v45, %v332_v62  ;;  %v352_v18 = vmul.f32 %v1569_v30, %v298_v5  ;;  %v353_v28 = vmul.f32 %v1569_v30, %v299_v6  ;;  %1334 = vmatprep.subr.bf16.mxu0 %v1403_v2  ;;  %v354_v39 = vmul.f32 %v1569_v30, %v300_v34 }
  0x23   : > { %v334_v42 = vadd.f32 %v330_v43, %v322_v47  ;;  %v335_v35 = vadd.f32 %v331_v44, %v323_v51  ;;  %v345_v54 = vadd.f32 %v341_v46, %v333_v52  ;;  %v364_v41 = vmul.f32 %v1578_v36, %v299_v6  ;;  %v1379_v43 = vld [vmem:[%s1818_s2] sm:$0xff]  }
  0x24   : > { %v356_v40 = vadd.f32 %v352_v18, %v344_v23  ;;  %v365_v15 = vmul.f32 %v1578_v36, %v300_v34  ;;  %v376_v29 = vmul.f32 %v1581_v37, %v300_v34  ;;  %v401_v13 = vmul.f32 %v1545_v24, %v387_v3  ;;  %v390_v46 = vld [vmem:[#allocation2 + $0x66] sm:$0xf] }
  0x25   : > { %v346_v62 = vadd.f32 %v342_v53, %v334_v42  ;;  %v347_v5 = vadd.f32 %v343_v22, %v335_v35  ;;  %v357_v45 = vadd.f32 %v353_v28, %v345_v54  ;;  %1335 = vmatpush3.bf16.msra.mxu0 %v1378_v7  ;;  %v412_v18 = vmul.f32 %v1573_v31, %v387_v3  ;;  %v391_v22 = vld [vmem:[#allocation2 + $0x76] sm:$0xf]  ;;  %v392_v42 = vld [vmem:[#allocation2 + $0x86] sm:$0xf] }
  0x26   : > { %v368_v30 = vadd.f32 %v364_v41, %v356_v40  ;;  %v413_v6 = vmul.f32 %v1573_v31, %v388_v61  ;;  %v423_v36 = vmul.f32 %v1585_v38, %v387_v3  ;;  %1336 = vmatprep.subr.bf16.mxu0 %v1403_v2  ;;  %v424_v24 = vmul.f32 %v1585_v38, %v388_v61 }
  0x27   : > { %v358_v37 = vadd.f32 %v354_v39, %v346_v62  ;;  %v359_v34 = vadd.f32 %v1591_v48, %v347_v5  ;;  %v369_v44 = vadd.f32 %v365_v15, %v357_v45  ;;  %v425_v51 = vmul.f32 %v1585_v38, %v389_v14  ;;  %v393_v39 = vld [vmem:[#allocation2 + $0x96] sm:$0xf]  ;;  %v478_v45 = vld [vmem:[#allocation2 + $0x7] sm:$0xf] }
  0x28   : > { %v380_v47 = vadd.f32 %v376_v29, %v368_v30  ;;  %v434_v52 = vmul.f32 %v1632_v8, %v387_v3  ;;  %v435_v53 = vmul.f32 %v1632_v8, %v388_v61  ;;  %v436_v48 = vmul.f32 %v1632_v8, %v389_v14  ;;  %v481_v30 = vld [vmem:[#allocation2 + $0x37] sm:$0xf] }
  0x29   : > { %v370_v31 = vadd.f32 %v1594_v49, %v358_v37  ;;  %v371_v7 = vadd.f32 %v1597_v50, %v359_v34  ;;  %v381_v2 = vadd.f32 %v1601_v55, %v369_v44  ;;  %1337 = vmatpush3.bf16.msra.mxu0 %v1379_v43  ;;  %v437_v23 = vmul.f32 %v1632_v8, %v390_v46 }
  0x2a   : > { %v402_v15 = vadd.f32 %v1610_v58, %v380_v47  ;;  %v446_v38 = vmul.f32 %v1636_v27, %v388_v61  ;;  %v447_v28 = vmul.f32 %v1636_v27, %v389_v14  ;;  %v448_v55 = vmul.f32 %v1636_v27, %v390_v46 }
  0x2b   : > { %v382_v3 = vadd.f32 %v1604_v56, %v370_v31  ;;  %v383_v49 = vadd.f32 %v1607_v57, %v371_v7  ;;  %v403_v50 = vadd.f32 %v1613_v59, %v381_v2  ;;  %v449_v54 = vmul.f32 %v1636_v27, %v391_v22 }
  0x2c   : > { %v414_v35 = vadd.f32 %v1622_v63, %v402_v15  ;;  %v458_v58 = vmul.f32 %v1640_v32, %v389_v14  ;;  %v459_v8 = vmul.f32 %v1640_v32, %v390_v46  ;;  %v460_v57 = vmul.f32 %v1640_v32, %v391_v22 }
  0x2d   : > { %v404_v61 = vadd.f32 %v1616_v60, %v382_v3  ;;  %v405_v40 = vadd.f32 %v401_v13, %v383_v49  ;;  %v415_v56 = vadd.f32 %v1625_v0, %v403_v50  ;;  %v461_v41 = vmul.f32 %v1640_v32, %v392_v42  ;;  %v479_v60 = vld [vmem:[#allocation2 + $0x17] sm:$0xf]  ;;  %v480_v13 = vld [vmem:[#allocation2 + $0x27] sm:$0xf] }
  0x2e   : > { %v426_v59 = vadd.f32 %v1628_v1, %v414_v35  ;;  %v470_v63 = vmul.f32 %v1644_v33, %v390_v46  ;;  %v471_v27 = vmul.f32 %v1644_v33, %v391_v22  ;;  %v472_v5 = vmul.f32 %v1644_v33, %v392_v42  ;;  %v483_v50 = vld [vmem:[#allocation2 + $0x57] sm:$0xf] }
  0x2f   : > { %v416_v29 = vadd.f32 %v412_v18, %v404_v61  ;;  %v417_v14 = vadd.f32 %v413_v6, %v405_v40  ;;  %v427_v62 = vadd.f32 %v423_v36, %v415_v56  ;;  %v473_v0 = vmul.f32 %v1644_v33, %v393_v39  ;;  %v482_v36 = vld [vmem:[#allocation2 + $0x47] sm:$0xf] }
  0x30   : > { %v438_v43 = vadd.f32 %v434_v52, %v426_v59  ;;  %v490_v1 = vsub.s32 2, %v1480_v4  ;;  %v1701_v32 = vsub.s32 3, %v1480_v4  ;;  %v1704_v18 = vsub.s32 4, %v1480_v4 }
  0x31   : > { %v428_v37 = vadd.f32 %v424_v24, %v416_v29  ;;  %v429_v34 = vadd.f32 %v425_v51, %v417_v14  ;;  %v439_v44 = vadd.f32 %v435_v53, %v427_v62 }
  0x32   : > { %v450_v6 = vadd.f32 %v446_v38, %v438_v43  ;;  %v491_v46 = vrot.slane %v1518_v16, %v490_v1  ;;  %v503_v47 = vrot.slane %v1523_v17, %v490_v1  ;;  %v515_v33 = vrot.slane %v1529_v19, %v490_v1 }
  0x33   : > { %v440_v52 = vadd.f32 %v436_v48, %v428_v37  ;;  %v441_v31 = vadd.f32 %v437_v23, %v429_v34  ;;  %v451_v7 = vadd.f32 %v447_v28, %v439_v44  ;;  %v527_v2 = vrot.slane %v1534_v20, %v490_v1  ;;  %v484_v28 = vld [vmem:[#allocation2 + $0x67] sm:$0xf] }
  0x34   : > { %v462_v22 = vadd.f32 %v458_v58, %v450_v6  ;;  %v492_v24 = vmul.f32 %v491_v46, %v478_v45  ;;  %v493_v51 = vmul.f32 %v491_v46, %v479_v60  ;;  %v494_v53 = vmul.f32 %v491_v46, %v480_v13 }
  0x35   : > { %v452_v15 = vadd.f32 %v448_v55, %v440_v52  ;;  %v453_v3 = vadd.f32 %v449_v54, %v441_v31  ;;  %v463_v49 = vadd.f32 %v459_v8, %v451_v7  ;;  %v495_v38 = vmul.f32 %v491_v46, %v481_v30 }
  0x36   : > { %v474_v42 = vadd.f32 %v470_v63, %v462_v22  ;;  %v504_v35 = vmul.f32 %v503_v47, %v479_v60  ;;  %v505_v39 = vmul.f32 %v503_v47, %v480_v13  ;;  %v506_v61 = vmul.f32 %v503_v47, %v481_v30 }
  0x37   : > { %v464_v40 = vadd.f32 %v460_v57, %v452_v15  ;;  %v465_v56 = vadd.f32 %v461_v41, %v453_v3  ;;  %v475_v48 = vadd.f32 %v471_v27, %v463_v49  ;;  %v507_v23 = vmul.f32 %v503_v47, %v482_v36  ;;  %v485_v41 = vld [vmem:[#allocation2 + $0x77] sm:$0xf] }
  0x38   : > { %v496_v59 = vadd.f32 %v492_v24, %v474_v42  ;;  %v516_v29 = vmul.f32 %v515_v33, %v480_v13  ;;  %v517_v58 = vmul.f32 %v515_v33, %v481_v30  ;;  %v518_v14 = vmul.f32 %v515_v33, %v482_v36  ;;  %v487_v15 = vld [vmem:[#allocation2 + $0x97] sm:$0xf] }
  0x39   : > { %v476_v62 = vadd.f32 %v472_v5, %v464_v40  ;;  %v477_v45 = vadd.f32 %v473_v0, %v465_v56  ;;  %v497_v55 = vadd.f32 %v493_v51, %v475_v48  ;;  %v519_v54 = vmul.f32 %v515_v33, %v483_v50  ;;  %v486_v33 = vld [vmem:[#allocation2 + $0x87] sm:$0xf]  ;;  %v573_v56 = vld [vmem:[#allocation2 + $0x18] sm:$0xf] }
  0x3a   : > { %v508_v8 = vadd.f32 %v504_v35, %v496_v59  ;;  %v528_v43 = vmul.f32 %v527_v2, %v481_v30  ;;  %v529_v63 = vmul.f32 %v527_v2, %v482_v36  ;;  %v530_v37 = vmul.f32 %v527_v2, %v483_v50  ;;  %v572_v40 = vld [vmem:[#allocation2 + $0x8] sm:$0xf] }
  0x3b   : > { %v498_v60 = vadd.f32 %v494_v53, %v476_v62  ;;  %v499_v34 = vadd.f32 %v495_v38, %v477_v45  ;;  %v509_v44 = vadd.f32 %v505_v39, %v497_v55  ;;  %v531_v57 = vmul.f32 %v527_v2, %v484_v28  ;;  %v574_v48 = vld [vmem:[#allocation2 + $0x28] sm:$0xf] }
  0x3c   : > { %v520_v27 = vadd.f32 %v516_v29, %v508_v8  ;;  %v539_v6 = vrot.slane %v1539_v21, %v490_v1  ;;  %v551_v13 = vrot.slane %v1557_v25, %v490_v1  ;;  %v563_v46 = vrot.slane %v1562_v26, %v490_v1 }
  0x3d   : > { %v510_v5 = vadd.f32 %v506_v61, %v498_v60  ;;  %v511_v0 = vadd.f32 %v507_v23, %v499_v34  ;;  %v521_v47 = vadd.f32 %v517_v58, %v509_v44  ;;  %v585_v30 = vrot.slane %v1518_v16, %v1701_v32  ;;  %v575_v58 = vld [vmem:[#allocation2 + $0x38] sm:$0xf]  ;;  %v576_v34 = vld [vmem:[#allocation2 + $0x48] sm:$0xf] }
  0x3e   : > { %v532_v52 = vadd.f32 %v528_v43, %v520_v27  ;;  %v540_v31 = vmul.f32 %v539_v6, %v482_v36  ;;  %v541_v7 = vmul.f32 %v539_v6, %v483_v50  ;;  %v542_v22 = vmul.f32 %v539_v6, %v484_v28 }
  0x3f   : > { %v522_v2 = vadd.f32 %v518_v14, %v510_v5  ;;  %v523_v24 = vadd.f32 %v519_v54, %v511_v0  ;;  %v533_v51 = vadd.f32 %v529_v63, %v521_v47  ;;  %v543_v53 = vmul.f32 %v539_v6, %v485_v41 }
  0x40   : > { %v544_v3 = vadd.f32 %v540_v31, %v532_v52  ;;  %v552_v49 = vmul.f32 %v551_v13, %v483_v50  ;;  %v553_v38 = vmul.f32 %v551_v13, %v484_v28  ;;  %v554_v1 = vmul.f32 %v551_v13, %v485_v41  ;;  %v578_v31 = vld [vmem:[#allocation2 + $0x68] sm:$0xf] }
  0x41   : > { %v534_v42 = vadd.f32 %v530_v37, %v522_v2  ;;  %v535_v35 = vadd.f32 %v531_v57, %v523_v24  ;;  %v545_v39 = vadd.f32 %v541_v7, %v533_v51  ;;  %v555_v61 = vmul.f32 %v551_v13, %v486_v33 }
  0x42   : > { %v556_v23 = vadd.f32 %v552_v49, %v544_v3  ;;  %v564_v36 = vmul.f32 %v563_v46, %v484_v28  ;;  %v565_v59 = vmul.f32 %v563_v46, %v485_v41  ;;  %v566_v29 = vmul.f32 %v563_v46, %v486_v33  ;;  %v579_v49 = vld [vmem:[#allocation2 + $0x78] sm:$0xf] }
  0x43   : > { %v546_v14 = vadd.f32 %v542_v22, %v534_v42  ;;  %v547_v62 = vadd.f32 %v543_v53, %v535_v35  ;;  %v557_v45 = vadd.f32 %v553_v38, %v545_v39  ;;  %v567_v55 = vmul.f32 %v563_v46, %v487_v15  ;;  %v577_v46 = vld [vmem:[#allocation2 + $0x58] sm:$0xf] }
  0x44   : > { %v568_v54 = vadd.f32 %v564_v36, %v556_v23  ;;  %v586_v50 = vmul.f32 %v585_v30, %v572_v40  ;;  %v587_v8 = vmul.f32 %v585_v30, %v573_v56  ;;  %v588_v43 = vmul.f32 %v585_v30, %v574_v48 }
  0x45   : > { %v558_v63 = vadd.f32 %v554_v1, %v546_v14  ;;  %v559_v37 = vadd.f32 %v555_v61, %v547_v62  ;;  %v569_v60 = vadd.f32 %v565_v59, %v557_v45  ;;  %v589_v44 = vmul.f32 %v585_v30, %v575_v58 }
  0x46   : > { %v590_v57 = vadd.f32 %v586_v50, %v568_v54  ;;  %v597_v28 = vrot.slane %v1523_v17, %v1701_v32  ;;  %v609_v41 = vrot.slane %v1529_v19, %v1701_v32  ;;  %v621_v27 = vrot.slane %v1534_v20, %v1701_v32 }
  0x47   : > { %v570_v6 = vadd.f32 %v566_v29, %v558_v63  ;;  %v571_v13 = vadd.f32 %v567_v55, %v559_v37  ;;  %v591_v5 = vadd.f32 %v587_v8, %v569_v60  ;;  %v633_v0 = vrot.slane %v1539_v21, %v1701_v32  ;;  %v580_v55 = vld [vmem:[#allocation2 + $0x88] sm:$0xf] }
  0x48   : > { %v598_v47 = vmul.f32 %v597_v28, %v573_v56  ;;  %v599_v33 = vmul.f32 %v597_v28, %v574_v48  ;;  %v600_v30 = vmul.f32 %v597_v28, %v575_v58  ;;  %v601_v52 = vmul.f32 %v597_v28, %v576_v34 }
  0x49   : > { %v592_v7 = vadd.f32 %v588_v43, %v570_v6  ;;  %v593_v22 = vadd.f32 %v589_v44, %v571_v13  ;;  %v610_v2 = vmul.f32 %v609_v41, %v574_v48  ;;  %v611_v24 = vmul.f32 %v609_v41, %v575_v58  ;;  %v581_v43 = vld [vmem:[#allocation2 + $0x98] sm:$0xf] }
  0x4a   : > { %v602_v51 = vadd.f32 %v598_v47, %v590_v57  ;;  %v603_v53 = vadd.f32 %v599_v33, %v591_v5  ;;  %v612_v15 = vmul.f32 %v609_v41, %v576_v34  ;;  %v613_v3 = vmul.f32 %v609_v41, %v577_v46  ;;  %v667_v6 = vld [vmem:[#allocation2 + $0x19] sm:$0xf] }
  0x4b   : > { %v604_v38 = vadd.f32 %v600_v30, %v592_v7  ;;  %v605_v1 = vadd.f32 %v601_v52, %v593_v22  ;;  %v622_v42 = vmul.f32 %v621_v27, %v575_v58  ;;  %v623_v35 = vmul.f32 %v621_v27, %v576_v34  ;;  %v669_v33 = vld [vmem:[#allocation2 + $0x39] sm:$0xf] }
  0x4c   : > { %v614_v39 = vadd.f32 %v610_v2, %v602_v51  ;;  %v615_v61 = vadd.f32 %v611_v24, %v603_v53  ;;  %v624_v40 = vmul.f32 %v621_v27, %v577_v46  ;;  %v625_v56 = vmul.f32 %v621_v27, %v578_v31  ;;  %v666_v27 = vld [vmem:[#allocation2 + $0x9] sm:$0xf] }
  0x4d   : > { %v616_v23 = vadd.f32 %v612_v15, %v604_v38  ;;  %v617_v36 = vadd.f32 %v613_v3, %v605_v1  ;;  %v634_v59 = vmul.f32 %v633_v0, %v576_v34  ;;  %v635_v29 = vmul.f32 %v633_v0, %v577_v46  ;;  %v670_v51 = vld [vmem:[#allocation2 + $0x49] sm:$0xf] }
  0x4e   : > { %v626_v14 = vadd.f32 %v622_v42, %v614_v39  ;;  %v627_v48 = vadd.f32 %v623_v35, %v615_v61  ;;  %v636_v62 = vmul.f32 %v633_v0, %v578_v31  ;;  %v637_v45 = vmul.f32 %v633_v0, %v579_v49 }
  0x4f   : > { %v628_v54 = vadd.f32 %v624_v40, %v616_v23  ;;  %v629_v50 = vadd.f32 %v625_v56, %v617_v36  ;;  %v645_v8 = vrot.slane %v1557_v25, %v1701_v32  ;;  %v657_v58 = vrot.slane %v1562_v26, %v1701_v32  ;;  %v668_v32 = vld [vmem:[#allocation2 + $0x29] sm:$0xf]  ;;  %v671_v23 = vld [vmem:[#allocation2 + $0x59] sm:$0xf] }
  0x50   : > { %v638_v63 = vadd.f32 %v634_v59, %v626_v14  ;;  %v639_v37 = vadd.f32 %v635_v29, %v627_v48  ;;  %v679_v60 = vrot.slane %v1518_v16, %v1704_v18  ;;  %v691_v34 = vrot.slane %v1523_v17, %v1704_v18  ;;  %v672_v48 = vld [vmem:[#allocation2 + $0x69] sm:$0xf] }
  0x51   : > { %v640_v44 = vadd.f32 %v636_v62, %v628_v54  ;;  %v641_v57 = vadd.f32 %v637_v45, %v629_v50  ;;  %v646_v28 = vmul.f32 %v645_v8, %v577_v46  ;;  %v647_v41 = vmul.f32 %v645_v8, %v578_v31 }
  0x52   : > { %v648_v13 = vmul.f32 %v645_v8, %v579_v49  ;;  %v649_v5 = vmul.f32 %v645_v8, %v580_v55  ;;  %v658_v0 = vmul.f32 %v657_v58, %v578_v31  ;;  %v659_v47 = vmul.f32 %v657_v58, %v579_v49 }
  0x53   : > { %v650_v30 = vadd.f32 %v646_v28, %v638_v63  ;;  %v651_v52 = vadd.f32 %v647_v41, %v639_v37  ;;  %v660_v7 = vmul.f32 %v657_v58, %v580_v55  ;;  %v661_v22 = vmul.f32 %v657_v58, %v581_v43  ;;  %v673_v63 = vld [vmem:[#allocation2 + $0x79] sm:$0xf] }
  0x54   : > { %v652_v2 = vadd.f32 %v648_v13, %v640_v44  ;;  %v653_v24 = vadd.f32 %v649_v5, %v641_v57  ;;  %v680_v53 = vmul.f32 %v679_v60, %v666_v27  ;;  %v681_v15 = vmul.f32 %v679_v60, %v667_v6 }
  0x55   : > { %v662_v3 = vadd.f32 %v658_v0, %v650_v30  ;;  %v663_v46 = vadd.f32 %v659_v47, %v651_v52  ;;  %v682_v38 = vmul.f32 %v679_v60, %v668_v32  ;;  %v683_v1 = vmul.f32 %v679_v60, %v669_v33 }
  0x56   : > { %v664_v42 = vadd.f32 %v660_v7, %v652_v2  ;;  %v665_v35 = vadd.f32 %v661_v22, %v653_v24  ;;  %v692_v39 = vmul.f32 %v691_v34, %v667_v6  ;;  %v693_v31 = vmul.f32 %v691_v34, %v668_v32  ;;  %v674_v6 = vld [vmem:[#allocation2 + $0x89] sm:$0xf] }
  0x57   : > { %v684_v49 = vadd.f32 %v680_v53, %v662_v3  ;;  %v685_v61 = vadd.f32 %v681_v15, %v663_v46  ;;  %v694_v40 = vmul.f32 %v691_v34, %v669_v33  ;;  %v695_v56 = vmul.f32 %v691_v34, %v670_v51 }
  0x58   : > { %v686_v36 = vadd.f32 %v682_v38, %v664_v42  ;;  %v687_v59 = vadd.f32 %v683_v1, %v665_v35  ;;  %v703_v29 = vrot.slane %v1529_v19, %v1704_v18  ;;  %v715_v14 = vrot.slane %v1534_v20, %v1704_v18  ;;  %v675_v38 = vld [vmem:[#allocation2 + $0x99] sm:$0xf] }
  0x59   : > { %v696_v62 = vadd.f32 %v692_v39, %v684_v49  ;;  %v697_v45 = vadd.f32 %v693_v31, %v685_v61  ;;  %v727_v55 = vrot.slane %v1539_v21, %v1704_v18  ;;  %v739_v54 = vrot.slane %v1557_v25, %v1704_v18 }
  0x5a   : > { %v698_v50 = vadd.f32 %v694_v40, %v686_v36  ;;  %v699_v8 = vadd.f32 %v695_v56, %v687_v59  ;;  %v704_v58 = vmul.f32 %v703_v29, %v668_v32  ;;  %v705_v43 = vmul.f32 %v703_v29, %v669_v33  ;;  %v760_v36 = vld [vmem:[#allocation2 + $0xa] sm:$0xf]  ;;  %v761_v59 = vld [vmem:[#allocation2 + $0x1a] sm:$0xf] }
  0x5b   : > { %v706_v37 = vmul.f32 %v703_v29, %v670_v51  ;;  %v707_v60 = vmul.f32 %v703_v29, %v671_v23  ;;  %v716_v34 = vmul.f32 %v715_v14, %v669_v33  ;;  %v717_v44 = vmul.f32 %v715_v14, %v670_v51 }
  0x5c   : > { %v708_v57 = vadd.f32 %v704_v58, %v696_v62  ;;  %v709_v28 = vadd.f32 %v705_v43, %v697_v45  ;;  %v718_v41 = vmul.f32 %v715_v14, %v671_v23  ;;  %v719_v27 = vmul.f32 %v715_v14, %v672_v48  ;;  %v762_v62 = vld [vmem:[#allocation2 + $0x2a] sm:$0xf]  ;;  %v763_v45 = vld [vmem:[#allocation2 + $0x3a] sm:$0xf] }
  0x5d   : > { %v710_v13 = vadd.f32 %v706_v37, %v698_v50  ;;  %v711_v5 = vadd.f32 %v707_v60, %v699_v8  ;;  %v728_v0 = vmul.f32 %v727_v55, %v670_v51  ;;  %v729_v47 = vmul.f32 %v727_v55, %v671_v23  ;;  %v764_v8 = vld [vmem:[#allocation2 + $0x4a] sm:$0xf]  ;;  %v765_v60 = vld [vmem:[#allocation2 + $0x5a] sm:$0xf] }
  0x5e   : > { %v720_v30 = vadd.f32 %v716_v34, %v708_v57  ;;  %v721_v52 = vadd.f32 %v717_v44, %v709_v28  ;;  %v730_v7 = vmul.f32 %v727_v55, %v672_v48  ;;  %v731_v22 = vmul.f32 %v727_v55, %v673_v63 }
  0x5f   : > { %v722_v32 = vadd.f32 %v718_v41, %v710_v13  ;;  %v723_v2 = vadd.f32 %v719_v27, %v711_v5  ;;  %v740_v24 = vmul.f32 %v739_v54, %v671_v23  ;;  %v741_v53 = vmul.f32 %v739_v54, %v672_v48  ;;  %v766_v5 = vld [vmem:[#allocation2 + $0x6a] sm:$0xf] }
  0x60   : > { %v732_v15 = vadd.f32 %v728_v0, %v720_v30  ;;  %v733_v33 = vadd.f32 %v729_v47, %v721_v52  ;;  %v742_v3 = vmul.f32 %v739_v54, %v673_v63  ;;  %v743_v46 = vmul.f32 %v739_v54, %v674_v6 }
  0x61   : > { %v734_v1 = vadd.f32 %v730_v7, %v722_v32  ;;  %v735_v42 = vadd.f32 %v731_v22, %v723_v2  ;;  %v751_v35 = vrot.slane %v1562_v26, %v1704_v18  ;;  %v772_v51 = vsub.s32 5, %v1480_v4 }
  0x62   : > { %v744_v39 = vadd.f32 %v740_v24, %v732_v15  ;;  %v745_v31 = vadd.f32 %v741_v53, %v733_v33  ;;  %v1743_v49 = vsub.s32 6, %v1480_v4 }
  0x63   : > { %v746_v61 = vadd.f32 %v742_v3, %v734_v1  ;;  %v747_v40 = vadd.f32 %v743_v46, %v735_v42  ;;  %v752_v56 = vmul.f32 %v751_v35, %v672_v48  ;;  %v753_v23 = vmul.f32 %v751_v35, %v673_v63  ;;  %v767_v42 = vld [vmem:[#allocation2 + $0x7a] sm:$0xf] }
  0x64   : > { %v754_v29 = vmul.f32 %v751_v35, %v674_v6  ;;  %v755_v14 = vmul.f32 %v751_v35, %v675_v38  ;;  %v773_v55 = vrot.slane %v1518_v16, %v772_v51  ;;  %v785_v18 = vrot.slane %v1523_v17, %v772_v51 }
  0x65   : > { %v756_v54 = vadd.f32 %v752_v56, %v744_v39  ;;  %v757_v50 = vadd.f32 %v753_v23, %v745_v31  ;;  %v797_v4 = vrot.slane %v1529_v19, %v772_v51  ;;  %v809_v58 = vrot.slane %v1534_v20, %v772_v51 }
  0x66   : > { %v758_v43 = vadd.f32 %v754_v29, %v746_v61  ;;  %v759_v48 = vadd.f32 %v755_v14, %v747_v40  ;;  %v774_v63 = vmul.f32 %v773_v55, %v760_v36  ;;  %v775_v37 = vmul.f32 %v773_v55, %v761_v59  ;;  %v768_v40 = vld [vmem:[#allocation2 + $0x8a] sm:$0xf] }
  0x67   : > { %v776_v34 = vmul.f32 %v773_v55, %v762_v62  ;;  %v777_v44 = vmul.f32 %v773_v55, %v763_v45  ;;  %v786_v57 = vmul.f32 %v785_v18, %v761_v59  ;;  %v787_v28 = vmul.f32 %v785_v18, %v762_v62  ;;  %v769_v55 = vld [vmem:[#allocation2 + $0x9a] sm:$0xf] }
  0x68   : > { %v778_v41 = vadd.f32 %v774_v63, %v756_v54  ;;  %v779_v27 = vadd.f32 %v775_v37, %v757_v50  ;;  %v788_v6 = vmul.f32 %v785_v18, %v763_v45  ;;  %v789_v13 = vmul.f32 %v785_v18, %v764_v8  ;;  %v854_v63 = vld [vmem:[#allocation2 + $0xb] sm:$0xf]  ;;  %v855_v37 = vld [vmem:[#allocation2 + $0x1b] sm:$0xf] }
  0x69   : > { %v780_v0 = vadd.f32 %v776_v34, %v758_v43  ;;  %v781_v47 = vadd.f32 %v777_v44, %v759_v48  ;;  %v798_v30 = vmul.f32 %v797_v4, %v762_v62  ;;  %v799_v52 = vmul.f32 %v797_v4, %v763_v45 }
  0x6a   : > { %v790_v7 = vadd.f32 %v786_v57, %v778_v41  ;;  %v791_v22 = vadd.f32 %v787_v28, %v779_v27  ;;  %v800_v32 = vmul.f32 %v797_v4, %v764_v8  ;;  %v801_v2 = vmul.f32 %v797_v4, %v765_v60  ;;  %v857_v57 = vld [vmem:[#allocation2 + $0x3b] sm:$0xf] }
  0x6b   : > { %v792_v24 = vadd.f32 %v788_v6, %v780_v0  ;;  %v793_v53 = vadd.f32 %v789_v13, %v781_v47  ;;  %v810_v15 = vmul.f32 %v809_v58, %v763_v45  ;;  %v811_v33 = vmul.f32 %v809_v58, %v764_v8 }
  0x6c   : > { %v802_v3 = vadd.f32 %v798_v30, %v790_v7  ;;  %v803_v46 = vadd.f32 %v799_v52, %v791_v22  ;;  %v812_v38 = vmul.f32 %v809_v58, %v765_v60  ;;  %v813_v1 = vmul.f32 %v809_v58, %v766_v5 }
  0x6d   : > { %v804_v35 = vadd.f32 %v800_v32, %v792_v24  ;;  %v805_v39 = vadd.f32 %v801_v2, %v793_v53  ;;  %v821_v31 = vrot.slane %v1539_v21, %v772_v51  ;;  %v833_v61 = vrot.slane %v1557_v25, %v772_v51  ;;  %v858_v2 = vld [vmem:[#allocation2 + $0x4b] sm:$0xf]  ;;  %v859_v53 = vld [vmem:[#allocation2 + $0x5b] sm:$0xf] }
  0x6e   : > { %v814_v56 = vadd.f32 %v810_v15, %v802_v3  ;;  %v815_v23 = vadd.f32 %v811_v33, %v803_v46  ;;  %v845_v36 = vrot.slane %v1562_v26, %v772_v51  ;;  %v867_v59 = vrot.slane %v1518_v16, %v1743_v49  ;;  %v856_v16 = vld [vmem:[#allocation2 + $0x2b] sm:$0xf] }
  0x6f   : > { %v816_v29 = vadd.f32 %v812_v38, %v804_v35  ;;  %v817_v14 = vadd.f32 %v813_v1, %v805_v39  ;;  %v822_v62 = vmul.f32 %v821_v31, %v764_v8  ;;  %v823_v45 = vmul.f32 %v821_v31, %v765_v60  ;;  %v860_v39 = vld [vmem:[#allocation2 + $0x6b] sm:$0xf] }
  0x70   : > { %v824_v18 = vmul.f32 %v821_v31, %v766_v5  ;;  %v825_v54 = vmul.f32 %v821_v31, %v767_v42  ;;  %v834_v50 = vmul.f32 %v833_v61, %v765_v60  ;;  %v835_v4 = vmul.f32 %v833_v61, %v766_v5 }
  0x71   : > { %v826_v58 = vadd.f32 %v822_v62, %v814_v56  ;;  %v827_v43 = vadd.f32 %v823_v45, %v815_v23  ;;  %v836_v25 = vmul.f32 %v833_v61, %v767_v42  ;;  %v837_v48 = vmul.f32 %v833_v61, %v768_v40 }
  0x72   : > { %v828_v34 = vadd.f32 %v824_v18, %v816_v29  ;;  %v829_v26 = vadd.f32 %v825_v54, %v817_v14  ;;  %v846_v51 = vmul.f32 %v845_v36, %v766_v5  ;;  %v847_v44 = vmul.f32 %v845_v36, %v767_v42 }
  0x73   : > { %v838_v28 = vadd.f32 %v834_v50, %v826_v58  ;;  %v839_v8 = vadd.f32 %v835_v4, %v827_v43  ;;  %v848_v41 = vmul.f32 %v845_v36, %v768_v40  ;;  %v849_v27 = vmul.f32 %v845_v36, %v769_v55 }
  0x74   : > { %v840_v6 = vadd.f32 %v836_v25, %v828_v34  ;;  %v841_v13 = vadd.f32 %v837_v48, %v829_v26  ;;  %v868_v60 = vmul.f32 %v867_v59, %v854_v63  ;;  %v869_v0 = vmul.f32 %v867_v59, %v855_v37 }
  0x75   : > { %v850_v47 = vadd.f32 %v846_v51, %v838_v28  ;;  %v851_v30 = vadd.f32 %v847_v44, %v839_v8  ;;  %v870_v52 = vmul.f32 %v867_v59, %v856_v16  ;;  %v871_v7 = vmul.f32 %v867_v59, %v857_v57  ;;  %v861_v59 = vld [vmem:[#allocation2 + $0x7b] sm:$0xf]  ;;  %v1392_v51 = vld [vmem:[%s1817_s1 + $0x28] sm:$0x7f] }
  0x76   : > { %v852_v22 = vadd.f32 %v848_v41, %v840_v6  ;;  %v853_v32 = vadd.f32 %v849_v27, %v841_v13  ;;  %v879_v5 = vrot.slane %v1523_v17, %v1743_v49  ;;  %v891_v24 = vrot.slane %v1529_v19, %v1743_v49  ;;  %v863_v28 = vld [vmem:[#allocation2 + $0x9b] sm:$0xf] }
  0x77   : > { %v872_v15 = vadd.f32 %v868_v60, %v850_v47  ;;  %v873_v33 = vadd.f32 %v869_v0, %v851_v30  ;;  %v903_v3 = vrot.slane %v1534_v20, %v1743_v49  ;;  %v915_v46 = vrot.slane %v1539_v21, %v1743_v49 }
  0x78   : > { %v874_v38 = vadd.f32 %v870_v52, %v852_v22  ;;  %v875_v1 = vadd.f32 %v871_v7, %v853_v32  ;;  %v880_v42 = vmul.f32 %v879_v5, %v855_v37  ;;  %v881_v35 = vmul.f32 %v879_v5, %v856_v16  ;;  %v862_v37 = vld [vmem:[#allocation2 + $0x8b] sm:$0xf] }
  0x79   : > { %v882_v31 = vmul.f32 %v879_v5, %v857_v57  ;;  %v883_v61 = vmul.f32 %v879_v5, %v858_v2  ;;  %v892_v17 = vmul.f32 %v891_v24, %v856_v16  ;;  %v893_v40 = vmul.f32 %v891_v24, %v857_v57  ;;  %v1393_v16 = vld [vmem:[%s1817_s1 + $0x30] sm:$0x7f] }
  0x7a   : > { %v884_v56 = vadd.f32 %v880_v42, %v872_v15  ;;  %v885_v19 = vadd.f32 %v881_v35, %v873_v33  ;;  %v894_v23 = vmul.f32 %v891_v24, %v858_v2  ;;  %v895_v36 = vmul.f32 %v891_v24, %v859_v53  ;;  %v1394_v42 = vld [vmem:[#allocation2] sm:$0xff]  ;;  %v1381_v35 = vld [vmem:[%s1820_s4 + $0x30] sm:$0xff]  }
  0x7b   : > { %v886_v29 = vadd.f32 %v882_v31, %v874_v38  ;;  %v887_v14 = vadd.f32 %v883_v61, %v875_v1  ;;  %v904_v20 = vmul.f32 %v903_v3, %v857_v57  ;;  %v905_v62 = vmul.f32 %v903_v3, %v858_v2  ;;  %v1383_v31 = vld [vmem:[%s1820_s4 + $0x20] sm:$0xff]   ;;  %v1384_v61 = vld [vmem:[%s1820_s4 + $0x18] sm:$0xff]  }
  0x7c   : > { %v896_v45 = vadd.f32 %v892_v17, %v884_v56  ;;  %v897_v21 = vadd.f32 %v893_v40, %v885_v19  ;;  %v906_v55 = vmul.f32 %v903_v3, %v859_v53  ;;  %v907_v18 = vmul.f32 %v903_v3, %v860_v39  ;;  %v1385_v17 = vld [vmem:[%s1820_s4 + $0x10] sm:$0xff]   ;;  %v1386_v40 = vld [vmem:[%s1820_s4 + $0x8] sm:$0xff]   ;;  %v1387_v56 = vld [vmem:[%s1820_s4] sm:$0xff]  }
  0x7d   : > { %v898_v54 = vadd.f32 %v894_v23, %v886_v29  ;;  %v899_v50 = vadd.f32 %v895_v36, %v887_v14  ;;  %v916_v4 = vmul.f32 %v915_v46, %v858_v2  ;;  %v917_v58 = vmul.f32 %v915_v46, %v859_v53  ;;  %v1282_v19 = vld [vmem:[%s1819_s3] ss:$0 sm:$0xff] }
  0x7e   : > { %v908_v43 = vadd.f32 %v904_v20, %v896_v45  ;;  %v909_v25 = vadd.f32 %v905_v62, %v897_v21  ;;  %v918_v48 = vmul.f32 %v915_v46, %v860_v39  ;;  %v919_v63 = vmul.f32 %v915_v46, %v861_v59 }
  0x7f   : > { %v910_v34 = vadd.f32 %v906_v55, %v898_v54  ;;  %v911_v26 = vadd.f32 %v907_v18, %v899_v50  ;;  %v927_v44 = vrot.slane %v1392_v51, %v1743_v49  ;;  %v939_v57 = vrot.slane %v1393_v16, %v1743_v49 }
  0x80   : > { %v920_v8 = vadd.f32 %v916_v4, %v908_v43  ;;  %v921_v41 = vadd.f32 %v917_v58, %v909_v25 }
  0x81   : > { %v922_v27 = vadd.f32 %v918_v48, %v910_v34  ;;  %v923_v6 = vadd.f32 %v919_v63, %v911_v26  ;;  %v928_v13 = vmul.f32 %v927_v44, %v859_v53  ;;  %v929_v60 = vmul.f32 %v927_v44, %v860_v39  ;;  %v1380_v53 = vld [vmem:[%s1820_s4 + $0x38] sm:$0xff]  }
  0x82   : > { %v930_v0 = vmul.f32 %v927_v44, %v861_v59  ;;  %v931_v47 = vmul.f32 %v927_v44, %v862_v37  ;;  %v940_v30 = vmul.f32 %v939_v57, %v860_v39  ;;  %v941_v52 = vmul.f32 %v939_v57, %v861_v59  ;;  %1343 = vmatpush3.bf16.msra.mxu1 %v1380_v53  ;;  %v1382_v39 = vld [vmem:[%s1820_s4 + $0x28] sm:$0xff]  }
  0x83   : > { %v932_v7 = vadd.f32 %v928_v13, %v920_v8  ;;  %v933_v22 = vadd.f32 %v929_v60, %v921_v41  ;;  %v942_v32 = vmul.f32 %v939_v57, %v862_v37  ;;  %v943_v2 = vmul.f32 %v939_v57, %v863_v28  ;;  %1344 = vmatprep.subr.bf16.mxu1 %v1394_v42  ;;  %v1291_v57 = vld [vmem:[%s1821_s5] ss:$0 sm:$0xff] }
  0x84   : > { %v934_v5 = vadd.f32 %v930_v0, %v922_v27  ;;  %v935_v24 = vadd.f32 %v931_v47, %v923_v6  ;;  %v1827_v6 = vunpack.c.l.bf16 %v1504_v9  ;;  %v1828_v0 = vunpack.c.l.bf16 %v1506_v10 }
  0x85   : > { %v944_v15 = vadd.f32 %v940_v30, %v932_v7  ;;  %v945_v33 = vadd.f32 %v941_v52, %v933_v22  ;;  %v1830_v9 = vunpack.c.l.bf16 %v1510_v12 }
  0x86   : > { %v946_v49 = vadd.f32 %v942_v32, %v934_v5  ;;  %v947_v3 = vadd.f32 %v943_v2, %v935_v24  ;;  %1345 = vmatpush3.bf16.msra.mxu1 %v1381_v35  ;;  %v1829_v2 = vunpack.c.l.bf16 %v1508_v11 }
  0x87   : > { %v952_v46 = vcombine.low %v944_v15, %v945_v33  ;;  %1346 = vmatprep.subr.bf16.mxu1 %v1394_v42 }
  0x88   : > { %v953_v38 = vcombine.low %v946_v49, %v947_v3 }
  0x8a   : > { %v956_v1 = vpack.c.bf16 %v953_v38, %v952_v46  ;;  %1347 = vmatpush3.bf16.msra.mxu1 %v1382_v39 }
  0x8b   : > { %1348 = vmatprep.subr.bf16.mxu1 %v1394_v42 }
  0x8c   : > { %1339 = vmatmul.mubr.bf16.vlgmr.msra.gmra.mxu0 %v956_v1 }
  0x8e   : > { %1349 = vmatpush3.bf16.msra.mxu1 %v1383_v31 }
  0x8f   : > { %1350 = vmatprep.subr.bf16.mxu1 %v1394_v42 }
  0x92   : > { %1351 = vmatpush3.bf16.msra.mxu1 %v1384_v61 }
  0x93   : > { %1352 = vmatprep.subr.bf16.mxu1 %v1394_v42 }
  0x96   : > { %1353 = vmatpush3.bf16.msra.mxu1 %v1385_v17 }
  0x97   : > { %1354 = vmatprep.subr.bf16.mxu1 %v1394_v42 }
  0x9a   : > { %1355 = vmatpush3.bf16.msra.mxu1 %v1386_v40 }
  0x9b   : > { %1356 = vmatprep.subr.bf16.mxu1 %v1394_v42 }
  0x9e   : > { %1357 = vmatpush3.bf16.msra.mxu1 %v1387_v56 }
 0x14c   : > { %v1062_v23 = vpop.f32.mrf.mxu0 }
 0x14d   : > { %v1063_v36 = vadd.f32 %v1282_v19, %v1062_v23 }
 0x14e   : > { %v1340_v59 = vpop.f32.mrf.mxu0 }
 0x14f   : > { %v1071_v29 = vmul.f32 0.044715, %v1063_v36  ;;  %v1069_v37 = vmul.f32 0.5, %v1063_v36 }
 0x150   : > { %v1065_v14 = vpop.f32.mrf.mxu0 }
 0x151   : > { %v1073_v20 = vmul.f32 %v1071_v29, %v1063_v36  ;;  %v1066_v62 = vadd.f32 %v1282_v19, %v1065_v14 }
 0x152   : > { %v1341_v45 = vpop.f32.mrf.mxu0 }
 0x153   : > { %v1075_v21 = vmul.f32 %v1073_v20, %v1063_v36  ;;  %v1072_v55 = vmul.f32 0.044715, %v1066_v62  ;;  %v1070_v34 = vmul.f32 0.5, %v1066_v62 }
 0x155   : > { %v1074_v18 = vmul.f32 %v1072_v55, %v1066_v62  ;;  %v1077_v54 = vadd.f32 %v1075_v21, %v1063_v36 }
 0x157   : > { %v1076_v50 = vmul.f32 %v1074_v18, %v1066_v62  ;;  %v1079_v4 = vmul.f32 0.7978846, %v1077_v54 }
 0x159   : > { %v1078_v58 = vadd.f32 %v1076_v50, %v1066_v62  ;;  %1388 = vtanh.f32 %v1079_v4 }
 0x15b   : > { %v1080_v43 = vmul.f32 0.7978846, %v1078_v58 }
 0x15d   : > { %1390 = vtanh.f32 %v1080_v43 }
 0x166   : > { %v1389_v25 = vpop.eup %1388 }
 0x167   : > { %v1083_v48 = vadd.f32 1.0, %v1389_v25 }
 0x169   : > { %v1085_v51 = vmul.f32 %v1083_v48, %v1069_v37 }
 0x16a   : > { %v1391_v63 = vpop.eup %1390 }
 0x16b   : > { %v1084_v26 = vadd.f32 1.0, %v1391_v63 }
 0x16d   : > { %v1086_v44 = vmul.f32 %v1084_v26, %v1070_v34 }
 0x16f   : > { %v1087_v16 = vpack.c.bf16 %v1086_v44, %v1085_v51 }
 0x171   : > { %1359 = vmatmul.mubr.bf16.vlgmr.msra.gmra.mxu1 %v1087_v16 }
 0x231   : > { %v1193_v28 = vpop.f32.mrf.mxu1 }
 0x232   : > { %v1194_v8 = vadd.f32 %v1291_v57, %v1193_v28 }
 0x233   : > { %v1360_v41 = vpop.f32.mrf.mxu1 }
 0x234   : > { %v1202_v27 = vcombine.high %v1194_v8, %v1194_v8  ;;  %v1206_v13 = vadd.f32 %v1194_v8, %v1827_v6 }
 0x235   : > { %v1196_v60 = vpop.f32.mrf.mxu1 }
 0x236   : > { %v1207_v47 = vadd.f32 %v1202_v27, %v1828_v0  ;;  %v1210_v30 = vpack.c.bf16 %v1206_v13, %v1206_v13  ;;  %v1197_v52 = vadd.f32 %v1291_v57, %v1196_v60 }
 0x237   : > { %v1361_v7 = vpop.f32.mrf.mxu1 }
 0x238   : > { %v1211_v22 = vpack.c.bf16 %v1207_v47, %v1207_v47  ;;  %1214 = vst [vmem:[%s251_s17] sm:$0x3] %v1210_v30  ;;  %v1203_v32 = vcombine.high %v1197_v52, %v1197_v52  ;;  %v1208_v5 = vadd.f32 %v1197_v52, %v1829_v2 }
 0x23a   : > { %1215 = vst [vmem:[%s251_s17 + $0x2] sm:$0x3] %v1211_v22  ;;  %v1209_v24 = vadd.f32 %v1203_v32, %v1830_v9  ;;  %v1212_v15 = vpack.c.bf16 %v1208_v5, %v1208_v5 }
 0x23c   : > { %v1213_v33 = vpack.c.bf16 %v1209_v24, %v1209_v24  ;;  %1216 = vst [vmem:[%s251_s17 + $0x4] sm:$0x3] %v1212_v15 }
 0x23e   : > { %1217 = vst [vmem:[%s251_s17 + $0x6] sm:$0x3] %v1213_v33 }
 0x23f PF: > { %s16_s21 = sadd.s32 1, %s1401_s21  }
 0x240   : > { %p13_p4 = scmp.ge.s32.totalorder %s16_s21, 4  }
 0x242   :  { %15 = sbr.rel (!%p13_p4) target bundleno = 1 (0x1), region = 76 }

// kernel: convnext2d_forward.14
= control target key start
LH: loop header
LB: loop body
LE: loop exit
PB: predicated region body
PF: predicated region fallthrough
CT: control target
= control target key end

     0   :  { %s625_s1 = inlined_call_operand.vmem [shape: bf16[512,128], index: 1, kind: input, shape index: {}]   ;;  %s626_s0 = inlined_call_operand.vmem [shape: bf16[8,512], index: 0, kind: input, shape index: {}]   ;;  %s627_s2 = inlined_call_operand.vmem [shape: f32[1,128], index: 2, kind: input, shape index: {}]   ;;  %s628_s3 = inlined_call_operand.vmem [shape: bf16[8,128], index: 3, kind: output, shape index: {}]  }
   0x1   :  { %v461_v0 = vld [vmem:[%s625_s1 + $0x78] sm:$0xff]   ;;  %v465_v4 = vld [vmem:[%s625_s1 + $0x70] sm:$0xff]   ;;  %v469_v8 = vld [vmem:[%s625_s1 + $0x68] sm:$0xff]  }
   0x2   :  { %v462_v1 = vld [vmem:[%s625_s1 + $0xf8] sm:$0xff]   ;;  %417 = vmatprep.subr.bf16.mxu0 %v461_v0  ;;  %v466_v5 = vld [vmem:[%s625_s1 + $0xf0] sm:$0xff]   ;;  %v470_v9 = vld [vmem:[%s625_s1 + $0xe8] sm:$0xff]  }
   0x3   :  { %v463_v2 = vld [vmem:[%s625_s1 + $0x38] sm:$0xff]   ;;  %439 = vmatprep.subr.bf16.mxu1 %v462_v1  ;;  %v467_v6 = vld [vmem:[%s625_s1 + $0x30] sm:$0xff]   ;;  %v471_v10 = vld [vmem:[%s625_s1 + $0x28] sm:$0xff]  }
   0x4   :  { %v464_v3 = vld [vmem:[%s625_s1 + $0xb8] sm:$0xff]   ;;  %418 = vmatpush3.bf16.msra.mxu0 %v463_v2  ;;  %v468_v7 = vld [vmem:[%s625_s1 + $0xb0] sm:$0xff]   ;;  %v472_v11 = vld [vmem:[%s625_s1 + $0xa8] sm:$0xff]  }
   0x5   :  { %440 = vmatpush3.bf16.msra.mxu1 %v464_v3  ;;  %419 = vmatprep.subr.bf16.mxu0 %v465_v4  ;;  %v473_v12 = vld [vmem:[%s625_s1 + $0x60] sm:$0xff]   ;;  %v477_v16 = vld [vmem:[%s625_s1 + $0x58] sm:$0xff]   ;;  %v481_v20 = vld [vmem:[%s625_s1 + $0x50] sm:$0xff]  }
   0x6   :  { %441 = vmatprep.subr.bf16.mxu1 %v466_v5  ;;  %v474_v13 = vld [vmem:[%s625_s1 + $0xe0] sm:$0xff]   ;;  %v478_v17 = vld [vmem:[%s625_s1 + $0xd8] sm:$0xff]   ;;  %v482_v21 = vld [vmem:[%s625_s1 + $0xd0] sm:$0xff]  }
   0x7   :  { %v475_v14 = vld [vmem:[%s625_s1 + $0x20] sm:$0xff]   ;;  %v479_v18 = vld [vmem:[%s625_s1 + $0x18] sm:$0xff]   ;;  %v483_v22 = vld [vmem:[%s625_s1 + $0x10] sm:$0xff]  }
   0x8   :  { %420 = vmatpush3.bf16.msra.mxu0 %v467_v6  ;;  %v476_v15 = vld [vmem:[%s625_s1 + $0xa0] sm:$0xff]   ;;  %v480_v19 = vld [vmem:[%s625_s1 + $0x98] sm:$0xff]   ;;  %v484_v23 = vld [vmem:[%s625_s1 + $0x90] sm:$0xff]  }
   0x9   :  { %442 = vmatpush3.bf16.msra.mxu1 %v468_v7  ;;  %421 = vmatprep.subr.bf16.mxu0 %v469_v8  ;;  %v485_v24 = vld [vmem:[%s625_s1 + $0x48] sm:$0xff]   ;;  %v489_v28 = vld [vmem:[%s625_s1 + $0x40] sm:$0xff]  }
   0xa   :  { %443 = vmatprep.subr.bf16.mxu1 %v470_v9  ;;  %v486_v25 = vld [vmem:[%s625_s1 + $0xc8] sm:$0xff]   ;;  %v490_v29 = vld [vmem:[%s625_s1 + $0xc0] sm:$0xff]  }
   0xb   :  { %v487_v26 = vld [vmem:[%s625_s1 + $0x8] sm:$0xff]   ;;  %v491_v30 = vld [vmem:[%s625_s1] sm:$0xff]  }
   0xc   :  { %422 = vmatpush3.bf16.msra.mxu0 %v471_v10  ;;  %v488_v27 = vld [vmem:[%s625_s1 + $0x88] sm:$0xff]   ;;  %v492_v31 = vld [vmem:[%s625_s1 + $0x80] sm:$0xff]  }
   0xd   :  { %444 = vmatpush3.bf16.msra.mxu1 %v472_v11  ;;  %423 = vmatprep.subr.bf16.mxu0 %v473_v12  ;;  %v15_v32 = vld [vmem:[%s626_s0] sm:$0xff]  ;;  %v16_v33 = vld [vmem:[%s626_s0 + $0x8] sm:$0xff] }
   0xe   :  { %445 = vmatprep.subr.bf16.mxu1 %v474_v13  ;;  %v381_v34 = vcombine.low %v15_v32, %v15_v32  ;;  %v382_v35 = vcombine.high %v15_v32, %v15_v32  ;;  %v383_v36 = vcombine.low %v16_v33, %v16_v33  ;;  %v384_v37 = vcombine.high %v16_v33, %v16_v33  ;;  %v380_v40 = vld [vmem:[%s627_s2] ss:$0 sm:$0xff] }
  0x10   :  { %424 = vmatpush3.bf16.msra.mxu0 %v475_v14  ;;  %326 = vmatprep.mubr.bf16.mxu0 %v382_v35 }
  0x11   :  { %446 = vmatpush3.bf16.msra.mxu1 %v476_v15  ;;  %425 = vmatprep.subr.bf16.mxu0 %v477_v16 }
  0x12   :  { %447 = vmatprep.subr.bf16.mxu1 %v478_v17  ;;  %366 = vmatprep.mubr.bf16.mxu1 %v384_v37 }
  0x14   :  { %426 = vmatpush3.bf16.msra.mxu0 %v479_v18 }
  0x15   :  { %448 = vmatpush3.bf16.msra.mxu1 %v480_v19  ;;  %427 = vmatprep.subr.bf16.mxu0 %v481_v20 }
  0x16   :  { %449 = vmatprep.subr.bf16.mxu1 %v482_v21 }
  0x18   :  { %428 = vmatpush3.bf16.msra.mxu0 %v483_v22 }
  0x19   :  { %450 = vmatpush3.bf16.msra.mxu1 %v484_v23  ;;  %429 = vmatprep.subr.bf16.mxu0 %v485_v24 }
  0x1a   :  { %451 = vmatprep.subr.bf16.mxu1 %v486_v25 }
  0x1c   :  { %430 = vmatpush3.bf16.msra.mxu0 %v487_v26 }
  0x1d   :  { %452 = vmatpush3.bf16.msra.mxu1 %v488_v27  ;;  %431 = vmatprep.subr.bf16.mxu0 %v489_v28 }
  0x1e   :  { %453 = vmatprep.subr.bf16.mxu1 %v490_v29 }
  0x20   :  { %432 = vmatpush3.bf16.msra.mxu0 %v491_v30 }
  0x21   :  { %454 = vmatpush3.bf16.msra.mxu1 %v492_v31 }
  0x23   :  { %327 = vmatmul.mubr.bf16.vlgmr.msra.gmra.mxu0 %v381_v34 }
  0x24   :  { %367 = vmatmul.mubr.bf16.vlgmr.msra.gmra.mxu1 %v383_v36 }
  0xe3   :  { %v433_v38 = vpop.f32.mrf.mxu0 }
  0xe4   :  { %v455_v39 = vpop.f32.mrf.mxu1 }
  0xe5   :  { %v434_v41 = vpop.f32.mrf.mxu0 }
  0xe6   :  { %v456_v42 = vpop.f32.mrf.mxu1  ;;  %v435_v43 = vadd.f32 %v434_v41, %v433_v38 }
  0xe7   :  { %v436_v44 = vpop.f32.mrf.mxu0  ;;  %v457_v47 = vadd.f32 %v456_v42, %v455_v39 }
  0xe8   :  { %v458_v45 = vpop.f32.mrf.mxu1  ;;  %v329_v46 = vadd.f32 %v435_v43, %v380_v40 }
  0xe9   :  { %v437_v48 = vpop.f32.mrf.mxu0 }
  0xea   :  { %v459_v49 = vpop.f32.mrf.mxu1  ;;  %v369_v50 = vadd.f32 %v457_v47, %v329_v46 }
  0xec   :  { %v374_v51 = vpack.c.bf16 %v369_v50, %v369_v50 }
  0xee   :  { %375 = vst [vmem:[%s628_s3] sm:$0xf] %v374_v51 }

// kernel: mul.62
= control target key start
LH: loop header
LB: loop body
LE: loop exit
PB: predicated region body
PF: predicated region fallthrough
CT: control target
= control target key end

     0   :  { %s34_s0 = inlined_call_operand.vmem [shape: f32[32], index: 0, kind: input, shape index: {}]   ;;  %s35_s1 = inlined_call_operand.vmem [shape: f32[32], index: 1, kind: input, shape index: {}]   ;;  %s36_s2 = inlined_call_operand.vmem [shape: f32[32], index: 2, kind: output, shape index: {}]  }
   0x1   :  { %v3_v0 = vld [vmem:[%s34_s0] sm:$0x1] }
   0x2   :  { %v4_v1 = vld [vmem:[%s35_s1] sm:$0x1] }
   0x3   :  { %v7_v2 = vmul.f32 %v4_v1, %v3_v0 }
   0x5   :  { %9 = vst [vmem:[%s36_s2] sm:$0x1] %v7_v2 }

// kernel: convnext2d_forward.15
= control target key start
LH: loop header
LB: loop body
LE: loop exit
PB: predicated region body
PF: predicated region fallthrough
CT: control target
= control target key end

     0   :  { %s1199_s21 = smov 0   ;;  %s1488_s0 = inlined_call_operand.vmem [shape: bf16[2,2,2,128], index: 0, kind: input, shape index: {}]   ;;  %s1489_s1 = inlined_call_operand.vmem [shape: f32[7,7,128], index: 1, kind: input, shape index: {}]   ;;  %s1490_s2 = inlined_call_operand.vmem [shape: bf16[128,128], index: 2, kind: input, shape index: {}]   ;;  %s1491_s3 = inlined_call_operand.vmem [shape: f32[1,128], index: 3, kind: input, shape index: {}]   ;;  %s1492_s4 = inlined_call_operand.vmem [shape: bf16[128,128], index: 4, kind: input, shape index: {}]   ;;  %s1493_s5 = inlined_call_operand.vmem [shape: f32[1,128], index: 5, kind: input, shape index: {}]   ;;  %s1494_s6 = inlined_call_operand.vmem [shape: bf16[2,2,2,128], index: 6, kind: output, shape index: {}]  }
   0x1 LB: > { %s1039_s22 = sadd.s32 4294967295, %s1159_s21   ;;  %p1043_p0 = scmp.ge.s32.totalorder %s1159_s21, 1  ;;  %s1159_s21 = sphi %s1199_s21, %s16_s21  }
   0x2   : > { %p211_p1 = scmp.lt.s32.totalorder %s1159_s21, 3 }
   0x4   : > { %p212_p2 = pnand %p1043_p0, %p211_p1 }
   0x5   : > { %p239_p3 = scmp.lt.s32.totalorder (!%p212_p2), %s1039_s22, 1 }
   0x6   : > { %215 = sbr.rel (%p212_p2) target bundleno = 557 (0x22d), region = 44 }
   0xb   : > { %v1135_v0 = vld [vmem:[%s1490_s2 + $0x38] sm:$0xff]   ;;  %v287_v1 = vlaneseq  ;;  %v1161_v2 = vmov 0.0   ;;  %v1136_v3 = vld [vmem:[%s1490_s2 + $0x30] sm:$0xff]   ;;  %vm1162_vm0 = vmmov 0   ;;  %s1496_s22 = smov (!%p239_p3, %s1039_s22), 1  ;;  %v1137_v6 = vld [vmem:[%s1490_s2 + $0x28] sm:$0xff]  }
   0xc   : > { %1084 = vmatprep.subr.bf16.mxu0 %v1161_v2  ;;  %252 = vst [vmem:[#allocation2] sm:$0xff] %v1161_v2  ;;  %253 = vst [vmem:[#allocation2 + $0x8] sm:$0x1f] %v1161_v2  ;;  %1104 = vmatprep.subr.bf16.mxu1 %v1161_v2  ;;  %s1044_s29 = sshll.u32 %s1496_s22, 1  ;;  %v1260_v9 = vld [vmem:[%s1489_s1] sm:$0x7f] }
   0xd   : > { %254 = vst [vmem:[#allocation2 + $0x10] sm:$0xff] %v1161_v2  ;;  %255 = vst [vmem:[#allocation2 + $0x18] sm:$0x1f] %v1161_v2  ;;  %1085 = vmatpush3.bf16.msra.mxu0 %v1135_v0  ;;  %1100 = vmatprep.mubr.msk.bf16.mxu0 %vm1162_vm0, %v1161_v2  ;;  %v1235_v4 = vshrl.u32 %v287_v1, 7  ;;  %s242_s8 = scalar_lea.vmem %s1488_s0, %s1044_s29  ;;  %v1267_v12 = vld [vmem:[%s1489_s1 + $0x8] sm:$0x7f]  ;;  %s246_s13 = scalar_lea.vmem %s1494_s6, %s1044_s29 }
   0xe   : > { %256 = vst [vmem:[#allocation2 + $0x20] sm:$0xff] %v1161_v2  ;;  %257 = vst [vmem:[#allocation2 + $0x28] sm:$0x1f] %v1161_v2  ;;  %1086 = vmatprep.subr.bf16.mxu0 %v1161_v2  ;;  %1120 = vmatprep.mubr.msk.bf16.mxu1 %vm1162_vm0, %v1161_v2  ;;  %v1253_v7 = vld [vmem:[%s242_s8] sm:$0x1]  ;;  %v1139_v38 = vld [vmem:[%s1490_s2 + $0x18] sm:$0xff]  }
   0xf   : > { %259 = vst [vmem:[#allocation2 + $0x50] sm:$0xff] %v1161_v2  ;;  %260 = vst [vmem:[#allocation2 + $0x58] sm:$0x1f] %v1161_v2  ;;  %v289_v5 = vsub.s32 0, %v1235_v4  ;;  %v1255_v8 = vld [vmem:[%s242_s8 + $0x1] sm:$0x1]  ;;  %v250_v10 = vunpack.c.l.bf16 %v1253_v7 }
  0x10   : > { %261 = vst [vmem:[#allocation2 + $0x60] sm:$0xff] %v1161_v2  ;;  %262 = vst [vmem:[#allocation2 + $0x68] sm:$0x1f] %v1161_v2  ;;  %v251_v11 = vunpack.c.l.bf16 %v1255_v8  ;;  %v1272_v13 = vld [vmem:[%s1489_s1 + $0x10] sm:$0x7f]  ;;  %v1138_v16 = vld [vmem:[%s1490_s2 + $0x20] sm:$0xff]  }
  0x11   : > { %263 = vst [vmem:[#allocation2 + $0x70] sm:$0xff] %v1161_v2  ;;  %264 = vst [vmem:[#allocation2 + $0x78] sm:$0x1f] %v1161_v2  ;;  %1087 = vmatpush3.bf16.msra.mxu0 %v1136_v3  ;;  %v1277_v14 = vld [vmem:[%s1489_s1 + $0x18] sm:$0x7f]  ;;  %v290_v15 = vrot.slane %v1260_v9, %v289_v5  ;;  %v296_v19 = vrot.slane %v1267_v12, %v289_v5  ;;  %v304_v20 = vrot.slane %v1272_v13, %v289_v5  ;;  %v1140_v51 = vld [vmem:[%s1490_s2 + $0x10] sm:$0xff]  }
  0x12   : > { %266 = vst [vmem:[#allocation2 + $0x30] sm:$0xff] %v1161_v2  ;;  %267 = vst [vmem:[#allocation2 + $0x40] sm:$0xff] %v1161_v2  ;;  %1088 = vmatprep.subr.bf16.mxu0 %v1161_v2  ;;  %v1286_v17 = vld [vmem:[%s1489_s1 + $0x20] sm:$0x7f]  ;;  %v1291_v18 = vld [vmem:[%s1489_s1 + $0x28] sm:$0x7f]  ;;  %v312_v21 = vrot.slane %v1277_v14, %v289_v5 }
  0x13   : > { %268 = vst [vmem:[#allocation2 + $0x3a] sm:$0x7] %v1161_v2  ;;  %269 = vst [vmem:[#allocation2 + $0x4a] sm:$0x7] %v1161_v2  ;;  %v279_v22 = vld [vmem:[#allocation2 + $0x5] sm:$0x3]  ;;  %v320_v25 = vrot.slane %v1286_v17, %v289_v5  ;;  %v328_v36 = vrot.slane %v1291_v18, %v289_v5 }
  0x14   : > { %270 = vst [vmem:[#allocation2 + $0x38] sm:$0x3] %v250_v10  ;;  %271 = vst [vmem:[#allocation2 + $0x48] sm:$0x3] %v251_v11  ;;  %v280_v23 = vld [vmem:[#allocation2 + $0x15] sm:$0x3]  ;;  %v291_v29 = vmul.f32 %v290_v15, %v279_v22 }
  0x15   : > { %1089 = vmatpush3.bf16.msra.mxu0 %v1137_v6  ;;  %v281_v24 = vld [vmem:[#allocation2 + $0x25] sm:$0x3]  ;;  %v1305_v26 = vld [vmem:[%s1489_s1 + $0x30] sm:$0x7f]  ;;  %v292_v30 = vmul.f32 %v290_v15, %v280_v23  ;;  %v297_v31 = vmul.f32 %v296_v19, %v280_v23  ;;  %v351_v37 = vsub.s32 1, %v1235_v4  ;;  %v1141_v1 = vld [vmem:[%s1490_s2 + $0x8] sm:$0xff]  }
  0x16   : > { %1090 = vmatprep.subr.bf16.mxu0 %v1161_v2  ;;  %v298_v32 = vmul.f32 %v296_v19, %v281_v24  ;;  %v284_v33 = vld [vmem:[#allocation2 + $0x55] sm:$0x3]  ;;  %v305_v34 = vmul.f32 %v304_v20, %v281_v24  ;;  %v336_v44 = vrot.slane %v1305_v26, %v289_v5  ;;  %v341_v56 = vld [vmem:[#allocation2 + $0x6] sm:$0x3] }
  0x17   : > { %v299_v39 = vadd.f32 %v297_v31, %v291_v29  ;;  %v285_v43 = vld [vmem:[#allocation2 + $0x65] sm:$0x3]  ;;  %v322_v48 = vmul.f32 %v320_v25, %v284_v33  ;;  %v352_v50 = vrot.slane %v1260_v9, %v351_v37  ;;  %v329_v54 = vmul.f32 %v328_v36, %v284_v33  ;;  %v342_v57 = vld [vmem:[#allocation2 + $0x16] sm:$0x3] }
  0x18   : > { %v300_v40 = vadd.f32 %v298_v32, %v292_v30  ;;  %v286_v49 = vld [vmem:[#allocation2 + $0x75] sm:$0x3]  ;;  %v330_v55 = vmul.f32 %v328_v36, %v285_v43  ;;  %v360_v58 = vrot.slane %v1267_v12, %v351_v37  ;;  %v337_v61 = vmul.f32 %v336_v44, %v285_v43  ;;  %v343_v63 = vld [vmem:[#allocation2 + $0x26] sm:$0x3] }
  0x19   : > { %v282_v27 = vld [vmem:[#allocation2 + $0x35] sm:$0x3]  ;;  %v283_v28 = vld [vmem:[#allocation2 + $0x45] sm:$0x3]  ;;  %1091 = vmatpush3.bf16.msra.mxu0 %v1138_v16  ;;  %v307_v45 = vadd.f32 %v305_v34, %v299_v39  ;;  %v338_v62 = vmul.f32 %v336_v44, %v286_v49  ;;  %v368_v0 = vrot.slane %v1272_v13, %v351_v37  ;;  %v353_v6 = vmul.f32 %v352_v50, %v341_v56  ;;  %v406_v49 = vld [vmem:[#allocation2 + $0x17] sm:$0x3] }
  0x1a   : > { %v306_v35 = vmul.f32 %v304_v20, %v282_v27  ;;  %v313_v41 = vmul.f32 %v312_v21, %v282_v27  ;;  %v314_v42 = vmul.f32 %v312_v21, %v283_v28  ;;  %1092 = vmatprep.subr.bf16.mxu0 %v1161_v2  ;;  %v321_v47 = vmul.f32 %v320_v25, %v283_v28  ;;  %v344_v16 = vld [vmem:[#allocation2 + $0x36] sm:$0x3]  ;;  %v345_v24 = vld [vmem:[#allocation2 + $0x46] sm:$0x3] }
  0x1b   : > { %v354_v15 = vmul.f32 %v352_v50, %v342_v57  ;;  %v361_v19 = vmul.f32 %v360_v58, %v342_v57  ;;  %v362_v22 = vmul.f32 %v360_v58, %v343_v63  ;;  %v376_v23 = vrot.slane %v1277_v14, %v351_v37  ;;  %v1142_v27 = vld [vmem:[%s1490_s2] sm:$0xff]   ;;  %v346_v32 = vld [vmem:[#allocation2 + $0x56] sm:$0x3] }
  0x1c   : > { %v308_v46 = vadd.f32 %v306_v35, %v300_v40  ;;  %v315_v52 = vadd.f32 %v313_v41, %v307_v45  ;;  %v369_v25 = vmul.f32 %v368_v0, %v343_v63  ;;  %v370_v30 = vmul.f32 %v368_v0, %v344_v16  ;;  %v347_v40 = vld [vmem:[#allocation2 + $0x66] sm:$0x3]  ;;  %v408_v0 = vld [vmem:[#allocation2 + $0x37] sm:$0x3] }
  0x1d   : > { %1093 = vmatpush3.bf16.msra.mxu0 %v1139_v38  ;;  %v384_v31 = vrot.slane %v1286_v17, %v351_v37  ;;  %v392_v33 = vrot.slane %v1291_v18, %v351_v37  ;;  %v415_v34 = vsub.s32 2, %v1235_v4  ;;  %v377_v38 = vmul.f32 %v376_v23, %v344_v16  ;;  %v407_v58 = vld [vmem:[#allocation2 + $0x27] sm:$0x3] }
  0x1e   : > { %v316_v53 = vadd.f32 %v314_v42, %v308_v46  ;;  %1094 = vmatprep.subr.bf16.mxu0 %v1161_v2  ;;  %v323_v59 = vadd.f32 %v321_v47, %v315_v52  ;;  %v378_v39 = vmul.f32 %v376_v23, %v345_v24  ;;  %v400_v41 = vrot.slane %v1305_v26, %v351_v37  ;;  %v348_v42 = vld [vmem:[#allocation2 + $0x76] sm:$0x3]  ;;  %v409_v16 = vld [vmem:[#allocation2 + $0x47] sm:$0x3] }
  0x1f   : > { %v385_v45 = vmul.f32 %v384_v31, %v345_v24  ;;  %v386_v46 = vmul.f32 %v384_v31, %v346_v32  ;;  %v393_v47 = vmul.f32 %v392_v33, %v346_v32  ;;  %v394_v52 = vmul.f32 %v392_v33, %v347_v40  ;;  %v411_v33 = vld [vmem:[#allocation2 + $0x67] sm:$0x3] }
  0x20   : > { %v324_v60 = vadd.f32 %v322_v48, %v316_v53  ;;  %v331_v3 = vadd.f32 %v329_v54, %v323_v59  ;;  %v405_v48 = vld [vmem:[#allocation2 + $0x7] sm:$0x3]  ;;  %v416_v53 = vrot.slane %v1260_v9, %v415_v34  ;;  %v401_v54 = vmul.f32 %v400_v41, %v347_v40 }
  0x21   : > { %1095 = vmatpush3.bf16.msra.mxu0 %v1140_v51  ;;  %v402_v57 = vmul.f32 %v400_v41, %v348_v42  ;;  %v424_v37 = vrot.slane %v1267_v12, %v415_v34  ;;  %v432_v59 = vrot.slane %v1272_v13, %v415_v34 }
  0x22   : > { %v332_v5 = vadd.f32 %v330_v55, %v324_v60  ;;  %1096 = vmatprep.subr.bf16.mxu0 %v1161_v2  ;;  %v339_v20 = vadd.f32 %v337_v61, %v331_v3  ;;  %v418_v63 = vmul.f32 %v416_v53, %v406_v49 }
  0x24   : > { %v340_v21 = vadd.f32 %v338_v62, %v332_v5  ;;  %v355_v28 = vadd.f32 %v353_v6, %v339_v20  ;;  %v417_v62 = vmul.f32 %v416_v53, %v405_v48  ;;  %v425_v6 = vmul.f32 %v424_v37, %v406_v49 }
  0x25   : > { %1097 = vmatpush3.bf16.msra.mxu0 %v1141_v1  ;;  %v440_v1 = vrot.slane %v1277_v14, %v415_v34  ;;  %v448_v20 = vrot.slane %v1286_v17, %v415_v34 }
  0x26   : > { %v356_v29 = vadd.f32 %v354_v15, %v340_v21  ;;  %1098 = vmatprep.subr.bf16.mxu0 %v1161_v2  ;;  %v363_v35 = vadd.f32 %v361_v19, %v355_v28  ;;  %v426_v15 = vmul.f32 %v424_v37, %v407_v58  ;;  %v433_v19 = vmul.f32 %v432_v59, %v407_v58  ;;  %v471_v58 = vld [vmem:[#allocation2 + $0x28] sm:$0x3] }
  0x27   : > { %v1340_v21 = vsub.s32 3, %v1235_v4  ;;  %v456_v28 = vrot.slane %v1291_v18, %v415_v34  ;;  %v441_v31 = vmul.f32 %v440_v1, %v408_v0  ;;  %v442_v32 = vmul.f32 %v440_v1, %v409_v16 }
  0x28   : > { %v364_v36 = vadd.f32 %v362_v22, %v356_v29  ;;  %v371_v43 = vadd.f32 %v369_v25, %v363_v35  ;;  %v410_v22 = vld [vmem:[#allocation2 + $0x57] sm:$0x3]  ;;  %v434_v25 = vmul.f32 %v432_v59, %v408_v0  ;;  %v449_v35 = vmul.f32 %v448_v20, %v409_v16 }
  0x29   : > { %1099 = vmatpush3.bf16.msra.mxu0 %v1142_v27  ;;  %v607_v27 = vsub.s32 5, %v1235_v4  ;;  %v480_v41 = vrot.slane %v1260_v9, %v1340_v21  ;;  %v457_v49 = vmul.f32 %v456_v28, %v410_v22  ;;  %v488_v53 = vrot.slane %v1267_v12, %v1340_v21 }
  0x2a   : > { %v372_v44 = vadd.f32 %v370_v30, %v364_v36  ;;  %v379_v50 = vadd.f32 %v377_v38, %v371_v43  ;;  %v450_v36 = vmul.f32 %v448_v20, %v410_v22  ;;  %v464_v38 = vrot.slane %v1305_v26, %v415_v34  ;;  %v412_v43 = vld [vmem:[#allocation2 + $0x77] sm:$0x3] }
  0x2b   : > { %v1348_v42 = vrot.slane %v1260_v9, %v607_v27  ;;  %v1360_v34 = vrot.slane %v1286_v17, %v607_v27  ;;  %v1370_v1 = vrot.slane %v1291_v18, %v607_v27 }
  0x2c   : > { %v380_v51 = vadd.f32 %v378_v39, %v372_v44  ;;  %v387_v55 = vadd.f32 %v385_v45, %v379_v50  ;;  %v1351_v44 = vrot.slane %v1267_v12, %v607_v27  ;;  %v1354_v45 = vrot.slane %v1272_v13, %v607_v27 }
  0x2d   : > { %v458_v50 = vmul.f32 %v456_v28, %v411_v33  ;;  %v466_v37 = vmul.f32 %v464_v38, %v412_v43 }
  0x2e   : > { %v388_v56 = vadd.f32 %v386_v46, %v380_v51  ;;  %v395_v60 = vadd.f32 %v393_v47, %v387_v55  ;;  %v1357_v46 = vrot.slane %v1277_v14, %v607_v27  ;;  %v469_v51 = vld [vmem:[#allocation2 + $0x8] sm:$0x3] }
  0x2f   : > { %v481_v59 = vmul.f32 %v480_v41, %v469_v51 }
  0x30   : > { %v396_v61 = vadd.f32 %v394_v52, %v388_v56  ;;  %v403_v3 = vadd.f32 %v401_v54, %v395_v60  ;;  %v470_v52 = vld [vmem:[#allocation2 + $0x18] sm:$0x3]  ;;  %v671_v54 = vsub.s32 6, %v1235_v4 }
  0x31   : > { %v482_v60 = vmul.f32 %v480_v41, %v470_v52 }
  0x32   : > { %v404_v5 = vadd.f32 %v402_v57, %v396_v61  ;;  %v419_v23 = vadd.f32 %v417_v62, %v403_v3  ;;  %v465_v57 = vmul.f32 %v464_v38, %v411_v33  ;;  %v496_v61 = vrot.slane %v1272_v13, %v1340_v21 }
  0x33   : > { %v504_v62 = vrot.slane %v1277_v14, %v1340_v21  ;;  %v1373_v3 = vrot.slane %v1305_v26, %v607_v27  ;;  %v1382_v16 = vrot.slane %v1272_v13, %v671_v54  ;;  %v512_v27 = vrot.slane %v1286_v17, %v1340_v21 }
  0x34   : > { %v420_v24 = vadd.f32 %v418_v63, %v404_v5  ;;  %v427_v29 = vadd.f32 %v425_v6, %v419_v23  ;;  %v472_v5 = vld [vmem:[#allocation2 + $0x38] sm:$0x3]  ;;  %v1376_v6 = vrot.slane %v1260_v9, %v671_v54  ;;  %v473_v23 = vld [vmem:[#allocation2 + $0x48] sm:$0x3]  ;;  %v543_v38 = vsub.s32 4, %v1235_v4 }
  0x35   : > { %v505_v33 = vmul.f32 %v504_v62, %v472_v5  ;;  %v1393_v41 = vrot.slane %v1286_v17, %v671_v54  ;;  %v1396_v43 = vrot.slane %v1291_v18, %v671_v54 }
  0x36   : > { %v428_v30 = vadd.f32 %v426_v15, %v420_v24  ;;  %v435_v39 = vadd.f32 %v433_v19, %v427_v29  ;;  %v1379_v15 = vrot.slane %v1267_v12, %v671_v54  ;;  %v1385_v19 = vrot.slane %v1277_v14, %v671_v54 }
  0x37   : > { %v489_v24 = vmul.f32 %v488_v53, %v470_v52  ;;  %v513_v52 = vmul.f32 %v512_v27, %v473_v23 }
  0x38   : > { %v436_v40 = vadd.f32 %v434_v25, %v428_v30  ;;  %v443_v47 = vadd.f32 %v441_v31, %v435_v39  ;;  %v490_v25 = vmul.f32 %v488_v53, %v471_v58  ;;  %v497_v30 = vmul.f32 %v496_v61, %v471_v58 }
  0x39   : > { %v498_v31 = vmul.f32 %v496_v61, %v472_v5  ;;  %v533_v61 = vld [vmem:[#allocation2 + $0x9] sm:$0x3] }
  0x3a   : > { %v444_v48 = vadd.f32 %v442_v32, %v436_v40  ;;  %v451_v55 = vadd.f32 %v449_v35, %v443_v47  ;;  %v474_v32 = vld [vmem:[#allocation2 + $0x58] sm:$0x3]  ;;  %v506_v35 = vmul.f32 %v504_v62, %v473_v23  ;;  %v475_v47 = vld [vmem:[#allocation2 + $0x68] sm:$0x3] }
  0x3b   : > { %v514_v53 = vmul.f32 %v512_v27, %v474_v32  ;;  %v534_v62 = vld [vmem:[#allocation2 + $0x19] sm:$0x3]  ;;  %v535_v5 = vld [vmem:[#allocation2 + $0x29] sm:$0x3] }
  0x3c   : > { %v452_v56 = vadd.f32 %v450_v36, %v444_v48  ;;  %v459_v63 = vadd.f32 %v457_v49, %v451_v55  ;;  %v520_v36 = vrot.slane %v1291_v18, %v1340_v21  ;;  %v528_v48 = vrot.slane %v1305_v26, %v1340_v21  ;;  %v476_v55 = vld [vmem:[#allocation2 + $0x78] sm:$0x3] }
  0x3d   : > { %v1401_v49 = vrot.slane %v1305_v26, %v671_v54  ;;  %v552_v54 = vrot.slane %v1267_v12, %v543_v38  ;;  %v536_v27 = vld [vmem:[#allocation2 + $0x39] sm:$0x3] }
  0x3e   : > { %v460_v0 = vadd.f32 %v458_v50, %v452_v56  ;;  %v467_v20 = vadd.f32 %v465_v57, %v459_v63  ;;  %v521_v56 = vmul.f32 %v520_v36, %v474_v32  ;;  %v522_v58 = vmul.f32 %v520_v36, %v475_v47  ;;  %v537_v32 = vld [vmem:[#allocation2 + $0x49] sm:$0x3] }
  0x3f   : > { %v530_v21 = vmul.f32 %v528_v48, %v476_v55 }
  0x40   : > { %v468_v22 = vadd.f32 %v466_v37, %v460_v0  ;;  %v483_v28 = vadd.f32 %v481_v59, %v467_v20  ;;  %v544_v59 = vrot.slane %v1260_v9, %v543_v38  ;;  %v560_v20 = vrot.slane %v1272_v13, %v543_v38 }
  0x41   : > { %v584_v13 = vrot.slane %v1291_v18, %v543_v38 }
  0x42   : > { %v484_v29 = vadd.f32 %v482_v60, %v468_v22  ;;  %v491_v39 = vadd.f32 %v489_v24, %v483_v28  ;;  %v529_v60 = vmul.f32 %v528_v48, %v475_v47  ;;  %v545_v24 = vmul.f32 %v544_v59, %v533_v61  ;;  %v597_v61 = vld [vmem:[#allocation2 + $0xa] sm:$0x3] }
  0x43   : > { %v568_v28 = vrot.slane %v1277_v14, %v543_v38  ;;  %v561_v12 = vmul.f32 %v560_v20, %v535_v5 }
  0x44   : > { %v492_v40 = vadd.f32 %v490_v25, %v484_v29  ;;  %v499_v50 = vadd.f32 %v497_v30, %v491_v39  ;;  %v546_v25 = vmul.f32 %v544_v59, %v534_v62  ;;  %v553_v30 = vmul.f32 %v552_v54, %v534_v62  ;;  %v598_v62 = vld [vmem:[#allocation2 + $0x1a] sm:$0x3] }
  0x45   : > { %v562_v39 = vmul.f32 %v560_v20, %v536_v27 }
  0x46   : > { %v500_v51 = vadd.f32 %v498_v31, %v492_v40  ;;  %v507_v57 = vadd.f32 %v505_v33, %v499_v50  ;;  %v554_v31 = vmul.f32 %v552_v54, %v535_v5  ;;  %v576_v33 = vrot.slane %v1286_v17, %v543_v38  ;;  %v538_v40 = vld [vmem:[#allocation2 + $0x59] sm:$0x3]  ;;  %v599_v54 = vld [vmem:[#allocation2 + $0x2a] sm:$0x3] }
  0x47   : > { %v569_v50 = vmul.f32 %v568_v28, %v536_v27  ;;  %v585_v59 = vmul.f32 %v584_v13, %v538_v40  ;;  %v618_v27 = vmul.f32 %v1351_v44, %v599_v54 }
  0x48   : > { %v508_v37 = vadd.f32 %v506_v35, %v500_v51  ;;  %v515_v63 = vadd.f32 %v513_v52, %v507_v57  ;;  %v570_v51 = vmul.f32 %v568_v28, %v537_v32  ;;  %v539_v52 = vld [vmem:[#allocation2 + $0x69] sm:$0x3]  ;;  %v577_v14 = vmul.f32 %v576_v33, %v537_v32  ;;  %v602_v32 = vld [vmem:[#allocation2 + $0x5a] sm:$0x3] }
  0x49   : > { %v592_v57 = vrot.slane %v1305_v26, %v543_v38  ;;  %v601_v28 = vld [vmem:[#allocation2 + $0x4a] sm:$0x3] }
  0x4a   : > { %v516_v0 = vadd.f32 %v514_v53, %v508_v37  ;;  %v523_v22 = vadd.f32 %v521_v56, %v515_v63  ;;  %v578_v56 = vmul.f32 %v576_v33, %v538_v40  ;;  %v540_v37 = vld [vmem:[#allocation2 + $0x79] sm:$0x3] }
  0x4c   : > { %v524_v23 = vadd.f32 %v522_v58, %v516_v0  ;;  %v531_v29 = vadd.f32 %v529_v60, %v523_v22  ;;  %v586_v60 = vmul.f32 %v584_v13, %v539_v52  ;;  %v593_v0 = vmul.f32 %v592_v57, %v539_v52  ;;  %v661_v52 = vld [vmem:[#allocation2 + $0xb] sm:$0x3] }
  0x4d   : > { %v609_v22 = vmul.f32 %v1348_v42, %v597_v61  ;;  %v641_v13 = vmul.f32 %v1360_v34, %v601_v28 }
  0x4e   : > { %v532_v9 = vadd.f32 %v530_v21, %v524_v23  ;;  %v547_v35 = vadd.f32 %v545_v24, %v531_v29  ;;  %v594_v21 = vmul.f32 %v592_v57, %v540_v37  ;;  %v610_v23 = vmul.f32 %v1348_v42, %v598_v62  ;;  %v600_v24 = vld [vmem:[#allocation2 + $0x3a] sm:$0x3]  ;;  %v663_v57 = vld [vmem:[#allocation2 + $0x2b] sm:$0x3] }
  0x4f   : > { %v634_v42 = vmul.f32 %v1357_v46, %v601_v28  ;;  %v668_v28 = vld [vmem:[#allocation2 + $0x7b] sm:$0x3] }
  0x50   : > { %v548_v36 = vadd.f32 %v546_v25, %v532_v9  ;;  %v555_v47 = vadd.f32 %v553_v30, %v547_v35  ;;  %v617_v25 = vmul.f32 %v1351_v44, %v598_v62  ;;  %v625_v30 = vmul.f32 %v1354_v45, %v599_v54  ;;  %v666_v54 = vld [vmem:[#allocation2 + $0x5b] sm:$0x3] }
  0x51   : > { %v642_v44 = vmul.f32 %v1360_v34, %v602_v32  ;;  %v673_v34 = vmul.f32 %v1376_v6, %v661_v52  ;;  %v682_v62 = vmul.f32 %v1379_v15, %v663_v57  ;;  %v1046_v52 = vld [vmem:[%s1491_s3] ss:$0 sm:$0xff] }
  0x52   : > { %v556_v48 = vadd.f32 %v554_v31, %v548_v36  ;;  %v563_v53 = vadd.f32 %v561_v12, %v555_v47  ;;  %v626_v31 = vmul.f32 %v1354_v45, %v600_v24  ;;  %v633_v36 = vmul.f32 %v1357_v46, %v600_v24  ;;  %v603_v12 = vld [vmem:[#allocation2 + $0x6a] sm:$0x3]  ;;  %v604_v47 = vld [vmem:[#allocation2 + $0x7a] sm:$0x3] }
  0x53   : > { %v650_v45 = vmul.f32 %v1370_v1, %v603_v12  ;;  %v657_v46 = vmul.f32 %v1373_v3, %v603_v12  ;;  %v1163_v24 = vmov 1983009808  }
  0x54   : > { %v564_v55 = vadd.f32 %v562_v39, %v556_v48  ;;  %v571_v17 = vadd.f32 %v569_v50, %v563_v53 }
  0x56   : > { %v572_v58 = vadd.f32 %v570_v51, %v564_v55  ;;  %v579_v63 = vadd.f32 %v577_v14, %v571_v17  ;;  %v649_v51 = vmul.f32 %v1370_v1, %v602_v32  ;;  %v662_v14 = vld [vmem:[#allocation2 + $0x1b] sm:$0x3] }
  0x57   : > { %v681_v1 = vmul.f32 %v1379_v15, %v662_v14 }
  0x58   : > { %v580_v18 = vadd.f32 %v578_v56, %v572_v58  ;;  %v587_v5 = vadd.f32 %v585_v59, %v579_v63  ;;  %v658_v56 = vmul.f32 %v1373_v3, %v604_v47  ;;  %v674_v58 = vmul.f32 %v1376_v6, %v662_v14  ;;  %v664_v59 = vld [vmem:[#allocation2 + $0x3b] sm:$0x3]  ;;  %v665_v63 = vld [vmem:[#allocation2 + $0x4b] sm:$0x3]  ;;  %v1146_v47 = vld [vmem:[%s1492_s4 + $0x20] sm:$0xff]  }
  0x59   : > { %v690_v3 = vmul.f32 %v1382_v16, %v664_v59  ;;  %v698_v6 = vmul.f32 %v1385_v19, %v665_v63  ;;  %v705_v15 = vmul.f32 %v1393_v41, %v665_v63 }
  0x5a   : > { %v588_v20 = vadd.f32 %v586_v60, %v580_v18  ;;  %v595_v26 = vadd.f32 %v593_v0, %v587_v5 }
  0x5c   : > { %v596_v38 = vadd.f32 %v594_v21, %v588_v20  ;;  %v611_v29 = vadd.f32 %v609_v22, %v595_v26  ;;  %v689_v21 = vmul.f32 %v1382_v16, %v663_v57  ;;  %v697_v22 = vmul.f32 %v1385_v19, %v664_v59 }
  0x5d   : > { %v729_v26 = vunpack.c.l.s4 %v1163_v24  ;;  %v713_v16 = vmul.f32 %v1396_v43, %v666_v54 }
  0x5e   : > { %v612_v9 = vadd.f32 %v610_v23, %v596_v38  ;;  %v619_v33 = vadd.f32 %v617_v25, %v611_v29  ;;  %v667_v23 = vld [vmem:[#allocation2 + $0x6b] sm:$0x3] }
  0x60   : > { %v620_v35 = vadd.f32 %v618_v27, %v612_v9  ;;  %v627_v39 = vadd.f32 %v625_v30, %v619_v33  ;;  %v706_v27 = vmul.f32 %v1393_v41, %v666_v54  ;;  %v714_v30 = vmul.f32 %v1396_v43, %v667_v23  ;;  %v1143_v43 = vld [vmem:[%s1492_s4 + $0x38] sm:$0xff]  }
  0x61   : > { %v722_v33 = vmul.f32 %v1401_v49, %v668_v28  ;;  %1105 = vmatpush3.bf16.msra.mxu1 %v1143_v43 }
  0x62   : > { %v628_v40 = vadd.f32 %v626_v31, %v620_v35  ;;  %v635_v48 = vadd.f32 %v633_v36, %v627_v39  ;;  %v721_v31 = vmul.f32 %v1401_v49, %v667_v23  ;;  %v730_v35 = vunpack.c.0.s8 %v729_v26  ;;  %1106 = vmatprep.subr.bf16.mxu1 %v1161_v2  ;;  %v1144_v49 = vld [vmem:[%s1492_s4 + $0x30] sm:$0xff]  }
  0x64   : > { %v636_v50 = vadd.f32 %v634_v42, %v628_v40  ;;  %v643_v53 = vadd.f32 %v641_v13, %v635_v48  ;;  %v733_v41 = vsub.s32 %v730_v35, %v1235_v4  ;;  %v1145_v4 = vld [vmem:[%s1492_s4 + $0x28] sm:$0xff]   ;;  %v1147_v48 = vld [vmem:[%s1492_s4 + $0x18] sm:$0xff]  }
  0x65   : > { %1107 = vmatpush3.bf16.msra.mxu1 %v1144_v49 }
  0x66   : > { %v644_v55 = vadd.f32 %v642_v44, %v636_v50  ;;  %v651_v37 = vadd.f32 %v649_v51, %v643_v53  ;;  %1108 = vmatprep.subr.bf16.mxu1 %v1161_v2  ;;  %v1148_v50 = vld [vmem:[%s1492_s4 + $0x10] sm:$0xff]   ;;  %v1149_v51 = vld [vmem:[%s1492_s4 + $0x8] sm:$0xff]  }
  0x68   : > { %v652_v17 = vadd.f32 %v650_v45, %v644_v55  ;;  %v659_v60 = vadd.f32 %v657_v46, %v651_v37  ;;  %v1150_v45 = vld [vmem:[%s1492_s4] sm:$0xff]  }
  0x69   : > { %1109 = vmatpush3.bf16.msra.mxu1 %v1145_v4 }
  0x6a   : > { %v660_v61 = vadd.f32 %v658_v56, %v652_v17  ;;  %v675_v18 = vadd.f32 %v673_v34, %v659_v60  ;;  %1110 = vmatprep.subr.bf16.mxu1 %v1161_v2 }
  0x6c   : > { %v676_v0 = vadd.f32 %v674_v58, %v660_v61  ;;  %v683_v5 = vadd.f32 %v681_v1, %v675_v18 }
  0x6d   : > { %1111 = vmatpush3.bf16.msra.mxu1 %v1146_v47 }
  0x6e   : > { %v684_v20 = vadd.f32 %v682_v62, %v676_v0  ;;  %v691_v38 = vadd.f32 %v689_v21, %v683_v5  ;;  %1112 = vmatprep.subr.bf16.mxu1 %v1161_v2  ;;  %v1055_v62 = vld [vmem:[%s1493_s5] ss:$0 sm:$0xff] }
  0x70   : > { %v692_v25 = vadd.f32 %v690_v3, %v684_v20  ;;  %v699_v29 = vadd.f32 %v697_v22, %v691_v38 }
  0x71   : > { %1113 = vmatpush3.bf16.msra.mxu1 %v1147_v48 }
  0x72   : > { %v700_v9 = vadd.f32 %v698_v6, %v692_v25  ;;  %v707_v32 = vadd.f32 %v705_v15, %v699_v29  ;;  %1114 = vmatprep.subr.bf16.mxu1 %v1161_v2 }
  0x74   : > { %v708_v19 = vadd.f32 %v706_v27, %v700_v9  ;;  %v715_v36 = vadd.f32 %v713_v16, %v707_v32 }
  0x75   : > { %1115 = vmatpush3.bf16.msra.mxu1 %v1148_v50 }
  0x76   : > { %v716_v42 = vadd.f32 %v714_v30, %v708_v19  ;;  %v723_v12 = vadd.f32 %v721_v31, %v715_v36  ;;  %1116 = vmatprep.subr.bf16.mxu1 %v1161_v2 }
  0x78   : > { %v724_v39 = vadd.f32 %v722_v33, %v716_v42 }
  0x79   : > { %1117 = vmatpush3.bf16.msra.mxu1 %v1149_v51 }
  0x7a   : > { %v727_v40 = vcombine.low %v723_v12, %v724_v39  ;;  %1118 = vmatprep.subr.bf16.mxu1 %v1161_v2 }
  0x7c   : > { %v734_v13 = vrot.slane %v727_v40, %v733_v41 }
  0x7d   : > { %1119 = vmatpush3.bf16.msra.mxu1 %v1150_v45 }
  0x7e   : > { %v736_v44 = vpack.c.bf16 %v734_v13, %v734_v13 }
  0x80   : > { %1101 = vmatmul.mubr.bf16.vlgmr.msra.gmra.mxu0 %v736_v44 }
 0x140   : > { %v842_v14 = vpop.f32.mrf.mxu0 }
 0x141   : > { %v843_v53 = vadd.f32 %v1046_v52, %v842_v14 }
 0x142   : > { %v1102_v55 = vpop.f32.mrf.mxu0 }
 0x143   : > { %v849_v46 = vmul.f32 0.044715, %v843_v53  ;;  %v848_v60 = vmul.f32 0.5, %v843_v53 }
 0x144   : > { %v845_v56 = vpop.f32.mrf.mxu0 }
 0x145   : > { %v850_v57 = vmul.f32 %v849_v46, %v843_v53 }
 0x146   : > { %v1103_v37 = vpop.f32.mrf.mxu0 }
 0x147   : > { %v851_v17 = vmul.f32 %v850_v57, %v843_v53 }
 0x149   : > { %v852_v34 = vadd.f32 %v851_v17, %v843_v53 }
 0x14b   : > { %v853_v58 = vmul.f32 0.7978846, %v852_v34 }
 0x14d   : > { %1151 = vtanh.f32 %v853_v58 }
 0x15a   : > { %v1152_v59 = vpop.eup %1151 }
 0x15b   : > { %v855_v2 = vadd.f32 1.0, %v1152_v59 }
 0x15d   : > { %v856_v61 = vmul.f32 %v855_v2, %v848_v60 }
 0x15f   : > { %v857_v1 = vpack.c.bf16 %v856_v61, %v856_v61 }
 0x161   : > { %1121 = vmatmul.mubr.bf16.vlgmr.msra.gmra.mxu1 %v857_v1 }
 0x221   : > { %v963_v63 = vpop.f32.mrf.mxu1 }
 0x222   : > { %v964_v18 = vadd.f32 %v1055_v62, %v963_v63 }
 0x223   : > { %v1122_v0 = vpop.f32.mrf.mxu1 }
 0x224   : > { %v976_v21 = vrot.slane %v964_v18, %v733_v41 }
 0x225   : > { %v966_v3 = vpop.f32.mrf.mxu1 }
 0x226   : > { %v977_v54 = vcombine.high %v976_v21, %v976_v21  ;;  %v980_v5 = vadd.f32 %v976_v21, %v250_v10 }
 0x227   : > { %v1123_v20 = vpop.f32.mrf.mxu1 }
 0x228   : > { %v981_v22 = vadd.f32 %v977_v54, %v251_v11  ;;  %v982_v6 = vpack.c.bf16 %v980_v5, %v980_v5 }
 0x22a   : > { %v983_v23 = vpack.c.bf16 %v981_v22, %v981_v22  ;;  %984 = vst [vmem:[%s246_s13] sm:$0x1] %v982_v6 }
 0x22c   : > { %985 = vst [vmem:[%s246_s13 + $0x1] sm:$0x1] %v983_v23 }
 0x22d PF: > { %s16_s21 = sadd.s32 1, %s1159_s21  }
 0x22e   : > { %p13_p4 = scmp.ge.s32.totalorder %s16_s21, 4  }
 0x230   :  { %15 = sbr.rel (!%p13_p4) target bundleno = 1 (0x1), region = 76 }

// kernel: convnext2d_forward.17
= control target key start
LH: loop header
LB: loop body
LE: loop exit
PB: predicated region body
PF: predicated region fallthrough
CT: control target
= control target key end

     0   :  { %v505_v22 = vmov 1966171168   ;;  %v99_v24 = vlaneseq  ;;  %s631_s1 = inlined_call_operand.vmem [shape: bf16[512,128], index: 1, kind: input, shape index: {}]   ;;  %s632_s0 = inlined_call_operand.vmem [shape: bf16[2,512], index: 0, kind: input, shape index: {}]   ;;  %s633_s2 = inlined_call_operand.vmem [shape: f32[1,128], index: 2, kind: input, shape index: {}]   ;;  %s634_s3 = inlined_call_operand.vmem [shape: bf16[2,128], index: 3, kind: output, shape index: {}]  }
   0x1   :  { %v473_v0 = vld [vmem:[%s631_s1 + $0x78] sm:$0xff]   ;;  %v477_v4 = vld [vmem:[%s631_s1 + $0x70] sm:$0xff]   ;;  %v481_v8 = vld [vmem:[%s631_s1 + $0x68] sm:$0xff]   ;;  %v97_v23 = vunpack.c.l.s4 %v505_v22 }
   0x2   :  { %v474_v1 = vld [vmem:[%s631_s1 + $0xf8] sm:$0xff]   ;;  %428 = vmatprep.subr.bf16.mxu0 %v473_v0  ;;  %v478_v5 = vld [vmem:[%s631_s1 + $0xf0] sm:$0xff]   ;;  %v482_v9 = vld [vmem:[%s631_s1 + $0xe8] sm:$0xff]   ;;  %v100_v30 = vshrl.u32 %v99_v24, 7 }
   0x3   :  { %v475_v2 = vld [vmem:[%s631_s1 + $0x38] sm:$0xff]   ;;  %450 = vmatprep.subr.bf16.mxu1 %v474_v1  ;;  %v479_v6 = vld [vmem:[%s631_s1 + $0x30] sm:$0xff]   ;;  %v483_v10 = vld [vmem:[%s631_s1 + $0x28] sm:$0xff]   ;;  %v98_v29 = vunpack.c.0.s8 %v97_v23 }
   0x4   :  { %v476_v3 = vld [vmem:[%s631_s1 + $0xb8] sm:$0xff]   ;;  %429 = vmatpush3.bf16.msra.mxu0 %v475_v2  ;;  %v480_v7 = vld [vmem:[%s631_s1 + $0xb0] sm:$0xff]   ;;  %v484_v11 = vld [vmem:[%s631_s1 + $0xa8] sm:$0xff]  }
   0x5   :  { %451 = vmatpush3.bf16.msra.mxu1 %v476_v3  ;;  %430 = vmatprep.subr.bf16.mxu0 %v477_v4  ;;  %v485_v12 = vld [vmem:[%s631_s1 + $0x60] sm:$0xff]   ;;  %v489_v16 = vld [vmem:[%s631_s1 + $0x58] sm:$0xff]   ;;  %v493_v20 = vld [vmem:[%s631_s1 + $0x50] sm:$0xff]   ;;  %v101_v35 = vsub.s32 %v98_v29, %v100_v30 }
   0x6   :  { %452 = vmatprep.subr.bf16.mxu1 %v478_v5  ;;  %v486_v13 = vld [vmem:[%s631_s1 + $0xe0] sm:$0xff]   ;;  %v490_v17 = vld [vmem:[%s631_s1 + $0xd8] sm:$0xff]   ;;  %v494_v21 = vld [vmem:[%s631_s1 + $0xd0] sm:$0xff]  }
   0x7   :  { %v487_v14 = vld [vmem:[%s631_s1 + $0x20] sm:$0xff]   ;;  %v491_v18 = vld [vmem:[%s631_s1 + $0x18] sm:$0xff]   ;;  %v495_v25 = vld [vmem:[%s631_s1 + $0x10] sm:$0xff]  }
   0x8   :  { %431 = vmatpush3.bf16.msra.mxu0 %v479_v6  ;;  %v488_v15 = vld [vmem:[%s631_s1 + $0xa0] sm:$0xff]   ;;  %v492_v19 = vld [vmem:[%s631_s1 + $0x98] sm:$0xff]   ;;  %v496_v26 = vld [vmem:[%s631_s1 + $0x90] sm:$0xff]  }
   0x9   :  { %453 = vmatpush3.bf16.msra.mxu1 %v480_v7  ;;  %432 = vmatprep.subr.bf16.mxu0 %v481_v8  ;;  %v497_v27 = vld [vmem:[%s631_s1 + $0x48] sm:$0xff]   ;;  %v501_v33 = vld [vmem:[%s631_s1 + $0x40] sm:$0xff]  }
   0xa   :  { %454 = vmatprep.subr.bf16.mxu1 %v482_v9  ;;  %v498_v28 = vld [vmem:[%s631_s1 + $0xc8] sm:$0xff]   ;;  %v502_v34 = vld [vmem:[%s631_s1 + $0xc0] sm:$0xff]  }
   0xb   :  { %v499_v31 = vld [vmem:[%s631_s1 + $0x8] sm:$0xff]   ;;  %v503_v36 = vld [vmem:[%s631_s1] sm:$0xff]  }
   0xc   :  { %433 = vmatpush3.bf16.msra.mxu0 %v483_v10  ;;  %v500_v32 = vld [vmem:[%s631_s1 + $0x88] sm:$0xff]   ;;  %v504_v37 = vld [vmem:[%s631_s1 + $0x80] sm:$0xff]  }
   0xd   :  { %455 = vmatpush3.bf16.msra.mxu1 %v484_v11  ;;  %434 = vmatprep.subr.bf16.mxu0 %v485_v12  ;;  %v395_v38 = vld.sshfl [vmem:[%s632_s0] sm:$0x33 pattern:$0x75316420] }
   0xe   :  { %456 = vmatprep.subr.bf16.mxu1 %v486_v13  ;;  %v95_v39 = vcombine.high %v395_v38, %v395_v38  ;;  %v102_v40 = vrot.slane %v395_v38, %v101_v35  ;;  %v394_v46 = vld [vmem:[%s633_s2] ss:$0 sm:$0xff] }
  0x10   :  { %435 = vmatpush3.bf16.msra.mxu0 %v487_v14  ;;  %v109_v41 = vrot.slane %v95_v39, %v101_v35  ;;  %v110_v42 = vcombine.high %v102_v40, %v102_v40 }
  0x11   :  { %457 = vmatpush3.bf16.msra.mxu1 %v488_v15  ;;  %436 = vmatprep.subr.bf16.mxu0 %v489_v16 }
  0x12   :  { %458 = vmatprep.subr.bf16.mxu1 %v490_v17  ;;  %340 = vmatprep.mubr.bf16.mxu0 %v109_v41  ;;  %v111_v43 = vcombine.high %v109_v41, %v109_v41 }
  0x14   :  { %437 = vmatpush3.bf16.msra.mxu0 %v491_v18  ;;  %380 = vmatprep.mubr.bf16.mxu1 %v111_v43 }
  0x15   :  { %459 = vmatpush3.bf16.msra.mxu1 %v492_v19  ;;  %438 = vmatprep.subr.bf16.mxu0 %v493_v20 }
  0x16   :  { %460 = vmatprep.subr.bf16.mxu1 %v494_v21 }
  0x18   :  { %439 = vmatpush3.bf16.msra.mxu0 %v495_v25 }
  0x19   :  { %461 = vmatpush3.bf16.msra.mxu1 %v496_v26  ;;  %440 = vmatprep.subr.bf16.mxu0 %v497_v27 }
  0x1a   :  { %462 = vmatprep.subr.bf16.mxu1 %v498_v28 }
  0x1c   :  { %441 = vmatpush3.bf16.msra.mxu0 %v499_v31 }
  0x1d   :  { %463 = vmatpush3.bf16.msra.mxu1 %v500_v32  ;;  %442 = vmatprep.subr.bf16.mxu0 %v501_v33 }
  0x1e   :  { %464 = vmatprep.subr.bf16.mxu1 %v502_v34 }
  0x20   :  { %443 = vmatpush3.bf16.msra.mxu0 %v503_v36 }
  0x21   :  { %465 = vmatpush3.bf16.msra.mxu1 %v504_v37 }
  0x23   :  { %341 = vmatmul.mubr.bf16.vlgmr.msra.gmra.mxu0 %v102_v40 }
  0x24   :  { %381 = vmatmul.mubr.bf16.vlgmr.msra.gmra.mxu1 %v110_v42 }
  0xe3   :  { %v444_v44 = vpop.f32.mrf.mxu0 }
  0xe4   :  { %v466_v45 = vpop.f32.mrf.mxu1 }
  0xe5   :  { %v445_v47 = vpop.f32.mrf.mxu0 }
  0xe6   :  { %v446_v48 = vadd.f32 %v445_v47, %v444_v44  ;;  %v467_v49 = vpop.f32.mrf.mxu1 }
  0xe7   :  { %v447_v50 = vpop.f32.mrf.mxu0  ;;  %v468_v52 = vadd.f32 %v467_v49, %v466_v45 }
  0xe8   :  { %v343_v51 = vadd.f32 %v446_v48, %v394_v46  ;;  %v469_v53 = vpop.f32.mrf.mxu1 }
  0xe9   :  { %v448_v54 = vpop.f32.mrf.mxu0 }
  0xea   :  { %v383_v55 = vadd.f32 %v468_v52, %v343_v51  ;;  %v470_v56 = vpop.f32.mrf.mxu1 }
  0xec   :  { %v388_v57 = vpack.c.bf16 %v383_v55, %v383_v55 }
  0xee   :  { %389 = vst [vmem:[%s634_s3] sm:$0x1] %v388_v57 }

// kernel: mul.75
= control target key start
LH: loop header
LB: loop body
LE: loop exit
PB: predicated region body
PF: predicated region fallthrough
CT: control target
= control target key end

     0   :  { %s34_s0 = inlined_call_operand.vmem [shape: f32[64], index: 0, kind: input, shape index: {}]   ;;  %s35_s1 = inlined_call_operand.vmem [shape: f32[64], index: 1, kind: input, shape index: {}]   ;;  %s36_s2 = inlined_call_operand.vmem [shape: f32[64], index: 2, kind: output, shape index: {}]  }
   0x1   :  { %v3_v0 = vld [vmem:[%s34_s0] sm:$0x1] }
   0x2   :  { %v4_v1 = vld [vmem:[%s35_s1] sm:$0x1] }
   0x3   :  { %v7_v2 = vmul.f32 %v4_v1, %v3_v0 }
   0x5   :  { %9 = vst [vmem:[%s36_s2] sm:$0x1] %v7_v2 }

// kernel: convnext2d_forward.19
= control target key start
LH: loop header
LB: loop body
LE: loop exit
PB: predicated region body
PF: predicated region fallthrough
CT: control target
= control target key end

     0   :  { %v234_v1 = vmov 0.0   ;;  %vm235_vm0 = vmmov 0   ;;  %s293_s0 = inlined_call_operand.vmem [shape: bf16[2,1,128], index: 0, kind: input, shape index: {}]   ;;  %s294_s1 = inlined_call_operand.vmem [shape: bf16[128,128], index: 1, kind: input, shape index: {}]   ;;  %s295_s2 = inlined_call_operand.vmem [shape: f32[1,128], index: 2, kind: input, shape index: {}]   ;;  %s296_s3 = inlined_call_operand.hbm [shape: f32[2,128], index: 3, kind: output, shape index: {}]  }
   0x1   :  { %v202_v0 = vld [vmem:[%s294_s1 + $0x38] sm:$0xff]   ;;  %179 = vmatprep.subr.bf16.mxu0 %v234_v1  ;;  %v203_v2 = vld [vmem:[%s294_s1 + $0x30] sm:$0xff]   ;;  %195 = vmatprep.mubr.msk.bf16.mxu0 %vm235_vm0, %v234_v1  ;;  %v204_v3 = vld [vmem:[%s294_s1 + $0x28] sm:$0xff]  }
   0x2   :  { %180 = vmatpush3.bf16.msra.mxu0 %v202_v0  ;;  %v205_v4 = vld [vmem:[%s294_s1 + $0x20] sm:$0xff]  }
   0x3   :  { %181 = vmatprep.subr.bf16.mxu0 %v234_v1 }
   0x6   :  { %182 = vmatpush3.bf16.msra.mxu0 %v203_v2 }
   0x7   :  { %183 = vmatprep.subr.bf16.mxu0 %v234_v1 }
   0xa   :  { %184 = vmatpush3.bf16.msra.mxu0 %v204_v3 }
   0xb   :  { %8 = vsyncpa [#allocation3], 0  ;;  %185 = vmatprep.subr.bf16.mxu0 %v234_v1  ;;  %v206_v5 = vld [vmem:[%s294_s1 + $0x18] sm:$0xff]   ;;  %v211_v6 = vld [vmem:[%s293_s0 + $0x1] ss:$0 sps:$4 sm:$0x11]  }
   0xc   :  { %v207_v7 = vld [vmem:[%s294_s1 + $0x10] sm:$0xff]   ;;  %v210_v8 = vld [vmem:[%s293_s0] ss:$0 sps:$4 sm:$0x11]   ;;  %v50_v9 = vunpack.c.l.b16 %v211_v6  ;;  %v208_v10 = vld [vmem:[%s294_s1 + $0x8] sm:$0xff]   ;;  %vm52_vm1 = vcmask 1041409  }
   0xd   :  { %v49_v11 = vunpack.c.l.b16 %v210_v8  ;;  %v209_v13 = vld [vmem:[%s294_s1] sm:$0xff]   ;;  %s236_s6 = smov [#allocation2]  }
   0xe   :  { %186 = vmatpush3.bf16.msra.mxu0 %v205_v4  ;;  %v51_v12 = vrot.slane %v50_v9, 7  ;;  %v161_v16 = vld [vmem:[%s295_s2] ss:$0 sm:$0xff]  ;;  %s151_s7 = sshll.u32 %s236_s6, 4  ;;  %s152_s7 = int_to_ptr.vmem [resolvable:$true] %s151_s7 }
   0xf   :  { %187 = vmatprep.subr.bf16.mxu0 %v234_v1  ;;  %s212_s8 = scalar_lea.vmem %s152_s7, 32  ;;  %p217_p1 = scmp.lt.s32.totalorder %s152_s7, %s152_s7 }
  0x10   :  { %v53_v14 = vsel %vm52_vm1, %v51_v12, %v49_v11  ;;  %p213_p0 = scmp.ne.s32.totalorder %s152_s7, %s212_s8  ;;  %p218_p2 = scmp.lt.s32.totalorder %s212_s8, %s212_s8 }
  0x11   :  { %v54_v15 = vpack.c.b16 %v53_v14, %v53_v14 }
  0x12   :  { %188 = vmatpush3.bf16.msra.mxu0 %v206_v5  ;;  %p219_p3 = por %p218_p2, %p217_p1 }
  0x13   :  { %189 = vmatprep.subr.bf16.mxu0 %v234_v1 }
  0x14   :  { %p220_p4 = pnand %p219_p3, %p213_p0 }
  0x16   :  { %190 = vmatpush3.bf16.msra.mxu0 %v207_v7 }
  0x17   :  { %191 = vmatprep.subr.bf16.mxu0 %v234_v1 }
  0x1a   :  { %192 = vmatpush3.bf16.msra.mxu0 %v208_v10 }
  0x1b   :  { %193 = vmatprep.subr.bf16.mxu0 %v234_v1 }
  0x1e   :  { %194 = vmatpush3.bf16.msra.mxu0 %v209_v13 }
  0x21   :  { %196 = vmatmul.mubr.bf16.vlgmr.msra.gmra.mxu0 %v54_v15 }
  0xe1   :  { %v138_v17 = vpop.f32.mrf.mxu0 }
  0xe2   :  { %v139_v18 = vadd.f32 %v161_v16, %v138_v17 }
  0xe3   :  { %v197_v19 = vpop.f32.mrf.mxu0 }
  0xe4   :  { %144 = vst [vmem:[#allocation2] sm:$0x3] %v139_v18 }
  0xe5   :  { %v141_v20 = vpop.f32.mrf.mxu0 }
  0xe6   :  { %223 = shalt.err (!%p220_p4)
}
  0xe7   :  { %154 = dma.vmem_to_hbm [thread:$0]  %s152_s7, 32, %s296_s3, [#allocation3]   ;;  %v198_v21 = vpop.f32.mrf.mxu0 }
  0xe8   :  { %232 = dma.done.wait [#allocation3], 32  }
  0xe9   :  { %233 = vsyncadd [#allocation3], 4294967264 }
  0xea   :  { %158 = vsyncpa [#allocation3], 1 }

// kernel: convnext2d_forward.18
= control target key start
LH: loop header
LB: loop body
LE: loop exit
PB: predicated region body
PF: predicated region fallthrough
CT: control target
= control target key end

     0   :  { %s1057_s21 = smov 0   ;;  %s1277_s0 = inlined_call_operand.vmem [shape: bf16[2,1,1,128], index: 0, kind: input, shape index: {}]   ;;  %s1278_s1 = inlined_call_operand.vmem [shape: f32[7,7,128], index: 1, kind: input, shape index: {}]   ;;  %s1279_s2 = inlined_call_operand.vmem [shape: bf16[128,256], index: 2, kind: input, shape index: {}]   ;;  %s1280_s3 = inlined_call_operand.vmem [shape: f32[1,256], index: 3, kind: input, shape index: {}]   ;;  %s1281_s4 = inlined_call_operand.vmem [shape: bf16[256,128], index: 4, kind: input, shape index: {}]   ;;  %s1282_s5 = inlined_call_operand.vmem [shape: f32[1,128], index: 5, kind: input, shape index: {}]   ;;  %s1283_s6 = inlined_call_operand.vmem [shape: bf16[2,1,1,128], index: 6, kind: output, shape index: {}]  }
   0x1 LB: > { %s897_s22 = sadd.s32 4294967295, %s1018_s21   ;;  %p901_p0 = scmp.ge.s32.totalorder %s1018_s21, 1  ;;  %s1018_s21 = sphi %s1057_s21, %s16_s21  }
   0x2   : > { %p210_p1 = scmp.lt.s32.totalorder %s1018_s21, 3 }
   0x4   : > { %p211_p2 = pnand %p901_p0, %p210_p1 }
   0x5   : > { %p1068_p3 = scmp.lt.s32.totalorder (!%p211_p2), %s897_s22, 1 }
   0x6   : > { %214 = sbr.rel (%p211_p2) target bundleno = 555 (0x22b), region = 44 }
   0xb   : > { %v968_v0 = vld [vmem:[%s1279_s2 + $0x74] ss:$8 sps:$4 sm:$0xff]   ;;  %v970_v1 = vld [vmem:[%s1279_s2 + $0x70] ss:$8 sps:$4 sm:$0xff]   ;;  %v1020_v2 = vmov 0   ;;  %v1021_v4 = vmov 0.0  }
   0xc   : > { %647 = vmatprep.mubr.bf16.mxu0 %v1020_v2  ;;  %615 = vmatprep.subr.bf16.mxu0 %v968_v0  ;;  %v971_v3 = vld [vmem:[%s1279_s2 + $0x64] ss:$8 sps:$4 sm:$0xff]   ;;  %245 = vst [vmem:[#allocation2] sm:$0xff] %v1021_v4  ;;  %246 = vst [vmem:[#allocation2 + $0x8] sm:$0xf] %v1021_v4  ;;  %s1286_s22 = smov (!%p1068_p3, %s897_s22), 1 }
   0xd   : > { %247 = vst [vmem:[#allocation2 + $0x10] sm:$0xff] %v1021_v4  ;;  %248 = vst [vmem:[#allocation2 + $0x18] sm:$0xf] %v1021_v4  ;;  %616 = vmatpush1.bf16.msra.mxu0 %v970_v1  ;;  %v973_v5 = vld [vmem:[%s1279_s2 + $0x60] ss:$8 sps:$4 sm:$0xff]   ;;  %s238_s14 = scalar_lea.vmem %s1277_s0, %s1286_s22  ;;  %s241_s23 = scalar_lea.vmem %s1283_s6, %s1286_s22  ;;  %vm847_vm0 = vcmask 1040384  }
   0xe   : > { %249 = vst [vmem:[#allocation2 + $0x20] sm:$0xff] %v1021_v4  ;;  %250 = vst [vmem:[#allocation2 + $0x28] sm:$0xf] %v1021_v4  ;;  %617 = vmatprep.subr.bf16.mxu0 %v971_v3  ;;  %v974_v6 = vld [vmem:[%s1279_s2 + $0x54] ss:$8 sps:$4 sm:$0xff]  }
   0xf   : > { %252 = vst [vmem:[#allocation2 + $0x40] sm:$0xff] %v1021_v4  ;;  %253 = vst [vmem:[#allocation2 + $0x48] sm:$0xf] %v1021_v4  ;;  %v976_v7 = vld [vmem:[%s1279_s2 + $0x50] ss:$8 sps:$4 sm:$0xff]  }
  0x10   : > { %254 = vst [vmem:[#allocation2 + $0x50] sm:$0xff] %v1021_v4  ;;  %255 = vst [vmem:[#allocation2 + $0x58] sm:$0xf] %v1021_v4  ;;  %v977_v8 = vld [vmem:[%s1279_s2 + $0x44] ss:$8 sps:$4 sm:$0xff]  }
  0x11   : > { %256 = vst [vmem:[#allocation2 + $0x60] sm:$0xff] %v1021_v4  ;;  %257 = vst [vmem:[#allocation2 + $0x68] sm:$0xf] %v1021_v4  ;;  %618 = vmatpush1.bf16.msra.mxu0 %v973_v5  ;;  %v1098_v9 = vld [vmem:[%s238_s14] sm:$0x1] }
  0x12   : > { %259 = vst [vmem:[#allocation2 + $0x30] sm:$0xff] %v1021_v4  ;;  %260 = vst [vmem:[#allocation2 + $0x39] sm:$0x7] %v1021_v4  ;;  %619 = vmatprep.subr.bf16.mxu0 %v974_v6  ;;  %v979_v10 = vld [vmem:[%s1279_s2 + $0x40] ss:$8 sps:$4 sm:$0xff]   ;;  %v244_v11 = vunpack.c.l.bf16 %v1098_v9 }
  0x13   : > { %v1107_v12 = vld [vmem:[%s1278_s1] sm:$0x7f]  ;;  %v1112_v13 = vld [vmem:[%s1278_s1 + $0x8] sm:$0x7f]  ;;  %v980_v14 = vld [vmem:[%s1279_s2 + $0x34] ss:$8 sps:$4 sm:$0xff]  }
  0x14   : > { %v1120_v15 = vld [vmem:[%s1278_s1 + $0x10] sm:$0x7f]  ;;  %261 = vst [vmem:[#allocation2 + $0x38] sm:$0x1] %v244_v11  ;;  %v1127_v16 = vld [vmem:[%s1278_s1 + $0x18] sm:$0x7f] }
  0x15   : > { %620 = vmatpush1.bf16.msra.mxu0 %v976_v7  ;;  %v269_v17 = vld [vmem:[#allocation2 + $0x5] sm:$0x1]  ;;  %v270_v18 = vld [vmem:[#allocation2 + $0x15] sm:$0x1]  ;;  %v982_v23 = vld [vmem:[%s1279_s2 + $0x30] ss:$8 sps:$4 sm:$0xff]  }
  0x16   : > { %621 = vmatprep.subr.bf16.mxu0 %v977_v8  ;;  %v271_v19 = vld [vmem:[#allocation2 + $0x25] sm:$0x1]  ;;  %v276_v21 = vmul.f32 %v269_v17, %v1107_v12  ;;  %v277_v22 = vmul.f32 %v270_v18, %v1112_v13  ;;  %v1147_v30 = vld [vmem:[%s1278_s1 + $0x28] sm:$0x7f]  ;;  %v1156_v35 = vld [vmem:[%s1278_s1 + $0x30] sm:$0x7f] }
  0x17   : > { %v1137_v24 = vld [vmem:[%s1278_s1 + $0x20] sm:$0x7f]  ;;  %v279_v26 = vmul.f32 %v271_v19, %v1120_v15  ;;  %v274_v31 = vld [vmem:[#allocation2 + $0x55] sm:$0x1]  ;;  %v297_v40 = vrot.slane %v1107_v12, 1  ;;  %v302_v44 = vrot.slane %v1112_v13, 1 }
  0x18   : > { %v273_v25 = vld [vmem:[#allocation2 + $0x45] sm:$0x1]  ;;  %v278_v28 = vadd.f32 %v277_v22, %v276_v21  ;;  %v985_v34 = vld [vmem:[%s1279_s2 + $0x20] ss:$8 sps:$4 sm:$0xff]   ;;  %v986_v37 = vld [vmem:[%s1279_s2 + $0x14] ss:$8 sps:$4 sm:$0xff]   ;;  %v285_v39 = vmul.f32 %v274_v31, %v1147_v30 }
  0x19   : > { %v272_v20 = vld [vmem:[#allocation2 + $0x35] sm:$0x1]  ;;  %622 = vmatpush1.bf16.msra.mxu0 %v979_v10  ;;  %v983_v27 = vld [vmem:[%s1279_s2 + $0x24] ss:$8 sps:$4 sm:$0xff]   ;;  %v283_v33 = vmul.f32 %v273_v25, %v1137_v24  ;;  %v988_v45 = vld [vmem:[%s1279_s2 + $0x10] ss:$8 sps:$4 sm:$0xff]  }
  0x1a   : > { %623 = vmatprep.subr.bf16.mxu0 %v980_v14  ;;  %v281_v29 = vmul.f32 %v272_v20, %v1127_v16  ;;  %v280_v32 = vadd.f32 %v279_v26, %v278_v28  ;;  %v275_v36 = vld [vmem:[#allocation2 + $0x65] sm:$0x1]  ;;  %v289_v41 = vld [vmem:[#allocation2 + $0x6] sm:$0x1]  ;;  %v290_v46 = vld [vmem:[#allocation2 + $0x16] sm:$0x1] }
  0x1b   : > { %v287_v43 = vmul.f32 %v275_v36, %v1156_v35  ;;  %v989_v47 = vld [vmem:[%s1279_s2 + $0x4] ss:$8 sps:$4 sm:$0xff]   ;;  %v299_v49 = vmul.f32 %v297_v40, %v289_v41  ;;  %v307_v50 = vrot.slane %v1120_v15, 1  ;;  %v304_v53 = vmul.f32 %v302_v44, %v290_v46  ;;  %v991_v55 = vld [vmem:[%s1279_s2] ss:$8 sps:$4 sm:$0xff]  }
  0x1c   : > { %v282_v38 = vadd.f32 %v281_v29, %v280_v32  ;;  %v291_v51 = vld [vmem:[#allocation2 + $0x26] sm:$0x1]  ;;  %v312_v54 = vrot.slane %v1127_v16, 1  ;;  %v292_v56 = vld [vmem:[#allocation2 + $0x36] sm:$0x1]  ;;  %v317_v59 = vrot.slane %v1137_v24, 1 }
  0x1d   : > { %624 = vmatpush1.bf16.msra.mxu0 %v982_v23  ;;  %v309_v58 = vmul.f32 %v307_v50, %v291_v51  ;;  %v293_v60 = vld [vmem:[#allocation2 + $0x46] sm:$0x1]  ;;  %v322_v63 = vrot.slane %v1147_v30, 1  ;;  %v294_v0 = vld [vmem:[#allocation2 + $0x56] sm:$0x1]  ;;  %v327_v3 = vrot.slane %v1156_v35, 1 }
  0x1e   : > { %625 = vmatprep.subr.bf16.mxu0 %v983_v27  ;;  %v284_v42 = vadd.f32 %v283_v33, %v282_v38  ;;  %v314_v62 = vmul.f32 %v312_v54, %v292_v56  ;;  %v319_v2 = vmul.f32 %v317_v59, %v293_v60  ;;  %v295_v4 = vld [vmem:[#allocation2 + $0x66] sm:$0x1]  ;;  %v338_v7 = vrot.slane %v1107_v12, 2  ;;  %v331_v8 = vld [vmem:[#allocation2 + $0x7] sm:$0x1] }
  0x1f   : > { %v324_v6 = vmul.f32 %v322_v63, %v294_v0  ;;  %v329_v14 = vmul.f32 %v327_v3, %v295_v4  ;;  %v332_v17 = vld [vmem:[#allocation2 + $0x17] sm:$0x1]  ;;  %v342_v18 = vrot.slane %v1112_v13, 2  ;;  %v333_v20 = vld [vmem:[#allocation2 + $0x27] sm:$0x1]  ;;  %v346_v22 = vrot.slane %v1120_v15, 2 }
  0x20   : > { %v286_v48 = vadd.f32 %v285_v39, %v284_v42  ;;  %v340_v21 = vmul.f32 %v338_v7, %v331_v8  ;;  %v334_v23 = vld [vmem:[#allocation2 + $0x37] sm:$0x1]  ;;  %v350_v25 = vrot.slane %v1127_v16, 2  ;;  %v354_v26 = vrot.slane %v1137_v24, 2  ;;  %v335_v32 = vld [vmem:[#allocation2 + $0x47] sm:$0x1] }
  0x21   : > { %626 = vmatpush1.bf16.msra.mxu0 %v985_v34  ;;  %v358_v27 = vrot.slane %v1147_v30, 2  ;;  %v362_v28 = vrot.slane %v1156_v35, 2  ;;  %v344_v31 = vmul.f32 %v342_v18, %v332_v17  ;;  %v348_v34 = vmul.f32 %v346_v22, %v333_v20  ;;  %v336_v36 = vld [vmem:[#allocation2 + $0x57] sm:$0x1]  ;;  %v337_v39 = vld [vmem:[#allocation2 + $0x67] sm:$0x1] }
  0x22   : > { %627 = vmatprep.subr.bf16.mxu0 %v986_v37  ;;  %v288_v52 = vadd.f32 %v287_v43, %v286_v48  ;;  %v352_v38 = vmul.f32 %v350_v25, %v334_v23  ;;  %v356_v41 = vmul.f32 %v354_v26, %v335_v32  ;;  %v373_v44 = vrot.slane %v1107_v12, 3  ;;  %v403_v23 = vld [vmem:[#allocation2 + $0x29] sm:$0x1] }
  0x23   : > { %v360_v43 = vmul.f32 %v358_v27, %v336_v36  ;;  %v377_v48 = vrot.slane %v1112_v13, 3  ;;  %v385_v56 = vrot.slane %v1127_v16, 3  ;;  %v389_v60 = vrot.slane %v1137_v24, 3 }
  0x24   : > { %v300_v57 = vadd.f32 %v299_v49, %v288_v52  ;;  %v367_v49 = vld [vmem:[#allocation2 + $0x18] sm:$0x1]  ;;  %v381_v52 = vrot.slane %v1120_v15, 3  ;;  %v393_v0 = vrot.slane %v1147_v30, 3  ;;  %v397_v4 = vrot.slane %v1156_v35, 3 }
  0x25   : > { %628 = vmatpush1.bf16.msra.mxu0 %v988_v45  ;;  %v366_v45 = vld [vmem:[#allocation2 + $0x8] sm:$0x1]  ;;  %v408_v8 = vrot.slane %v1107_v12, 4  ;;  %v412_v18 = vrot.slane %v1112_v13, 4  ;;  %v416_v22 = vrot.slane %v1120_v15, 4  ;;  %v420_v27 = vrot.slane %v1127_v16, 4 }
  0x26   : > { %629 = vmatprep.subr.bf16.mxu0 %v989_v47  ;;  %v305_v61 = vadd.f32 %v304_v53, %v300_v57  ;;  %v364_v47 = vmul.f32 %v362_v28, %v337_v39  ;;  %v375_v51 = vmul.f32 %v373_v44, %v366_v45  ;;  %v368_v53 = vld [vmem:[#allocation2 + $0x28] sm:$0x1]  ;;  %v369_v57 = vld [vmem:[#allocation2 + $0x38] sm:$0x1]  ;;  %v404_v28 = vld [vmem:[#allocation2 + $0x39] sm:$0x1] }
  0x27   : > { %v383_v59 = vmul.f32 %v381_v52, %v368_v53  ;;  %v387_v63 = vmul.f32 %v385_v56, %v369_v57  ;;  %v424_v32 = vrot.slane %v1137_v24, 4  ;;  %v422_v36 = vmul.f32 %v420_v27, %v404_v28 }
  0x28   : > { %v310_v1 = vadd.f32 %v309_v58, %v305_v61  ;;  %v370_v61 = vld [vmem:[#allocation2 + $0x48] sm:$0x1]  ;;  %v443_v45 = vrot.slane %v1107_v12, 5  ;;  %v451_v53 = vrot.slane %v1120_v15, 5  ;;  %v455_v57 = vrot.slane %v1127_v16, 5 }
  0x29   : > { %630 = vmatpush1.bf16.msra.mxu0 %v991_v55  ;;  %v379_v55 = vmul.f32 %v377_v48, %v367_v49  ;;  %v391_v3 = vmul.f32 %v389_v60, %v370_v61  ;;  %v447_v49 = vrot.slane %v1112_v13, 5  ;;  %v459_v61 = vrot.slane %v1137_v24, 5 }
  0x2a   : > { %v315_v5 = vadd.f32 %v314_v62, %v310_v1  ;;  %v371_v1 = vld [vmem:[#allocation2 + $0x58] sm:$0x1]  ;;  %v490_v28 = vrot.slane %v1127_v16, 6  ;;  %vm848_vm1 = vsmask.f32 256 }
  0x2b   : > { %v395_v7 = vmul.f32 %v393_v0, %v371_v1  ;;  %v463_v1 = vrot.slane %v1147_v30, 5  ;;  %vm849_vm2 = vmand %vm847_vm0, %vm848_vm1 }
  0x2c   : > { %v320_v10 = vadd.f32 %v319_v2, %v315_v5  ;;  %v372_v5 = vld [vmem:[#allocation2 + $0x68] sm:$0x1] }
  0x2d   : > { %v399_v17 = vmul.f32 %v397_v4, %v372_v5  ;;  %v467_v5 = vrot.slane %v1156_v35, 5 }
  0x2e   : > { %v325_v19 = vadd.f32 %v324_v6, %v320_v10  ;;  %v401_v10 = vld [vmem:[#allocation2 + $0x9] sm:$0x1] }
  0x30   : > { %v330_v29 = vadd.f32 %v329_v14, %v325_v19  ;;  %v402_v19 = vld [vmem:[#allocation2 + $0x19] sm:$0x1] }
  0x31   : > { %v414_v26 = vmul.f32 %v412_v18, %v402_v19  ;;  %v482_v19 = vrot.slane %v1112_v13, 6  ;;  %v498_v13 = vrot.slane %v1147_v30, 6 }
  0x32   : > { %v341_v33 = vadd.f32 %v340_v21, %v330_v29  ;;  %v410_v21 = vmul.f32 %v408_v8, %v401_v10  ;;  %v478_v10 = vrot.slane %v1107_v12, 6  ;;  %v494_v12 = vrot.slane %v1137_v24, 6  ;;  %v992_v24 = vld [vmem:[%s1281_s4 + $0x78] sm:$0xff]  }
  0x33   : > { %936 = vmatprep.subr.bf16.mxu1 %v992_v24 }
  0x34   : > { %v345_v37 = vadd.f32 %v344_v31, %v341_v33  ;;  %v418_v31 = vmul.f32 %v416_v22, %v403_v23  ;;  %v405_v33 = vld [vmem:[#allocation2 + $0x49] sm:$0x1]  ;;  %v486_v23 = vrot.slane %v1120_v15, 6  ;;  %v502_v15 = vrot.slane %v1156_v35, 6 }
  0x36   : > { %v349_v40 = vadd.f32 %v348_v34, %v345_v37  ;;  %v428_v37 = vrot.slane %v1147_v30, 4  ;;  %v993_v30 = vld [vmem:[%s1281_s4 + $0x38] sm:$0xff]  }
  0x37   : > { %937 = vmatpush3.bf16.msra.mxu1 %v993_v30 }
  0x38   : > { %v353_v42 = vadd.f32 %v352_v38, %v349_v40  ;;  %v406_v38 = vld [vmem:[#allocation2 + $0x59] sm:$0x1]  ;;  %v426_v40 = vmul.f32 %v424_v32, %v405_v33  ;;  %v475_v33 = vld [vmem:[#allocation2 + $0x4b] sm:$0x1] }
  0x39   : > { %v430_v44 = vmul.f32 %v428_v37, %v406_v38  ;;  %v476_v37 = vld [vmem:[#allocation2 + $0x5b] sm:$0x1] }
  0x3a   : > { %v357_v46 = vadd.f32 %v356_v41, %v353_v42  ;;  %v432_v41 = vrot.slane %v1156_v35, 4  ;;  %v407_v42 = vld [vmem:[#allocation2 + $0x69] sm:$0x1]  ;;  %v994_v35 = vld [vmem:[%s1281_s4 + $0x70] sm:$0xff]  }
  0x3b   : > { %938 = vmatprep.subr.bf16.mxu1 %v994_v35 }
  0x3c   : > { %v361_v50 = vadd.f32 %v360_v43, %v357_v46  ;;  %v436_v46 = vld [vmem:[#allocation2 + $0xa] sm:$0x1]  ;;  %v434_v48 = vmul.f32 %v432_v41, %v407_v42  ;;  %v500_v42 = vmul.f32 %v498_v13, %v476_v37  ;;  %v708_v37 = vld [vmem:[%s1282_s5] sm:$0x1] }
  0x3d   : > { %v445_v52 = vmul.f32 %v443_v45, %v436_v46 }
  0x3e   : > { %v365_v54 = vadd.f32 %v364_v47, %v361_v50  ;;  %v437_v50 = vld [vmem:[#allocation2 + $0x1a] sm:$0x1] }
  0x3f   : > { %v449_v56 = vmul.f32 %v447_v49, %v437_v50  ;;  %v997_v49 = vld [vmem:[%s1281_s4 + $0x28] sm:$0xff]   ;;  %v998_v50 = vld [vmem:[%s1281_s4 + $0x60] sm:$0xff]  }
  0x40   : > { %v376_v58 = vadd.f32 %v375_v51, %v365_v54  ;;  %v438_v54 = vld [vmem:[#allocation2 + $0x2a] sm:$0x1] }
  0x41   : > { %v453_v60 = vmul.f32 %v451_v53, %v438_v54  ;;  %v1001_v53 = vld [vmem:[%s1281_s4 + $0x18] sm:$0xff]   ;;  %v1002_v54 = vld [vmem:[%s1281_s4 + $0x50] sm:$0xff]  }
  0x42   : > { %v380_v62 = vadd.f32 %v379_v55, %v376_v58  ;;  %v439_v58 = vld [vmem:[#allocation2 + $0x3a] sm:$0x1] }
  0x43   : > { %v457_v0 = vmul.f32 %v455_v57, %v439_v58  ;;  %v1005_v57 = vld [vmem:[%s1281_s4 + $0x8] sm:$0xff]   ;;  %v1006_v58 = vld [vmem:[%s1281_s4 + $0x40] sm:$0xff]  }
  0x44   : > { %v384_v2 = vadd.f32 %v383_v59, %v380_v62  ;;  %v440_v62 = vld [vmem:[#allocation2 + $0x4a] sm:$0x1] }
  0x45   : > { %v461_v4 = vmul.f32 %v459_v61, %v440_v62 }
  0x46   : > { %v388_v6 = vadd.f32 %v387_v63, %v384_v2  ;;  %v441_v2 = vld [vmem:[#allocation2 + $0x5a] sm:$0x1] }
  0x47   : > { %v465_v8 = vmul.f32 %v463_v1, %v441_v2 }
  0x48   : > { %v392_v14 = vadd.f32 %v391_v3, %v388_v6  ;;  %v442_v6 = vld [vmem:[#allocation2 + $0x6a] sm:$0x1] }
  0x49   : > { %v469_v18 = vmul.f32 %v467_v5, %v442_v6 }
  0x4a   : > { %v396_v20 = vadd.f32 %v395_v7, %v392_v14  ;;  %v471_v14 = vld [vmem:[#allocation2 + $0xb] sm:$0x1] }
  0x4b   : > { %v480_v22 = vmul.f32 %v478_v10, %v471_v14 }
  0x4c   : > { %v400_v25 = vadd.f32 %v399_v17, %v396_v20  ;;  %v472_v20 = vld [vmem:[#allocation2 + $0x1b] sm:$0x1] }
  0x4d   : > { %v484_v27 = vmul.f32 %v482_v19, %v472_v20 }
  0x4e   : > { %v411_v29 = vadd.f32 %v410_v21, %v400_v25  ;;  %v473_v25 = vld [vmem:[#allocation2 + $0x2b] sm:$0x1] }
  0x4f   : > { %v488_v32 = vmul.f32 %v486_v23, %v473_v25 }
  0x50   : > { %v415_v34 = vadd.f32 %v414_v26, %v411_v29  ;;  %v474_v29 = vld [vmem:[#allocation2 + $0x3b] sm:$0x1] }
  0x52   : > { %v419_v39 = vadd.f32 %v418_v31, %v415_v34 }
  0x54   : > { %v423_v43 = vadd.f32 %v422_v36, %v419_v39  ;;  %v492_v36 = vmul.f32 %v490_v28, %v474_v29  ;;  %v496_v39 = vmul.f32 %v494_v12, %v475_v33 }
  0x56   : > { %v427_v47 = vadd.f32 %v426_v40, %v423_v43  ;;  %v477_v40 = vld [vmem:[#allocation2 + $0x6b] sm:$0x1] }
  0x57   : > { %v504_v16 = vmul.f32 %v502_v15, %v477_v40 }
  0x58   : > { %v431_v51 = vadd.f32 %v430_v44, %v427_v47  ;;  %v995_v47 = vld [vmem:[%s1281_s4 + $0x30] sm:$0xff]  }
  0x59   : > { %939 = vmatpush3.bf16.msra.mxu1 %v995_v47 }
  0x5a   : > { %v435_v55 = vadd.f32 %v434_v48, %v431_v51  ;;  %v996_v48 = vld [vmem:[%s1281_s4 + $0x68] sm:$0xff]   ;;  %v999_v51 = vld [vmem:[%s1281_s4 + $0x20] sm:$0xff]  }
  0x5b   : > { %940 = vmatprep.subr.bf16.mxu1 %v996_v48 }
  0x5c   : > { %v446_v59 = vadd.f32 %v445_v52, %v435_v55  ;;  %v1000_v52 = vld [vmem:[%s1281_s4 + $0x58] sm:$0xff]   ;;  %v1003_v55 = vld [vmem:[%s1281_s4 + $0x10] sm:$0xff]  }
  0x5d   : > { %941 = vmatpush3.bf16.msra.mxu1 %v997_v49 }
  0x5e   : > { %v450_v63 = vadd.f32 %v449_v56, %v446_v59  ;;  %942 = vmatprep.subr.bf16.mxu1 %v998_v50  ;;  %v1004_v56 = vld [vmem:[%s1281_s4 + $0x48] sm:$0xff]   ;;  %v1007_v59 = vld [vmem:[%s1281_s4] sm:$0xff]  }
  0x60   : > { %v454_v3 = vadd.f32 %v453_v60, %v450_v63  ;;  %v605_v60 = vlaneseq  ;;  %v523_v63 = vld [vmem:[%s1280_s3] sm:$0x3] }
  0x61   : > { %943 = vmatpush3.bf16.msra.mxu1 %v999_v51 }
  0x62   : > { %v458_v7 = vadd.f32 %v457_v0, %v454_v3  ;;  %944 = vmatprep.subr.bf16.mxu1 %v1000_v52  ;;  %v606_v61 = vshrl.u32 %v605_v60, 7 }
  0x64   : > { %v462_v17 = vadd.f32 %v461_v4, %v458_v7  ;;  %v607_v62 = vsub.s32 0, %v606_v61  ;;  %v611_v0 = vsub.s32 1, %v606_v61 }
  0x65   : > { %945 = vmatpush3.bf16.msra.mxu1 %v1001_v53 }
  0x66   : > { %v466_v21 = vadd.f32 %v465_v8, %v462_v17  ;;  %946 = vmatprep.subr.bf16.mxu1 %v1002_v54  ;;  %v608_v1 = vrot.slane %v523_v63, %v607_v62  ;;  %v612_v2 = vrot.slane %v523_v63, %v611_v0 }
  0x68   : > { %v470_v26 = vadd.f32 %v469_v18, %v466_v21 }
  0x69   : > { %947 = vmatpush3.bf16.msra.mxu1 %v1003_v55 }
  0x6a   : > { %v481_v31 = vadd.f32 %v480_v22, %v470_v26  ;;  %948 = vmatprep.subr.bf16.mxu1 %v1004_v56 }
  0x6c   : > { %v485_v34 = vadd.f32 %v484_v27, %v481_v31 }
  0x6d   : > { %949 = vmatpush3.bf16.msra.mxu1 %v1005_v57 }
  0x6e   : > { %v489_v38 = vadd.f32 %v488_v32, %v485_v34  ;;  %950 = vmatprep.subr.bf16.mxu1 %v1006_v58 }
  0x70   : > { %v493_v41 = vadd.f32 %v492_v36, %v489_v38 }
  0x71   : > { %951 = vmatpush3.bf16.msra.mxu1 %v1007_v59 }
  0x72   : > { %v497_v43 = vadd.f32 %v496_v39, %v493_v41 }
  0x74   : > { %v501_v44 = vadd.f32 %v500_v42, %v497_v43  ;;  %v850_v43 = vld [vmem:[%s241_s23] sm:$0x1] }
  0x76   : > { %v505_v45 = vadd.f32 %v504_v16, %v501_v44 }
  0x78   : > { %v506_v46 = vpack.c.bf16 %v505_v45, %v505_v45 }
  0x7a   : > { %648 = vmatmul.mubr.bf16.vlgmr.msra.gmra.mxu0 %v506_v46 }
 0x13a   : > { %v649_v3 = vpop.f32.mrf.mxu0 }
 0x13b   : > { %v650_v4 = vadd.f32 %v649_v3, %v608_v1 }
 0x13c   : > { %v651_v5 = vpop.f32.mrf.mxu0 }
 0x13d   : > { %v658_v6 = vmul.f32 0.044715, %v650_v4  ;;  %v652_v7 = vadd.f32 %v651_v5, %v612_v2  ;;  %v656_v29 = vmul.f32 0.5, %v650_v4 }
 0x13e   : > { %v653_v8 = vpop.f32.mrf.mxu0 }
 0x13f   : > { %v660_v10 = vmul.f32 %v658_v6, %v650_v4  ;;  %v659_v14 = vmul.f32 0.044715, %v652_v7  ;;  %v657_v31 = vmul.f32 0.5, %v652_v7 }
 0x140   : > { %v654_v17 = vpop.f32.mrf.mxu0 }
 0x141   : > { %v661_v18 = vmul.f32 %v659_v14, %v652_v7  ;;  %v662_v19 = vmul.f32 %v660_v10, %v650_v4 }
 0x143   : > { %v663_v20 = vmul.f32 %v661_v18, %v652_v7  ;;  %v664_v21 = vadd.f32 %v662_v19, %v650_v4 }
 0x145   : > { %v665_v22 = vadd.f32 %v663_v20, %v652_v7  ;;  %v666_v23 = vmul.f32 0.7978846, %v664_v21 }
 0x147   : > { %v667_v25 = vmul.f32 0.7978846, %v665_v22  ;;  %1008 = vtanh.f32 %v666_v23 }
 0x149   : > { %1010 = vtanh.f32 %v667_v25 }
 0x154   : > { %v1009_v26 = vpop.eup %1008 }
 0x155   : > { %v670_v27 = vadd.f32 1.0, %v1009_v26 }
 0x156   : > { %v1011_v28 = vpop.eup %1010 }
 0x157   : > { %v671_v32 = vadd.f32 1.0, %v1011_v28  ;;  %v672_v12 = vmul.f32 %v670_v27, %v656_v29 }
 0x159   : > { %v673_v33 = vmul.f32 %v671_v32, %v657_v31  ;;  %v674_v36 = vpack.c.bf16 %v672_v12, %v672_v12 }
 0x15b   : > { %v675_v34 = vpack.c.bf16 %v673_v33, %v673_v33 }
 0x15d   : > { %837 = vmatprep.mubr.bf16.mxu1 %v675_v34 }
 0x15e   : > { %838 = vmatmul.mubr.bf16.vlgmr.msra.gmra.mxu1 %v674_v36 }
 0x21e   : > { %v952_v13 = vpop.f32.mrf.mxu1 }
 0x220   : > { %v953_v38 = vpop.f32.mrf.mxu1 }
 0x221   : > { %v954_v39 = vadd.f32 %v953_v38, %v952_v13 }
 0x222   : > { %v955_v15 = vpop.f32.mrf.mxu1 }
 0x223   : > { %v840_v40 = vadd.f32 %v954_v39, %v708_v37 }
 0x224   : > { %v956_v41 = vpop.f32.mrf.mxu1 }
 0x225   : > { %v845_v42 = vadd.f32 %v840_v40, %v244_v11 }
 0x227   : > { %v846_v16 = vpack.c.bf16 %v845_v42, %v845_v42 }
 0x229   : > { %v851_v44 = vsel %vm849_vm2, %v846_v16, %v850_v43 }
 0x22a   : > { %852 = vst [vmem:[%s241_s23] sm:$0x1] %v851_v44 }
 0x22b PF: > { %s16_s21 = sadd.s32 1, %s1018_s21  }
 0x22c   : > { %p13_p4 = scmp.ge.s32.totalorder %s16_s21, 4  }
 0x22e   :  { %15 = sbr.rel (!%p13_p4) target bundleno = 1 (0x1), region = 76 }

</bundles_post_ra>
